<compile_context>
chip_gen: v7x
topology: tpu7x:2x2x1
jax: 0.10.0
libtpu: 0.0.40
codegen_flags: <defaults>
</compile_context>

<pallas_src>
import functools
import math

import jax
import jax.numpy as jnp
from jax.experimental import pallas as pl
from jax.experimental.pallas import tpu as pltpu

EPS = 1e-5          # nn.BatchNorm1d default
NEG_PAD = -1e30     # bias for the padded fc6 lanes -> exp() underflows to exactly 0


# ----------------------------------------------------------------------------
# Pallas kernel: fused MLP (branches + residual + trunk + softmax)
# ----------------------------------------------------------------------------
def customnet_kernel(
    x1_ref, x2_ref, x3_ref,
    w1_ref, b1_ref, w12_ref, b12_ref, w13_ref, b13_ref,
    w2_ref, b2_ref, w22_ref, b22_ref, w23_ref, b23_ref,
    wrA_ref, wrB_ref, wrC_ref, bres_ref,
    w3a_ref, w3b_ref, w3c_ref, b3_ref,
    w4_ref, b4_ref, w5_ref, b5_ref, w6_ref, b6_ref,
    out_ref,
):
    def mm(x, w_ref):
        # bf16 x bf16 on the MXU, f32 accumulation.
        return jnp.dot(x.astype(jnp.bfloat16), w_ref[...],
                       preferred_element_type=jnp.float32)

    def dense_relu(x, w_ref, b_ref):
        return jnp.maximum(mm(x, w_ref) + b_ref[...], 0.0)

    # Branch 1 / 2 / 3: fc1* -> (folded bn1*) -> relu -> fc2* -> (folded bn2*) -> relu
    h1 = dense_relu(x1_ref[...], w1_ref, b1_ref)      # (TN, 512)
    h2 = dense_relu(x2_ref[...], w12_ref, b12_ref)    # (TN, 512)
    h3 = dense_relu(x3_ref[...], w13_ref, b13_ref)    # (TN, 512)

    h1 = dense_relu(h1, w2_ref, b2_ref)               # (TN, 256)
    h2 = dense_relu(h2, w22_ref, b22_ref)             # (TN, 256)
    h3 = dense_relu(h3, w23_ref, b23_ref)             # (TN, 256)

    # Residual block without materializing the concatenation:
    #   cat = [h1 | h2 | h3]; d = relu(fcRes_folded(cat)); res = d + cat
    d = jnp.maximum(
        mm(h1, wrA_ref) + mm(h2, wrB_ref) + mm(h3, wrC_ref) + bres_ref[...], 0.0
    )                                                 # (TN, 768)
    r1 = d[:, 0:256] + h1
    r2 = d[:, 256:512] + h2
    r3 = d[:, 512:768] + h3

    # Trunk: fc3..fc5 with folded BN + ReLU, then padded fc6
    t = jnp.maximum(
        mm(r1, w3a_ref) + mm(r2, w3b_ref) + mm(r3, w3c_ref) + b3_ref[...], 0.0
    )                                                 # (TN, 512)
    t = dense_relu(t, w4_ref, b4_ref)                 # (TN, 256)
    t = dense_relu(t, w5_ref, b5_ref)                 # (TN, 128)
    logits = mm(t, w6_ref) + b6_ref[...]              # (TN, 128) lane-dense (cols 16.. padded)

    # softmax over the feature axis; padded lanes contribute exp(-1e30 - m) == 0
    m = jnp.max(logits, axis=1, keepdims=True)
    e = jnp.exp(logits - m)
    s = jnp.sum(e, axis=1, keepdims=True)
    out_ref[...] = e * pl.reciprocal(s, approx=True)


# ----------------------------------------------------------------------------
# Host-side parameter construction, BN folding and kernel-layout preparation
# ----------------------------------------------------------------------------
def _fold_linear_bn(w, b, gamma, beta, mean, var):
    """Fold eval-mode BatchNorm1d into the preceding Linear.

    PyTorch: y = bn(x @ W.T + b) = (x @ W.T + b - mean) * gamma/sqrt(var+eps) + beta
    Returns (in, out) weight and (out,) bias such that y = x @ W_eff + b_eff.
    """
    s = gamma / jnp.sqrt(var + EPS)
    w_eff = w.T * s[None, :]
    b_eff = (b - mean) * s + beta
    return w_eff.astype(jnp.float32), b_eff.astype(jnp.float32)


def _plain_linear(w, b):
    return w.T.astype(jnp.float32), b.astype(jnp.float32)


_LAYER_DIMS = {
    "fc1": (768, 512), "fc1_2": (768, 512), "fc1_3": (768, 512),
    "fc2": (512, 256), "fc2_2": (512, 256), "fc2_3": (512, 256),
    "fcRes": (768, 768),
    "fc3": (768, 512), "fc4": (512, 256), "fc5": (256, 128),
    "fc6": (128, 16),
}
_HAS_BN = {name: (name != "fc6") for name in _LAYER_DIMS}


def make_params(key):
    """Deterministic synthetic folded parameters matching CustomNet.__init__ shapes.

    Returns dict: name -> (w_eff (in,out) f32, b_eff (out,) f32) with BN already folded.
    """
    params = {}
    for name, (din, dout) in _LAYER_DIMS.items():
        key, kw, kb, kg, kbe, km, kv = jax.random.split(key, 7)
        w = jax.random.normal(kw, (dout, din), jnp.float32) * 0.05   # PyTorch (out, in)
        b = jax.random.normal(kb, (dout,), jnp.float32) * 0.05
        if _HAS_BN[name]:
            gamma = jax.random.uniform(kg, (dout,), jnp.float32, 0.5, 1.5)
            beta = jax.random.normal(kbe, (dout,), jnp.float32) * 0.1
            mean = jax.random.normal(km, (dout,), jnp.float32) * 0.1
            var = jax.random.uniform(kv, (dout,), jnp.float32, 0.5, 1.5)
            params[name] = _fold_linear_bn(w, b, gamma, beta, mean, var)
        else:
            params[name] = _plain_linear(w, b)
    return params


def prepare_kernel_params(params):
    """Split / pad / cast folded params into the flat tuple the kernel expects.

    Weights -> bf16 (halves HBM traffic, full-rate MXU); biases stay f32 (1, out).
    fcRes / fc3 weights are split into three 256-row blocks (removes the in-kernel concat).
    fc6 is padded to 128 output columns (zero weights, -1e30 bias in pad lanes).
    """
    flat = []

    def add_wb(w, b):
        flat.append(jnp.asarray(w, jnp.bfloat16))
        flat.append(jnp.asarray(b, jnp.float32).reshape(1, -1))

    for name in ("fc1", "fc1_2", "fc1_3", "fc2", "fc2_2", "fc2_3"):
        w, b = params[name]
        add_wb(w, b)

    w_res, b_res = params["fcRes"]                       # (768,768), (768,)
    for blk in (w_res[0:256], w_res[256:512], w_res[512:768]):
        flat.append(jnp.asarray(blk, jnp.bfloat16))
    flat.append(jnp.asarray(b_res, jnp.float32).reshape(1, -1))

    w3, b3 = params["fc3"]                               # (768,512), (512,)
    for blk in (w3[0:256], w3[256:512], w3[512:768]):
        flat.append(jnp.asarray(blk, jnp.bfloat16))
    flat.append(jnp.asarray(b3, jnp.float32).reshape(1, -1))

    for name in ("fc4", "fc5"):
        w, b = params[name]
        add_wb(w, b)

    w6, b6 = params["fc6"]                               # (128,16), (16,)
    w6p = jnp.zeros((128, 128), jnp.float32).at[:, :16].set(w6)
    b6p = jnp.full((128,), NEG_PAD, jnp.float32).at[:16].set(b6)
    flat.append(jnp.asarray(w6p, jnp.bfloat16))
    flat.append(b6p.reshape(1, -1))

    return tuple(flat)


def _round_up(x, m):
    return ((x + m - 1) // m) * m


# ----------------------------------------------------------------------------
# Forward wrapper: batch grid + resident weights + lane-dense padded output
# ----------------------------------------------------------------------------
@functools.partial(jax.jit, static_argnames=("tile_n",))
def customnet_forward(x, x_2, x_3, flat_params, tile_n=512):
    """Eval-mode forward of CustomNet. x, x_2, x_3: anything flattening to (N, 768)."""
    x = x.reshape(-1, 768).astype(jnp.float32)
    x_2 = x_2.reshape(-1, 768).astype(jnp.float32)
    x_3 = x_3.reshape(-1, 768).astype(jnp.float32)
    n = x.shape[0]

    # Batch tile: multiple of 8 sublanes (we use multiples of 128 for full MXU rows).
    tn = min(tile_n, _round_up(n, 128))
    n_pad = _round_up(n, tn)
    if n_pad != n:
        pad = ((0, n_pad - n), (0, 0))
        x = jnp.pad(x, pad)
        x_2 = jnp.pad(x_2, pad)
        x_3 = jnp.pad(x_3, pad)
    grid = (n_pad // tn,)

    x_spec = pl.BlockSpec((tn, 768), lambda i: (i, 0))

    def const_spec(arr):
        # Full-array block with a constant index_map -> stays resident, DMA'd once.
        return pl.BlockSpec(arr.shape, lambda i: (0, 0))

    in_specs = [x_spec, x_spec, x_spec] + [const_spec(p) for p in flat_params]
    out_spec = pl.BlockSpec((tn, 128), lambda i: (i, 0))

    # Advisory cost estimate for the XLA scheduler.
    macs_per_row = (3 * 768 * 512 + 3 * 512 * 256 + 768 * 768
                    + 768 * 512 + 512 * 256 + 256 * 128 + 128 * 128)
    param_bytes = sum(math.prod(p.shape) * jnp.dtype(p.dtype).itemsize
                      for p in flat_params)
    cost = pl.CostEstimate(
        flops=2 * n_pad * macs_per_row,
        transcendentals=n_pad * 128,
        bytes_accessed=3 * n_pad * 768 * 4 + n_pad * 128 * 4 + param_bytes,
    )

    out = pl.pallas_call(
        customnet_kernel,
        out_shape=jax.ShapeDtypeStruct((n_pad, 128), jnp.float32),
        grid_spec=pltpu.PrefetchScalarGridSpec(
            num_scalar_prefetch=0,
            grid=grid,
            in_specs=in_specs,
            out_specs=out_spec,
        ),
        compiler_params=pltpu.CompilerParams(
            dimension_semantics=("parallel",),
            vmem_limit_bytes=48 << 20,
        ),
        cost_estimate=cost,
    )(x, x_2, x_3, *flat_params)

    # Strip batch padding and the 112 padded softmax lanes (all exactly 0).
    return out[:n, :16]


# ----------------------------------------------------------------------------
# Pure-JAX reference (f32, folded params) for validation
# ----------------------------------------------------------------------------
def customnet_reference(x, x_2, x_3, params):
    x = x.reshape(-1, 768).astype(jnp.float32)
    x_2 = x_2.reshape(-1, 768).astype(jnp.float32)
    x_3 = x_3.reshape(-1, 768).astype(jnp.float32)

    def dense(h, name):
        w, b = params[name]
        return h @ w + b[None, :]

    relu = lambda v: jnp.maximum(v, 0.0)
    h1 = relu(dense(relu(dense(x, "fc1")), "fc2"))
    h2 = relu(dense(relu(dense(x_2, "fc1_2")), "fc2_2"))
    h3 = relu(dense(relu(dense(x_3, "fc1_3")), "fc2_3"))
    cat = jnp.concatenate([h1, h2, h3], axis=1)
    res = relu(dense(cat, "fcRes")) + cat
    t = relu(dense(res, "fc3"))
    t = relu(dense(t, "fc4"))
    t = relu(dense(t, "fc5"))
    logits = dense(t, "fc6")
    return jax.nn.softmax(logits, axis=1)


# ----------------------------------------------------------------------------
# Demo
# ----------------------------------------------------------------------------
if __name__ == "__main__":
    key = jax.random.PRNGKey(0)
    kp, kx1, kx2, kx3 = jax.random.split(key, 4)

    params = make_params(kp)
    kernel_params = prepare_kernel_params(params)

    batch = 8
    x = jax.random.normal(kx1, (batch, 768), jnp.float32)
    x_2 = jax.random.normal(kx2, (batch, 768), jnp.float32)
    x_3 = jax.random.normal(kx3, (batch, 768), jnp.float32)

    out = customnet_forward(x, x_2, x_3, kernel_params)
    out = jax.block_until_ready(out)

    assert out.shape == (batch, 16), out.shape
    assert bool(jnp.all(jnp.isfinite(out)))
    # softmax rows must sum to 1 (approx reciprocal -> loose tolerance)
    row_sums = jnp.sum(out, axis=1)
    assert bool(jnp.all(jnp.abs(row_sums - 1.0) < 2e-3)), row_sums
    # match the f32 reference within bf16-weight tolerance
    ref = customnet_reference(x, x_2, x_3, params)
    assert bool(jnp.max(jnp.abs(out - ref)) < 8e-2)

    print("KERNEL_OK")
</pallas_src>

<mosaic_0001>
module attributes {stable_mosaic.version = 11 : i64} {
  func.func @customnet_kernel(%arg0: i32, %arg1: memref<128x768xf32, #tpu.memory_space<vmem>>, %arg2: memref<128x768xf32, #tpu.memory_space<vmem>>, %arg3: memref<128x768xf32, #tpu.memory_space<vmem>>, %arg4: memref<768x512xbf16, #tpu.memory_space<vmem>>, %arg5: memref<1x512xf32, #tpu.memory_space<vmem>>, %arg6: memref<768x512xbf16, #tpu.memory_space<vmem>>, %arg7: memref<1x512xf32, #tpu.memory_space<vmem>>, %arg8: memref<768x512xbf16, #tpu.memory_space<vmem>>, %arg9: memref<1x512xf32, #tpu.memory_space<vmem>>, %arg10: memref<512x256xbf16, #tpu.memory_space<vmem>>, %arg11: memref<1x256xf32, #tpu.memory_space<vmem>>, %arg12: memref<512x256xbf16, #tpu.memory_space<vmem>>, %arg13: memref<1x256xf32, #tpu.memory_space<vmem>>, %arg14: memref<512x256xbf16, #tpu.memory_space<vmem>>, %arg15: memref<1x256xf32, #tpu.memory_space<vmem>>, %arg16: memref<256x768xbf16, #tpu.memory_space<vmem>>, %arg17: memref<256x768xbf16, #tpu.memory_space<vmem>>, %arg18: memref<256x768xbf16, #tpu.memory_space<vmem>>, %arg19: memref<1x768xf32, #tpu.memory_space<vmem>>, %arg20: memref<256x512xbf16, #tpu.memory_space<vmem>>, %arg21: memref<256x512xbf16, #tpu.memory_space<vmem>>, %arg22: memref<256x512xbf16, #tpu.memory_space<vmem>>, %arg23: memref<1x512xf32, #tpu.memory_space<vmem>>, %arg24: memref<512x256xbf16, #tpu.memory_space<vmem>>, %arg25: memref<1x256xf32, #tpu.memory_space<vmem>>, %arg26: memref<256x128xbf16, #tpu.memory_space<vmem>>, %arg27: memref<1x128xf32, #tpu.memory_space<vmem>>, %arg28: memref<128x128xbf16, #tpu.memory_space<vmem>>, %arg29: memref<1x128xf32, #tpu.memory_space<vmem>>, %arg30: memref<128x128xf32, #tpu.memory_space<vmem>>) attributes {dimension_semantics = [#tpu.dimension_semantics<parallel>], iteration_bounds = array<i64: 1>, scalar_prefetch = 0 : i64, scratch_operands = 0 : i64, tpu.core_type = #tpu.core_type<tc>, window_params = [{transform_indices = @transform_0, window_bounds = array<i64: 128, 768>}, {transform_indices = @transform_1, window_bounds = array<i64: 128, 768>}, {transform_indices = @transform_2, window_bounds = array<i64: 128, 768>}, {pipeline_mode = #tpu.pipeline_mode<synchronous>, transform_indices = @transform_3, window_bounds = array<i64: 768, 512>}, {pipeline_mode = #tpu.pipeline_mode<synchronous>, transform_indices = @transform_4, window_bounds = array<i64: 1, 512>}, {pipeline_mode = #tpu.pipeline_mode<synchronous>, transform_indices = @transform_5, window_bounds = array<i64: 768, 512>}, {pipeline_mode = #tpu.pipeline_mode<synchronous>, transform_indices = @transform_6, window_bounds = array<i64: 1, 512>}, {pipeline_mode = #tpu.pipeline_mode<synchronous>, transform_indices = @transform_7, window_bounds = array<i64: 768, 512>}, {pipeline_mode = #tpu.pipeline_mode<synchronous>, transform_indices = @transform_8, window_bounds = array<i64: 1, 512>}, {pipeline_mode = #tpu.pipeline_mode<synchronous>, transform_indices = @transform_9, window_bounds = array<i64: 512, 256>}, {pipeline_mode = #tpu.pipeline_mode<synchronous>, transform_indices = @transform_10, window_bounds = array<i64: 1, 256>}, {pipeline_mode = #tpu.pipeline_mode<synchronous>, transform_indices = @transform_11, window_bounds = array<i64: 512, 256>}, {pipeline_mode = #tpu.pipeline_mode<synchronous>, transform_indices = @transform_12, window_bounds = array<i64: 1, 256>}, {pipeline_mode = #tpu.pipeline_mode<synchronous>, transform_indices = @transform_13, window_bounds = array<i64: 512, 256>}, {pipeline_mode = #tpu.pipeline_mode<synchronous>, transform_indices = @transform_14, window_bounds = array<i64: 1, 256>}, {pipeline_mode = #tpu.pipeline_mode<synchronous>, transform_indices = @transform_15, window_bounds = array<i64: 256, 768>}, {pipeline_mode = #tpu.pipeline_mode<synchronous>, transform_indices = @transform_16, window_bounds = array<i64: 256, 768>}, {pipeline_mode = #tpu.pipeline_mode<synchronous>, transform_indices = @transform_17, window_bounds = array<i64: 256, 768>}, {pipeline_mode = #tpu.pipeline_mode<synchronous>, transform_indices = @transform_18, window_bounds = array<i64: 1, 768>}, {pipeline_mode = #tpu.pipeline_mode<synchronous>, transform_indices = @transform_19, window_bounds = array<i64: 256, 512>}, {pipeline_mode = #tpu.pipeline_mode<synchronous>, transform_indices = @transform_20, window_bounds = array<i64: 256, 512>}, {pipeline_mode = #tpu.pipeline_mode<synchronous>, transform_indices = @transform_21, window_bounds = array<i64: 256, 512>}, {pipeline_mode = #tpu.pipeline_mode<synchronous>, transform_indices = @transform_22, window_bounds = array<i64: 1, 512>}, {pipeline_mode = #tpu.pipeline_mode<synchronous>, transform_indices = @transform_23, window_bounds = array<i64: 512, 256>}, {pipeline_mode = #tpu.pipeline_mode<synchronous>, transform_indices = @transform_24, window_bounds = array<i64: 1, 256>}, {pipeline_mode = #tpu.pipeline_mode<synchronous>, transform_indices = @transform_25, window_bounds = array<i64: 256, 128>}, {pipeline_mode = #tpu.pipeline_mode<synchronous>, transform_indices = @transform_26, window_bounds = array<i64: 1, 128>}, {pipeline_mode = #tpu.pipeline_mode<synchronous>, transform_indices = @transform_27, window_bounds = array<i64: 128, 128>}, {pipeline_mode = #tpu.pipeline_mode<synchronous>, transform_indices = @transform_28, window_bounds = array<i64: 1, 128>}, {transform_indices = @transform_29, window_bounds = array<i64: 128, 128>}]} {
    %c0 = arith.constant 0 : index
    %c0_0 = arith.constant 0 : index
    %0 = vector.load %arg1[%c0, %c0_0] : memref<128x768xf32, #tpu.memory_space<vmem>>, vector<128x768xf32>
    %1 = arith.truncf %0 : vector<128x768xf32> to vector<128x768xbf16>
    %c0_1 = arith.constant 0 : index
    %c0_2 = arith.constant 0 : index
    %2 = vector.load %arg4[%c0_1, %c0_2] : memref<768x512xbf16, #tpu.memory_space<vmem>>, vector<768x512xbf16>
    %cst = arith.constant dense<0.000000e+00> : vector<128x512xf32>
    %3 = tpu.matmul %1, %2, %cst {dimension_numbers = #tpu.dot_dimension_numbers<[1], [0], [0], [1], [0, 0, 1, 1], [], []>} : vector<128x768xbf16>, vector<768x512xbf16>, vector<128x512xf32> -> vector<128x512xf32>
    %c0_3 = arith.constant 0 : index
    %c0_4 = arith.constant 0 : index
    %4 = vector.load %arg5[%c0_3, %c0_4] : memref<1x512xf32, #tpu.memory_space<vmem>>, vector<1x512xf32>
    %5 = vector.broadcast %4 : vector<1x512xf32> to vector<128x512xf32>
    %6 = arith.addf %3, %5 : vector<128x512xf32>
    %cst_5 = arith.constant 0.000000e+00 : f32
    %7 = vector.broadcast %cst_5 : f32 to vector<128x512xf32>
    %8 = arith.maximumf %6, %7 : vector<128x512xf32>
    %c0_6 = arith.constant 0 : index
    %c0_7 = arith.constant 0 : index
    %9 = vector.load %arg2[%c0_6, %c0_7] : memref<128x768xf32, #tpu.memory_space<vmem>>, vector<128x768xf32>
    %10 = arith.truncf %9 : vector<128x768xf32> to vector<128x768xbf16>
    %c0_8 = arith.constant 0 : index
    %c0_9 = arith.constant 0 : index
    %11 = vector.load %arg6[%c0_8, %c0_9] : memref<768x512xbf16, #tpu.memory_space<vmem>>, vector<768x512xbf16>
    %cst_10 = arith.constant dense<0.000000e+00> : vector<128x512xf32>
    %12 = tpu.matmul %10, %11, %cst_10 {dimension_numbers = #tpu.dot_dimension_numbers<[1], [0], [0], [1], [0, 0, 1, 1], [], []>} : vector<128x768xbf16>, vector<768x512xbf16>, vector<128x512xf32> -> vector<128x512xf32>
    %c0_11 = arith.constant 0 : index
    %c0_12 = arith.constant 0 : index
    %13 = vector.load %arg7[%c0_11, %c0_12] : memref<1x512xf32, #tpu.memory_space<vmem>>, vector<1x512xf32>
    %14 = vector.broadcast %13 : vector<1x512xf32> to vector<128x512xf32>
    %15 = arith.addf %12, %14 : vector<128x512xf32>
    %cst_13 = arith.constant 0.000000e+00 : f32
    %16 = vector.broadcast %cst_13 : f32 to vector<128x512xf32>
    %17 = arith.maximumf %15, %16 : vector<128x512xf32>
    %c0_14 = arith.constant 0 : index
    %c0_15 = arith.constant 0 : index
    %18 = vector.load %arg3[%c0_14, %c0_15] : memref<128x768xf32, #tpu.memory_space<vmem>>, vector<128x768xf32>
    %19 = arith.truncf %18 : vector<128x768xf32> to vector<128x768xbf16>
    %c0_16 = arith.constant 0 : index
    %c0_17 = arith.constant 0 : index
    %20 = vector.load %arg8[%c0_16, %c0_17] : memref<768x512xbf16, #tpu.memory_space<vmem>>, vector<768x512xbf16>
    %cst_18 = arith.constant dense<0.000000e+00> : vector<128x512xf32>
    %21 = tpu.matmul %19, %20, %cst_18 {dimension_numbers = #tpu.dot_dimension_numbers<[1], [0], [0], [1], [0, 0, 1, 1], [], []>} : vector<128x768xbf16>, vector<768x512xbf16>, vector<128x512xf32> -> vector<128x512xf32>
    %c0_19 = arith.constant 0 : index
    %c0_20 = arith.constant 0 : index
    %22 = vector.load %arg9[%c0_19, %c0_20] : memref<1x512xf32, #tpu.memory_space<vmem>>, vector<1x512xf32>
    %23 = vector.broadcast %22 : vector<1x512xf32> to vector<128x512xf32>
    %24 = arith.addf %21, %23 : vector<128x512xf32>
    %cst_21 = arith.constant 0.000000e+00 : f32
    %25 = vector.broadcast %cst_21 : f32 to vector<128x512xf32>
    %26 = arith.maximumf %24, %25 : vector<128x512xf32>
    %27 = arith.truncf %8 : vector<128x512xf32> to vector<128x512xbf16>
    %c0_22 = arith.constant 0 : index
    %c0_23 = arith.constant 0 : index
    %28 = vector.load %arg10[%c0_22, %c0_23] : memref<512x256xbf16, #tpu.memory_space<vmem>>, vector<512x256xbf16>
    %cst_24 = arith.constant dense<0.000000e+00> : vector<128x256xf32>
    %29 = tpu.matmul %27, %28, %cst_24 {dimension_numbers = #tpu.dot_dimension_numbers<[1], [0], [0], [1], [0, 0, 1, 1], [], []>} : vector<128x512xbf16>, vector<512x256xbf16>, vector<128x256xf32> -> vector<128x256xf32>
    %c0_25 = arith.constant 0 : index
    %c0_26 = arith.constant 0 : index
    %30 = vector.load %arg11[%c0_25, %c0_26] : memref<1x256xf32, #tpu.memory_space<vmem>>, vector<1x256xf32>
    %31 = vector.broadcast %30 : vector<1x256xf32> to vector<128x256xf32>
    %32 = arith.addf %29, %31 : vector<128x256xf32>
    %cst_27 = arith.constant 0.000000e+00 : f32
    %33 = vector.broadcast %cst_27 : f32 to vector<128x256xf32>
    %34 = arith.maximumf %32, %33 : vector<128x256xf32>
    %35 = arith.truncf %17 : vector<128x512xf32> to vector<128x512xbf16>
    %c0_28 = arith.constant 0 : index
    %c0_29 = arith.constant 0 : index
    %36 = vector.load %arg12[%c0_28, %c0_29] : memref<512x256xbf16, #tpu.memory_space<vmem>>, vector<512x256xbf16>
    %cst_30 = arith.constant dense<0.000000e+00> : vector<128x256xf32>
    %37 = tpu.matmul %35, %36, %cst_30 {dimension_numbers = #tpu.dot_dimension_numbers<[1], [0], [0], [1], [0, 0, 1, 1], [], []>} : vector<128x512xbf16>, vector<512x256xbf16>, vector<128x256xf32> -> vector<128x256xf32>
    %c0_31 = arith.constant 0 : index
    %c0_32 = arith.constant 0 : index
    %38 = vector.load %arg13[%c0_31, %c0_32] : memref<1x256xf32, #tpu.memory_space<vmem>>, vector<1x256xf32>
    %39 = vector.broadcast %38 : vector<1x256xf32> to vector<128x256xf32>
    %40 = arith.addf %37, %39 : vector<128x256xf32>
    %cst_33 = arith.constant 0.000000e+00 : f32
    %41 = vector.broadcast %cst_33 : f32 to vector<128x256xf32>
    %42 = arith.maximumf %40, %41 : vector<128x256xf32>
    %43 = arith.truncf %26 : vector<128x512xf32> to vector<128x512xbf16>
    %c0_34 = arith.constant 0 : index
    %c0_35 = arith.constant 0 : index
    %44 = vector.load %arg14[%c0_34, %c0_35] : memref<512x256xbf16, #tpu.memory_space<vmem>>, vector<512x256xbf16>
    %cst_36 = arith.constant dense<0.000000e+00> : vector<128x256xf32>
    %45 = tpu.matmul %43, %44, %cst_36 {dimension_numbers = #tpu.dot_dimension_numbers<[1], [0], [0], [1], [0, 0, 1, 1], [], []>} : vector<128x512xbf16>, vector<512x256xbf16>, vector<128x256xf32> -> vector<128x256xf32>
    %c0_37 = arith.constant 0 : index
    %c0_38 = arith.constant 0 : index
    %46 = vector.load %arg15[%c0_37, %c0_38] : memref<1x256xf32, #tpu.memory_space<vmem>>, vector<1x256xf32>
    %47 = vector.broadcast %46 : vector<1x256xf32> to vector<128x256xf32>
    %48 = arith.addf %45, %47 : vector<128x256xf32>
    %cst_39 = arith.constant 0.000000e+00 : f32
    %49 = vector.broadcast %cst_39 : f32 to vector<128x256xf32>
    %50 = arith.maximumf %48, %49 : vector<128x256xf32>
    %51 = arith.truncf %34 : vector<128x256xf32> to vector<128x256xbf16>
    %c0_40 = arith.constant 0 : index
    %c0_41 = arith.constant 0 : index
    %52 = vector.load %arg16[%c0_40, %c0_41] : memref<256x768xbf16, #tpu.memory_space<vmem>>, vector<256x768xbf16>
    %cst_42 = arith.constant dense<0.000000e+00> : vector<128x768xf32>
    %53 = tpu.matmul %51, %52, %cst_42 {dimension_numbers = #tpu.dot_dimension_numbers<[1], [0], [0], [1], [0, 0, 1, 1], [], []>} : vector<128x256xbf16>, vector<256x768xbf16>, vector<128x768xf32> -> vector<128x768xf32>
    %54 = arith.truncf %42 : vector<128x256xf32> to vector<128x256xbf16>
    %c0_43 = arith.constant 0 : index
    %c0_44 = arith.constant 0 : index
    %55 = vector.load %arg17[%c0_43, %c0_44] : memref<256x768xbf16, #tpu.memory_space<vmem>>, vector<256x768xbf16>
    %cst_45 = arith.constant dense<0.000000e+00> : vector<128x768xf32>
    %56 = tpu.matmul %54, %55, %cst_45 {dimension_numbers = #tpu.dot_dimension_numbers<[1], [0], [0], [1], [0, 0, 1, 1], [], []>} : vector<128x256xbf16>, vector<256x768xbf16>, vector<128x768xf32> -> vector<128x768xf32>
    %57 = arith.addf %53, %56 : vector<128x768xf32>
    %58 = arith.truncf %50 : vector<128x256xf32> to vector<128x256xbf16>
    %c0_46 = arith.constant 0 : index
    %c0_47 = arith.constant 0 : index
    %59 = vector.load %arg18[%c0_46, %c0_47] : memref<256x768xbf16, #tpu.memory_space<vmem>>, vector<256x768xbf16>
    %cst_48 = arith.constant dense<0.000000e+00> : vector<128x768xf32>
    %60 = tpu.matmul %58, %59, %cst_48 {dimension_numbers = #tpu.dot_dimension_numbers<[1], [0], [0], [1], [0, 0, 1, 1], [], []>} : vector<128x256xbf16>, vector<256x768xbf16>, vector<128x768xf32> -> vector<128x768xf32>
    %61 = arith.addf %57, %60 : vector<128x768xf32>
    %c0_49 = arith.constant 0 : index
    %c0_50 = arith.constant 0 : index
    %62 = vector.load %arg19[%c0_49, %c0_50] : memref<1x768xf32, #tpu.memory_space<vmem>>, vector<1x768xf32>
    %63 = vector.broadcast %62 : vector<1x768xf32> to vector<128x768xf32>
    %64 = arith.addf %61, %63 : vector<128x768xf32>
    %cst_51 = arith.constant 0.000000e+00 : f32
    %65 = vector.broadcast %cst_51 : f32 to vector<128x768xf32>
    %66 = arith.maximumf %64, %65 : vector<128x768xf32>
    %67 = vector.extract_strided_slice %66 {offsets = [0, 0], sizes = [128, 256], strides = [1, 1]} : vector<128x768xf32> to vector<128x256xf32>
    %68 = arith.addf %67, %34 : vector<128x256xf32>
    %69 = vector.extract_strided_slice %66 {offsets = [0, 256], sizes = [128, 256], strides = [1, 1]} : vector<128x768xf32> to vector<128x256xf32>
    %70 = arith.addf %69, %42 : vector<128x256xf32>
    %71 = vector.extract_strided_slice %66 {offsets = [0, 512], sizes = [128, 256], strides = [1, 1]} : vector<128x768xf32> to vector<128x256xf32>
    %72 = arith.addf %71, %50 : vector<128x256xf32>
    %73 = arith.truncf %68 : vector<128x256xf32> to vector<128x256xbf16>
    %c0_52 = arith.constant 0 : index
    %c0_53 = arith.constant 0 : index
    %74 = vector.load %arg20[%c0_52, %c0_53] : memref<256x512xbf16, #tpu.memory_space<vmem>>, vector<256x512xbf16>
    %cst_54 = arith.constant dense<0.000000e+00> : vector<128x512xf32>
    %75 = tpu.matmul %73, %74, %cst_54 {dimension_numbers = #tpu.dot_dimension_numbers<[1], [0], [0], [1], [0, 0, 1, 1], [], []>} : vector<128x256xbf16>, vector<256x512xbf16>, vector<128x512xf32> -> vector<128x512xf32>
    %76 = arith.truncf %70 : vector<128x256xf32> to vector<128x256xbf16>
    %c0_55 = arith.constant 0 : index
    %c0_56 = arith.constant 0 : index
    %77 = vector.load %arg21[%c0_55, %c0_56] : memref<256x512xbf16, #tpu.memory_space<vmem>>, vector<256x512xbf16>
    %cst_57 = arith.constant dense<0.000000e+00> : vector<128x512xf32>
    %78 = tpu.matmul %76, %77, %cst_57 {dimension_numbers = #tpu.dot_dimension_numbers<[1], [0], [0], [1], [0, 0, 1, 1], [], []>} : vector<128x256xbf16>, vector<256x512xbf16>, vector<128x512xf32> -> vector<128x512xf32>
    %79 = arith.addf %75, %78 : vector<128x512xf32>
    %80 = arith.truncf %72 : vector<128x256xf32> to vector<128x256xbf16>
    %c0_58 = arith.constant 0 : index
    %c0_59 = arith.constant 0 : index
    %81 = vector.load %arg22[%c0_58, %c0_59] : memref<256x512xbf16, #tpu.memory_space<vmem>>, vector<256x512xbf16>
    %cst_60 = arith.constant dense<0.000000e+00> : vector<128x512xf32>
    %82 = tpu.matmul %80, %81, %cst_60 {dimension_numbers = #tpu.dot_dimension_numbers<[1], [0], [0], [1], [0, 0, 1, 1], [], []>} : vector<128x256xbf16>, vector<256x512xbf16>, vector<128x512xf32> -> vector<128x512xf32>
    %83 = arith.addf %79, %82 : vector<128x512xf32>
    %c0_61 = arith.constant 0 : index
    %c0_62 = arith.constant 0 : index
    %84 = vector.load %arg23[%c0_61, %c0_62] : memref<1x512xf32, #tpu.memory_space<vmem>>, vector<1x512xf32>
    %85 = vector.broadcast %84 : vector<1x512xf32> to vector<128x512xf32>
    %86 = arith.addf %83, %85 : vector<128x512xf32>
    %cst_63 = arith.constant 0.000000e+00 : f32
    %87 = vector.broadcast %cst_63 : f32 to vector<128x512xf32>
    %88 = arith.maximumf %86, %87 : vector<128x512xf32>
    %89 = arith.truncf %88 : vector<128x512xf32> to vector<128x512xbf16>
    %c0_64 = arith.constant 0 : index
    %c0_65 = arith.constant 0 : index
    %90 = vector.load %arg24[%c0_64, %c0_65] : memref<512x256xbf16, #tpu.memory_space<vmem>>, vector<512x256xbf16>
    %cst_66 = arith.constant dense<0.000000e+00> : vector<128x256xf32>
    %91 = tpu.matmul %89, %90, %cst_66 {dimension_numbers = #tpu.dot_dimension_numbers<[1], [0], [0], [1], [0, 0, 1, 1], [], []>} : vector<128x512xbf16>, vector<512x256xbf16>, vector<128x256xf32> -> vector<128x256xf32>
    %c0_67 = arith.constant 0 : index
    %c0_68 = arith.constant 0 : index
    %92 = vector.load %arg25[%c0_67, %c0_68] : memref<1x256xf32, #tpu.memory_space<vmem>>, vector<1x256xf32>
    %93 = vector.broadcast %92 : vector<1x256xf32> to vector<128x256xf32>
    %94 = arith.addf %91, %93 : vector<128x256xf32>
    %cst_69 = arith.constant 0.000000e+00 : f32
    %95 = vector.broadcast %cst_69 : f32 to vector<128x256xf32>
    %96 = arith.maximumf %94, %95 : vector<128x256xf32>
    %97 = arith.truncf %96 : vector<128x256xf32> to vector<128x256xbf16>
    %c0_70 = arith.constant 0 : index
    %c0_71 = arith.constant 0 : index
    %98 = vector.load %arg26[%c0_70, %c0_71] : memref<256x128xbf16, #tpu.memory_space<vmem>>, vector<256x128xbf16>
    %cst_72 = arith.constant dense<0.000000e+00> : vector<128x128xf32>
    %99 = tpu.matmul %97, %98, %cst_72 {dimension_numbers = #tpu.dot_dimension_numbers<[1], [0], [0], [1], [0, 0, 1, 1], [], []>} : vector<128x256xbf16>, vector<256x128xbf16>, vector<128x128xf32> -> vector<128x128xf32>
    %c0_73 = arith.constant 0 : index
    %c0_74 = arith.constant 0 : index
    %100 = vector.load %arg27[%c0_73, %c0_74] : memref<1x128xf32, #tpu.memory_space<vmem>>, vector<1x128xf32>
    %101 = vector.broadcast %100 : vector<1x128xf32> to vector<128x128xf32>
    %102 = arith.addf %99, %101 : vector<128x128xf32>
    %cst_75 = arith.constant 0.000000e+00 : f32
    %103 = vector.broadcast %cst_75 : f32 to vector<128x128xf32>
    %104 = arith.maximumf %102, %103 : vector<128x128xf32>
    %105 = arith.truncf %104 : vector<128x128xf32> to vector<128x128xbf16>
    %c0_76 = arith.constant 0 : index
    %c0_77 = arith.constant 0 : index
    %106 = vector.load %arg28[%c0_76, %c0_77] : memref<128x128xbf16, #tpu.memory_space<vmem>>, vector<128x128xbf16>
    %cst_78 = arith.constant dense<0.000000e+00> : vector<128x128xf32>
    %107 = tpu.matmul %105, %106, %cst_78 {dimension_numbers = #tpu.dot_dimension_numbers<[1], [0], [0], [1], [0, 0, 1, 1], [], []>} : vector<128x128xbf16>, vector<128x128xbf16>, vector<128x128xf32> -> vector<128x128xf32>
    %c0_79 = arith.constant 0 : index
    %c0_80 = arith.constant 0 : index
    %108 = vector.load %arg29[%c0_79, %c0_80] : memref<1x128xf32, #tpu.memory_space<vmem>>, vector<1x128xf32>
    %109 = vector.broadcast %108 : vector<1x128xf32> to vector<128x128xf32>
    %110 = arith.addf %107, %109 : vector<128x128xf32>
    %cst_81 = arith.constant dense<0xFF800000> : vector<128xf32>
    %111 = vector.multi_reduction <maximumf>, %110, %cst_81 [1] : vector<128x128xf32> to vector<128xf32>
    %112 = vector.shape_cast %111 : vector<128xf32> to vector<128x1xf32>
    %113 = vector.broadcast %112 : vector<128x1xf32> to vector<128x128xf32>
    %114 = arith.subf %110, %113 : vector<128x128xf32>
    %115 = math.exp %114 : vector<128x128xf32>
    %cst_82 = arith.constant dense<0.000000e+00> : vector<128xf32>
    %116 = vector.multi_reduction <add>, %115, %cst_82 [1] : vector<128x128xf32> to vector<128xf32>
    %117 = vector.shape_cast %116 : vector<128xf32> to vector<128x1xf32>
    %118 = tpu.reciprocal %117 {approx = true} : vector<128x1xf32> -> vector<128x1xf32>
    %119 = vector.broadcast %118 : vector<128x1xf32> to vector<128x128xf32>
    %120 = arith.mulf %115, %119 : vector<128x128xf32>
    %c0_83 = arith.constant 0 : index
    %c0_84 = arith.constant 0 : index
    %121 = vector.load %arg30[%c0_83, %c0_84] : memref<128x128xf32, #tpu.memory_space<vmem>>, vector<128x128xf32>
    tpu.vector_store %arg30[%c0_83, %c0_84], %120 {strides = array<i32>} : memref<128x128xf32, #tpu.memory_space<vmem>>, vector<128x128xf32>,
    return
  }
  func.func @transform_0(%arg0: i32) -> (i32, i32) {
    %c0_i32 = arith.constant 0 : i32
    %c0_i32_0 = arith.constant 0 : i32
    return %arg0, %c0_i32 : i32, i32
  }
  func.func @transform_1(%arg0: i32) -> (i32, i32) {
    %c0_i32 = arith.constant 0 : i32
    %c0_i32_0 = arith.constant 0 : i32
    return %arg0, %c0_i32 : i32, i32
  }
  func.func @transform_2(%arg0: i32) -> (i32, i32) {
    %c0_i32 = arith.constant 0 : i32
    %c0_i32_0 = arith.constant 0 : i32
    return %arg0, %c0_i32 : i32, i32
  }
  func.func @transform_3(%arg0: i32) -> (i32, i32) {
    %c0_i32 = arith.constant 0 : i32
    %c0_i32_0 = arith.constant 0 : i32
    %c0_i32_1 = arith.constant 0 : i32
    return %c0_i32, %c0_i32_0 : i32, i32
  }
  func.func @transform_4(%arg0: i32) -> (i32, i32) {
    %c0_i32 = arith.constant 0 : i32
    %c0_i32_0 = arith.constant 0 : i32
    %c0_i32_1 = arith.constant 0 : i32
    return %c0_i32, %c0_i32_0 : i32, i32
  }
  func.func @transform_5(%arg0: i32) -> (i32, i32) {
    %c0_i32 = arith.constant 0 : i32
    %c0_i32_0 = arith.constant 0 : i32
    %c0_i32_1 = arith.constant 0 : i32
    return %c0_i32, %c0_i32_0 : i32, i32
  }
  func.func @transform_6(%arg0: i32) -> (i32, i32) {
    %c0_i32 = arith.constant 0 : i32
    %c0_i32_0 = arith.constant 0 : i32
    %c0_i32_1 = arith.constant 0 : i32
    return %c0_i32, %c0_i32_0 : i32, i32
  }
  func.func @transform_7(%arg0: i32) -> (i32, i32) {
    %c0_i32 = arith.constant 0 : i32
    %c0_i32_0 = arith.constant 0 : i32
    %c0_i32_1 = arith.constant 0 : i32
    return %c0_i32, %c0_i32_0 : i32, i32
  }
  func.func @transform_8(%arg0: i32) -> (i32, i32) {
    %c0_i32 = arith.constant 0 : i32
    %c0_i32_0 = arith.constant 0 : i32
    %c0_i32_1 = arith.constant 0 : i32
    return %c0_i32, %c0_i32_0 : i32, i32
  }
  func.func @transform_9(%arg0: i32) -> (i32, i32) {
    %c0_i32 = arith.constant 0 : i32
    %c0_i32_0 = arith.constant 0 : i32
    %c0_i32_1 = arith.constant 0 : i32
    return %c0_i32, %c0_i32_0 : i32, i32
  }
  func.func @transform_10(%arg0: i32) -> (i32, i32) {
    %c0_i32 = arith.constant 0 : i32
    %c0_i32_0 = arith.constant 0 : i32
    %c0_i32_1 = arith.constant 0 : i32
    return %c0_i32, %c0_i32_0 : i32, i32
  }
  func.func @transform_11(%arg0: i32) -> (i32, i32) {
    %c0_i32 = arith.constant 0 : i32
    %c0_i32_0 = arith.constant 0 : i32
    %c0_i32_1 = arith.constant 0 : i32
    return %c0_i32, %c0_i32_0 : i32, i32
  }
  func.func @transform_12(%arg0: i32) -> (i32, i32) {
    %c0_i32 = arith.constant 0 : i32
    %c0_i32_0 = arith.constant 0 : i32
    %c0_i32_1 = arith.constant 0 : i32
    return %c0_i32, %c0_i32_0 : i32, i32
  }
  func.func @transform_13(%arg0: i32) -> (i32, i32) {
    %c0_i32 = arith.constant 0 : i32
    %c0_i32_0 = arith.constant 0 : i32
    %c0_i32_1 = arith.constant 0 : i32
    return %c0_i32, %c0_i32_0 : i32, i32
  }
  func.func @transform_14(%arg0: i32) -> (i32, i32) {
    %c0_i32 = arith.constant 0 : i32
    %c0_i32_0 = arith.constant 0 : i32
    %c0_i32_1 = arith.constant 0 : i32
    return %c0_i32, %c0_i32_0 : i32, i32
  }
  func.func @transform_15(%arg0: i32) -> (i32, i32) {
    %c0_i32 = arith.constant 0 : i32
    %c0_i32_0 = arith.constant 0 : i32
    %c0_i32_1 = arith.constant 0 : i32
    return %c0_i32, %c0_i32_0 : i32, i32
  }
  func.func @transform_16(%arg0: i32) -> (i32, i32) {
    %c0_i32 = arith.constant 0 : i32
    %c0_i32_0 = arith.constant 0 : i32
    %c0_i32_1 = arith.constant 0 : i32
    return %c0_i32, %c0_i32_0 : i32, i32
  }
  func.func @transform_17(%arg0: i32) -> (i32, i32) {
    %c0_i32 = arith.constant 0 : i32
    %c0_i32_0 = arith.constant 0 : i32
    %c0_i32_1 = arith.constant 0 : i32
    return %c0_i32, %c0_i32_0 : i32, i32
  }
  func.func @transform_18(%arg0: i32) -> (i32, i32) {
    %c0_i32 = arith.constant 0 : i32
    %c0_i32_0 = arith.constant 0 : i32
    %c0_i32_1 = arith.constant 0 : i32
    return %c0_i32, %c0_i32_0 : i32, i32
  }
  func.func @transform_19(%arg0: i32) -> (i32, i32) {
    %c0_i32 = arith.constant 0 : i32
    %c0_i32_0 = arith.constant 0 : i32
    %c0_i32_1 = arith.constant 0 : i32
    return %c0_i32, %c0_i32_0 : i32, i32
  }
  func.func @transform_20(%arg0: i32) -> (i32, i32) {
    %c0_i32 = arith.constant 0 : i32
    %c0_i32_0 = arith.constant 0 : i32
    %c0_i32_1 = arith.constant 0 : i32
    return %c0_i32, %c0_i32_0 : i32, i32
  }
  func.func @transform_21(%arg0: i32) -> (i32, i32) {
    %c0_i32 = arith.constant 0 : i32
    %c0_i32_0 = arith.constant 0 : i32
    %c0_i32_1 = arith.constant 0 : i32
    return %c0_i32, %c0_i32_0 : i32, i32
  }
  func.func @transform_22(%arg0: i32) -> (i32, i32) {
    %c0_i32 = arith.constant 0 : i32
    %c0_i32_0 = arith.constant 0 : i32
    %c0_i32_1 = arith.constant 0 : i32
    return %c0_i32, %c0_i32_0 : i32, i32
  }
  func.func @transform_23(%arg0: i32) -> (i32, i32) {
    %c0_i32 = arith.constant 0 : i32
    %c0_i32_0 = arith.constant 0 : i32
    %c0_i32_1 = arith.constant 0 : i32
    return %c0_i32, %c0_i32_0 : i32, i32
  }
  func.func @transform_24(%arg0: i32) -> (i32, i32) {
    %c0_i32 = arith.constant 0 : i32
    %c0_i32_0 = arith.constant 0 : i32
    %c0_i32_1 = arith.constant 0 : i32
    return %c0_i32, %c0_i32_0 : i32, i32
  }
  func.func @transform_25(%arg0: i32) -> (i32, i32) {
    %c0_i32 = arith.constant 0 : i32
    %c0_i32_0 = arith.constant 0 : i32
    %c0_i32_1 = arith.constant 0 : i32
    return %c0_i32, %c0_i32_0 : i32, i32
  }
  func.func @transform_26(%arg0: i32) -> (i32, i32) {
    %c0_i32 = arith.constant 0 : i32
    %c0_i32_0 = arith.constant 0 : i32
    %c0_i32_1 = arith.constant 0 : i32
    return %c0_i32, %c0_i32_0 : i32, i32
  }
  func.func @transform_27(%arg0: i32) -> (i32, i32) {
    %c0_i32 = arith.constant 0 : i32
    %c0_i32_0 = arith.constant 0 : i32
    %c0_i32_1 = arith.constant 0 : i32
    return %c0_i32, %c0_i32_0 : i32, i32
  }
  func.func @transform_28(%arg0: i32) -> (i32, i32) {
    %c0_i32 = arith.constant 0 : i32
    %c0_i32_0 = arith.constant 0 : i32
    %c0_i32_1 = arith.constant 0 : i32
    return %c0_i32, %c0_i32_0 : i32, i32
  }
  func.func @transform_29(%arg0: i32) -> (i32, i32) {
    %c0_i32 = arith.constant 0 : i32
    %c0_i32_0 = arith.constant 0 : i32
    return %arg0, %c0_i32 : i32, i32
  }
}

</mosaic_0001>

<bundles_post_ra>
// kernel: customnet_forward.1
= control target key start
LH: loop header
LB: loop body
LE: loop exit
PB: predicated region body
PF: predicated region fallthrough
CT: control target
= control target key end

     0   :  { %s20311_s6 = smov 1   ;;  %s20312_s10 = smov 2   ;;  %s24240_s0 = inlined_call_operand.smem [shape: u32[30], index: -1, kind: input, shape index: {}] }
   0x1   :  { %s20370_s5 = sld [smem:[%s24240_s0]]   ;;  %s20313_s14 = smov 3  }
   0x2   :  { %s20375_s9 = sld [smem:[%s24240_s0 + %s20311_s6]]   ;;  %s20314_s18 = smov 4  }
   0x3   :  { %s20380_s13 = sld [smem:[%s24240_s0 + %s20312_s10]]   ;;  %s20315_s22 = smov 5  }
   0x4   :  { %s20385_s17 = sld [smem:[%s24240_s0 + %s20313_s14]]   ;;  %s20316_s26 = smov 6  }
   0x5   :  { %s20390_s21 = sld [smem:[%s24240_s0 + %s20314_s18]]   ;;  %s20317_s30 = smov 7  }
   0x6   :  { %s20395_s25 = sld [smem:[%s24240_s0 + %s20315_s22]]   ;;  %s20318_s4 = smov 8  }
   0x7   :  { %24444 = sst [smem:[#allocation36_spill]] %s20370_s5  ;;  %s20319_s10 = smov 9  }
   0x8   :  { %24445 = sst [smem:[#allocation37_spill]] %s20375_s9  ;;  %s20320_s15 = smov 10  }
   0x9   :  { %24446 = sst [smem:[#allocation38_spill]] %s20380_s13  ;;  %s20321_s20 = smov 11  }
   0xa   :  { %24447 = sst [smem:[#allocation39_spill]] %s20385_s17  ;;  %s20323_s1 = smov 13  }
   0xb   :  { %s20400_s29 = sld [smem:[%s24240_s0 + %s20316_s26]]   ;;  %s20322_s26 = smov 12  }
   0xc   :  { %s20405_s3 = sld [smem:[%s24240_s0 + %s20317_s30]]   ;;  %s20324_s7 = smov 14  }
   0xd   :  { %s20410_s8 = sld [smem:[%s24240_s0 + %s20318_s4]]   ;;  %s20326_s22 = smov 16  }
   0xe   :  { %s20415_s14 = sld [smem:[%s24240_s0 + %s20319_s10]]   ;;  %s20327_s28 = smov 17  }
   0xf   :  { %s20420_s19 = sld [smem:[%s24240_s0 + %s20320_s15]]   ;;  %s20325_s15 = smov 15  }
  0x10   :  { %s20425_s24 = sld [smem:[%s24240_s0 + %s20321_s20]]  }
  0x11   :  { %s20430_s30 = sld [smem:[%s24240_s0 + %s20322_s26]]  }
  0x12   :  { %s20435_s6 = sld [smem:[%s24240_s0 + %s20323_s1]]  }
  0x13   :  { %s20440_s12 = sld [smem:[%s24240_s0 + %s20324_s7]]   ;;  %s20328_s7 = smov 18  }
  0x14   :  { %s20445_s20 = sld [smem:[%s24240_s0 + %s20325_s15]]   ;;  %s20329_s15 = smov 19  }
  0x15   :  { %24448 = sst [smem:[#allocation40_spill]] %s20420_s19 }
  0x16   :  { %s20450_s27 = sld [smem:[%s24240_s0 + %s20326_s22]]   ;;  %s20330_s22 = smov 20  }
  0x17   :  { %s20455_s4 = sld [smem:[%s24240_s0 + %s20327_s28]]   ;;  %s20331_s28 = smov 21  }
  0x18   :  { %s20460_s19 = sld [smem:[%s24240_s0 + %s20328_s7]]   ;;  %s20332_s7 = smov 22  }
  0x19   :  { %s20470_s13 = sld [smem:[%s24240_s0 + %s20330_s22]]   ;;  %s20334_s22 = smov 24  }
  0x1a   :  { %24449 = sst [smem:[#allocation41_spill]] %s20445_s20 }
  0x1b   :  { %s20465_s20 = sld [smem:[%s24240_s0 + %s20329_s15]]   ;;  %s20333_s15 = smov 23  }
  0x1c   :  { %s20475_s9 = sld [smem:[%s24240_s0 + %s20331_s28]]   ;;  %s20335_s28 = smov 25  }
  0x1d   :  { %s20485_s5 = sld [smem:[%s24240_s0 + %s20333_s15]]   ;;  %s20337_s15 = smov 27  }
  0x1e   :  { %24450 = sst [smem:[#allocation42_spill]] %s20460_s19 }
  0x1f   :  { %s20480_s19 = sld [smem:[%s24240_s0 + %s20332_s7]]   ;;  %s20336_s7 = smov 26  }
  0x20   :  { %s20490_s17 = sld [smem:[%s24240_s0 + %s20334_s22]]   ;;  %s20338_s22 = smov 28  }
  0x22   :  { %24451 = sst [smem:[#allocation43_spill]] %s20475_s9 }
  0x23   :  { %24453 = sst [smem:[#allocation45_spill]] %s20485_s5 }
  0x24   :  { %s20495_s9 = sld [smem:[%s24240_s0 + %s20335_s28]]   ;;  %s20339_s28 = smov 29  }
  0x25   :  { %24452 = sst [smem:[#allocation44_spill]] %s20480_s19 }
  0x26   :  { %24454 = sst [smem:[#allocation46_spill]] %s20490_s17 }
  0x27   :  { %s20500_s19 = sld [smem:[%s24240_s0 + %s20336_s7]]  }
  0x28   :  { %s20505_s5 = sld [smem:[%s24240_s0 + %s20337_s15]]  }
  0x29   :  { %s20510_s17 = sld [smem:[%s24240_s0 + %s20338_s22]]  }
  0x2a   :  { %24455 = sst [smem:[#allocation47_spill]] %s20495_s9 }
  0x2b   :  { %s20515_s9 = sld [smem:[%s24240_s0 + %s20339_s28]]  }
  0x2c   :  { %64 = vsyncpa [#allocation3], 0 }
  0x2d   :  { %65 = vsyncpa [#allocation5], 0 }
  0x2e   :  { %66 = vsyncpa [#allocation8], 0 }
  0x2f   :  { %67 = vsyncpa [#allocation11], 0 }
  0x30   :  { %68 = vsyncpa [#allocation14], 0 }
  0x31   :  { %69 = vsyncpa [#allocation17], 0 }
  0x32   :  { %70 = vsyncpa [#allocation20], 0 }
  0x33   :  { %71 = vsyncpa [#allocation23], 0 }
  0x34   :  { %72 = vsyncpa [#allocation26], 0  ;;  %s20340_s7 = smov [#allocation4]   ;;  %s19941_s11 = scalar_lea.hbm %s20395_s25, 24576 }
  0x35   :  { %s96_s10 = sshll.u32 %s20340_s7, 4  ;;  %p19942_p0 = scmp.ne.s32.totalorder %s20395_s25, %s19941_s11  ;;  %s97_s10 = int_to_ptr.vmem [resolvable:$true] %s96_s10 }
  0x36   :  { %p19945_p1 = scmp.lt.u32.totalorder %s19941_s11, %s20395_s25 }
  0x38   :  { %p19947_p2 = pnand %p19945_p1, %p19942_p0 }
  0x3a   :  { %19950 = shalt.err (!%p19947_p2)
}
  0x3b   :  { %s19951_s0 = scalar_lea.vmem %s97_s10, 24576  ;;  %p19956_p4 = scmp.lt.s32.totalorder %s97_s10, %s97_s10 }
  0x3c   :  { %p19952_p3 = scmp.ne.s32.totalorder %s97_s10, %s19951_s0  ;;  %p19957_p5 = scmp.lt.s32.totalorder %s19951_s0, %s19951_s0 }
  0x3e   :  { %p19958_p6 = por %p19957_p5, %p19956_p4 }
  0x40   :  { %p19959_p7 = pnand %p19958_p6, %p19952_p3 }
  0x42   :  { %19962 = shalt.err (!%p19959_p7)
}
  0x43   :  { %s20341_s15 = smov 256   ;;  %s20342_s16 = smov 16  }
  0x44   :  { %102 = dma.hbm_to_vmem [thread:$0]  %s20395_s25, 24576, %s97_s10, [#allocation5], %s20341_s15, %s20341_s15, %s20342_s16  }
  0x45   :  { %s20343_s18 = smov [#allocation7]   ;;  %s20344_s23 = smov [#allocation10]  }
  0x46   :  { %s118_s22 = sshll.u32 %s20343_s18, 4  ;;  %s140_s26 = sshll.u32 %s20344_s23, 4  ;;  %s119_s22 = int_to_ptr.vmem [resolvable:$true] %s118_s22  ;;  %s141_s26 = int_to_ptr.vmem [resolvable:$true] %s140_s26 }
  0x47   :  { %s19963_s28 = scalar_lea.hbm %s20405_s3, 24576 }
  0x48   :  { %p19964_p8 = scmp.ne.s32.totalorder %s20405_s3, %s19963_s28  ;;  %p19967_p9 = scmp.lt.u32.totalorder %s19963_s28, %s20405_s3 }
  0x4a   :  { %p19969_p10 = pnand %p19967_p9, %p19964_p8 }
  0x4c   :  { %19972 = shalt.err (!%p19969_p10)
}
  0x4d   :  { %s19973_s1 = scalar_lea.vmem %s119_s22, 24576  ;;  %p19978_p12 = scmp.lt.s32.totalorder %s119_s22, %s119_s22 }
  0x4e   :  { %p19974_p11 = scmp.ne.s32.totalorder %s119_s22, %s19973_s1  ;;  %p19979_p13 = scmp.lt.s32.totalorder %s19973_s1, %s19973_s1 }
  0x50   :  { %p19980_p0 = por %p19979_p13, %p19978_p12 }
  0x52   :  { %p19981_p1 = pnand %p19980_p0, %p19974_p11 }
  0x54   :  { %19984 = shalt.err (!%p19981_p1)
}
  0x55   :  { %124 = dma.hbm_to_vmem [thread:$0]  %s20405_s3, 24576, %s119_s22, [#allocation8], %s20341_s15, %s20341_s15, %s20342_s16  }
  0x56   :  { %s19985_s25 = scalar_lea.hbm %s20415_s14, 8192 }
  0x57   :  { %p19986_p2 = scmp.ne.s32.totalorder %s20415_s14, %s19985_s25  ;;  %p19989_p3 = scmp.lt.u32.totalorder %s19985_s25, %s20415_s14 }
  0x59   :  { %p19991_p4 = pnand %p19989_p3, %p19986_p2 }
  0x5b   :  { %19994 = shalt.err (!%p19991_p4)
}
  0x5c   :  { %s19995_s2 = scalar_lea.vmem %s141_s26, 8192  ;;  %p20000_p6 = scmp.lt.s32.totalorder %s141_s26, %s141_s26 }
  0x5d   :  { %p19996_p5 = scmp.ne.s32.totalorder %s141_s26, %s19995_s2  ;;  %p20001_p7 = scmp.lt.s32.totalorder %s19995_s2, %s19995_s2 }
  0x5f   :  { %p20002_p8 = por %p20001_p7, %p20000_p6 }
  0x61   :  { %p20003_p9 = pnand %p20002_p8, %p19996_p5 }
  0x63   :  { %20006 = shalt.err (!%p20003_p9)
}
  0x64   :  { %s20345_s7 = smov 128   ;;  %s20346_s10 = smov 8  }
  0x65   :  { %146 = dma.hbm_to_vmem [thread:$0]  %s20415_s14, 8192, %s141_s26, [#allocation11], %s20345_s7, %s20345_s7, %s20346_s10  }
  0x66   :  { %s20347_s3 = smov [#allocation13]   ;;  %s20348_s0 = smov [#allocation16]  }
  0x67   :  { %s167_s11 = sshll.u32 %s20347_s3, 4  ;;  %s189_s18 = sshll.u32 %s20348_s0, 4  ;;  %s168_s11 = int_to_ptr.vmem [resolvable:$true] %s167_s11  ;;  %s190_s18 = int_to_ptr.vmem [resolvable:$true] %s189_s18 }
  0x68   :  { %s20007_s22 = scalar_lea.hbm %s20430_s30, 32 }
  0x69   :  { %p20008_p10 = scmp.ne.s32.totalorder %s20430_s30, %s20007_s22  ;;  %p20011_p11 = scmp.lt.u32.totalorder %s20007_s22, %s20430_s30 }
  0x6b   :  { %p20013_p12 = pnand %p20011_p11, %p20008_p10 }
  0x6d   :  { %20016 = shalt.err (!%p20013_p12)
}
  0x6e   :  { %s20017_s23 = scalar_lea.vmem %s168_s11, 32  ;;  %p20022_p0 = scmp.lt.s32.totalorder %s168_s11, %s168_s11 }
  0x6f   :  { %p20018_p13 = scmp.ne.s32.totalorder %s168_s11, %s20017_s23  ;;  %p20023_p1 = scmp.lt.s32.totalorder %s20017_s23, %s20017_s23 }
  0x71   :  { %p20024_p2 = por %p20023_p1, %p20022_p0 }
  0x73   :  { %p20025_p3 = pnand %p20024_p2, %p20018_p13 }
  0x75   :  { %20028 = shalt.err (!%p20025_p3)
}
  0x76   :  { %170 = dma.hbm_to_vmem [thread:$0]  %s20430_s30, 32, %s168_s11, [#allocation14]  }
  0x77   :  { %s20029_s14 = scalar_lea.hbm %s20440_s12, 32 }
  0x78   :  { %p20030_p4 = scmp.ne.s32.totalorder %s20440_s12, %s20029_s14  ;;  %p20033_p5 = scmp.lt.u32.totalorder %s20029_s14, %s20440_s12 }
  0x7a   :  { %p20035_p6 = pnand %p20033_p5, %p20030_p4 }
  0x7c   :  { %20038 = shalt.err (!%p20035_p6)
}
  0x7d   :  { %s20039_s26 = scalar_lea.vmem %s190_s18, 32  ;;  %p20044_p8 = scmp.lt.s32.totalorder %s190_s18, %s190_s18 }
  0x7e   :  { %p20040_p7 = scmp.ne.s32.totalorder %s190_s18, %s20039_s26  ;;  %p20045_p9 = scmp.lt.s32.totalorder %s20039_s26, %s20039_s26 }
  0x80   :  { %p20046_p10 = por %p20045_p9, %p20044_p8 }
  0x82   :  { %p20047_p11 = pnand %p20046_p10, %p20040_p7 }
  0x84   :  { %20050 = shalt.err (!%p20047_p11)
}
  0x85   :  { %192 = dma.hbm_to_vmem [thread:$0]  %s20440_s12, 32, %s190_s18, [#allocation17]  }
  0x86   :  { %s20349_s28 = smov [#allocation19]   ;;  %s20350_s1 = smov [#allocation22]  }
  0x87   :  { %s212_s30 = sshll.u32 %s20349_s28, 4  ;;  %s238_s25 = sshll.u32 %s20350_s1, 4  ;;  %s213_s30 = int_to_ptr.vmem [resolvable:$true] %s212_s30  ;;  %s239_s25 = int_to_ptr.vmem [resolvable:$true] %s238_s25 }
  0x88   :  { %s20051_s2 = scalar_lea.hbm %s20455_s4, 12288 }
  0x89   :  { %p20052_p12 = scmp.ne.s32.totalorder %s20455_s4, %s20051_s2  ;;  %p20055_p13 = scmp.lt.u32.totalorder %s20051_s2, %s20455_s4 }
  0x8b   :  { %p20057_p0 = pnand %p20055_p13, %p20052_p12 }
  0x8d   :  { %20060 = shalt.err (!%p20057_p0)
}
  0x8e   :  { %s20061_s3 = scalar_lea.vmem %s213_s30, 12288  ;;  %p20066_p2 = scmp.lt.s32.totalorder %s213_s30, %s213_s30 }
  0x8f   :  { %p20062_p1 = scmp.ne.s32.totalorder %s213_s30, %s20061_s3  ;;  %p20067_p3 = scmp.lt.s32.totalorder %s20061_s3, %s20061_s3 }
  0x91   :  { %p20068_p4 = por %p20067_p3, %p20066_p2 }
  0x93   :  { %p20069_p5 = pnand %p20068_p4, %p20062_p1 }
  0x95   :  { %20072 = shalt.err (!%p20069_p5)
}
  0x96   :  { %s20351_s11 = smov 384   ;;  %s20352_s12 = smov 24  }
  0x97   :  { %218 = dma.hbm_to_vmem [thread:$0]  %s20455_s4, 12288, %s213_s30, [#allocation20], %s20351_s11, %s20351_s11, %s20352_s12  }
  0x98   :  { %s20073_s0 = scalar_lea.hbm %s20470_s13, 8192 }
  0x99   :  { %p20074_p6 = scmp.ne.s32.totalorder %s20470_s13, %s20073_s0  ;;  %p20077_p7 = scmp.lt.u32.totalorder %s20073_s0, %s20470_s13 }
  0x9b   :  { %p20079_p8 = pnand %p20077_p7, %p20074_p6 }
  0x9d   :  { %20082 = shalt.err (!%p20079_p8)
}
  0x9e   :  { %s20083_s18 = scalar_lea.vmem %s239_s25, 8192  ;;  %p20088_p10 = scmp.lt.s32.totalorder %s239_s25, %s239_s25 }
  0x9f   :  { %p20084_p9 = scmp.ne.s32.totalorder %s239_s25, %s20083_s18  ;;  %p20089_p11 = scmp.lt.s32.totalorder %s20083_s18, %s20083_s18 }
  0xa1   :  { %p20090_p12 = por %p20089_p11, %p20088_p10 }
  0xa3   :  { %p20091_p13 = pnand %p20090_p12, %p20084_p9 }
  0xa5   :  { %20094 = shalt.err (!%p20091_p13)
}
  0xa6   :  { %244 = dma.hbm_to_vmem [thread:$0]  %s20470_s13, 8192, %s239_s25, [#allocation23], %s20341_s15, %s20341_s15, %s20342_s16  }
  0xa7   :  { %s20353_s4 = smov [#allocation2]   ;;  %s20354_s23 = smov [#allocation6]  }
  0xa8   :  { %s87_s22 = sshll.u32 %s20353_s4, 4  ;;  %s109_s14 = sshll.u32 %s20354_s23, 4  ;;  %s88_s22 = int_to_ptr.vmem [resolvable:$true] %s87_s22  ;;  %s110_s14 = int_to_ptr.vmem [resolvable:$true] %s109_s14 }
  0xa9   :  { %s20095_s26 = scalar_lea.hbm %s20390_s21, 64 }
  0xaa   :  { %p20096_p0 = scmp.ne.s32.totalorder %s20390_s21, %s20095_s26  ;;  %p20099_p1 = scmp.lt.u32.totalorder %s20095_s26, %s20390_s21 }
  0xac   :  { %p20101_p2 = pnand %p20099_p1, %p20096_p0 }
  0xae   :  { %20104 = shalt.err (!%p20101_p2)
}
  0xaf   :  { %s20105_s28 = scalar_lea.vmem %s88_s22, 64  ;;  %p20110_p4 = scmp.lt.s32.totalorder %s88_s22, %s88_s22 }
  0xb0   :  { %p20106_p3 = scmp.ne.s32.totalorder %s88_s22, %s20105_s28  ;;  %p20111_p5 = scmp.lt.s32.totalorder %s20105_s28, %s20105_s28 }
  0xb2   :  { %p20112_p6 = por %p20111_p5, %p20110_p4 }
  0xb4   :  { %p20113_p7 = pnand %p20112_p6, %p20106_p3 }
  0xb6   :  { %20116 = shalt.err (!%p20113_p7)
}
  0xb7   :  { %90 = dma.hbm_to_vmem [thread:$0]  %s20390_s21, 64, %s88_s22, [#allocation3]  }
  0xb8   :  { %s20117_s13 = scalar_lea.hbm %s20400_s29, 64 }
  0xb9   :  { %p20118_p8 = scmp.ne.s32.totalorder %s20400_s29, %s20117_s13  ;;  %p20121_p9 = scmp.lt.u32.totalorder %s20117_s13, %s20400_s29 }
  0xbb   :  { %p20123_p10 = pnand %p20121_p9, %p20118_p8 }
  0xbd   :  { %20126 = shalt.err (!%p20123_p10)
}
  0xbe   :  { %s20127_s30 = scalar_lea.vmem %s110_s14, 64  ;;  %p20132_p12 = scmp.lt.s32.totalorder %s110_s14, %s110_s14 }
  0xbf   :  { %p20128_p11 = scmp.ne.s32.totalorder %s110_s14, %s20127_s30  ;;  %p20133_p13 = scmp.lt.s32.totalorder %s20127_s30, %s20127_s30 }
  0xc1   :  { %p20134_p0 = por %p20133_p13, %p20132_p12 }
  0xc3   :  { %p20135_p1 = pnand %p20134_p0, %p20128_p11 }
  0xc5   :  { %20138 = shalt.err (!%p20135_p1)
}
  0xc6   :  { %112 = dma.hbm_to_vmem [thread:$0]  %s20400_s29, 64, %s110_s14, [#allocation5]  }
  0xc7   :  { %s20355_s1 = smov [#allocation9]   ;;  %s20356_s25 = smov [#allocation12]  }
  0xc8   :  { %s131_s21 = sshll.u32 %s20355_s1, 4  ;;  %s154_s2 = sshll.u32 %s20356_s25, 4  ;;  %s132_s21 = int_to_ptr.vmem [resolvable:$true] %s131_s21  ;;  %s155_s2 = int_to_ptr.vmem [resolvable:$true] %s154_s2 }
  0xc9   :  { %s20139_s3 = scalar_lea.hbm %s20410_s8, 64 }
  0xca   :  { %p20140_p2 = scmp.ne.s32.totalorder %s20410_s8, %s20139_s3  ;;  %p20143_p3 = scmp.lt.u32.totalorder %s20139_s3, %s20410_s8 }
  0xcc   :  { %p20145_p4 = pnand %p20143_p3, %p20140_p2 }
  0xce   :  { %20148 = shalt.err (!%p20145_p4)
}
  0xcf   :  { %s20149_s0 = scalar_lea.vmem %s132_s21, 64  ;;  %p20154_p6 = scmp.lt.s32.totalorder %s132_s21, %s132_s21 }
  0xd0   :  { %p20150_p5 = scmp.ne.s32.totalorder %s132_s21, %s20149_s0  ;;  %p20155_p7 = scmp.lt.s32.totalorder %s20149_s0, %s20149_s0 }
  0xd2   :  { %p20156_p8 = por %p20155_p7, %p20154_p6 }
  0xd4   :  { %p20157_p9 = pnand %p20156_p8, %p20150_p5 }
  0xd6   :  { %20160 = shalt.err (!%p20157_p9)
}
  0xd7   :  { %134 = dma.hbm_to_vmem [thread:$0]  %s20410_s8, 64, %s132_s21, [#allocation8]  }
  0xd8   :  { %s20161_s29 = scalar_lea.hbm %s20425_s24, 8192 }
  0xd9   :  { %p20162_p10 = scmp.ne.s32.totalorder %s20425_s24, %s20161_s29  ;;  %p20165_p11 = scmp.lt.u32.totalorder %s20161_s29, %s20425_s24 }
  0xdb   :  { %p20167_p12 = pnand %p20165_p11, %p20162_p10 }
  0xdd   :  { %20170 = shalt.err (!%p20167_p12)
}
  0xde   :  { %s20171_s18 = scalar_lea.vmem %s155_s2, 8192  ;;  %p20176_p0 = scmp.lt.s32.totalorder %s155_s2, %s155_s2 }
  0xdf   :  { %p20172_p13 = scmp.ne.s32.totalorder %s155_s2, %s20171_s18  ;;  %p20177_p1 = scmp.lt.s32.totalorder %s20171_s18, %s20171_s18 }
  0xe1   :  { %p20178_p2 = por %p20177_p1, %p20176_p0 }
  0xe3   :  { %p20179_p3 = pnand %p20178_p2, %p20172_p13 }
  0xe5   :  { %20182 = shalt.err (!%p20179_p3)
}
  0xe6   :  { %160 = dma.hbm_to_vmem [thread:$0]  %s20425_s24, 8192, %s155_s2, [#allocation11], %s20345_s7, %s20345_s7, %s20346_s10  }
  0xe7   :  { %s20357_s8 = smov [#allocation15]   ;;  %s20358_s22 = smov [#allocation18]  }
  0xe8   :  { %s176_s4 = sshll.u32 %s20357_s8, 4  ;;  %s200_s23 = sshll.u32 %s20358_s22, 4  ;;  %s177_s4 = int_to_ptr.vmem [resolvable:$true] %s176_s4  ;;  %s201_s23 = int_to_ptr.vmem [resolvable:$true] %s200_s23 }
  0xe9   :  { %s20183_s14 = scalar_lea.hbm %s20435_s6, 8192 }
  0xea   :  { %p20184_p4 = scmp.ne.s32.totalorder %s20435_s6, %s20183_s14  ;;  %p20187_p5 = scmp.lt.u32.totalorder %s20183_s14, %s20435_s6 }
  0xec   :  { %p20189_p6 = pnand %p20187_p5, %p20184_p4 }
  0xee   :  { %20192 = shalt.err (!%p20189_p6)
}
  0xef   :  { %s20193_s26 = scalar_lea.vmem %s177_s4, 8192  ;;  %p20198_p8 = scmp.lt.s32.totalorder %s177_s4, %s177_s4 }
  0xf0   :  { %p20194_p7 = scmp.ne.s32.totalorder %s177_s4, %s20193_s26  ;;  %p20199_p9 = scmp.lt.s32.totalorder %s20193_s26, %s20193_s26 }
  0xf2   :  { %p20200_p10 = por %p20199_p9, %p20198_p8 }
  0xf4   :  { %p20201_p11 = pnand %p20200_p10, %p20194_p7 }
  0xf6   :  { %20204 = shalt.err (!%p20201_p11)
}
  0xf7   :  { %182 = dma.hbm_to_vmem [thread:$0]  %s20435_s6, 8192, %s177_s4, [#allocation14], %s20345_s7, %s20345_s7, %s20346_s10  }
  0xf8   :  { %s20205_s24 = scalar_lea.hbm %s20450_s27, 12288 }
  0xf9   :  { %p20206_p12 = scmp.ne.s32.totalorder %s20450_s27, %s20205_s24  ;;  %p20209_p13 = scmp.lt.u32.totalorder %s20205_s24, %s20450_s27 }
  0xfb   :  { %p20211_p0 = pnand %p20209_p13, %p20206_p12 }
  0xfd   :  { %20214 = shalt.err (!%p20211_p0)
}
  0xfe   :  { %s20215_s28 = scalar_lea.vmem %s201_s23, 12288  ;;  %p20220_p2 = scmp.lt.s32.totalorder %s201_s23, %s201_s23 }
  0xff   :  { %p20216_p1 = scmp.ne.s32.totalorder %s201_s23, %s20215_s28  ;;  %p20221_p3 = scmp.lt.s32.totalorder %s20215_s28, %s20215_s28 }
 0x101   :  { %p20222_p4 = por %p20221_p3, %p20220_p2 }
 0x103   :  { %p20223_p5 = pnand %p20222_p4, %p20216_p1 }
 0x105   :  { %20226 = shalt.err (!%p20223_p5)
}
 0x106   :  { %206 = dma.hbm_to_vmem [thread:$0]  %s20450_s27, 12288, %s201_s23, [#allocation17], %s20351_s11, %s20351_s11, %s20352_s12  }
 0x107   :  { %s20359_s6 = smov [#allocation21]   ;;  %s20360_s30 = smov [#allocation24]  }
 0x108   :  { %s226_s13 = sshll.u32 %s20359_s6, 4  ;;  %s250_s1 = sshll.u32 %s20360_s30, 4  ;;  %s227_s13 = int_to_ptr.vmem [resolvable:$true] %s226_s13  ;;  %s251_s1 = int_to_ptr.vmem [resolvable:$true] %s250_s1 }
 0x109   :  { %s20227_s21 = scalar_lea.hbm %s20465_s20, 8192 }
 0x10a   :  { %p20228_p6 = scmp.ne.s32.totalorder %s20465_s20, %s20227_s21  ;;  %p20231_p7 = scmp.lt.u32.totalorder %s20227_s21, %s20465_s20 }
 0x10c   :  { %p20233_p8 = pnand %p20231_p7, %p20228_p6 }
 0x10e   :  { %20236 = shalt.err (!%p20233_p8)
}
 0x10f   :  { %s20237_s25 = scalar_lea.vmem %s227_s13, 8192  ;;  %p20242_p10 = scmp.lt.s32.totalorder %s227_s13, %s227_s13 }
 0x110   :  { %p20238_p9 = scmp.ne.s32.totalorder %s227_s13, %s20237_s25  ;;  %p20243_p11 = scmp.lt.s32.totalorder %s20237_s25, %s20237_s25 }
 0x112   :  { %p20244_p12 = por %p20243_p11, %p20242_p10 }
 0x114   :  { %p20245_p13 = pnand %p20244_p12, %p20238_p9 }
 0x116   :  { %20248 = shalt.err (!%p20245_p13)
}
 0x117   :  { %s24456_s27 = sld [smem:[#allocation43_spill]] }
 0x118   :  { %232 = dma.hbm_to_vmem [thread:$0]  %s20465_s20, 8192, %s227_s13, [#allocation20], %s20341_s15, %s20341_s15, %s20342_s16  }
 0x11d   :  { %s20249_s11 = scalar_lea.hbm %s24456_s27, 8192 }
 0x11e   :  { %p20250_p0 = scmp.ne.s32.totalorder %s24456_s27, %s20249_s11  ;;  %p20253_p1 = scmp.lt.u32.totalorder %s20249_s11, %s24456_s27 }
 0x120   :  { %p20255_p2 = pnand %p20253_p1, %p20250_p0 }
 0x122   :  { %20258 = shalt.err (!%p20255_p2)
}
 0x123   :  { %s20259_s12 = scalar_lea.vmem %s251_s1, 8192  ;;  %p20264_p4 = scmp.lt.s32.totalorder %s251_s1, %s251_s1 }
 0x124   :  { %p20260_p3 = scmp.ne.s32.totalorder %s251_s1, %s20259_s12  ;;  %p20265_p5 = scmp.lt.s32.totalorder %s20259_s12, %s20259_s12 }
 0x126   :  { %p20266_p6 = por %p20265_p5, %p20264_p4 }
 0x128   :  { %p20267_p7 = pnand %p20266_p6, %p20260_p3 }
 0x12a   :  { %20270 = shalt.err (!%p20267_p7)
}
 0x12b   :  { %s24457_s2 = sld [smem:[#allocation45_spill]]  ;;  %s20361_s20 = smov [#allocation25]  }
 0x12c   :  { %256 = dma.hbm_to_vmem [thread:$0]  %s24456_s27, 8192, %s251_s1, [#allocation23], %s20341_s15, %s20341_s15, %s20342_s16  }
 0x12d   :  { %s264_s3 = sshll.u32 %s20361_s20, 4  ;;  %s265_s3 = int_to_ptr.vmem [resolvable:$true] %s264_s3 }
 0x131   :  { %s20271_s0 = scalar_lea.hbm %s24457_s2, 8192 }
 0x132   :  { %p20272_p8 = scmp.ne.s32.totalorder %s24457_s2, %s20271_s0  ;;  %p20275_p9 = scmp.lt.u32.totalorder %s20271_s0, %s24457_s2 }
 0x134   :  { %p20277_p10 = pnand %p20275_p9, %p20272_p8 }
 0x136   :  { %20280 = shalt.err (!%p20277_p10)
}
 0x137   :  { %s20281_s29 = scalar_lea.vmem %s265_s3, 8192  ;;  %p20286_p12 = scmp.lt.s32.totalorder %s265_s3, %s265_s3 }
 0x138   :  { %p20282_p11 = scmp.ne.s32.totalorder %s265_s3, %s20281_s29  ;;  %p20287_p13 = scmp.lt.s32.totalorder %s20281_s29, %s20281_s29 }
 0x13a   :  { %p20288_p0 = por %p20287_p13, %p20286_p12 }
 0x13c   :  { %p20289_p1 = pnand %p20288_p0, %p20282_p11 }
 0x13e   :  { %20292 = shalt.err (!%p20289_p1)
}
 0x13f   :  { %270 = dma.hbm_to_vmem [thread:$0]  %s24457_s2, 8192, %s265_s3, [#allocation26], %s20345_s7, %s20345_s7, %s20346_s10  }
 0x140   :  { %20293 = dma.done.wait [#allocation3], 64  }
 0x141   :  { %20294 = vsyncadd [#allocation3], 4294967232 }
 0x142   :  { %20295 = dma.done.wait [#allocation5], 24640  }
 0x143   :  { %20296 = vsyncadd [#allocation5], 4294942656 }
 0x144   :  { %20297 = dma.done.wait [#allocation8], 24640  }
 0x145   :  { %20298 = vsyncadd [#allocation8], 4294942656 }
 0x146   :  { %20299 = dma.done.wait [#allocation11], 16384  }
 0x147   :  { %20300 = vsyncadd [#allocation11], 4294950912 }
 0x148   :  { %20301 = dma.done.wait [#allocation14], 8224  }
 0x149   :  { %20302 = vsyncadd [#allocation14], 4294959072 }
 0x14a   :  { %20303 = dma.done.wait [#allocation17], 12320  }
 0x14b   :  { %20304 = vsyncadd [#allocation17], 4294954976 }
 0x14c   :  { %20305 = dma.done.wait [#allocation20], 20480  }
 0x14d   :  { %20306 = vsyncadd [#allocation20], 4294946816 }
 0x14e   :  { %20307 = dma.done.wait [#allocation23], 16384  }
 0x14f   :  { %20308 = vsyncadd [#allocation23], 4294950912 }
 0x150   :  { %20309 = dma.done.wait [#allocation26], 8192  }
 0x151   :  { %20310 = vsyncadd [#allocation26], 4294959104  ;;  %s24458_s15 = sld [smem:[#allocation39_spill]]  ;;  %s24459_s16 = sld [smem:[#allocation36_spill]] }
 0x152   :  { %s24460_s7 = sld [smem:[#allocation37_spill]]  ;;  %s24488_s10 = sld [smem:[#allocation38_spill]] }
 0x153   :  { %s24592_s18 = sld [smem:[#allocation41_spill]]  ;;  %s24618_s8 = sld [smem:[#allocation40_spill]] }
 0x154   :  { %s24688_s4 = sld [smem:[#allocation42_spill]]  ;;  %s24873_s22 = sld [smem:[#allocation44_spill]] }
 0x155   :  { %s24878_s23 = sld [smem:[#allocation47_spill]]  ;;  %s24879_s14 = sld [smem:[#allocation46_spill]] }
 0x157   :  { %v17882_v0 = vld [vmem:[%s24458_s15 + $0x4] ss:$16 sps:$4 sm:$0xff]   ;;  %v17886_v2 = vld [vmem:[%s24458_s15] ss:$16 sps:$4 sm:$0xff]   ;;  %v331_v46 = vld [vmem:[%s24459_s16 + $0x8] sm:$0xff] }
 0x158   :  { %v17884_v1 = vld [vmem:[%s24458_s15 + $0x204] ss:$16 sps:$4 sm:$0xff]   ;;  %1648 = vmatprep.subr.bf16.mxu1 %v17882_v0  ;;  %v17887_v3 = vld [vmem:[%s24458_s15 + $0x200] ss:$16 sps:$4 sm:$0xff]   ;;  %v337_v47 = vld [vmem:[%s24459_s16 + $0x38] sm:$0xff] }
 0x159   :  { %1761 = vmatprep.subr.bf16.mxu0 %v17884_v1  ;;  %v17888_v4 = vld [vmem:[%s24458_s15 + $0x24] ss:$16 sps:$4 sm:$0xff]   ;;  %1649 = vmatpush1.bf16.msra.mxu1 %v17886_v2  ;;  %v17892_v6 = vld [vmem:[%s24458_s15 + $0x20] ss:$16 sps:$4 sm:$0xff]   ;;  %v333_v48 = vld [vmem:[%s24459_s16 + $0x18] sm:$0xff]  ;;  %v20667_v53 = vpack.c.bf16 %v337_v47, %v331_v46 }
 0x15a   :  { %1762 = vmatpush1.bf16.msra.mxu0 %v17887_v3  ;;  %v17890_v5 = vld [vmem:[%s24458_s15 + $0x224] ss:$16 sps:$4 sm:$0xff]   ;;  %1650 = vmatprep.subr.bf16.mxu1 %v17888_v4  ;;  %v17893_v7 = vld [vmem:[%s24458_s15 + $0x220] ss:$16 sps:$4 sm:$0xff]   ;;  %v339_v49 = vld [vmem:[%s24459_s16 + $0x48] sm:$0xff] }
 0x15b   :  { %1763 = vmatprep.subr.bf16.mxu0 %v17890_v5  ;;  %v17894_v8 = vld [vmem:[%s24458_s15 + $0x44] ss:$16 sps:$4 sm:$0xff]   ;;  %v17898_v10 = vld [vmem:[%s24458_s15 + $0x40] ss:$16 sps:$4 sm:$0xff]   ;;  %v20669_v54 = vpack.c.bf16 %v339_v49, %v333_v48  ;;  %1680 = vmatprep.mubr.bf16.mxu1 %v20667_v53 }
 0x15c   :  { %v17896_v9 = vld [vmem:[%s24458_s15 + $0x244] ss:$16 sps:$4 sm:$0xff]   ;;  %v17899_v11 = vld [vmem:[%s24458_s15 + $0x240] ss:$16 sps:$4 sm:$0xff]  }
 0x15d   :  { %1651 = vmatpush1.bf16.msra.mxu1 %v17892_v6  ;;  %v17900_v12 = vld [vmem:[%s24458_s15 + $0x64] ss:$16 sps:$4 sm:$0xff]   ;;  %v17904_v14 = vld [vmem:[%s24458_s15 + $0x60] ss:$16 sps:$4 sm:$0xff]   ;;  %1793 = vmatprep.mubr.bf16.mxu0 %v20669_v54 }
 0x15e   :  { %1764 = vmatpush1.bf16.msra.mxu0 %v17893_v7  ;;  %1652 = vmatprep.subr.bf16.mxu1 %v17894_v8  ;;  %v17902_v13 = vld [vmem:[%s24458_s15 + $0x264] ss:$16 sps:$4 sm:$0xff]   ;;  %v17905_v15 = vld [vmem:[%s24458_s15 + $0x260] ss:$16 sps:$4 sm:$0xff]  }
 0x15f   :  { %1765 = vmatprep.subr.bf16.mxu0 %v17896_v9  ;;  %v17906_v16 = vld [vmem:[%s24458_s15 + $0x84] ss:$16 sps:$4 sm:$0xff]   ;;  %v17910_v18 = vld [vmem:[%s24458_s15 + $0x80] ss:$16 sps:$4 sm:$0xff]  }
 0x160   :  { %v17908_v17 = vld [vmem:[%s24458_s15 + $0x284] ss:$16 sps:$4 sm:$0xff]   ;;  %v17911_v19 = vld [vmem:[%s24458_s15 + $0x280] ss:$16 sps:$4 sm:$0xff]  }
 0x161   :  { %1653 = vmatpush1.bf16.msra.mxu1 %v17898_v10  ;;  %v17912_v20 = vld [vmem:[%s24458_s15 + $0xa4] ss:$16 sps:$4 sm:$0xff]   ;;  %v17916_v22 = vld [vmem:[%s24458_s15 + $0xa0] ss:$16 sps:$4 sm:$0xff]  }
 0x162   :  { %1766 = vmatpush1.bf16.msra.mxu0 %v17899_v11  ;;  %1654 = vmatprep.subr.bf16.mxu1 %v17900_v12  ;;  %v17914_v21 = vld [vmem:[%s24458_s15 + $0x2a4] ss:$16 sps:$4 sm:$0xff]   ;;  %v17917_v23 = vld [vmem:[%s24458_s15 + $0x2a0] ss:$16 sps:$4 sm:$0xff]   ;;  %v17983_v11 = vld [vmem:[%s24458_s15 + $0xc] ss:$16 sps:$4 sm:$0xff]  }
 0x163   :  { %1767 = vmatprep.subr.bf16.mxu0 %v17902_v13  ;;  %v17918_v24 = vld [vmem:[%s24458_s15 + $0xc4] ss:$16 sps:$4 sm:$0xff]   ;;  %v17922_v26 = vld [vmem:[%s24458_s15 + $0xc0] ss:$16 sps:$4 sm:$0xff]   ;;  %v17981_v13 = vld [vmem:[%s24458_s15 + $0x8] ss:$16 sps:$4 sm:$0xff]  }
 0x164   :  { %v17920_v25 = vld [vmem:[%s24458_s15 + $0x2c4] ss:$16 sps:$4 sm:$0xff]   ;;  %v17923_v27 = vld [vmem:[%s24458_s15 + $0x2c0] ss:$16 sps:$4 sm:$0xff]  }
 0x165   :  { %1655 = vmatpush1.bf16.msra.mxu1 %v17904_v14  ;;  %v17924_v28 = vld [vmem:[%s24458_s15 + $0xe4] ss:$16 sps:$4 sm:$0xff]   ;;  %v17928_v30 = vld [vmem:[%s24458_s15 + $0xe0] ss:$16 sps:$4 sm:$0xff]   ;;  %v343_v14 = vld [vmem:[%s24459_s16 + $0x68] sm:$0xff] }
 0x166   :  { %1768 = vmatpush1.bf16.msra.mxu0 %v17905_v15  ;;  %1656 = vmatprep.subr.bf16.mxu1 %v17906_v16  ;;  %v17926_v29 = vld [vmem:[%s24458_s15 + $0x2e4] ss:$16 sps:$4 sm:$0xff]   ;;  %v17929_v31 = vld [vmem:[%s24458_s15 + $0x2e0] ss:$16 sps:$4 sm:$0xff]   ;;  %v349_v15 = vld [vmem:[%s24459_s16 + $0x98] sm:$0xff] }
 0x167   :  { %1769 = vmatprep.subr.bf16.mxu0 %v17908_v17  ;;  %v17930_v32 = vld [vmem:[%s24458_s15 + $0x104] ss:$16 sps:$4 sm:$0xff]   ;;  %v17934_v34 = vld [vmem:[%s24458_s15 + $0x100] ss:$16 sps:$4 sm:$0xff]  }
 0x168   :  { %v17932_v33 = vld [vmem:[%s24458_s15 + $0x304] ss:$16 sps:$4 sm:$0xff]   ;;  %v17935_v35 = vld [vmem:[%s24458_s15 + $0x300] ss:$16 sps:$4 sm:$0xff]  }
 0x169   :  { %1657 = vmatpush1.bf16.msra.mxu1 %v17910_v18  ;;  %v17936_v36 = vld [vmem:[%s24458_s15 + $0x124] ss:$16 sps:$4 sm:$0xff]   ;;  %v17940_v38 = vld [vmem:[%s24458_s15 + $0x120] ss:$16 sps:$4 sm:$0xff]   ;;  %v345_v18 = vld [vmem:[%s24459_s16 + $0x78] sm:$0xff] }
 0x16a   :  { %1770 = vmatpush1.bf16.msra.mxu0 %v17911_v19  ;;  %1658 = vmatprep.subr.bf16.mxu1 %v17912_v20  ;;  %v17938_v37 = vld [vmem:[%s24458_s15 + $0x324] ss:$16 sps:$4 sm:$0xff]   ;;  %v17941_v39 = vld [vmem:[%s24458_s15 + $0x320] ss:$16 sps:$4 sm:$0xff]   ;;  %v351_v19 = vld [vmem:[%s24459_s16 + $0xa8] sm:$0xff] }
 0x16b   :  { %1771 = vmatprep.subr.bf16.mxu0 %v17914_v21  ;;  %v17942_v40 = vld [vmem:[%s24458_s15 + $0x144] ss:$16 sps:$4 sm:$0xff]   ;;  %v17946_v42 = vld [vmem:[%s24458_s15 + $0x140] ss:$16 sps:$4 sm:$0xff]   ;;  %v17989_v21 = vld [vmem:[%s24458_s15 + $0x2c] ss:$16 sps:$4 sm:$0xff]  }
 0x16c   :  { %v17944_v41 = vld [vmem:[%s24458_s15 + $0x344] ss:$16 sps:$4 sm:$0xff]   ;;  %v17947_v43 = vld [vmem:[%s24458_s15 + $0x340] ss:$16 sps:$4 sm:$0xff]  }
 0x16d   :  { %1659 = vmatpush1.bf16.msra.mxu1 %v17916_v22  ;;  %v17948_v44 = vld [vmem:[%s24458_s15 + $0x164] ss:$16 sps:$4 sm:$0xff]   ;;  %v17952_v50 = vld [vmem:[%s24458_s15 + $0x160] ss:$16 sps:$4 sm:$0xff]  }
 0x16e   :  { %1772 = vmatpush1.bf16.msra.mxu0 %v17917_v23  ;;  %1660 = vmatprep.subr.bf16.mxu1 %v17918_v24  ;;  %v17950_v45 = vld [vmem:[%s24458_s15 + $0x364] ss:$16 sps:$4 sm:$0xff]   ;;  %v17953_v51 = vld [vmem:[%s24458_s15 + $0x360] ss:$16 sps:$4 sm:$0xff]   ;;  %v20707_v23 = vpack.c.bf16 %v349_v15, %v343_v14  ;;  %v20709_v24 = vpack.c.bf16 %v351_v19, %v345_v18  ;;  %v381_v18 = vld [vmem:[%s24459_s16 + $0x198] sm:$0xff] }
 0x16f   :  { %1773 = vmatprep.subr.bf16.mxu0 %v17920_v25  ;;  %v17954_v52 = vld [vmem:[%s24458_s15 + $0x184] ss:$16 sps:$4 sm:$0xff]   ;;  %v17958_v56 = vld [vmem:[%s24458_s15 + $0x180] ss:$16 sps:$4 sm:$0xff]   ;;  %v17987_v25 = vld [vmem:[%s24458_s15 + $0x28] ss:$16 sps:$4 sm:$0xff]  }
 0x170   :  { %v17956_v55 = vld [vmem:[%s24458_s15 + $0x384] ss:$16 sps:$4 sm:$0xff]   ;;  %v17959_v57 = vld [vmem:[%s24458_s15 + $0x380] ss:$16 sps:$4 sm:$0xff]   ;;  %v387_v19 = vld [vmem:[%s24459_s16 + $0x1c8] sm:$0xff] }
 0x171   :  { %1661 = vmatpush1.bf16.msra.mxu1 %v17922_v26  ;;  %v17960_v58 = vld [vmem:[%s24458_s15 + $0x1a4] ss:$16 sps:$4 sm:$0xff]   ;;  %v17964_v60 = vld [vmem:[%s24458_s15 + $0x1a0] ss:$16 sps:$4 sm:$0xff]  }
 0x172   :  { %1774 = vmatpush1.bf16.msra.mxu0 %v17923_v27  ;;  %1662 = vmatprep.subr.bf16.mxu1 %v17924_v28  ;;  %v17962_v59 = vld [vmem:[%s24458_s15 + $0x3a4] ss:$16 sps:$4 sm:$0xff]   ;;  %v17965_v61 = vld [vmem:[%s24458_s15 + $0x3a0] ss:$16 sps:$4 sm:$0xff]  }
 0x173   :  { %1775 = vmatprep.subr.bf16.mxu0 %v17926_v29  ;;  %v17966_v62 = vld [vmem:[%s24458_s15 + $0x1c4] ss:$16 sps:$4 sm:$0xff]   ;;  %v17970_v0 = vld [vmem:[%s24458_s15 + $0x1c0] ss:$16 sps:$4 sm:$0xff]  }
 0x174   :  { %v17968_v63 = vld [vmem:[%s24458_s15 + $0x3c4] ss:$16 sps:$4 sm:$0xff]   ;;  %v17971_v1 = vld [vmem:[%s24458_s15 + $0x3c0] ss:$16 sps:$4 sm:$0xff]  }
 0x175   :  { %1663 = vmatpush1.bf16.msra.mxu1 %v17928_v30  ;;  %v17972_v2 = vld [vmem:[%s24458_s15 + $0x1e4] ss:$16 sps:$4 sm:$0xff]   ;;  %v17976_v4 = vld [vmem:[%s24458_s15 + $0x1e0] ss:$16 sps:$4 sm:$0xff]  }
 0x176   :  { %1776 = vmatpush1.bf16.msra.mxu0 %v17929_v31  ;;  %1664 = vmatprep.subr.bf16.mxu1 %v17930_v32  ;;  %v17974_v3 = vld [vmem:[%s24458_s15 + $0x3e4] ss:$16 sps:$4 sm:$0xff]   ;;  %v17977_v5 = vld [vmem:[%s24458_s15 + $0x3e0] ss:$16 sps:$4 sm:$0xff]   ;;  %v17995_v31 = vld [vmem:[%s24458_s15 + $0x4c] ss:$16 sps:$4 sm:$0xff]  }
 0x177   :  { %1777 = vmatprep.subr.bf16.mxu0 %v17932_v33  ;;  %v330_v6 = vld [vmem:[%s24459_s16] sm:$0xff]  ;;  %v336_v7 = vld [vmem:[%s24459_s16 + $0x30] sm:$0xff]  ;;  %v17993_v33 = vld [vmem:[%s24458_s15 + $0x48] ss:$16 sps:$4 sm:$0xff]  }
 0x178   :  { %v332_v8 = vld [vmem:[%s24459_s16 + $0x10] sm:$0xff]  ;;  %v338_v9 = vld [vmem:[%s24459_s16 + $0x40] sm:$0xff]  ;;  %v20698_v16 = vpack.c.bf16 %v336_v7, %v330_v6 }
 0x179   :  { %1665 = vmatpush1.bf16.msra.mxu1 %v17934_v34  ;;  %v17980_v10 = vld [vmem:[%s24458_s15 + $0x404] ss:$16 sps:$4 sm:$0xff]   ;;  %v17978_v12 = vld [vmem:[%s24458_s15 + $0x400] ss:$16 sps:$4 sm:$0xff]   ;;  %v20700_v17 = vpack.c.bf16 %v338_v9, %v332_v8  ;;  %v355_v34 = vld [vmem:[%s24459_s16 + $0xc8] sm:$0xff] }
 0x17a   :  { %1778 = vmatpush1.bf16.msra.mxu0 %v17935_v35  ;;  %1666 = vmatprep.subr.bf16.mxu1 %v17936_v36  ;;  %v17986_v20 = vld [vmem:[%s24458_s15 + $0x424] ss:$16 sps:$4 sm:$0xff]   ;;  %v17984_v22 = vld [vmem:[%s24458_s15 + $0x420] ss:$16 sps:$4 sm:$0xff]   ;;  %v361_v35 = vld [vmem:[%s24459_s16 + $0xf8] sm:$0xff] }
 0x17b   :  { %1779 = vmatprep.subr.bf16.mxu0 %v17938_v37  ;;  %v342_v26 = vld [vmem:[%s24459_s16 + $0x60] sm:$0xff]  ;;  %v348_v27 = vld [vmem:[%s24459_s16 + $0x90] sm:$0xff]  ;;  %v18019_v9 = vld [vmem:[%s24458_s15 + $0xcc] ss:$16 sps:$4 sm:$0xff]  }
 0x17c   :  { %v344_v28 = vld [vmem:[%s24459_s16 + $0x70] sm:$0xff]  ;;  %v350_v29 = vld [vmem:[%s24459_s16 + $0xa0] sm:$0xff]  ;;  %v20726_v36 = vpack.c.bf16 %v348_v27, %v342_v26  ;;  %v20793_v26 = vpack.c.bf16 %v387_v19, %v381_v18  ;;  %v18023_v27 = vld [vmem:[%s24458_s15 + $0xe8] ss:$16 sps:$4 sm:$0xff]  }
 0x17d   :  { %1667 = vmatpush1.bf16.msra.mxu1 %v17940_v38  ;;  %v17992_v30 = vld [vmem:[%s24458_s15 + $0x444] ss:$16 sps:$4 sm:$0xff]   ;;  %v17990_v32 = vld [vmem:[%s24458_s15 + $0x440] ss:$16 sps:$4 sm:$0xff]   ;;  %v20728_v37 = vpack.c.bf16 %v350_v29, %v344_v28  ;;  %v357_v38 = vld [vmem:[%s24459_s16 + $0xd8] sm:$0xff] }
 0x17e   :  { %1780 = vmatpush1.bf16.msra.mxu0 %v17941_v39  ;;  %1668 = vmatprep.subr.bf16.mxu1 %v17942_v40  ;;  %v363_v39 = vld [vmem:[%s24459_s16 + $0x108] sm:$0xff]  ;;  %v17998_v40 = vld [vmem:[%s24458_s15 + $0x464] ss:$16 sps:$4 sm:$0xff]  }
 0x17f   :  { %1781 = vmatprep.subr.bf16.mxu0 %v17944_v41  ;;  %v18001_v41 = vld [vmem:[%s24458_s15 + $0x6c] ss:$16 sps:$4 sm:$0xff]   ;;  %v354_v46 = vld [vmem:[%s24459_s16 + $0xc0] sm:$0xff]  ;;  %v360_v47 = vld [vmem:[%s24459_s16 + $0xf0] sm:$0xff] }
 0x180   :  { %v356_v48 = vld [vmem:[%s24459_s16 + $0xd0] sm:$0xff]  ;;  %v362_v49 = vld [vmem:[%s24459_s16 + $0x100] sm:$0xff] }
 0x181   :  { %1669 = vmatpush1.bf16.msra.mxu1 %v17946_v42  ;;  %v17996_v42 = vld [vmem:[%s24458_s15 + $0x460] ss:$16 sps:$4 sm:$0xff]   ;;  %v18016_v8 = vld [vmem:[%s24458_s15 + $0x4c4] ss:$16 sps:$4 sm:$0xff]  }
 0x182   :  { %1782 = vmatpush1.bf16.msra.mxu0 %v17947_v43  ;;  %1670 = vmatprep.subr.bf16.mxu1 %v17948_v44  ;;  %v20735_v43 = vpack.c.bf16 %v361_v35, %v355_v34  ;;  %v20737_v44 = vpack.c.bf16 %v363_v39, %v357_v38  ;;  %v368_v6 = vld [vmem:[%s24459_s16 + $0x130] sm:$0xff]  ;;  %v374_v7 = vld [vmem:[%s24459_s16 + $0x160] sm:$0xff]  ;;  %v18029_v35 = vld [vmem:[%s24458_s15 + $0x108] ss:$16 sps:$4 sm:$0xff]  }
 0x183   :  { %1783 = vmatprep.subr.bf16.mxu0 %v17950_v45  ;;  %v17999_v45 = vld [vmem:[%s24458_s15 + $0x68] ss:$16 sps:$4 sm:$0xff]   ;;  %v20784_v15 = vpack.c.bf16 %v374_v7, %v368_v6  ;;  %v378_v28 = vld [vmem:[%s24459_s16 + $0x180] sm:$0xff]  ;;  %v384_v29 = vld [vmem:[%s24459_s16 + $0x1b0] sm:$0xff] }
 0x184   :  { %v18026_v34 = vld [vmem:[%s24458_s15 + $0x500] ss:$16 sps:$4 sm:$0xff]   ;;  %v391_v38 = vld [vmem:[%s24459_s16 + $0x1e8] sm:$0xff]  ;;  %v397_v39 = vld [vmem:[%s24459_s16 + $0x218] sm:$0xff] }
 0x185   :  { %1671 = vmatpush1.bf16.msra.mxu1 %v17952_v50  ;;  %v18004_v50 = vld [vmem:[%s24458_s15 + $0x484] ss:$16 sps:$4 sm:$0xff]   ;;  %v405_v6 = vld [vmem:[%s24459_s16 + $0x258] sm:$0xff]  ;;  %v411_v7 = vld [vmem:[%s24459_s16 + $0x288] sm:$0xff] }
 0x186   :  { %1784 = vmatpush1.bf16.msra.mxu0 %v17953_v51  ;;  %1672 = vmatprep.subr.bf16.mxu1 %v17954_v52  ;;  %v18007_v51 = vld [vmem:[%s24458_s15 + $0x8c] ss:$16 sps:$4 sm:$0xff]   ;;  %v18002_v52 = vld [vmem:[%s24458_s15 + $0x480] ss:$16 sps:$4 sm:$0xff]  }
 0x187   :  { %1785 = vmatprep.subr.bf16.mxu0 %v17956_v55  ;;  %v18005_v55 = vld [vmem:[%s24458_s15 + $0x88] ss:$16 sps:$4 sm:$0xff]   ;;  %v402_v18 = vld [vmem:[%s24459_s16 + $0x240] sm:$0xff]  ;;  %v408_v19 = vld [vmem:[%s24459_s16 + $0x270] sm:$0xff] }
 0x189   :  { %1673 = vmatpush1.bf16.msra.mxu1 %v17958_v56  ;;  %v367_v56 = vld [vmem:[%s24459_s16 + $0x128] sm:$0xff] }
 0x18a   :  { %1786 = vmatpush1.bf16.msra.mxu0 %v17959_v57  ;;  %1674 = vmatprep.subr.bf16.mxu1 %v17960_v58  ;;  %v373_v57 = vld [vmem:[%s24459_s16 + $0x158] sm:$0xff]  ;;  %v20754_v58 = vpack.c.bf16 %v360_v47, %v354_v46  ;;  %v18034_v46 = vld [vmem:[%s24458_s15 + $0x524] ss:$16 sps:$4 sm:$0xff]  }
 0x18b   :  { %1787 = vmatprep.subr.bf16.mxu0 %v17962_v59  ;;  %v20756_v59 = vpack.c.bf16 %v362_v49, %v356_v48  ;;  %v18037_v47 = vld [vmem:[%s24458_s15 + $0x12c] ss:$16 sps:$4 sm:$0xff]   ;;  %v18032_v48 = vld [vmem:[%s24458_s15 + $0x520] ss:$16 sps:$4 sm:$0xff]   ;;  %v20819_v49 = vpack.c.bf16 %v397_v39, %v391_v38  ;;  %v18058_v38 = vld [vmem:[%s24458_s15 + $0x5a4] ss:$16 sps:$4 sm:$0xff]  }
 0x18c   :  { %v18061_v39 = vld [vmem:[%s24458_s15 + $0x1ac] ss:$16 sps:$4 sm:$0xff]  }
 0x18d   :  { %1675 = vmatpush1.bf16.msra.mxu1 %v17964_v60  ;;  %v369_v60 = vld [vmem:[%s24459_s16 + $0x138] sm:$0xff] }
 0x18e   :  { %1788 = vmatpush1.bf16.msra.mxu0 %v17965_v61  ;;  %1676 = vmatprep.subr.bf16.mxu1 %v17966_v62  ;;  %v375_v61 = vld [vmem:[%s24459_s16 + $0x168] sm:$0xff]  ;;  %v18010_v62 = vld [vmem:[%s24458_s15 + $0x4a4] ss:$16 sps:$4 sm:$0xff]  }
 0x18f   :  { %1789 = vmatprep.subr.bf16.mxu0 %v17968_v63  ;;  %v18013_v63 = vld [vmem:[%s24458_s15 + $0xac] ss:$16 sps:$4 sm:$0xff]  }
 0x191   :  { %1677 = vmatpush1.bf16.msra.mxu1 %v17970_v0  ;;  %v18008_v0 = vld [vmem:[%s24458_s15 + $0x4a0] ss:$16 sps:$4 sm:$0xff]  }
 0x192   :  { %1790 = vmatpush1.bf16.msra.mxu0 %v17971_v1  ;;  %1678 = vmatprep.subr.bf16.mxu1 %v17972_v2  ;;  %v20763_v1 = vpack.c.bf16 %v373_v57, %v367_v56  ;;  %v20765_v2 = vpack.c.bf16 %v375_v61, %v369_v60  ;;  %v392_v56 = vld [vmem:[%s24459_s16 + $0x1f0] sm:$0xff]  ;;  %v398_v57 = vld [vmem:[%s24459_s16 + $0x220] sm:$0xff]  ;;  %v18043_v61 = vld [vmem:[%s24458_s15 + $0x14c] ss:$16 sps:$4 sm:$0xff]  }
 0x193   :  { %1791 = vmatprep.subr.bf16.mxu0 %v17974_v3  ;;  %v18011_v3 = vld [vmem:[%s24458_s15 + $0xa8] ss:$16 sps:$4 sm:$0xff]   ;;  %v18040_v60 = vld [vmem:[%s24458_s15 + $0x544] ss:$16 sps:$4 sm:$0xff]  }
 0x195   :  { %1679 = vmatpush1.bf16.msra.mxu1 %v17976_v4  ;;  %v366_v4 = vld [vmem:[%s24459_s16 + $0x120] sm:$0xff] }
 0x196   :  { %1792 = vmatpush1.bf16.msra.mxu0 %v17977_v5  ;;  %1987 = vmatprep.subr.bf16.mxu1 %v17983_v11  ;;  %v372_v5 = vld [vmem:[%s24459_s16 + $0x150] sm:$0xff]  ;;  %v18017_v11 = vld [vmem:[%s24458_s15 + $0xc8] ss:$16 sps:$4 sm:$0xff]  }
 0x197   :  { %1874 = vmatprep.subr.bf16.mxu0 %v17980_v10  ;;  %v18014_v10 = vld [vmem:[%s24458_s15 + $0x4c0] ss:$16 sps:$4 sm:$0xff]   ;;  %v20782_v14 = vpack.c.bf16 %v372_v5, %v366_v4  ;;  %v20840_v5 = vpack.c.bf16 %v398_v57, %v392_v56  ;;  %v18064_v56 = vld [vmem:[%s24458_s15 + $0x5c4] ss:$16 sps:$4 sm:$0xff]   ;;  %v18067_v57 = vld [vmem:[%s24458_s15 + $0x1cc] ss:$16 sps:$4 sm:$0xff]  }
 0x198   :  { %1681 = vmatmul.mubr.bf16.vlgmr.msra.gmra.mrb[0].mxu1 %v20698_v16 }
 0x199   :  { %1794 = vmatmul.mubr.bf16.vlgmr.msra.gmra.mrb[0].mxu0 %v20700_v17  ;;  %1988 = vmatpush1.bf16.msra.mxu1 %v17981_v13  ;;  %v385_v13 = vld [vmem:[%s24459_s16 + $0x1b8] sm:$0xff] }
 0x19a   :  { %1875 = vmatpush1.bf16.msra.mxu0 %v17978_v12  ;;  %1989 = vmatprep.subr.bf16.mxu1 %v17989_v21  ;;  %v379_v12 = vld [vmem:[%s24459_s16 + $0x188] sm:$0xff] }
 0x19b   :  { %1876 = vmatprep.subr.bf16.mxu0 %v17986_v20  ;;  %1690 = vmatprep.mubr.bf16.mxu1 %v20707_v23  ;;  %v18022_v20 = vld [vmem:[%s24458_s15 + $0x4e4] ss:$16 sps:$4 sm:$0xff]   ;;  %v18025_v21 = vld [vmem:[%s24458_s15 + $0xec] ss:$16 sps:$4 sm:$0xff]  }
 0x19c   :  { %1803 = vmatprep.mubr.bf16.mxu0 %v20709_v24 }
 0x19d   :  { %1990 = vmatpush1.bf16.msra.mxu1 %v17987_v25  ;;  %v20791_v25 = vpack.c.bf16 %v385_v13, %v379_v12  ;;  %v20850_v13 = vpack.c.bf16 %v411_v7, %v405_v6  ;;  %v18070_v6 = vld [vmem:[%s24458_s15 + $0x5e4] ss:$16 sps:$4 sm:$0xff]   ;;  %v18073_v7 = vld [vmem:[%s24458_s15 + $0x1ec] ss:$16 sps:$4 sm:$0xff]  }
 0x19e   :  { %1877 = vmatpush1.bf16.msra.mxu0 %v17984_v22  ;;  %1991 = vmatprep.subr.bf16.mxu1 %v17995_v31  ;;  %v18020_v22 = vld [vmem:[%s24458_s15 + $0x4e0] ss:$16 sps:$4 sm:$0xff]  }
 0x19f   :  { %1878 = vmatprep.subr.bf16.mxu0 %v17992_v30  ;;  %v380_v30 = vld [vmem:[%s24459_s16 + $0x190] sm:$0xff]  ;;  %v386_v31 = vld [vmem:[%s24459_s16 + $0x1c0] sm:$0xff] }
 0x1a0   :  { %1691 = vmatmul.mubr.bf16.gmra.mrb[4].mxu1 %v20726_v36 }
 0x1a1   :  { %1804 = vmatmul.mubr.bf16.gmra.mrb[4].mxu0 %v20728_v37  ;;  %1992 = vmatpush1.bf16.msra.mxu1 %v17993_v33  ;;  %v18031_v33 = vld [vmem:[%s24458_s15 + $0x10c] ss:$16 sps:$4 sm:$0xff]  }
 0x1a2   :  { %1879 = vmatpush1.bf16.msra.mxu0 %v17990_v32  ;;  %1993 = vmatprep.subr.bf16.mxu1 %v18001_v41  ;;  %v18028_v32 = vld [vmem:[%s24458_s15 + $0x504] ss:$16 sps:$4 sm:$0xff]   ;;  %v20812_v41 = vpack.c.bf16 %v386_v31, %v380_v30  ;;  %v421_v30 = vld [vmem:[%s24459_s16 + $0x2d8] sm:$0xff]  ;;  %v20865_v31 = vpack.c.bf16 %v408_v19, %v402_v18 }
 0x1a3   :  { %1880 = vmatprep.subr.bf16.mxu0 %v17998_v40  ;;  %1700 = vmatprep.mubr.bf16.mxu1 %v20735_v43  ;;  %v20810_v40 = vpack.c.bf16 %v384_v29, %v378_v28  ;;  %v18050_v28 = vld [vmem:[%s24458_s15 + $0x580] ss:$16 sps:$4 sm:$0xff]   ;;  %v415_v29 = vld [vmem:[%s24459_s16 + $0x2a8] sm:$0xff] }
 0x1a4   :  { %1813 = vmatprep.mubr.bf16.mxu0 %v20737_v44  ;;  %v340_v18 = vld [vmem:[%s24459_s16 + $0x50] sm:$0xff]  ;;  %v18076_v19 = vld [vmem:[%s24458_s15 + $0x20c] ss:$16 sps:$4 sm:$0xff]  }
 0x1a5   :  { %1994 = vmatpush1.bf16.msra.mxu1 %v17999_v45  ;;  %v399_v45 = vld [vmem:[%s24459_s16 + $0x228] sm:$0xff] }
 0x1a6   :  { %1881 = vmatpush1.bf16.msra.mxu0 %v17996_v42  ;;  %1995 = vmatprep.subr.bf16.mxu1 %v18007_v51  ;;  %v393_v42 = vld [vmem:[%s24459_s16 + $0x1f8] sm:$0xff] }
 0x1a7   :  { %1882 = vmatprep.subr.bf16.mxu0 %v18004_v50  ;;  %v20821_v50 = vpack.c.bf16 %v399_v45, %v393_v42  ;;  %v18035_v51 = vld [vmem:[%s24458_s15 + $0x128] ss:$16 sps:$4 sm:$0xff]   ;;  %v18056_v42 = vld [vmem:[%s24458_s15 + $0x5a0] ss:$16 sps:$4 sm:$0xff]  }
 0x1a8   :  { %1701 = vmatmul.mubr.bf16.gmra.mrb[8].mxu1 %v20754_v58  ;;  %v18059_v45 = vld [vmem:[%s24458_s15 + $0x1a8] ss:$16 sps:$4 sm:$0xff]  }
 0x1a9   :  { %1814 = vmatmul.mubr.bf16.gmra.mrb[8].mxu0 %v20756_v59  ;;  %1996 = vmatpush1.bf16.msra.mxu1 %v18005_v55  ;;  %v396_v55 = vld [vmem:[%s24459_s16 + $0x210] sm:$0xff] }
 0x1aa   :  { %1883 = vmatpush1.bf16.msra.mxu0 %v18002_v52  ;;  %1997 = vmatprep.subr.bf16.mxu1 %v18013_v63  ;;  %v390_v52 = vld [vmem:[%s24459_s16 + $0x1e0] sm:$0xff]  ;;  %v18041_v63 = vld [vmem:[%s24458_s15 + $0x148] ss:$16 sps:$4 sm:$0xff]  }
 0x1ab   :  { %1884 = vmatprep.subr.bf16.mxu0 %v18010_v62  ;;  %1710 = vmatprep.mubr.bf16.mxu1 %v20763_v1  ;;  %v18038_v62 = vld [vmem:[%s24458_s15 + $0x540] ss:$16 sps:$4 sm:$0xff]   ;;  %v20838_v4 = vpack.c.bf16 %v396_v55, %v390_v52 }
 0x1ac   :  { %1823 = vmatprep.mubr.bf16.mxu0 %v20765_v2  ;;  %v416_v52 = vld [vmem:[%s24459_s16 + $0x2b0] sm:$0xff]  ;;  %v422_v55 = vld [vmem:[%s24459_s16 + $0x2e0] sm:$0xff] }
 0x1ad   :  { %1998 = vmatpush1.bf16.msra.mxu1 %v18011_v3  ;;  %v409_v3 = vld [vmem:[%s24459_s16 + $0x278] sm:$0xff] }
 0x1ae   :  { %1885 = vmatpush1.bf16.msra.mxu0 %v18008_v0  ;;  %1999 = vmatprep.subr.bf16.mxu1 %v18019_v9  ;;  %v403_v0 = vld [vmem:[%s24459_s16 + $0x248] sm:$0xff] }
 0x1af   :  { %1886 = vmatprep.subr.bf16.mxu0 %v18016_v8  ;;  %v18046_v8 = vld [vmem:[%s24458_s15 + $0x564] ss:$16 sps:$4 sm:$0xff]   ;;  %v18049_v9 = vld [vmem:[%s24458_s15 + $0x16c] ss:$16 sps:$4 sm:$0xff]   ;;  %v20848_v12 = vpack.c.bf16 %v409_v3, %v403_v0  ;;  %v18062_v0 = vld [vmem:[%s24458_s15 + $0x5c0] ss:$16 sps:$4 sm:$0xff]  }
 0x1b0   :  { %1711 = vmatmul.mubr.bf16.gmra.mrb[12].mxu1 %v20782_v14  ;;  %v18065_v3 = vld [vmem:[%s24458_s15 + $0x1c8] ss:$16 sps:$4 sm:$0xff]  }
 0x1b1   :  { %1824 = vmatmul.mubr.bf16.gmra.mrb[12].mxu0 %v20784_v15  ;;  %2000 = vmatpush1.bf16.msra.mxu1 %v18017_v11  ;;  %v18047_v11 = vld [vmem:[%s24458_s15 + $0x168] ss:$16 sps:$4 sm:$0xff]  }
 0x1b2   :  { %1887 = vmatpush1.bf16.msra.mxu0 %v18014_v10  ;;  %2001 = vmatprep.subr.bf16.mxu1 %v18025_v21  ;;  %v18044_v10 = vld [vmem:[%s24458_s15 + $0x560] ss:$16 sps:$4 sm:$0xff]  }
 0x1b3   :  { %1888 = vmatprep.subr.bf16.mxu0 %v18022_v20  ;;  %1720 = vmatprep.mubr.bf16.mxu1 %v20791_v25  ;;  %v404_v20 = vld [vmem:[%s24459_s16 + $0x250] sm:$0xff]  ;;  %v410_v21 = vld [vmem:[%s24459_s16 + $0x280] sm:$0xff] }
 0x1b4   :  { %1833 = vmatprep.mubr.bf16.mxu0 %v20793_v26 }
 0x1b5   :  { %2002 = vmatpush1.bf16.msra.mxu1 %v18023_v27  ;;  %v18055_v27 = vld [vmem:[%s24458_s15 + $0x18c] ss:$16 sps:$4 sm:$0xff]  }
 0x1b6   :  { %1889 = vmatpush1.bf16.msra.mxu0 %v18020_v22  ;;  %2003 = vmatprep.subr.bf16.mxu1 %v18031_v33  ;;  %v18052_v22 = vld [vmem:[%s24458_s15 + $0x584] ss:$16 sps:$4 sm:$0xff]   ;;  %v417_v33 = vld [vmem:[%s24459_s16 + $0x2b8] sm:$0xff] }
 0x1b7   :  { %1890 = vmatprep.subr.bf16.mxu0 %v18028_v32  ;;  %v20867_v32 = vpack.c.bf16 %v410_v21, %v404_v20  ;;  %v18079_v20 = vld [vmem:[#allocation4 + $0x4] ss:$16 sps:$4 sm:$0xff]  }
 0x1b8   :  { %1721 = vmatmul.mubr.bf16.gmra.mrb[16].mxu1 %v20810_v40  ;;  %v18074_v21 = vld [vmem:[%s24458_s15 + $0x208] ss:$16 sps:$4 sm:$0xff]  }
 0x1b9   :  { %1834 = vmatmul.mubr.bf16.gmra.mrb[16].mxu0 %v20812_v41  ;;  %2004 = vmatpush1.bf16.msra.mxu1 %v18029_v35  ;;  %v18053_v35 = vld [vmem:[%s24458_s15 + $0x188] ss:$16 sps:$4 sm:$0xff]  }
 0x1ba   :  { %1891 = vmatpush1.bf16.msra.mxu0 %v18026_v34  ;;  %2005 = vmatprep.subr.bf16.mxu1 %v18037_v47  ;;  %v423_v34 = vld [vmem:[%s24459_s16 + $0x2e8] sm:$0xff] }
 0x1bb   :  { %1892 = vmatprep.subr.bf16.mxu0 %v18034_v46  ;;  %1730 = vmatprep.mubr.bf16.mxu1 %v20819_v49  ;;  %v20876_v46 = vpack.c.bf16 %v421_v30, %v415_v29  ;;  %v20878_v47 = vpack.c.bf16 %v423_v34, %v417_v33  ;;  %v353_v29 = vld [vmem:[%s24459_s16 + $0xb8] sm:$0xff] }
 0x1bc   :  { %1843 = vmatprep.mubr.bf16.mxu0 %v20821_v50  ;;  %v18082_v30 = vld [vmem:[%s24458_s15 + $0x22c] ss:$16 sps:$4 sm:$0xff]   ;;  %v18085_v33 = vld [vmem:[#allocation4 + $0x24] ss:$16 sps:$4 sm:$0xff]  }
 0x1bd   :  { %2006 = vmatpush1.bf16.msra.mxu1 %v18035_v51  ;;  %v420_v51 = vld [vmem:[%s24459_s16 + $0x2d0] sm:$0xff]  ;;  %v18080_v34 = vld [vmem:[%s24458_s15 + $0x228] ss:$16 sps:$4 sm:$0xff]  }
 0x1be   :  { %1893 = vmatpush1.bf16.msra.mxu0 %v18032_v48  ;;  %2007 = vmatprep.subr.bf16.mxu1 %v18043_v61  ;;  %v414_v48 = vld [vmem:[%s24459_s16 + $0x2a0] sm:$0xff]  ;;  %v20892_v61 = vpack.c.bf16 %v422_v55, %v416_v52  ;;  %v365_v55 = vld [vmem:[%s24459_s16 + $0x118] sm:$0xff] }
 0x1bf   :  { %1894 = vmatprep.subr.bf16.mxu0 %v18040_v60  ;;  %v20890_v60 = vpack.c.bf16 %v420_v51, %v414_v48  ;;  %v18086_v48 = vld [vmem:[%s24458_s15 + $0x248] ss:$16 sps:$4 sm:$0xff]   ;;  %v18089_v51 = vld [vmem:[#allocation4 + $0x40] ss:$16 sps:$4 sm:$0xff]  }
 0x1c0   :  { %1731 = vmatmul.mubr.bf16.gmra.mrb[20].mxu1 %v20838_v4 }
 0x1c1   :  { %1844 = vmatmul.mubr.bf16.gmra.mrb[20].mxu0 %v20840_v5  ;;  %2008 = vmatpush1.bf16.msra.mxu1 %v18041_v63  ;;  %v341_v63 = vld [vmem:[%s24459_s16 + $0x58] sm:$0xff] }
 0x1c2   :  { %1895 = vmatpush1.bf16.msra.mxu0 %v18038_v62  ;;  %2009 = vmatprep.subr.bf16.mxu1 %v18049_v9  ;;  %v335_v62 = vld [vmem:[%s24459_s16 + $0x28] sm:$0xff] }
 0x1c3   :  { %1896 = vmatprep.subr.bf16.mxu0 %v18046_v8  ;;  %1740 = vmatprep.mubr.bf16.mxu1 %v20848_v12  ;;  %v18068_v8 = vld [vmem:[%s24458_s15 + $0x5e0] ss:$16 sps:$4 sm:$0xff]   ;;  %v18071_v9 = vld [vmem:[%s24458_s15 + $0x1e8] ss:$16 sps:$4 sm:$0xff]  }
 0x1c4   :  { %1853 = vmatprep.mubr.bf16.mxu0 %v20850_v13 }
 0x1c5   :  { %2010 = vmatpush1.bf16.msra.mxu1 %v18047_v11  ;;  %v334_v11 = vld [vmem:[%s24459_s16 + $0x20] sm:$0xff] }
 0x1c6   :  { %1897 = vmatpush1.bf16.msra.mxu0 %v18044_v10  ;;  %2011 = vmatprep.subr.bf16.mxu1 %v18055_v27  ;;  %v20902_v10 = vpack.c.bf16 %v341_v63, %v335_v62  ;;  %v18077_v27 = vld [vmem:[#allocation4] ss:$16 sps:$4 sm:$0xff]  }
 0x1c7   :  { %1898 = vmatprep.subr.bf16.mxu0 %v18052_v22  ;;  %v20912_v22 = vpack.c.bf16 %v340_v18, %v334_v11  ;;  %v18095_v63 = vld [vmem:[#allocation4 + $0x60] ss:$16 sps:$4 sm:$0xff]   ;;  %v371_v11 = vld [vmem:[%s24459_s16 + $0x148] sm:$0xff]  ;;  %v377_v18 = vld [vmem:[%s24459_s16 + $0x178] sm:$0xff] }
 0x1c8   :  { %1741 = vmatmul.mubr.bf16.gmra.mrb[24].mxu1 %v20865_v31 }
 0x1c9   :  { %1854 = vmatmul.mubr.bf16.gmra.mrb[24].mxu0 %v20867_v32  ;;  %2012 = vmatpush1.bf16.msra.mxu1 %v18053_v35 }
 0x1ca   :  { %1899 = vmatpush1.bf16.msra.mxu0 %v18050_v28  ;;  %2013 = vmatprep.subr.bf16.mxu1 %v18061_v39  ;;  %v347_v28 = vld [vmem:[%s24459_s16 + $0x88] sm:$0xff]  ;;  %v352_v39 = vld [vmem:[%s24459_s16 + $0xb0] sm:$0xff] }
 0x1cb   :  { %1900 = vmatprep.subr.bf16.mxu0 %v18058_v38  ;;  %1750 = vmatprep.mubr.bf16.mxu1 %v20876_v46  ;;  %v20918_v35 = vpack.c.bf16 %v353_v29, %v347_v28  ;;  %v346_v38 = vld [vmem:[%s24459_s16 + $0x80] sm:$0xff]  ;;  %v376_v29 = vld [vmem:[%s24459_s16 + $0x170] sm:$0xff] }
 0x1cc   :  { %1863 = vmatprep.mubr.bf16.mxu0 %v20878_v47  ;;  %v20928_v52 = vpack.c.bf16 %v352_v39, %v346_v38  ;;  %v370_v28 = vld [vmem:[%s24459_s16 + $0x140] sm:$0xff]  ;;  %v389_v38 = vld [vmem:[%s24459_s16 + $0x1d8] sm:$0xff] }
 0x1cd   :  { %2014 = vmatpush1.bf16.msra.mxu1 %v18059_v45  ;;  %v18091_v45 = vld [vmem:[#allocation4 + $0x44] ss:$16 sps:$4 sm:$0xff]   ;;  %v18113_v39 = vld [vmem:[#allocation4 + $0xc0] ss:$16 sps:$4 sm:$0xff]  }
 0x1ce   :  { %1901 = vmatpush1.bf16.msra.mxu0 %v18056_v42  ;;  %2015 = vmatprep.subr.bf16.mxu1 %v18067_v57  ;;  %v18088_v42 = vld [vmem:[%s24458_s15 + $0x24c] ss:$16 sps:$4 sm:$0xff]   ;;  %v18097_v57 = vld [vmem:[#allocation4 + $0x64] ss:$16 sps:$4 sm:$0xff]  }
 0x1cf   :  { %1902 = vmatprep.subr.bf16.mxu0 %v18064_v56  ;;  %v18094_v56 = vld [vmem:[%s24458_s15 + $0x26c] ss:$16 sps:$4 sm:$0xff]  }
 0x1d0   :  { %1751 = vmatmul.mubr.bf16.gmra.mrb[28].mxu1 %v20890_v60 }
 0x1d1   :  { %1864 = vmatmul.mubr.bf16.gmra.mrb[28].mxu0 %v20892_v61  ;;  %2016 = vmatpush1.bf16.msra.mxu1 %v18065_v3  ;;  %v364_v3 = vld [vmem:[%s24459_s16 + $0x110] sm:$0xff] }
 0x1d2   :  { %1903 = vmatpush1.bf16.msra.mxu0 %v18062_v0  ;;  %2017 = vmatprep.subr.bf16.mxu1 %v18073_v7  ;;  %v358_v0 = vld [vmem:[%s24459_s16 + $0xe0] sm:$0xff]  ;;  %v18103_v7 = vld [vmem:[#allocation4 + $0x84] ss:$16 sps:$4 sm:$0xff]  }
 0x1d3   :  { %1904 = vmatprep.subr.bf16.mxu0 %v18070_v6  ;;  %1906 = vmatprep.mubr.bf16.mxu0 %v20902_v10  ;;  %v18100_v6 = vld [vmem:[%s24458_s15 + $0x28c] ss:$16 sps:$4 sm:$0xff]  }
 0x1d4   :  { %2019 = vmatprep.mubr.bf16.mxu1 %v20667_v53  ;;  %v18083_v53 = vld [vmem:[#allocation4 + $0x20] ss:$16 sps:$4 sm:$0xff]  }
 0x1d5   :  { %2018 = vmatpush1.bf16.msra.mxu1 %v18071_v9  ;;  %v20944_v9 = vpack.c.bf16 %v364_v3, %v358_v0  ;;  %v18122_v0 = vld [vmem:[%s24458_s15 + $0x308] ss:$16 sps:$4 sm:$0xff]   ;;  %v18125_v3 = vld [vmem:[#allocation4 + $0x100] ss:$16 sps:$4 sm:$0xff]  }
 0x1d6   :  { %1905 = vmatpush1.bf16.msra.mxu0 %v18068_v8  ;;  %2100 = vmatprep.subr.bf16.mxu1 %v18076_v19  ;;  %v18098_v8 = vld [vmem:[%s24458_s15 + $0x288] ss:$16 sps:$4 sm:$0xff]   ;;  %v18106_v19 = vld [vmem:[%s24458_s15 + $0x2ac] ss:$16 sps:$4 sm:$0xff]  }
 0x1d7   :  { %3708 = vmatprep.subr.bf16.mxu0 %v18079_v20  ;;  %v18109_v20 = vld [vmem:[#allocation4 + $0xa4] ss:$16 sps:$4 sm:$0xff]  }
 0x1d8   :  { %2020 = vmatmul.mubr.bf16.vlgmr.msra.gmra.mrb[32].mxu1 %v20698_v16  ;;  %v359_v16 = vld [vmem:[%s24459_s16 + $0xe8] sm:$0xff] }
 0x1d9   :  { %1907 = vmatmul.mubr.bf16.vlgmr.msra.gmra.mrb[0].mxu0 %v20912_v22  ;;  %2101 = vmatpush1.bf16.msra.mxu1 %v18074_v21  ;;  %v20933_v62 = vpack.c.bf16 %v365_v55, %v359_v16  ;;  %v18104_v21 = vld [vmem:[%s24458_s15 + $0x2a8] ss:$16 sps:$4 sm:$0xff]   ;;  %v382_v16 = vld [vmem:[%s24459_s16 + $0x1a0] sm:$0xff]  ;;  %v388_v55 = vld [vmem:[%s24459_s16 + $0x1d0] sm:$0xff] }
 0x1da   :  { %3709 = vmatpush1.bf16.msra.mxu0 %v18077_v27  ;;  %2102 = vmatprep.subr.bf16.mxu1 %v18082_v30  ;;  %v20950_v27 = vpack.c.bf16 %v377_v18, %v371_v11  ;;  %v18112_v30 = vld [vmem:[%s24458_s15 + $0x2cc] ss:$16 sps:$4 sm:$0xff]   ;;  %v394_v11 = vld [vmem:[%s24459_s16 + $0x200] sm:$0xff]  ;;  %v400_v18 = vld [vmem:[%s24459_s16 + $0x230] sm:$0xff] }
 0x1db   :  { %3710 = vmatprep.subr.bf16.mxu0 %v18085_v33  ;;  %1916 = vmatprep.mubr.bf16.mxu0 %v20918_v35  ;;  %v18115_v33 = vld [vmem:[#allocation4 + $0xc4] ss:$16 sps:$4 sm:$0xff]  }
 0x1dc   :  { %2029 = vmatprep.mubr.bf16.mxu1 %v20707_v23  ;;  %v18092_v23 = vld [vmem:[%s24458_s15 + $0x268] ss:$16 sps:$4 sm:$0xff]  }
 0x1dd   :  { %2103 = vmatpush1.bf16.msra.mxu1 %v18080_v34  ;;  %v18110_v34 = vld [vmem:[%s24458_s15 + $0x2c8] ss:$16 sps:$4 sm:$0xff]  }
 0x1de   :  { %3711 = vmatpush1.bf16.msra.mxu0 %v18083_v53  ;;  %2104 = vmatprep.subr.bf16.mxu1 %v18088_v42  ;;  %v20960_v53 = vpack.c.bf16 %v376_v29, %v370_v28  ;;  %v18118_v42 = vld [vmem:[%s24458_s15 + $0x2ec] ss:$16 sps:$4 sm:$0xff]   ;;  %v18134_v28 = vld [vmem:[%s24458_s15 + $0x348] ss:$16 sps:$4 sm:$0xff]   ;;  %v18137_v29 = vld [vmem:[#allocation4 + $0x140] ss:$16 sps:$4 sm:$0xff]  }
 0x1df   :  { %3712 = vmatprep.subr.bf16.mxu0 %v18091_v45  ;;  %v18121_v45 = vld [vmem:[#allocation4 + $0xe4] ss:$16 sps:$4 sm:$0xff]  }
 0x1e0   :  { %2030 = vmatmul.mubr.bf16.gmra.mrb[36].mxu1 %v20726_v36  ;;  %v18101_v36 = vld [vmem:[#allocation4 + $0x80] ss:$16 sps:$4 sm:$0xff]  }
 0x1e1   :  { %1917 = vmatmul.mubr.bf16.gmra.mrb[4].mxu0 %v20928_v52  ;;  %2105 = vmatpush1.bf16.msra.mxu1 %v18086_v48  ;;  %v18116_v48 = vld [vmem:[%s24458_s15 + $0x2e8] ss:$16 sps:$4 sm:$0xff]  }
 0x1e2   :  { %3713 = vmatpush1.bf16.msra.mxu0 %v18089_v51  ;;  %2106 = vmatprep.subr.bf16.mxu1 %v18094_v56  ;;  %v18119_v51 = vld [vmem:[#allocation4 + $0xe0] ss:$16 sps:$4 sm:$0xff]   ;;  %v18124_v56 = vld [vmem:[%s24458_s15 + $0x30c] ss:$16 sps:$4 sm:$0xff]  }
 0x1e3   :  { %3714 = vmatprep.subr.bf16.mxu0 %v18097_v57  ;;  %1926 = vmatprep.mubr.bf16.mxu0 %v20933_v62  ;;  %v18127_v57 = vld [vmem:[#allocation4 + $0x104] ss:$16 sps:$4 sm:$0xff]  }
 0x1e4   :  { %2039 = vmatprep.mubr.bf16.mxu1 %v20735_v43  ;;  %v18107_v43 = vld [vmem:[#allocation4 + $0xa0] ss:$16 sps:$4 sm:$0xff]  }
 0x1e5   :  { %2107 = vmatpush1.bf16.msra.mxu1 %v18092_v23  ;;  %v20975_v23 = vpack.c.bf16 %v388_v55, %v382_v16  ;;  %v419_v16 = vld [vmem:[%s24459_s16 + $0x2c8] sm:$0xff]  ;;  %v425_v55 = vld [vmem:[%s24459_s16 + $0x2f8] sm:$0xff] }
 0x1e6   :  { %3715 = vmatpush1.bf16.msra.mxu0 %v18095_v63  ;;  %2108 = vmatprep.subr.bf16.mxu1 %v18100_v6  ;;  %v395_v63 = vld [vmem:[%s24459_s16 + $0x208] sm:$0xff] }
 0x1e7   :  { %3716 = vmatprep.subr.bf16.mxu0 %v18103_v7  ;;  %v18130_v6 = vld [vmem:[%s24458_s15 + $0x32c] ss:$16 sps:$4 sm:$0xff]   ;;  %v18133_v7 = vld [vmem:[#allocation4 + $0x124] ss:$16 sps:$4 sm:$0xff]  }
 0x1e8   :  { %2040 = vmatmul.mubr.bf16.gmra.mrb[40].mxu1 %v20754_v58  ;;  %v383_v58 = vld [vmem:[%s24459_s16 + $0x1a8] sm:$0xff] }
 0x1e9   :  { %1927 = vmatmul.mubr.bf16.gmra.mrb[8].mxu0 %v20944_v9  ;;  %2109 = vmatpush1.bf16.msra.mxu1 %v18098_v8  ;;  %v18128_v8 = vld [vmem:[%s24458_s15 + $0x328] ss:$16 sps:$4 sm:$0xff]  }
 0x1ea   :  { %3717 = vmatpush1.bf16.msra.mxu0 %v18101_v36  ;;  %2110 = vmatprep.subr.bf16.mxu1 %v18106_v19  ;;  %v18131_v36 = vld [vmem:[#allocation4 + $0x120] ss:$16 sps:$4 sm:$0xff]   ;;  %v18136_v19 = vld [vmem:[%s24458_s15 + $0x34c] ss:$16 sps:$4 sm:$0xff]  }
 0x1eb   :  { %3718 = vmatprep.subr.bf16.mxu0 %v18109_v20  ;;  %1936 = vmatprep.mubr.bf16.mxu0 %v20950_v27  ;;  %v18139_v20 = vld [vmem:[#allocation4 + $0x144] ss:$16 sps:$4 sm:$0xff]  }
 0x1ec   :  { %2049 = vmatprep.mubr.bf16.mxu1 %v20763_v1  ;;  %v20966_v1 = vpack.c.bf16 %v389_v38, %v383_v58  ;;  %v406_v38 = vld [vmem:[%s24459_s16 + $0x260] sm:$0xff] }
 0x1ed   :  { %2111 = vmatpush1.bf16.msra.mxu1 %v18104_v21  ;;  %v407_v21 = vld [vmem:[%s24459_s16 + $0x268] sm:$0xff] }
 0x1ee   :  { %3719 = vmatpush1.bf16.msra.mxu0 %v18107_v43  ;;  %2112 = vmatprep.subr.bf16.mxu1 %v18112_v30  ;;  %v20992_v43 = vpack.c.bf16 %v400_v18, %v394_v11  ;;  %v18142_v30 = vld [vmem:[%s24458_s15 + $0x36c] ss:$16 sps:$4 sm:$0xff]  }
 0x1ef   :  { %3720 = vmatprep.subr.bf16.mxu0 %v18115_v33  ;;  %v18145_v33 = vld [vmem:[#allocation4 + $0x164] ss:$16 sps:$4 sm:$0xff]  }
 0x1f0   :  { %2050 = vmatmul.mubr.bf16.gmra.mrb[44].mxu1 %v20782_v14  ;;  %v401_v14 = vld [vmem:[%s24459_s16 + $0x238] sm:$0xff]  ;;  %v2391_v11 = vld [vmem:[%s24460_s7 + $0x8] sm:$0xff] }
 0x1f1   :  { %1937 = vmatmul.mubr.bf16.gmra.mrb[12].mxu0 %v20960_v53  ;;  %2113 = vmatpush1.bf16.msra.mxu1 %v18110_v34  ;;  %v18140_v34 = vld [vmem:[%s24458_s15 + $0x368] ss:$16 sps:$4 sm:$0xff]  }
 0x1f2   :  { %3721 = vmatpush1.bf16.msra.mxu0 %v18113_v39  ;;  %2114 = vmatprep.subr.bf16.mxu1 %v18118_v42  ;;  %v412_v39 = vld [vmem:[%s24459_s16 + $0x290] sm:$0xff]  ;;  %v18148_v42 = vld [vmem:[%s24458_s15 + $0x38c] ss:$16 sps:$4 sm:$0xff]  }
 0x1f3   :  { %3722 = vmatprep.subr.bf16.mxu0 %v18121_v45  ;;  %1946 = vmatprep.mubr.bf16.mxu0 %v20966_v1  ;;  %v18151_v45 = vld [vmem:[#allocation4 + $0x184] ss:$16 sps:$4 sm:$0xff]  }
 0x1f4   :  { %2059 = vmatprep.mubr.bf16.mxu1 %v20791_v25  ;;  %v20982_v25 = vpack.c.bf16 %v401_v14, %v395_v63  ;;  %v21013_v63 = vpack.c.bf16 %v425_v55, %v419_v16  ;;  %v18155_v14 = vld [vmem:[#allocation4 + $0x1a0] ss:$16 sps:$4 sm:$0xff]   ;;  %v2397_v18 = vld [vmem:[%s24460_s7 + $0x38] sm:$0xff] }
 0x1f5   :  { %2115 = vmatpush1.bf16.msra.mxu1 %v18116_v48  ;;  %v18146_v48 = vld [vmem:[%s24458_s15 + $0x388] ss:$16 sps:$4 sm:$0xff]   ;;  %v18184_v16 = vld [vmem:[%s24458_s15 + $0x44c] ss:$16 sps:$4 sm:$0xff]   ;;  %v2402_v55 = vld [vmem:[%s24460_s7 + $0x60] sm:$0xff] }
 0x1f6   :  { %3723 = vmatpush1.bf16.msra.mxu0 %v18119_v51  ;;  %2116 = vmatprep.subr.bf16.mxu1 %v18124_v56  ;;  %v21008_v51 = vpack.c.bf16 %v412_v39, %v406_v38  ;;  %v18154_v56 = vld [vmem:[%s24458_s15 + $0x3ac] ss:$16 sps:$4 sm:$0xff]   ;;  %v18173_v39 = vld [vmem:[#allocation4 + $0x200] ss:$16 sps:$4 sm:$0xff]  }
 0x1f7   :  { %3724 = vmatprep.subr.bf16.mxu0 %v18127_v57  ;;  %v18157_v57 = vld [vmem:[#allocation4 + $0x1a4] ss:$16 sps:$4 sm:$0xff]  }
 0x1f8   :  { %2060 = vmatmul.mubr.bf16.gmra.mrb[48].mxu1 %v20810_v40  ;;  %v413_v40 = vld [vmem:[%s24459_s16 + $0x298] sm:$0xff] }
 0x1f9   :  { %1947 = vmatmul.mubr.bf16.gmra.mrb[16].mxu0 %v20975_v23  ;;  %2117 = vmatpush1.bf16.msra.mxu1 %v18122_v0  ;;  %v20998_v58 = vpack.c.bf16 %v413_v40, %v407_v21  ;;  %v418_v0 = vld [vmem:[%s24459_s16 + $0x2c0] sm:$0xff]  ;;  %v18164_v21 = vld [vmem:[%s24458_s15 + $0x3e8] ss:$16 sps:$4 sm:$0xff]   ;;  %v21030_v40 = vpack.c.bf16 %v2397_v18, %v2391_v11  ;;  %v18196_v11 = vld [vmem:[%s24458_s15 + $0x48c] ss:$16 sps:$4 sm:$0xff]  }
 0x1fa   :  { %3725 = vmatpush1.bf16.msra.mxu0 %v18125_v3  ;;  %2118 = vmatprep.subr.bf16.mxu1 %v18130_v6  ;;  %v424_v3 = vld [vmem:[%s24459_s16 + $0x2f0] sm:$0xff]  ;;  %v18160_v6 = vld [vmem:[%s24458_s15 + $0x3cc] ss:$16 sps:$4 sm:$0xff]   ;;  %v2414_v18 = vld [vmem:[%s24460_s7 + $0xc0] sm:$0xff] }
 0x1fb   :  { %3726 = vmatprep.subr.bf16.mxu0 %v18133_v7  ;;  %1956 = vmatprep.mubr.bf16.mxu0 %v20982_v25  ;;  %v18163_v7 = vld [vmem:[#allocation4 + $0x1c4] ss:$16 sps:$4 sm:$0xff]  }
 0x1fc   :  { %2069 = vmatprep.mubr.bf16.mxu1 %v20819_v49  ;;  %v18143_v49 = vld [vmem:[#allocation4 + $0x160] ss:$16 sps:$4 sm:$0xff]   ;;  %v2409_v38 = vld [vmem:[%s24460_s7 + $0x98] sm:$0xff] }
 0x1fd   :  { %2119 = vmatpush1.bf16.msra.mxu1 %v18128_v8  ;;  %v18158_v8 = vld [vmem:[%s24458_s15 + $0x3c8] ss:$16 sps:$4 sm:$0xff]  }
 0x1fe   :  { %3727 = vmatpush1.bf16.msra.mxu0 %v18131_v36  ;;  %2120 = vmatprep.subr.bf16.mxu1 %v18136_v19  ;;  %v21024_v36 = vpack.c.bf16 %v424_v3, %v418_v0  ;;  %v18166_v19 = vld [vmem:[%s24458_s15 + $0x3ec] ss:$16 sps:$4 sm:$0xff]   ;;  %v18182_v0 = vld [vmem:[%s24458_s15 + $0x448] ss:$16 sps:$4 sm:$0xff]   ;;  %v18185_v3 = vld [vmem:[#allocation4 + $0x240] ss:$16 sps:$4 sm:$0xff]  }
 0x1ff   :  { %3728 = vmatprep.subr.bf16.mxu0 %v18139_v20  ;;  %v18169_v20 = vld [vmem:[#allocation4 + $0x1e4] ss:$16 sps:$4 sm:$0xff]  }
 0x200   :  { %2070 = vmatmul.mubr.bf16.gmra.mrb[52].mxu1 %v20838_v4  ;;  %v18149_v4 = vld [vmem:[#allocation4 + $0x180] ss:$16 sps:$4 sm:$0xff]  }
 0x201   :  { %1957 = vmatmul.mubr.bf16.gmra.mrb[20].mxu0 %v20992_v43  ;;  %2121 = vmatpush1.bf16.msra.mxu1 %v18134_v28  ;;  %v18172_v28 = vld [vmem:[%s24458_s15 + $0x40c] ss:$16 sps:$4 sm:$0xff]  }
 0x202   :  { %3729 = vmatpush1.bf16.msra.mxu0 %v18137_v29  ;;  %2122 = vmatprep.subr.bf16.mxu1 %v18142_v30  ;;  %v2390_v29 = vld [vmem:[%s24460_s7] sm:$0xff]  ;;  %v2396_v30 = vld [vmem:[%s24460_s7 + $0x30] sm:$0xff] }
 0x203   :  { %3730 = vmatprep.subr.bf16.mxu0 %v18145_v33  ;;  %1966 = vmatprep.mubr.bf16.mxu0 %v20998_v58  ;;  %v18175_v33 = vld [vmem:[#allocation4 + $0x204] ss:$16 sps:$4 sm:$0xff]  }
 0x204   :  { %2079 = vmatprep.mubr.bf16.mxu1 %v20848_v12  ;;  %v18152_v12 = vld [vmem:[%s24458_s15 + $0x3a8] ss:$16 sps:$4 sm:$0xff]  }
 0x205   :  { %2123 = vmatpush1.bf16.msra.mxu1 %v18140_v34  ;;  %v18170_v34 = vld [vmem:[%s24458_s15 + $0x408] ss:$16 sps:$4 sm:$0xff]  }
 0x206   :  { %3731 = vmatpush1.bf16.msra.mxu0 %v18143_v49  ;;  %2124 = vmatprep.subr.bf16.mxu1 %v18148_v42  ;;  %v21040_v49 = vpack.c.bf16 %v2396_v30, %v2390_v29  ;;  %v18178_v42 = vld [vmem:[%s24458_s15 + $0x42c] ss:$16 sps:$4 sm:$0xff]   ;;  %v18197_v29 = vld [vmem:[#allocation4 + $0x280] ss:$16 sps:$4 sm:$0xff]  }
 0x207   :  { %3732 = vmatprep.subr.bf16.mxu0 %v18151_v45  ;;  %v18181_v45 = vld [vmem:[#allocation4 + $0x224] ss:$16 sps:$4 sm:$0xff]   ;;  %v18202_v30 = vld [vmem:[%s24458_s15 + $0x4ac] ss:$16 sps:$4 sm:$0xff]  }
 0x208   :  { %2080 = vmatmul.mubr.bf16.gmra.mrb[56].mxu1 %v20865_v31  ;;  %v18161_v31 = vld [vmem:[#allocation4 + $0x1c0] ss:$16 sps:$4 sm:$0xff]  }
 0x209   :  { %1967 = vmatmul.mubr.bf16.gmra.mrb[24].mxu0 %v21008_v51  ;;  %2125 = vmatpush1.bf16.msra.mxu1 %v18146_v48  ;;  %v18176_v48 = vld [vmem:[%s24458_s15 + $0x428] ss:$16 sps:$4 sm:$0xff]  }
 0x20a   :  { %3733 = vmatpush1.bf16.msra.mxu0 %v18149_v4  ;;  %2126 = vmatprep.subr.bf16.mxu1 %v18154_v56  ;;  %v18179_v4 = vld [vmem:[#allocation4 + $0x220] ss:$16 sps:$4 sm:$0xff]  }
 0x20b   :  { %3734 = vmatprep.subr.bf16.mxu0 %v18157_v57  ;;  %1976 = vmatprep.mubr.bf16.mxu0 %v21013_v63  ;;  %v2408_v56 = vld [vmem:[%s24460_s7 + $0x90] sm:$0xff]  ;;  %v18187_v57 = vld [vmem:[#allocation4 + $0x244] ss:$16 sps:$4 sm:$0xff]  }
 0x20c   :  { %2089 = vmatprep.mubr.bf16.mxu1 %v20876_v46  ;;  %v18167_v46 = vld [vmem:[#allocation4 + $0x1e0] ss:$16 sps:$4 sm:$0xff]  }
 0x20d   :  { %2127 = vmatpush1.bf16.msra.mxu1 %v18152_v12  ;;  %v21055_v12 = vpack.c.bf16 %v2408_v56, %v2402_v55  ;;  %v2445_v55 = vld [vmem:[%s24460_s7 + $0x1b8] sm:$0xff] }
 0x20e   :  { %3735 = vmatpush1.bf16.msra.mxu0 %v18155_v14  ;;  %2128 = vmatprep.subr.bf16.mxu1 %v18160_v6  ;;  %v2421_v14 = vld [vmem:[%s24460_s7 + $0xf8] sm:$0xff] }
 0x20f   :  { %3736 = vmatprep.subr.bf16.mxu0 %v18163_v7  ;;  %v18190_v6 = vld [vmem:[%s24458_s15 + $0x46c] ss:$16 sps:$4 sm:$0xff]   ;;  %v18193_v7 = vld [vmem:[#allocation4 + $0x264] ss:$16 sps:$4 sm:$0xff]  }
 0x210   :  { %2090 = vmatmul.mubr.bf16.gmra.mrb[60].mxu1 %v20890_v60  ;;  %v2403_v60 = vld [vmem:[%s24460_s7 + $0x68] sm:$0xff] }
 0x211   :  { %1977 = vmatmul.mubr.bf16.gmra.mrb[28].mxu0 %v21024_v36  ;;  %2129 = vmatpush1.bf16.msra.mxu1 %v18158_v8  ;;  %v18188_v8 = vld [vmem:[%s24458_s15 + $0x468] ss:$16 sps:$4 sm:$0xff]   ;;  %v18214_v56 = vld [vmem:[%s24458_s15 + $0x4ec] ss:$16 sps:$4 sm:$0xff]  }
 0x212   :  { %3737 = vmatpush1.bf16.msra.mxu0 %v18161_v31  ;;  %2130 = vmatprep.subr.bf16.mxu1 %v18166_v19  ;;  %v2420_v19 = vld [vmem:[%s24460_s7 + $0xf0] sm:$0xff] }
 0x213   :  { %3738 = vmatprep.subr.bf16.mxu0 %v18169_v20  ;;  %2132 = vmatprep.mubr.bf16.mxu1 %v20669_v54  ;;  %v21046_v54 = vpack.c.bf16 %v2409_v38, %v2403_v60  ;;  %v18199_v20 = vld [vmem:[#allocation4 + $0x284] ss:$16 sps:$4 sm:$0xff]   ;;  %v18203_v60 = vld [vmem:[#allocation4 + $0x2a0] ss:$16 sps:$4 sm:$0xff]  }
 0x214   :  { %3740 = vmatprep.mubr.bf16.mxu0 %v21030_v40  ;;  %v2426_v38 = vld [vmem:[%s24460_s7 + $0x120] sm:$0xff] }
 0x215   :  { %2131 = vmatpush1.bf16.msra.mxu1 %v18164_v21  ;;  %v2427_v21 = vld [vmem:[%s24460_s7 + $0x128] sm:$0xff] }
 0x216   :  { %3739 = vmatpush1.bf16.msra.mxu0 %v18167_v46  ;;  %2213 = vmatprep.subr.bf16.mxu1 %v18172_v28  ;;  %v2433_v46 = vld [vmem:[%s24460_s7 + $0x158] sm:$0xff] }
 0x217   :  { %3821 = vmatprep.subr.bf16.mxu0 %v18175_v33  ;;  %v18194_v28 = vld [vmem:[%s24458_s15 + $0x488] ss:$16 sps:$4 sm:$0xff]  }
 0x218   :  { %2133 = vmatmul.mubr.bf16.vlgmr.msra.gmra.mrb[32].mxu1 %v20700_v17  ;;  %v2415_v17 = vld [vmem:[%s24460_s7 + $0xc8] sm:$0xff] }
 0x219   :  { %3741 = vmatmul.mubr.bf16.vlgmr.msra.gmra.mrb[32].mxu0 %v21040_v49  ;;  %2214 = vmatpush1.bf16.msra.mxu1 %v18170_v34  ;;  %v21062_v31 = vpack.c.bf16 %v2421_v14, %v2415_v17  ;;  %v18205_v33 = vld [vmem:[#allocation4 + $0x2a4] ss:$16 sps:$4 sm:$0xff]   ;;  %v18215_v14 = vld [vmem:[#allocation4 + $0x2e0] ss:$16 sps:$4 sm:$0xff]  }
 0x21a   :  { %3822 = vmatpush1.bf16.msra.mxu0 %v18173_v39  ;;  %2215 = vmatprep.subr.bf16.mxu1 %v18178_v42  ;;  %v18200_v34 = vld [vmem:[%s24458_s15 + $0x4a8] ss:$16 sps:$4 sm:$0xff]   ;;  %v2432_v39 = vld [vmem:[%s24460_s7 + $0x150] sm:$0xff]  ;;  %v18208_v42 = vld [vmem:[%s24458_s15 + $0x4cc] ss:$16 sps:$4 sm:$0xff]  }
 0x21b   :  { %3823 = vmatprep.subr.bf16.mxu0 %v18181_v45  ;;  %2142 = vmatprep.mubr.bf16.mxu1 %v20709_v24  ;;  %v18191_v24 = vld [vmem:[#allocation4 + $0x260] ss:$16 sps:$4 sm:$0xff]   ;;  %v18211_v45 = vld [vmem:[#allocation4 + $0x2c4] ss:$16 sps:$4 sm:$0xff]  }
 0x21c   :  { %3750 = vmatprep.mubr.bf16.mxu0 %v21046_v54  ;;  %v18212_v17 = vld [vmem:[%s24458_s15 + $0x4e8] ss:$16 sps:$4 sm:$0xff]  }
 0x21d   :  { %2216 = vmatpush1.bf16.msra.mxu1 %v18176_v48  ;;  %v18209_v48 = vld [vmem:[#allocation4 + $0x2c0] ss:$16 sps:$4 sm:$0xff]  }
 0x21e   :  { %3824 = vmatpush1.bf16.msra.mxu0 %v18179_v4  ;;  %2217 = vmatprep.subr.bf16.mxu1 %v18184_v16  ;;  %v21088_v4 = vpack.c.bf16 %v2432_v39, %v2426_v38  ;;  %v2439_v16 = vld [vmem:[%s24460_s7 + $0x188] sm:$0xff]  ;;  %v2469_v38 = vld [vmem:[%s24460_s7 + $0x278] sm:$0xff]  ;;  %v18233_v39 = vld [vmem:[#allocation4 + $0x340] ss:$16 sps:$4 sm:$0xff]  }
 0x21f   :  { %3825 = vmatprep.subr.bf16.mxu0 %v18187_v57  ;;  %v18217_v57 = vld [vmem:[#allocation4 + $0x2e4] ss:$16 sps:$4 sm:$0xff]  }
 0x220   :  { %2143 = vmatmul.mubr.bf16.gmra.mrb[36].mxu1 %v20728_v37  ;;  %v21072_v37 = vpack.c.bf16 %v2420_v19, %v2414_v18  ;;  %v2457_v18 = vld [vmem:[%s24460_s7 + $0x218] sm:$0xff] }
 0x221   :  { %3751 = vmatmul.mubr.bf16.gmra.mrb[36].mxu0 %v21055_v12  ;;  %2218 = vmatpush1.bf16.msra.mxu1 %v18182_v0  ;;  %v18220_v0 = vld [vmem:[%s24458_s15 + $0x50c] ss:$16 sps:$4 sm:$0xff]  }
 0x222   :  { %3826 = vmatpush1.bf16.msra.mxu0 %v18185_v3  ;;  %2219 = vmatprep.subr.bf16.mxu1 %v18190_v6  ;;  %v2438_v3 = vld [vmem:[%s24460_s7 + $0x180] sm:$0xff]  ;;  %v2444_v6 = vld [vmem:[%s24460_s7 + $0x1b0] sm:$0xff]  ;;  %v18226_v19 = vld [vmem:[%s24458_s15 + $0x52c] ss:$16 sps:$4 sm:$0xff]  }
 0x223   :  { %3827 = vmatprep.subr.bf16.mxu0 %v18193_v7  ;;  %2152 = vmatprep.mubr.bf16.mxu1 %v20737_v44  ;;  %v21078_v44 = vpack.c.bf16 %v2433_v46, %v2427_v21  ;;  %v18223_v7 = vld [vmem:[#allocation4 + $0x304] ss:$16 sps:$4 sm:$0xff]   ;;  %v18227_v46 = vld [vmem:[#allocation4 + $0x320] ss:$16 sps:$4 sm:$0xff]  }
 0x224   :  { %3760 = vmatprep.mubr.bf16.mxu0 %v21062_v31  ;;  %v18224_v21 = vld [vmem:[%s24458_s15 + $0x528] ss:$16 sps:$4 sm:$0xff]  }
 0x225   :  { %2220 = vmatpush1.bf16.msra.mxu1 %v18188_v8  ;;  %v18221_v8 = vld [vmem:[#allocation4 + $0x300] ss:$16 sps:$4 sm:$0xff]  }
 0x226   :  { %3828 = vmatpush1.bf16.msra.mxu0 %v18191_v24  ;;  %2221 = vmatprep.subr.bf16.mxu1 %v18196_v11  ;;  %v21104_v24 = vpack.c.bf16 %v2444_v6, %v2438_v3  ;;  %v2451_v11 = vld [vmem:[%s24460_s7 + $0x1e8] sm:$0xff]  ;;  %v18245_v3 = vld [vmem:[#allocation4 + $0x380] ss:$16 sps:$4 sm:$0xff]  }
 0x227   :  { %3829 = vmatprep.subr.bf16.mxu0 %v18199_v20  ;;  %v18229_v20 = vld [vmem:[#allocation4 + $0x324] ss:$16 sps:$4 sm:$0xff]   ;;  %v18250_v6 = vld [vmem:[%s24458_s15 + $0x5ac] ss:$16 sps:$4 sm:$0xff]  }
 0x228   :  { %2153 = vmatmul.mubr.bf16.gmra.mrb[40].mxu1 %v20756_v59  ;;  %v18206_v59 = vld [vmem:[%s24458_s15 + $0x4c8] ss:$16 sps:$4 sm:$0xff]  }
 0x229   :  { %3761 = vmatmul.mubr.bf16.gmra.mrb[40].mxu0 %v21072_v37  ;;  %2222 = vmatpush1.bf16.msra.mxu1 %v18194_v28  ;;  %v18232_v28 = vld [vmem:[%s24458_s15 + $0x54c] ss:$16 sps:$4 sm:$0xff]  }
 0x22a   :  { %3830 = vmatpush1.bf16.msra.mxu0 %v18197_v29  ;;  %2223 = vmatprep.subr.bf16.mxu1 %v18202_v30  ;;  %v2450_v29 = vld [vmem:[%s24460_s7 + $0x1e0] sm:$0xff]  ;;  %v2456_v30 = vld [vmem:[%s24460_s7 + $0x210] sm:$0xff] }
 0x22b   :  { %3831 = vmatprep.subr.bf16.mxu0 %v18205_v33  ;;  %2162 = vmatprep.mubr.bf16.mxu1 %v20765_v2  ;;  %v21093_v2 = vpack.c.bf16 %v2445_v55, %v2439_v16  ;;  %v18235_v33 = vld [vmem:[#allocation4 + $0x344] ss:$16 sps:$4 sm:$0xff]   ;;  %v2462_v16 = vld [vmem:[%s24460_s7 + $0x240] sm:$0xff]  ;;  %v2468_v55 = vld [vmem:[%s24460_s7 + $0x270] sm:$0xff] }
 0x22c   :  { %3770 = vmatprep.mubr.bf16.mxu0 %v21078_v44 }
 0x22d   :  { %2224 = vmatpush1.bf16.msra.mxu1 %v18200_v34  ;;  %v18230_v34 = vld [vmem:[%s24458_s15 + $0x548] ss:$16 sps:$4 sm:$0xff]  }
 0x22e   :  { %3832 = vmatpush1.bf16.msra.mxu0 %v18203_v60  ;;  %2225 = vmatprep.subr.bf16.mxu1 %v18208_v42  ;;  %v21121_v60 = vpack.c.bf16 %v2456_v30, %v2450_v29  ;;  %v18238_v42 = vld [vmem:[%s24458_s15 + $0x56c] ss:$16 sps:$4 sm:$0xff]   ;;  %v18257_v29 = vld [vmem:[#allocation4 + $0x3c0] ss:$16 sps:$4 sm:$0xff]  }
 0x22f   :  { %3833 = vmatprep.subr.bf16.mxu0 %v18211_v45  ;;  %v18241_v45 = vld [vmem:[#allocation4 + $0x364] ss:$16 sps:$4 sm:$0xff]   ;;  %v18262_v30 = vld [vmem:[%s24458_s15 + $0x5ec] ss:$16 sps:$4 sm:$0xff]  }
 0x230   :  { %2163 = vmatmul.mubr.bf16.gmra.mrb[44].mxu1 %v20784_v15  ;;  %v18218_v15 = vld [vmem:[%s24458_s15 + $0x508] ss:$16 sps:$4 sm:$0xff]  }
 0x231   :  { %3771 = vmatmul.mubr.bf16.gmra.mrb[44].mxu0 %v21088_v4  ;;  %2226 = vmatpush1.bf16.msra.mxu1 %v18206_v59  ;;  %v18236_v59 = vld [vmem:[%s24458_s15 + $0x568] ss:$16 sps:$4 sm:$0xff]  }
 0x232   :  { %3834 = vmatpush1.bf16.msra.mxu0 %v18209_v48  ;;  %2227 = vmatprep.subr.bf16.mxu1 %v18214_v56  ;;  %v18244_v56 = vld [vmem:[%s24458_s15 + $0x58c] ss:$16 sps:$4 sm:$0xff]  }
 0x233   :  { %3835 = vmatprep.subr.bf16.mxu0 %v18217_v57  ;;  %2172 = vmatprep.mubr.bf16.mxu1 %v20793_v26  ;;  %v21110_v26 = vpack.c.bf16 %v2457_v18, %v2451_v11  ;;  %v18247_v57 = vld [vmem:[#allocation4 + $0x384] ss:$16 sps:$4 sm:$0xff]   ;;  %v2474_v11 = vld [vmem:[%s24460_s7 + $0x2a0] sm:$0xff]  ;;  %v2480_v18 = vld [vmem:[%s24460_s7 + $0x2d0] sm:$0xff] }
 0x234   :  { %3780 = vmatprep.mubr.bf16.mxu0 %v21093_v2 }
 0x235   :  { %2228 = vmatpush1.bf16.msra.mxu1 %v18212_v17  ;;  %v2475_v17 = vld [vmem:[%s24460_s7 + $0x2a8] sm:$0xff] }
 0x236   :  { %3836 = vmatpush1.bf16.msra.mxu0 %v18215_v14  ;;  %2229 = vmatprep.subr.bf16.mxu1 %v18220_v0  ;;  %v2481_v14 = vld [vmem:[%s24460_s7 + $0x2d8] sm:$0xff] }
 0x237   :  { %3837 = vmatprep.subr.bf16.mxu0 %v18223_v7  ;;  %v18242_v0 = vld [vmem:[%s24458_s15 + $0x588] ss:$16 sps:$4 sm:$0xff]  }
 0x238   :  { %2173 = vmatmul.mubr.bf16.gmra.mrb[48].mxu1 %v20812_v41  ;;  %v2463_v41 = vld [vmem:[%s24460_s7 + $0x248] sm:$0xff] }
 0x239   :  { %3781 = vmatmul.mubr.bf16.gmra.mrb[48].mxu0 %v21104_v24  ;;  %2230 = vmatpush1.bf16.msra.mxu1 %v18218_v15  ;;  %v21126_v48 = vpack.c.bf16 %v2469_v38, %v2463_v41  ;;  %v18253_v7 = vld [vmem:[#allocation4 + $0x3a4] ss:$16 sps:$4 sm:$0xff]   ;;  %v18263_v41 = vld [vmem:[#allocation4 + $0x3e0] ss:$16 sps:$4 sm:$0xff]  }
 0x23a   :  { %3838 = vmatpush1.bf16.msra.mxu0 %v18221_v8  ;;  %2231 = vmatprep.subr.bf16.mxu1 %v18226_v19  ;;  %v18248_v15 = vld [vmem:[%s24458_s15 + $0x5a8] ss:$16 sps:$4 sm:$0xff]   ;;  %v21142_v8 = vpack.c.bf16 %v2481_v14, %v2475_v17  ;;  %v18256_v19 = vld [vmem:[%s24458_s15 + $0x5cc] ss:$16 sps:$4 sm:$0xff]   ;;  %v2392_v38 = vld [vmem:[%s24460_s7 + $0x10] sm:$0xff] }
 0x23b   :  { %3839 = vmatprep.subr.bf16.mxu0 %v18229_v20  ;;  %2182 = vmatprep.mubr.bf16.mxu1 %v20821_v50  ;;  %v18239_v50 = vld [vmem:[#allocation4 + $0x360] ss:$16 sps:$4 sm:$0xff]   ;;  %v18259_v20 = vld [vmem:[#allocation4 + $0x3c4] ss:$16 sps:$4 sm:$0xff]   ;;  %v18275_v14 = vld [vmem:[#allocation4 + $0x28] ss:$16 sps:$4 sm:$0xff]  }
 0x23c   :  { %3790 = vmatprep.mubr.bf16.mxu0 %v21110_v26 }
 0x23d   :  { %2232 = vmatpush1.bf16.msra.mxu1 %v18224_v21  ;;  %v18254_v21 = vld [vmem:[%s24458_s15 + $0x5c8] ss:$16 sps:$4 sm:$0xff]  }
 0x23e   :  { %3840 = vmatpush1.bf16.msra.mxu0 %v18227_v46  ;;  %2233 = vmatprep.subr.bf16.mxu1 %v18232_v28  ;;  %v21152_v46 = vpack.c.bf16 %v2480_v18, %v2474_v11  ;;  %v2399_v28 = vld [vmem:[%s24460_s7 + $0x48] sm:$0xff] }
 0x23f   :  { %3841 = vmatprep.subr.bf16.mxu0 %v18235_v33  ;;  %v18265_v33 = vld [vmem:[#allocation4 + $0x3e4] ss:$16 sps:$4 sm:$0xff]   ;;  %v18281_v18 = vld [vmem:[#allocation4 + $0x48] ss:$16 sps:$4 sm:$0xff]  }
 0x240   :  { %2183 = vmatmul.mubr.bf16.gmra.mrb[52].mxu1 %v20840_v5  ;;  %v21136_v5 = vpack.c.bf16 %v2468_v55, %v2462_v16  ;;  %v18269_v55 = vld [vmem:[#allocation4 + $0x8] ss:$16 sps:$4 sm:$0xff]  }
 0x241   :  { %3791 = vmatmul.mubr.bf16.gmra.mrb[52].mxu0 %v21121_v60  ;;  %2234 = vmatpush1.bf16.msra.mxu1 %v18230_v34  ;;  %v18260_v34 = vld [vmem:[%s24458_s15 + $0x5e8] ss:$16 sps:$4 sm:$0xff]  }
 0x242   :  { %3842 = vmatpush1.bf16.msra.mxu0 %v18233_v39  ;;  %2235 = vmatprep.subr.bf16.mxu1 %v18238_v42  ;;  %v2398_v39 = vld [vmem:[%s24460_s7 + $0x40] sm:$0xff]  ;;  %v18268_v42 = vld [vmem:[#allocation4 + $0x404] ss:$16 sps:$4 sm:$0xff]  }
 0x243   :  { %3843 = vmatprep.subr.bf16.mxu0 %v18241_v45  ;;  %2192 = vmatprep.mubr.bf16.mxu1 %v20850_v13  ;;  %v18251_v13 = vld [vmem:[#allocation4 + $0x3a0] ss:$16 sps:$4 sm:$0xff]   ;;  %v18271_v45 = vld [vmem:[#allocation4 + $0xc] ss:$16 sps:$4 sm:$0xff]   ;;  %v21167_v16 = vpack.c.bf16 %v2398_v39, %v2392_v38  ;;  %v2423_v11 = vld [vmem:[%s24460_s7 + $0x108] sm:$0xff] }
 0x244   :  { %3800 = vmatprep.mubr.bf16.mxu0 %v21126_v48  ;;  %v2435_v38 = vld [vmem:[%s24460_s7 + $0x168] sm:$0xff] }
 0x245   :  { %2236 = vmatpush1.bf16.msra.mxu1 %v18236_v59  ;;  %v18266_v59 = vld [vmem:[#allocation4 + $0x400] ss:$16 sps:$4 sm:$0xff]   ;;  %v18293_v39 = vld [vmem:[#allocation4 + $0x88] ss:$16 sps:$4 sm:$0xff]  }
 0x246   :  { %3844 = vmatpush1.bf16.msra.mxu0 %v18239_v50  ;;  %2237 = vmatprep.subr.bf16.mxu1 %v18244_v56  ;;  %v2405_v50 = vld [vmem:[%s24460_s7 + $0x78] sm:$0xff] }
 0x247   :  { %3845 = vmatprep.subr.bf16.mxu0 %v18247_v57  ;;  %v18274_v56 = vld [vmem:[#allocation4 + $0x424] ss:$16 sps:$4 sm:$0xff]   ;;  %v18277_v57 = vld [vmem:[#allocation4 + $0x2c] ss:$16 sps:$4 sm:$0xff]  }
 0x248   :  { %2193 = vmatmul.mubr.bf16.gmra.mrb[56].mxu1 %v20867_v32  ;;  %v2393_v32 = vld [vmem:[%s24460_s7 + $0x18] sm:$0xff] }
 0x249   :  { %3801 = vmatmul.mubr.bf16.gmra.mrb[56].mxu0 %v21136_v5  ;;  %2238 = vmatpush1.bf16.msra.mxu1 %v18242_v0  ;;  %v2404_v0 = vld [vmem:[%s24460_s7 + $0x70] sm:$0xff] }
 0x24a   :  { %3846 = vmatpush1.bf16.msra.mxu0 %v18245_v3  ;;  %2239 = vmatprep.subr.bf16.mxu1 %v18250_v6  ;;  %v2410_v3 = vld [vmem:[%s24460_s7 + $0xa0] sm:$0xff]  ;;  %v18280_v6 = vld [vmem:[#allocation4 + $0x444] ss:$16 sps:$4 sm:$0xff]  }
 0x24b   :  { %3847 = vmatprep.subr.bf16.mxu0 %v18253_v7  ;;  %2202 = vmatprep.mubr.bf16.mxu1 %v20878_v47  ;;  %v21158_v47 = vpack.c.bf16 %v2399_v28, %v2393_v32  ;;  %v18283_v7 = vld [vmem:[#allocation4 + $0x4c] ss:$16 sps:$4 sm:$0xff]   ;;  %v18287_v32 = vld [vmem:[#allocation4 + $0x68] ss:$16 sps:$4 sm:$0xff]  }
 0x24c   :  { %3810 = vmatprep.mubr.bf16.mxu0 %v21142_v8  ;;  %v2416_v28 = vld [vmem:[%s24460_s7 + $0xd0] sm:$0xff] }
 0x24d   :  { %2240 = vmatpush1.bf16.msra.mxu1 %v18248_v15  ;;  %v18278_v15 = vld [vmem:[#allocation4 + $0x440] ss:$16 sps:$4 sm:$0xff]  }
 0x24e   :  { %3848 = vmatpush1.bf16.msra.mxu0 %v18251_v13  ;;  %2241 = vmatprep.subr.bf16.mxu1 %v18256_v19  ;;  %v21179_v13 = vpack.c.bf16 %v2410_v3, %v2404_v0  ;;  %v18286_v19 = vld [vmem:[#allocation4 + $0x464] ss:$16 sps:$4 sm:$0xff]  }
 0x24f   :  { %3849 = vmatprep.subr.bf16.mxu0 %v18259_v20  ;;  %v18289_v20 = vld [vmem:[#allocation4 + $0x6c] ss:$16 sps:$4 sm:$0xff]   ;;  %v2447_v3 = vld [vmem:[%s24460_s7 + $0x1c8] sm:$0xff] }
 0x250   :  { %2203 = vmatmul.mubr.bf16.gmra.mrb[60].mxu1 %v20892_v61  ;;  %v2411_v61 = vld [vmem:[%s24460_s7 + $0xa8] sm:$0xff]  ;;  %24461 = vst [vmem:[#allocation48_spill] sm:$0xff] %v21179_v13 }
 0x251   :  { %3811 = vmatmul.mubr.bf16.gmra.mrb[60].mxu0 %v21152_v46  ;;  %2242 = vmatpush1.bf16.msra.mxu1 %v18254_v21  ;;  %v21170_v17 = vpack.c.bf16 %v2411_v61, %v2405_v50  ;;  %v18299_v50 = vld [vmem:[#allocation4 + $0xa8] ss:$16 sps:$4 sm:$0xff]   ;;  %v2428_v61 = vld [vmem:[%s24460_s7 + $0x130] sm:$0xff] }
 0x252   :  { %3850 = vmatpush1.bf16.msra.mxu0 %v18257_v29  ;;  %2243 = vmatprep.subr.bf16.mxu1 %v18262_v30  ;;  %v2422_v29 = vld [vmem:[%s24460_s7 + $0x100] sm:$0xff]  ;;  %v18292_v30 = vld [vmem:[#allocation4 + $0x484] ss:$16 sps:$4 sm:$0xff]  }
 0x253   :  { %3851 = vmatprep.subr.bf16.mxu0 %v18265_v33  ;;  %2245 = vmatprep.mubr.bf16.mxu1 %v20902_v10  ;;  %v18272_v10 = vld [vmem:[#allocation4 + $0x420] ss:$16 sps:$4 sm:$0xff]   ;;  %v18295_v33 = vld [vmem:[#allocation4 + $0x8c] ss:$16 sps:$4 sm:$0xff]  }
 0x254   :  { %3853 = vmatprep.mubr.bf16.mxu0 %v21158_v47 }
 0x255   :  { %2244 = vmatpush1.bf16.msra.mxu1 %v18260_v34  ;;  %v18290_v34 = vld [vmem:[#allocation4 + $0x480] ss:$16 sps:$4 sm:$0xff]  }
 0x256   :  { %3852 = vmatpush1.bf16.msra.mxu0 %v18263_v41  ;;  %4047 = vmatprep.subr.bf16.mxu1 %v18271_v45  ;;  %v21191_v41 = vpack.c.bf16 %v2422_v29, %v2416_v28  ;;  %v18301_v45 = vld [vmem:[#allocation4 + $0xac] ss:$16 sps:$4 sm:$0xff]   ;;  %v18316_v28 = vld [vmem:[#allocation4 + $0x504] ss:$16 sps:$4 sm:$0xff]  }
 0x257   :  { %3934 = vmatprep.subr.bf16.mxu0 %v18268_v42  ;;  %v18298_v42 = vld [vmem:[#allocation4 + $0x4a4] ss:$16 sps:$4 sm:$0xff]   ;;  %v18319_v29 = vld [vmem:[#allocation4 + $0x10c] ss:$16 sps:$4 sm:$0xff]  }
 0x258   :  { %2246 = vmatmul.mubr.bf16.vlgmr.msra.gmra.mrb[32].mxu1 %v20912_v22  ;;  %v2417_v22 = vld [vmem:[%s24460_s7 + $0xd8] sm:$0xff]  ;;  %24463 = vst [vmem:[#allocation50_spill] sm:$0xff] %v21191_v41 }
 0x259   :  { %3854 = vmatmul.mubr.bf16.vlgmr.msra.gmra.mrb[32].mxu0 %v21167_v16  ;;  %4048 = vmatpush1.bf16.msra.mxu1 %v18269_v55  ;;  %v21182_v21 = vpack.c.bf16 %v2423_v11, %v2417_v22  ;;  %v2434_v55 = vld [vmem:[%s24460_s7 + $0x160] sm:$0xff] }
 0x25a   :  { %3935 = vmatpush1.bf16.msra.mxu0 %v18266_v59  ;;  %4049 = vmatprep.subr.bf16.mxu1 %v18277_v57  ;;  %v18296_v59 = vld [vmem:[#allocation4 + $0x4a0] ss:$16 sps:$4 sm:$0xff]   ;;  %v18307_v57 = vld [vmem:[#allocation4 + $0xcc] ss:$16 sps:$4 sm:$0xff]  }
 0x25b   :  { %3936 = vmatprep.subr.bf16.mxu0 %v18274_v56  ;;  %2255 = vmatprep.mubr.bf16.mxu1 %v20918_v35  ;;  %24462 = vst [vmem:[#allocation49_spill] sm:$0xff] %v21182_v21  ;;  %v18284_v35 = vld [vmem:[#allocation4 + $0x460] ss:$16 sps:$4 sm:$0xff]   ;;  %v18304_v56 = vld [vmem:[#allocation4 + $0x4c4] ss:$16 sps:$4 sm:$0xff]  }
 0x25c   :  { %3863 = vmatprep.mubr.bf16.mxu0 %v21170_v17  ;;  %v18313_v11 = vld [vmem:[#allocation4 + $0xec] ss:$16 sps:$4 sm:$0xff]  }
 0x25d   :  { %4050 = vmatpush1.bf16.msra.mxu1 %v18275_v14  ;;  %v2441_v14 = vld [vmem:[%s24460_s7 + $0x198] sm:$0xff] }
 0x25e   :  { %3937 = vmatpush1.bf16.msra.mxu0 %v18272_v10  ;;  %4051 = vmatprep.subr.bf16.mxu1 %v18283_v7  ;;  %v18302_v7 = vld [vmem:[#allocation4 + $0x4c0] ss:$16 sps:$4 sm:$0xff]  }
 0x25f   :  { %3938 = vmatprep.subr.bf16.mxu0 %v18280_v6 }
 0x260   :  { %2256 = vmatmul.mubr.bf16.gmra.mrb[36].mxu1 %v20928_v52  ;;  %v2429_v52 = vld [vmem:[%s24460_s7 + $0x138] sm:$0xff] }
 0x261   :  { %3864 = vmatmul.mubr.bf16.gmra.mrb[36].mxu0 %v21179_v13  ;;  %4052 = vmatpush1.bf16.msra.mxu1 %v18281_v18  ;;  %v18308_v18 = vld [vmem:[#allocation4 + $0x4e0] ss:$16 sps:$4 sm:$0xff]  }
 0x262   :  { %3939 = vmatpush1.bf16.msra.mxu0 %v18278_v15  ;;  %4053 = vmatprep.subr.bf16.mxu1 %v18289_v20  ;;  %v18305_v15 = vld [vmem:[#allocation4 + $0xc8] ss:$16 sps:$4 sm:$0xff]   ;;  %v21214_v20 = vpack.c.bf16 %v2447_v3, %v2441_v14  ;;  %v18328_v14 = vld [vmem:[#allocation4 + $0x544] ss:$16 sps:$4 sm:$0xff]   ;;  %v18331_v3 = vld [vmem:[#allocation4 + $0x14c] ss:$16 sps:$4 sm:$0xff]  }
 0x263   :  { %3940 = vmatprep.subr.bf16.mxu0 %v18286_v19  ;;  %2265 = vmatprep.mubr.bf16.mxu1 %v20933_v62  ;;  %v21194_v62 = vpack.c.bf16 %v2435_v38, %v2429_v52  ;;  %v18311_v19 = vld [vmem:[#allocation4 + $0xe8] ss:$16 sps:$4 sm:$0xff]  }
 0x264   :  { %3873 = vmatprep.mubr.bf16.mxu0 %v21182_v21  ;;  %24466 = vst [vmem:[#allocation53_spill] sm:$0xff] %v21214_v20  ;;  %v2453_v52 = vld [vmem:[%s24460_s7 + $0x1f8] sm:$0xff]  ;;  %v2459_v38 = vld [vmem:[%s24460_s7 + $0x228] sm:$0xff] }
 0x265   :  { %4054 = vmatpush1.bf16.msra.mxu1 %v18287_v32  ;;  %24464 = vst [vmem:[#allocation51_spill] sm:$0xff] %v21194_v62  ;;  %v2446_v32 = vld [vmem:[%s24460_s7 + $0x1c0] sm:$0xff]  ;;  %v18392_v21 = vld [vmem:[#allocation4 + $0x2a8] ss:$16 sps:$4 sm:$0xff]  }
 0x266   :  { %3941 = vmatpush1.bf16.msra.mxu0 %v18284_v35  ;;  %4055 = vmatprep.subr.bf16.mxu1 %v18295_v33  ;;  %v2440_v35 = vld [vmem:[%s24460_s7 + $0x190] sm:$0xff] }
 0x267   :  { %3942 = vmatprep.subr.bf16.mxu0 %v18292_v30 }
 0x268   :  { %2266 = vmatmul.mubr.bf16.gmra.mrb[40].mxu1 %v20944_v9  ;;  %v21207_v9 = vpack.c.bf16 %v2434_v55, %v2428_v61  ;;  %v18323_v61 = vld [vmem:[#allocation4 + $0x128] ss:$16 sps:$4 sm:$0xff]   ;;  %v21234_v55 = vpack.c.bf16 %v2459_v38, %v2453_v52  ;;  %v2464_v38 = vld [vmem:[%s24460_s7 + $0x250] sm:$0xff] }
 0x269   :  { %3874 = vmatmul.mubr.bf16.gmra.mrb[40].mxu0 %v21191_v41  ;;  %4056 = vmatpush1.bf16.msra.mxu1 %v18293_v39  ;;  %v18335_v52 = vld [vmem:[#allocation4 + $0x168] ss:$16 sps:$4 sm:$0xff]  }
 0x26a   :  { %3943 = vmatpush1.bf16.msra.mxu0 %v18290_v34  ;;  %4057 = vmatprep.subr.bf16.mxu1 %v18301_v45  ;;  %24465 = vst [vmem:[#allocation52_spill] sm:$0xff] %v21207_v9  ;;  %v18314_v34 = vld [vmem:[#allocation4 + $0x500] ss:$16 sps:$4 sm:$0xff]   ;;  %24468 = vst [vmem:[#allocation55_spill] sm:$0xff] %v21234_v55 }
 0x26b   :  { %3944 = vmatprep.subr.bf16.mxu0 %v18298_v42  ;;  %v21200_v10 = vpop.f32.mrb[0].mxu1  ;;  %2275 = vmatprep.mubr.bf16.mxu1 %v20950_v27  ;;  %v18310_v27 = vld [vmem:[#allocation4 + $0x4e4] ss:$16 sps:$4 sm:$0xff]   ;;  %v18317_v42 = vld [vmem:[#allocation4 + $0x108] ss:$16 sps:$4 sm:$0xff]  }
 0x26c   :  { %3883 = vmatprep.mubr.bf16.mxu0 %v21194_v62  ;;  %v21205_v0 = vpop.f32.mrb[1].mxu1  ;;  %v666_v62 = vld [vmem:[#allocation2] sm:$0xf] }
 0x26d   :  { %v21210_v6 = vpop.f32.mrb[2].mxu1  ;;  %4058 = vmatpush1.bf16.msra.mxu1 %v18299_v50  ;;  %v18320_v50 = vld [vmem:[#allocation4 + $0x520] ss:$16 sps:$4 sm:$0xff]  }
 0x26e   :  { %3945 = vmatpush1.bf16.msra.mxu0 %v18296_v59  ;;  %v21212_v22 = vpop.f32.mrb[3].mxu1  ;;  %4059 = vmatprep.subr.bf16.mxu1 %v18307_v57  ;;  %v18325_v59 = vld [vmem:[#allocation4 + $0x12c] ss:$16 sps:$4 sm:$0xff]  }
 0x26f   :  { %3946 = vmatprep.subr.bf16.mxu0 %v18304_v56  ;;  %v2452_v56 = vld [vmem:[%s24460_s7 + $0x1f0] sm:$0xff]  ;;  %v2458_v57 = vld [vmem:[%s24460_s7 + $0x220] sm:$0xff] }
 0x270   :  { %2276 = vmatmul.mubr.bf16.gmra.mrb[44].mxu1 %v20960_v53  ;;  %v21226_v53 = vpack.c.bf16 %v2446_v32, %v2440_v35  ;;  %v18329_v35 = vld [vmem:[#allocation4 + $0x148] ss:$16 sps:$4 sm:$0xff]  }
 0x271   :  { %3884 = vmatmul.mubr.bf16.gmra.mrb[44].mxu0 %v21207_v9  ;;  %4060 = vmatpush1.bf16.msra.mxu1 %v18305_v15  ;;  %v18326_v15 = vld [vmem:[#allocation4 + $0x540] ss:$16 sps:$4 sm:$0xff]   ;;  %v18383_v9 = vld [vmem:[#allocation7 + $0x60] ss:$16 sps:$4 sm:$0xff]  }
 0x272   :  { %3947 = vmatpush1.bf16.msra.mxu0 %v18302_v7  ;;  %4061 = vmatprep.subr.bf16.mxu1 %v18313_v11  ;;  %24467 = vst [vmem:[#allocation54_spill] sm:$0xff] %v21226_v53  ;;  %v21247_v11 = vpack.c.bf16 %v2458_v57, %v2452_v56 }
 0x273   :  { %3948 = vmatprep.subr.bf16.mxu0 %v18310_v27  ;;  %v21220_v30 = vpop.f32.mrb[4].mxu1  ;;  %2285 = vmatprep.mubr.bf16.mxu1 %v20966_v1  ;;  %v18322_v1 = vld [vmem:[#allocation4 + $0x524] ss:$16 sps:$4 sm:$0xff]  }
 0x274   :  { %3893 = vmatprep.mubr.bf16.mxu0 %v21214_v20  ;;  %v21224_v33 = vpop.f32.mrb[5].mxu1  ;;  %v2465_v27 = vld [vmem:[%s24460_s7 + $0x258] sm:$0xff]  ;;  %24469 = vst [vmem:[#allocation56_spill] sm:$0xff] %v21247_v11 }
 0x275   :  { %v21230_v39 = vpop.f32.mrb[6].mxu1  ;;  %4062 = vmatpush1.bf16.msra.mxu1 %v18311_v19 }
 0x276   :  { %3949 = vmatpush1.bf16.msra.mxu0 %v18308_v18  ;;  %v21232_v45 = vpop.f32.mrb[7].mxu1  ;;  %4063 = vmatprep.subr.bf16.mxu1 %v18319_v29  ;;  %v2471_v18 = vld [vmem:[%s24460_s7 + $0x288] sm:$0xff] }
 0x277   :  { %3950 = vmatprep.subr.bf16.mxu0 %v18316_v28  ;;  %v18337_v28 = vld [vmem:[#allocation4 + $0x16c] ss:$16 sps:$4 sm:$0xff]   ;;  %v21254_v29 = vpack.c.bf16 %v2471_v18, %v2465_v27 }
 0x278   :  { %2286 = vmatmul.mubr.bf16.gmra.mrb[48].mxu1 %v20975_v23  ;;  %v18349_v18 = vld [vmem:[#allocation4 + $0x1ac] ss:$16 sps:$4 sm:$0xff]  }
 0x279   :  { %3894 = vmatmul.mubr.bf16.gmra.mrb[48].mxu0 %v21226_v53  ;;  %4064 = vmatpush1.bf16.msra.mxu1 %v18317_v42  ;;  %24470 = vst [vmem:[#allocation57_spill] sm:$0xff] %v21254_v29  ;;  %v2470_v42 = vld [vmem:[%s24460_s7 + $0x280] sm:$0xff] }
 0x27a   :  { %3951 = vmatpush1.bf16.msra.mxu0 %v18314_v34  ;;  %4065 = vmatprep.subr.bf16.mxu1 %v18325_v59  ;;  %v18332_v34 = vld [vmem:[#allocation4 + $0x560] ss:$16 sps:$4 sm:$0xff]   ;;  %v18343_v59 = vld [vmem:[#allocation4 + $0x18c] ss:$16 sps:$4 sm:$0xff]   ;;  %v21267_v57 = vpack.c.bf16 %v2470_v42, %v2464_v38  ;;  %v18352_v38 = vld [vmem:[#allocation4 + $0x5c4] ss:$16 sps:$4 sm:$0xff]  }
 0x27b   :  { %3952 = vmatprep.subr.bf16.mxu0 %v18322_v1  ;;  %v21240_v7 = vpop.f32.mrb[8].mxu1  ;;  %2295 = vmatprep.mubr.bf16.mxu1 %v20982_v25  ;;  %v18334_v25 = vld [vmem:[#allocation4 + $0x564] ss:$16 sps:$4 sm:$0xff]   ;;  %v18355_v42 = vld [vmem:[#allocation4 + $0x1cc] ss:$16 sps:$4 sm:$0xff]  }
 0x27c   :  { %3903 = vmatprep.mubr.bf16.mxu0 %v21234_v55  ;;  %v21245_v23 = vpop.f32.mrb[9].mxu1  ;;  %v18340_v1 = vld [vmem:[#allocation4 + $0x584] ss:$16 sps:$4 sm:$0xff]   ;;  %24471 = vst [vmem:[#allocation58_spill] sm:$0xff] %v21267_v57 }
 0x27d   :  { %v21250_v19 = vpop.f32.mrb[10].mxu1  ;;  %4066 = vmatpush1.bf16.msra.mxu1 %v18323_v61  ;;  %v2477_v61 = vld [vmem:[%s24460_s7 + $0x2b8] sm:$0xff] }
 0x27e   :  { %3953 = vmatpush1.bf16.msra.mxu0 %v18320_v50  ;;  %v21252_v32 = vpop.f32.mrb[11].mxu1  ;;  %4067 = vmatprep.subr.bf16.mxu1 %v18331_v3  ;;  %v18371_v55 = vld [vmem:[#allocation7 + $0x20] ss:$16 sps:$4 sm:$0xff]  }
 0x27f   :  { %3954 = vmatprep.subr.bf16.mxu0 %v18328_v14  ;;  %v2483_v14 = vld [vmem:[%s24460_s7 + $0x2e8] sm:$0xff] }
 0x280   :  { %2296 = vmatmul.mubr.bf16.gmra.mrb[52].mxu1 %v20992_v43  ;;  %v18338_v43 = vld [vmem:[#allocation4 + $0x580] ss:$16 sps:$4 sm:$0xff]  }
 0x281   :  { %3904 = vmatmul.mubr.bf16.gmra.mrb[52].mxu0 %v21247_v11  ;;  %4068 = vmatpush1.bf16.msra.mxu1 %v18329_v35  ;;  %v21274_v35 = vpack.c.bf16 %v2483_v14, %v2477_v61 }
 0x282   :  { %3955 = vmatpush1.bf16.msra.mxu0 %v18326_v15  ;;  %4069 = vmatprep.subr.bf16.mxu1 %v18337_v28  ;;  %v18341_v15 = vld [vmem:[#allocation4 + $0x188] ss:$16 sps:$4 sm:$0xff]  }
 0x283   :  { %3956 = vmatprep.subr.bf16.mxu0 %v18334_v25  ;;  %v21260_v50 = vpop.f32.mrb[12].mxu1  ;;  %2305 = vmatprep.mubr.bf16.mxu1 %v20998_v58  ;;  %v18346_v58 = vld [vmem:[#allocation4 + $0x5a4] ss:$16 sps:$4 sm:$0xff]   ;;  %24472 = vst [vmem:[#allocation59_spill] sm:$0xff] %v21274_v35  ;;  %v18344_v25 = vld [vmem:[#allocation4 + $0x5a0] ss:$16 sps:$4 sm:$0xff]  }
 0x284   :  { %3913 = vmatprep.mubr.bf16.mxu0 %v21254_v29  ;;  %v21265_v56 = vpop.f32.mrb[13].mxu1  ;;  %v18347_v28 = vld [vmem:[#allocation4 + $0x1a8] ss:$16 sps:$4 sm:$0xff]  }
 0x285   :  { %v21270_v3 = vpop.f32.mrb[14].mxu1  ;;  %4070 = vmatpush1.bf16.msra.mxu1 %v18335_v52  ;;  %v2482_v52 = vld [vmem:[%s24460_s7 + $0x2e0] sm:$0xff]  ;;  %v18359_v29 = vld [vmem:[#allocation4 + $0x1e8] ss:$16 sps:$4 sm:$0xff]  }
 0x286   :  { %3957 = vmatpush1.bf16.msra.mxu0 %v18332_v34  ;;  %v21272_v27 = vpop.f32.mrb[15].mxu1  ;;  %4071 = vmatprep.subr.bf16.mxu1 %v18343_v59  ;;  %v2476_v34 = vld [vmem:[%s24460_s7 + $0x2b0] sm:$0xff]  ;;  %v2395_v59 = vld [vmem:[%s24460_s7 + $0x28] sm:$0xff] }
 0x287   :  { %3958 = vmatprep.subr.bf16.mxu0 %v18340_v1  ;;  %v21287_v14 = vpack.c.bf16 %v2482_v52, %v2476_v34  ;;  %v18364_v34 = vld [vmem:[#allocation4 + $0x20c] ss:$16 sps:$4 sm:$0xff]   ;;  %v18367_v52 = vld [vmem:[#allocation7 + $0x4] ss:$16 sps:$4 sm:$0xff]  }
 0x288   :  { %2306 = vmatmul.mubr.bf16.gmra.mrb[56].mxu1 %v21008_v51  ;;  %v18350_v51 = vld [vmem:[#allocation4 + $0x5c0] ss:$16 sps:$4 sm:$0xff]  }
 0x289   :  { %3914 = vmatmul.mubr.bf16.gmra.mrb[56].mxu0 %v21267_v57  ;;  %4072 = vmatpush1.bf16.msra.mxu1 %v18341_v15  ;;  %24473 = vst [vmem:[#allocation60_spill] sm:$0xff] %v21287_v14  ;;  %v18356_v57 = vld [vmem:[#allocation4 + $0x5e0] ss:$16 sps:$4 sm:$0xff]  }
 0x28a   :  { %3959 = vmatpush1.bf16.msra.mxu0 %v18338_v43  ;;  %4073 = vmatprep.subr.bf16.mxu1 %v18349_v18  ;;  %v2401_v43 = vld [vmem:[%s24460_s7 + $0x58] sm:$0xff] }
 0x28b   :  { %3960 = vmatprep.subr.bf16.mxu0 %v18346_v58  ;;  %v21280_v1 = vpop.f32.mrb[16].mxu1  ;;  %2315 = vmatprep.mubr.bf16.mxu1 %v21013_v63  ;;  %v18353_v58 = vld [vmem:[#allocation4 + $0x1c8] ss:$16 sps:$4 sm:$0xff]   ;;  %v18358_v63 = vld [vmem:[#allocation4 + $0x5e4] ss:$16 sps:$4 sm:$0xff]   ;;  %v21294_v11 = vpack.c.bf16 %v2401_v43, %v2395_v59 }
 0x28c   :  { %3923 = vmatprep.mubr.bf16.mxu0 %v21274_v35  ;;  %v21285_v61 = vpop.f32.mrb[17].mxu1  ;;  %v18361_v35 = vld [vmem:[#allocation4 + $0x1ec] ss:$16 sps:$4 sm:$0xff]   ;;  %v2407_v59 = vld [vmem:[%s24460_s7 + $0x88] sm:$0xff] }
 0x28d   :  { %v21290_v15 = vpop.f32.mrb[18].mxu1  ;;  %4074 = vmatpush1.bf16.msra.mxu1 %v18347_v28  ;;  %24474 = vst [vmem:[#allocation61_spill] sm:$0xff] %v21294_v11  ;;  %v2400_v28 = vld [vmem:[%s24460_s7 + $0x50] sm:$0xff] }
 0x28e   :  { %3961 = vmatpush1.bf16.msra.mxu0 %v18344_v25  ;;  %v21292_v18 = vpop.f32.mrb[19].mxu1  ;;  %4075 = vmatprep.subr.bf16.mxu1 %v18355_v42  ;;  %v2394_v25 = vld [vmem:[%s24460_s7 + $0x20] sm:$0xff]  ;;  %v18362_v42 = vld [vmem:[#allocation4 + $0x208] ss:$16 sps:$4 sm:$0xff]  }
 0x28f   :  { %3962 = vmatprep.subr.bf16.mxu0 %v18352_v38  ;;  %v21307_v43 = vpack.c.bf16 %v2400_v28, %v2394_v25  ;;  %v668_v25 = vlaneseq  ;;  %v18376_v28 = vld [vmem:[#allocation4 + $0x24c] ss:$16 sps:$4 sm:$0xff]  }
 0x290   :  { %2316 = vmatmul.mubr.bf16.gmra.mrb[60].mxu1 %v21024_v36 }
 0x291   :  { %3924 = vmatmul.mubr.bf16.gmra.mrb[60].mxu0 %v21287_v14  ;;  %4076 = vmatpush1.bf16.msra.mxu1 %v18353_v58  ;;  %24475 = vst [vmem:[#allocation62_spill] sm:$0xff] %v21307_v43  ;;  %v2413_v14 = vld [vmem:[%s24460_s7 + $0xb8] sm:$0xff]  ;;  %v18370_v58 = vld [vmem:[#allocation4 + $0x22c] ss:$16 sps:$4 sm:$0xff]  }
 0x292   :  { %3963 = vmatpush1.bf16.msra.mxu0 %v18350_v51  ;;  %4077 = vmatprep.subr.bf16.mxu1 %v18361_v35  ;;  %v18365_v35 = vld [vmem:[#allocation7] ss:$16 sps:$4 sm:$0xff]   ;;  %v21314_v53 = vpack.c.bf16 %v2413_v14, %v2407_v59  ;;  %v21324_v14 = vshrl.u32 %v668_v25, 7  ;;  %v18385_v25 = vld [vmem:[#allocation7 + $0x64] ss:$16 sps:$4 sm:$0xff]  }
 0x293   :  { %3964 = vmatprep.subr.bf16.mxu0 %v18358_v63  ;;  %v21300_v38 = vpop.f32.mrb[20].mxu1  ;;  %3966 = vmatprep.mubr.bf16.mxu0 %v21294_v11  ;;  %v18368_v11 = vld [vmem:[#allocation4 + $0x228] ss:$16 sps:$4 sm:$0xff]  }
 0x294   :  { %4079 = vmatprep.mubr.bf16.mxu1 %v21030_v40  ;;  %v21305_v36 = vpop.f32.mrb[21].mxu1  ;;  %v18373_v40 = vld [vmem:[#allocation7 + $0x24] ss:$16 sps:$4 sm:$0xff]   ;;  %24476 = vst [vmem:[#allocation63_spill] sm:$0xff] %v21314_v53  ;;  %24477 = vst [vmem:[#allocation64_spill] sm:$0xff] %v21324_v14 }
 0x295   :  { %v21310_v51 = vpop.f32.mrb[22].mxu1  ;;  %4078 = vmatpush1.bf16.msra.mxu1 %v18359_v29  ;;  %v2406_v29 = vld [vmem:[%s24460_s7 + $0x80] sm:$0xff] }
 0x296   :  { %3965 = vmatpush1.bf16.msra.mxu0 %v18356_v57  ;;  %v21312_v63 = vpop.f32.mrb[23].mxu1  ;;  %4160 = vmatprep.subr.bf16.mxu1 %v18364_v34  ;;  %v2412_v57 = vld [vmem:[%s24460_s7 + $0xb0] sm:$0xff]  ;;  %v18379_v34 = vld [vmem:[#allocation7 + $0x44] ss:$16 sps:$4 sm:$0xff]  }
 0x297   :  { %5768 = vmatprep.subr.bf16.mxu0 %v18367_v52 }
 0x298   :  { %4080 = vmatmul.mubr.bf16.vlgmr.msra.gmra.mrb[64].mxu1 %v21040_v49  ;;  %v21328_v49 = vpack.c.bf16 %v2412_v57, %v2406_v29  ;;  %v2418_v57 = vld [vmem:[%s24460_s7 + $0xe0] sm:$0xff] }
 0x299   :  { %3967 = vmatmul.mubr.bf16.vlgmr.msra.gmra.mrb[32].mxu0 %v21307_v43  ;;  %4161 = vmatpush1.bf16.msra.mxu1 %v18362_v42  ;;  %v2419_v43 = vld [vmem:[%s24460_s7 + $0xe8] sm:$0xff]  ;;  %v2425_v42 = vld [vmem:[%s24460_s7 + $0x118] sm:$0xff] }
 0x29a   :  { %5769 = vmatpush1.bf16.msra.mxu0 %v18365_v35  ;;  %4162 = vmatprep.subr.bf16.mxu1 %v18370_v58  ;;  %24478 = vst [vmem:[#allocation65_spill] sm:$0xff] %v21328_v49  ;;  %v18374_v58 = vld [vmem:[#allocation4 + $0x248] ss:$16 sps:$4 sm:$0xff]   ;;  %v21336_v29 = vpack.c.bf16 %v2425_v42, %v2419_v43  ;;  %v21346_v43 = vsub.s32 1, %v21324_v14 }
 0x29b   :  { %5770 = vmatprep.subr.bf16.mxu0 %v18373_v40  ;;  %v21320_v52 = vpop.f32.mrb[24].mxu1  ;;  %3976 = vmatprep.mubr.bf16.mxu0 %v21314_v53  ;;  %v18377_v40 = vld [vmem:[#allocation7 + $0x40] ss:$16 sps:$4 sm:$0xff]   ;;  %v18380_v53 = vld [vmem:[#allocation4 + $0x268] ss:$16 sps:$4 sm:$0xff]  }
 0x29c   :  { %4089 = vmatprep.mubr.bf16.mxu1 %v21046_v54  ;;  %v21326_v59 = vpop.f32.mrb[25].mxu1  ;;  %v18382_v54 = vld [vmem:[#allocation4 + $0x26c] ss:$16 sps:$4 sm:$0xff]   ;;  %24479 = vst [vmem:[#allocation66_spill] sm:$0xff] %v21336_v29  ;;  %24481 = vst [vmem:[#allocation68_spill] sm:$0xff] %v21346_v43 }
 0x29d   :  { %v21332_v35 = vpop.f32.mrb[26].mxu1  ;;  %4163 = vmatpush1.bf16.msra.mxu1 %v18368_v11  ;;  %v21343_v11 = vsub.s32 0, %v21324_v14  ;;  %v18389_v14 = vld [vmem:[#allocation7 + $0x80] ss:$16 sps:$4 sm:$0xff]  }
 0x29e   :  { %5771 = vmatpush1.bf16.msra.mxu0 %v18371_v55  ;;  %v21334_v20 = vpop.f32.mrb[27].mxu1  ;;  %4164 = vmatprep.subr.bf16.mxu1 %v18376_v28  ;;  %v2424_v55 = vld [vmem:[%s24460_s7 + $0x110] sm:$0xff] }
 0x29f   :  { %5772 = vmatprep.subr.bf16.mxu0 %v18379_v34  ;;  %24480 = vst [vmem:[#allocation67_spill] sm:$0xff] %v21343_v11  ;;  %v18388_v28 = vld [vmem:[#allocation4 + $0x28c] ss:$16 sps:$4 sm:$0xff]   ;;  %v18391_v34 = vld [vmem:[#allocation7 + $0x84] ss:$16 sps:$4 sm:$0xff]   ;;  %v21361_v41 = vrot.slane %v666_v62, %v21343_v11 }
 0x2a0   :  { %4090 = vmatmul.mubr.bf16.gmra.mrb[68].mxu1 %v21055_v12  ;;  %v2436_v11 = vld [vmem:[%s24460_s7 + $0x170] sm:$0xff] }
 0x2a1   :  { %3977 = vmatmul.mubr.bf16.gmra.mrb[36].mxu0 %v21328_v49  ;;  %4165 = vmatpush1.bf16.msra.mxu1 %v18374_v58  ;;  %v21354_v58 = vpack.c.bf16 %v2424_v55, %v2418_v57  ;;  %v2431_v49 = vld [vmem:[%s24460_s7 + $0x148] sm:$0xff]  ;;  %v21366_v55 = vrot.slane %v666_v62, %v21346_v43 }
 0x2a2   :  { %5773 = vmatpush1.bf16.msra.mxu0 %v18377_v40  ;;  %4166 = vmatprep.subr.bf16.mxu1 %v18382_v54  ;;  %v18386_v40 = vld [vmem:[#allocation4 + $0x288] ss:$16 sps:$4 sm:$0xff]  }
 0x2a3   :  { %5774 = vmatprep.subr.bf16.mxu0 %v18385_v25  ;;  %v21348_v42 = vpop.f32.mrb[28].mxu1  ;;  %3986 = vmatprep.mubr.bf16.mxu0 %v21336_v29  ;;  %24484 = vst [vmem:[#allocation71_spill] sm:$0xff] %v21354_v58  ;;  %v2437_v54 = vld [vmem:[%s24460_s7 + $0x178] sm:$0xff] }
 0x2a4   :  { %24482 = vst [vmem:[#allocation69_spill] sm:$0xff] %v21348_v42  ;;  %4099 = vmatprep.mubr.bf16.mxu1 %v21062_v31  ;;  %v21352_v12 = vpop.f32.mrb[29].mxu1  ;;  %v18394_v31 = vld [vmem:[#allocation4 + $0x2ac] ss:$16 sps:$4 sm:$0xff]   ;;  %v18397_v57 = vld [vmem:[#allocation7 + $0xa4] ss:$16 sps:$4 sm:$0xff]  }
 0x2a5   :  { %24483 = vst [vmem:[#allocation70_spill] sm:$0xff] %v21352_v12  ;;  %v21358_v25 = vpop.f32.mrb[30].mxu1  ;;  %4167 = vmatpush1.bf16.msra.mxu1 %v18380_v53  ;;  %v21368_v12 = vpack.c.bf16 %v2437_v54, %v2431_v49  ;;  %v2430_v53 = vld [vmem:[%s24460_s7 + $0x140] sm:$0xff]  ;;  %v18403_v62 = vld [vmem:[#allocation7 + $0xc4] ss:$16 sps:$4 sm:$0xff]   ;;  %v1685_v49 = vadd.f32 %v21205_v0, %v21366_v55 }
 0x2a6   :  { %24485 = vst [vmem:[#allocation72_spill] sm:$0xff] %v21358_v25  ;;  %5775 = vmatpush1.bf16.msra.mxu0 %v18383_v9  ;;  %v21363_v29 = vpop.f32.mrb[31].mxu1  ;;  %4168 = vmatprep.subr.bf16.mxu1 %v18388_v28  ;;  %v18395_v9 = vld [vmem:[#allocation7 + $0xa0] ss:$16 sps:$4 sm:$0xff]   ;;  %v18400_v28 = vld [vmem:[#allocation4 + $0x2cc] ss:$16 sps:$4 sm:$0xff]  }
 0x2a7   :  { %24486 = vst [vmem:[#allocation73_spill] sm:$0xff] %v21363_v29  ;;  %5776 = vmatprep.subr.bf16.mxu0 %v18391_v34  ;;  %24487 = vst [vmem:[#allocation74_spill] sm:$0xff] %v21368_v12  ;;  %v1683_v34 = vadd.f32 %v21200_v10, %v21361_v41  ;;  %v21383_v29 = vpack.c.bf16 %v2436_v11, %v2430_v53  ;;  %v2449_v10 = vld [vmem:[%s24460_s7 + $0x1d8] sm:$0xff] }
 0x2a8   :  { %4100 = vmatmul.mubr.bf16.gmra.mrb[72].mxu1 %v21072_v37  ;;  %v18398_v37 = vld [vmem:[#allocation4 + $0x2c8] ss:$16 sps:$4 sm:$0xff]  }
 0x2a9   :  { %3987 = vmatmul.mubr.bf16.gmra.mrb[40].mxu0 %v21354_v58  ;;  %4169 = vmatpush1.bf16.msra.mxu1 %v18386_v40  ;;  %v1687_v40 = vadd.f32 %v21210_v6, %v21361_v41  ;;  %v18406_v6 = vld [vmem:[#allocation4 + $0x2ec] ss:$16 sps:$4 sm:$0xff]   ;;  %v18404_v11 = vld [vmem:[#allocation4 + $0x2e8] ss:$16 sps:$4 sm:$0xff]  }
 0x2aa   :  { %5777 = vmatpush1.bf16.msra.mxu0 %v18389_v14  ;;  %4170 = vmatprep.subr.bf16.mxu1 %v18394_v31  ;;  %v2443_v14 = vld [vmem:[%s24460_s7 + $0x1a8] sm:$0xff]  ;;  %v1689_v31 = vadd.f32 %v21212_v22, %v21366_v55  ;;  %v2442_v22 = vld [vmem:[%s24460_s7 + $0x1a0] sm:$0xff] }
 0x2ab   :  { %5778 = vmatprep.subr.bf16.mxu0 %v18397_v57  ;;  %3996 = vmatprep.mubr.bf16.mxu0 %v21368_v12  ;;  %v18401_v12 = vld [vmem:[#allocation7 + $0xc0] ss:$16 sps:$4 sm:$0xff]   ;;  %v21388_v53 = vpack.c.bf16 %v2449_v10, %v2443_v14 }
 0x2ac   :  { %v1908_v54 = vpop.f32.mrb[0].mxu0  ;;  %4109 = vmatprep.mubr.bf16.mxu1 %v21078_v44  ;;  %v2461_v10 = vld [vmem:[%s24460_s7 + $0x238] sm:$0xff] }
 0x2ad   :  { %v16680_v43 = vadd.f32 %v1908_v54, %v1683_v34  ;;  %v1910_v58 = vpop.f32.mrb[1].mxu0  ;;  %4171 = vmatpush1.bf16.msra.mxu1 %v18392_v21  ;;  %v18409_v34 = vld [vmem:[#allocation7 + $0xe4] ss:$16 sps:$4 sm:$0xff]   ;;  %v18407_v21 = vld [vmem:[#allocation7 + $0xe0] ss:$16 sps:$4 sm:$0xff]  }
 0x2ae   :  { %v16682_v57 = vadd.f32 %v1910_v58, %v1685_v49  ;;  %v1912_v0 = vpop.f32.mrb[2].mxu0  ;;  %5779 = vmatpush1.bf16.msra.mxu0 %v18395_v9  ;;  %4172 = vmatprep.subr.bf16.mxu1 %v18400_v28  ;;  %v2448_v28 = vld [vmem:[%s24460_s7 + $0x1d0] sm:$0xff]  ;;  %v18415_v49 = vld [vmem:[#allocation7 + $0x104] ss:$16 sps:$4 sm:$0xff]  }
 0x2af   :  { %v16684_v44 = vadd.f32 %v1912_v0, %v1687_v40  ;;  %v1914_v25 = vpop.f32.mrb[3].mxu0  ;;  %5780 = vmatprep.subr.bf16.mxu0 %v18403_v62  ;;  %v2326_v42 = vmax.f32 %v16680_v43, 0.0  ;;  %v18412_v43 = vld [vmem:[#allocation4 + $0x30c] ss:$16 sps:$4 sm:$0xff]   ;;  %v21407_v40 = vpack.c.bf16 %v2448_v28, %v2442_v22  ;;  %v18410_v0 = vld [vmem:[#allocation4 + $0x308] ss:$16 sps:$4 sm:$0xff]  }
 0x2b0   :  { %v16686_v54 = vadd.f32 %v1914_v25, %v1689_v31  ;;  %4110 = vmatmul.mubr.bf16.gmra.mrb[76].mxu1 %v21088_v4  ;;  %v2327_v58 = vmax.f32 %v16682_v57, 0.0  ;;  %v1693_v25 = vadd.f32 %v21220_v30, %v21361_v41  ;;  %v1695_v4 = vadd.f32 %v21224_v33, %v21366_v55  ;;  %v18416_v22 = vld [vmem:[#allocation4 + $0x328] ss:$16 sps:$4 sm:$0xff]  }
 0x2b1   :  { %v2330_v13 = vmax.f32 %v16684_v44, 0.0  ;;  %3997 = vmatmul.mubr.bf16.gmra.mrb[44].mxu0 %v21383_v29  ;;  %4173 = vmatpush1.bf16.msra.mxu1 %v18398_v37  ;;  %v1697_v30 = vadd.f32 %v21230_v39, %v21361_v41  ;;  %v1699_v31 = vadd.f32 %v21232_v45, %v21366_v55  ;;  %v18418_v39 = vld [vmem:[#allocation4 + $0x32c] ss:$16 sps:$4 sm:$0xff]  }
 0x2b2   :  { %v2331_v9 = vmax.f32 %v16686_v54, 0.0  ;;  %5781 = vmatpush1.bf16.msra.mxu0 %v18401_v12  ;;  %4174 = vmatprep.subr.bf16.mxu1 %v18406_v6  ;;  %v2455_v12 = vld [vmem:[%s24460_s7 + $0x208] sm:$0xff] }
 0x2b3   :  { %v21396_v62 = vpack.c.bf16 %v2330_v13, %v2326_v42  ;;  %5782 = vmatprep.subr.bf16.mxu0 %v18409_v34  ;;  %4006 = vmatprep.mubr.bf16.mxu0 %v21388_v53  ;;  %v18421_v34 = vld [vmem:[#allocation7 + $0x124] ss:$16 sps:$4 sm:$0xff]  }
 0x2b4   :  { %v1918_v14 = vpop.f32.mrb[4].mxu0  ;;  %4119 = vmatprep.mubr.bf16.mxu1 %v21093_v2  ;;  %v21403_v37 = vpack.c.bf16 %v2331_v9, %v2327_v58  ;;  %v18413_v2 = vld [vmem:[#allocation7 + $0x100] ss:$16 sps:$4 sm:$0xff]   ;;  %v21412_v58 = vpack.c.bf16 %v2461_v10, %v2455_v12 }
 0x2b5   :  { %v16688_v13 = vadd.f32 %v1918_v14, %v1693_v25  ;;  %v1920_v42 = vpop.f32.mrb[5].mxu0  ;;  %4175 = vmatpush1.bf16.msra.mxu1 %v18404_v11  ;;  %v18419_v11 = vld [vmem:[#allocation7 + $0x120] ss:$16 sps:$4 sm:$0xff]   ;;  %v2454_v25 = vld [vmem:[%s24460_s7 + $0x200] sm:$0xff]  ;;  %v18427_v14 = vld [vmem:[#allocation7 + $0x144] ss:$16 sps:$4 sm:$0xff]  }
 0x2b6   :  { %v16690_v33 = vadd.f32 %v1920_v42, %v1695_v4  ;;  %v1922_v57 = vpop.f32.mrb[6].mxu0  ;;  %5783 = vmatpush1.bf16.msra.mxu0 %v18407_v21  ;;  %4176 = vmatprep.subr.bf16.mxu1 %v18412_v43  ;;  %v2460_v43 = vld [vmem:[%s24460_s7 + $0x230] sm:$0xff]  ;;  %v2467_v42 = vld [vmem:[%s24460_s7 + $0x268] sm:$0xff] }
 0x2b7   :  { %v16692_v44 = vadd.f32 %v1922_v57, %v1697_v30  ;;  %v1924_v6 = vpop.f32.mrb[7].mxu0  ;;  %5784 = vmatprep.subr.bf16.mxu0 %v18415_v49  ;;  %v2334_v9 = vmax.f32 %v16688_v13, 0.0  ;;  %v1703_v49 = vadd.f32 %v21240_v7, %v21361_v41  ;;  %v18424_v4 = vld [vmem:[#allocation4 + $0x34c] ss:$16 sps:$4 sm:$0xff]   ;;  %v18422_v13 = vld [vmem:[#allocation4 + $0x348] ss:$16 sps:$4 sm:$0xff]   ;;  %v21431_v57 = vpack.c.bf16 %v2460_v43, %v2454_v25 }
 0x2b8   :  { %v16694_v54 = vadd.f32 %v1924_v6, %v1699_v31  ;;  %4120 = vmatmul.mubr.bf16.gmra.mrb[80].mxu1 %v21104_v24  ;;  %v2335_v21 = vmax.f32 %v16690_v33, 0.0  ;;  %v1705_v24 = vadd.f32 %v21245_v23, %v21366_v55  ;;  %v1707_v33 = vadd.f32 %v21250_v19, %v21361_v41  ;;  %v18430_v6 = vld [vmem:[#allocation4 + $0x36c] ss:$16 sps:$4 sm:$0xff]  }
 0x2b9   :  { %v2338_v45 = vmax.f32 %v16692_v44, 0.0  ;;  %4007 = vmatmul.mubr.bf16.gmra.mrb[48].mxu0 %v21407_v40  ;;  %4177 = vmatpush1.bf16.msra.mxu1 %v18410_v0  ;;  %v2473_v0 = vld [vmem:[%s24460_s7 + $0x298] sm:$0xff]  ;;  %v1709_v23 = vadd.f32 %v21252_v32, %v21366_v55  ;;  %v2466_v25 = vld [vmem:[%s24460_s7 + $0x260] sm:$0xff]  ;;  %v2472_v43 = vld [vmem:[%s24460_s7 + $0x290] sm:$0xff] }
 0x2ba   :  { %v2339_v28 = vmax.f32 %v16694_v54, 0.0  ;;  %5785 = vmatpush1.bf16.msra.mxu0 %v18413_v2  ;;  %4178 = vmatprep.subr.bf16.mxu1 %v18418_v39  ;;  %v18433_v54 = vld [vmem:[#allocation7 + $0x164] ss:$16 sps:$4 sm:$0xff]   ;;  %v18431_v32 = vld [vmem:[#allocation7 + $0x160] ss:$16 sps:$4 sm:$0xff]  }
 0x2bb   :  { %5786 = vmatprep.subr.bf16.mxu0 %v18421_v34  ;;  %v21420_v12 = vpack.c.bf16 %v2338_v45, %v2334_v9  ;;  %4016 = vmatprep.mubr.bf16.mxu0 %v21412_v58  ;;  %v18428_v9 = vld [vmem:[#allocation4 + $0x368] ss:$16 sps:$4 sm:$0xff]   ;;  %v21436_v45 = vpack.c.bf16 %v2473_v0, %v2467_v42 }
 0x2bc   :  { %v1928_v30 = vpop.f32.mrb[8].mxu0  ;;  %4129 = vmatprep.mubr.bf16.mxu1 %v21110_v26  ;;  %v21427_v10 = vpack.c.bf16 %v2339_v28, %v2335_v21  ;;  %v18425_v26 = vld [vmem:[#allocation7 + $0x140] ss:$16 sps:$4 sm:$0xff]  }
 0x2bd   :  { %v16696_v7 = vadd.f32 %v1928_v30, %v1703_v49  ;;  %v1930_v31 = vpop.f32.mrb[9].mxu0  ;;  %4179 = vmatpush1.bf16.msra.mxu1 %v18416_v22  ;;  %v18439_v30 = vld [vmem:[#allocation7 + $0x184] ss:$16 sps:$4 sm:$0xff]  }
 0x2be   :  { %v16698_v2 = vadd.f32 %v1930_v31, %v1705_v24  ;;  %v1932_v44 = vpop.f32.mrb[10].mxu0  ;;  %5787 = vmatpush1.bf16.msra.mxu0 %v18419_v11  ;;  %4180 = vmatprep.subr.bf16.mxu1 %v18424_v4  ;;  %v1713_v4 = vadd.f32 %v21260_v50, %v21361_v41  ;;  %v1717_v50 = vadd.f32 %v21270_v3, %v21361_v41  ;;  %v2479_v0 = vld [vmem:[%s24460_s7 + $0x2c8] sm:$0xff]  ;;  %v18442_v3 = vld [vmem:[#allocation4 + $0x3ac] ss:$16 sps:$4 sm:$0xff]  }
 0x2bf   :  { %v16700_v39 = vadd.f32 %v1932_v44, %v1707_v33  ;;  %v1934_v34 = vpop.f32.mrb[11].mxu0  ;;  %5788 = vmatprep.subr.bf16.mxu0 %v18427_v14  ;;  %v2342_v21 = vmax.f32 %v16696_v7, 0.0  ;;  %v18436_v14 = vld [vmem:[#allocation4 + $0x38c] ss:$16 sps:$4 sm:$0xff]   ;;  %v21454_v31 = vpack.c.bf16 %v2472_v43, %v2466_v25  ;;  %v18434_v33 = vld [vmem:[#allocation4 + $0x388] ss:$16 sps:$4 sm:$0xff]   ;;  %v1723_v43 = vadd.f32 %v21280_v1, %v21361_v41 }
 0x2c0   :  { %v16702_v19 = vadd.f32 %v1934_v34, %v1709_v23  ;;  %4130 = vmatmul.mubr.bf16.gmra.mrb[84].mxu1 %v21121_v60  ;;  %v2343_v22 = vmax.f32 %v16698_v2, 0.0  ;;  %v2485_v2 = vld [vmem:[%s24460_s7 + $0x2f8] sm:$0xff]  ;;  %v1727_v1 = vadd.f32 %v21290_v15, %v21361_v41 }
 0x2c1   :  { %v2346_v28 = vmax.f32 %v16700_v39, 0.0  ;;  %4017 = vmatmul.mubr.bf16.gmra.mrb[52].mxu0 %v21431_v57  ;;  %4181 = vmatpush1.bf16.msra.mxu1 %v18422_v13  ;;  %v1715_v13 = vadd.f32 %v21265_v56, %v21366_v55  ;;  %v1719_v56 = vadd.f32 %v21272_v27, %v21366_v55  ;;  %v18445_v39 = vld [vmem:[#allocation7 + $0x1a4] ss:$16 sps:$4 sm:$0xff]   ;;  %v18443_v27 = vld [vmem:[#allocation7 + $0x1a0] ss:$16 sps:$4 sm:$0xff]  }
 0x2c2   :  { %v2347_v11 = vmax.f32 %v16702_v19, 0.0  ;;  %5789 = vmatpush1.bf16.msra.mxu0 %v18425_v26  ;;  %4182 = vmatprep.subr.bf16.mxu1 %v18430_v6  ;;  %v18437_v26 = vld [vmem:[#allocation7 + $0x180] ss:$16 sps:$4 sm:$0xff]   ;;  %v21460_v19 = vpack.c.bf16 %v2485_v2, %v2479_v0 }
 0x2c3   :  { %v21442_v49 = vpack.c.bf16 %v2346_v28, %v2342_v21  ;;  %5790 = vmatprep.subr.bf16.mxu0 %v18433_v54  ;;  %4026 = vmatprep.mubr.bf16.mxu0 %v21436_v45  ;;  %v18440_v54 = vld [vmem:[#allocation4 + $0x3a8] ss:$16 sps:$4 sm:$0xff]  }
 0x2c4   :  { %v21446_v24 = vpack.c.bf16 %v2347_v11, %v2343_v22  ;;  %v1938_v60 = vpop.f32.mrb[12].mxu0  ;;  %4139 = vmatprep.mubr.bf16.mxu1 %v21126_v48  ;;  %v2478_v22 = vld [vmem:[%s24460_s7 + $0x2c0] sm:$0xff]  ;;  %v2484_v11 = vld [vmem:[%s24460_s7 + $0x2f0] sm:$0xff]  ;;  %v4457_v0 = vld [vmem:[%s24488_s10 + $0x38] sm:$0xff] }
 0x2c5   :  { %v16704_v42 = vadd.f32 %v1938_v60, %v1713_v4  ;;  %v1940_v7 = vpop.f32.mrb[13].mxu0  ;;  %4183 = vmatpush1.bf16.msra.mxu1 %v18428_v9  ;;  %v18448_v4 = vld [vmem:[#allocation4 + $0x3cc] ss:$16 sps:$4 sm:$0xff]   ;;  %v1725_v60 = vadd.f32 %v21285_v61, %v21366_v55  ;;  %v1729_v61 = vadd.f32 %v21292_v18, %v21366_v55 }
 0x2c6   :  { %v16706_v44 = vadd.f32 %v1940_v7, %v1715_v13  ;;  %v1942_v23 = vpop.f32.mrb[14].mxu0  ;;  %5791 = vmatpush1.bf16.msra.mxu0 %v18431_v32  ;;  %4184 = vmatprep.subr.bf16.mxu1 %v18436_v14  ;;  %v18451_v14 = vld [vmem:[#allocation7 + $0x1c4] ss:$16 sps:$4 sm:$0xff]  }
 0x2c7   :  { %v16708_v6 = vadd.f32 %v1942_v23, %v1717_v50  ;;  %v1944_v48 = vpop.f32.mrb[15].mxu0  ;;  %5792 = vmatprep.subr.bf16.mxu0 %v18439_v30  ;;  %v2350_v21 = vmax.f32 %v16704_v42, 0.0  ;;  %v18446_v13 = vld [vmem:[#allocation4 + $0x3c8] ss:$16 sps:$4 sm:$0xff]   ;;  %v18449_v23 = vld [vmem:[#allocation7 + $0x1c0] ss:$16 sps:$4 sm:$0xff]  }
 0x2c8   :  { %v16710_v34 = vadd.f32 %v1944_v48, %v1719_v56  ;;  %4140 = vmatmul.mubr.bf16.gmra.mrb[88].mxu1 %v21136_v5  ;;  %v2351_v9 = vmax.f32 %v16706_v44, 0.0  ;;  %v4451_v42 = vld [vmem:[%s24488_s10 + $0x8] sm:$0xff]  ;;  %v18454_v56 = vld [vmem:[#allocation4 + $0x3ec] ss:$16 sps:$4 sm:$0xff]  }
 0x2c9   :  { %v2354_v28 = vmax.f32 %v16708_v6, 0.0  ;;  %4027 = vmatmul.mubr.bf16.gmra.mrb[56].mxu0 %v21454_v31  ;;  %4185 = vmatpush1.bf16.msra.mxu1 %v18434_v33  ;;  %v21479_v33 = vpack.c.bf16 %v2484_v11, %v2478_v22  ;;  %v18457_v6 = vld [vmem:[#allocation7 + $0x1e4] ss:$16 sps:$4 sm:$0xff]   ;;  %v21484_v48 = vpack.c.bf16 %v4457_v0, %v4451_v42  ;;  %v18460_v22 = vld [vmem:[#allocation4 + $0x40c] ss:$16 sps:$4 sm:$0xff]  }
 0x2ca   :  { %v2355_v32 = vmax.f32 %v16710_v34, 0.0  ;;  %5793 = vmatpush1.bf16.msra.mxu0 %v18437_v26  ;;  %4186 = vmatprep.subr.bf16.mxu1 %v18442_v3  ;;  %v18452_v34 = vld [vmem:[#allocation4 + $0x3e8] ss:$16 sps:$4 sm:$0xff]   ;;  %v18466_v0 = vld [vmem:[#allocation4 + $0x42c] ss:$16 sps:$4 sm:$0xff]  }
 0x2cb   :  { %v21466_v25 = vpack.c.bf16 %v2354_v28, %v2350_v21  ;;  %5794 = vmatprep.subr.bf16.mxu0 %v18445_v39  ;;  %4036 = vmatprep.mubr.bf16.mxu0 %v21460_v19  ;;  %v18455_v21 = vld [vmem:[#allocation7 + $0x1e0] ss:$16 sps:$4 sm:$0xff]   ;;  %v4450_v28 = vld [vmem:[%s24488_s10] sm:$0xff]  ;;  %v18463_v11 = vld [vmem:[#allocation7 + $0x204] ss:$16 sps:$4 sm:$0xff]  }
 0x2cc   :  { %v21470_v30 = vpack.c.bf16 %v2355_v32, %v2351_v9  ;;  %v1948_v5 = vpop.f32.mrb[16].mxu0  ;;  %4149 = vmatprep.mubr.bf16.mxu1 %v21142_v8  ;;  %v1733_v32 = vadd.f32 %v21300_v38, %v21361_v41  ;;  %v1737_v38 = vadd.f32 %v21310_v51, %v21361_v41 }
 0x2cd   :  { %v16712_v7 = vadd.f32 %v1948_v5, %v1723_v43  ;;  %v1950_v50 = vpop.f32.mrb[17].mxu0  ;;  %4187 = vmatpush1.bf16.msra.mxu1 %v18440_v54  ;;  %v4463_v5 = vld [vmem:[%s24488_s10 + $0x68] sm:$0xff] }
 0x2ce   :  { %v16714_v2 = vadd.f32 %v1950_v50, %v1725_v60  ;;  %v1952_v44 = vpop.f32.mrb[18].mxu0  ;;  %5795 = vmatpush1.bf16.msra.mxu0 %v18443_v27  ;;  %4188 = vmatprep.subr.bf16.mxu1 %v18448_v4  ;;  %v4456_v27 = vld [vmem:[%s24488_s10 + $0x30] sm:$0xff]  ;;  %v1735_v4 = vadd.f32 %v21305_v36, %v21366_v55  ;;  %v1739_v36 = vadd.f32 %v21312_v63, %v21366_v55  ;;  %v18467_v63 = vld [vmem:[#allocation7 + $0x220] ss:$16 sps:$4 sm:$0xff]  }
 0x2cf   :  { %v16716_v8 = vadd.f32 %v1952_v44, %v1727_v1  ;;  %v1954_v26 = vpop.f32.mrb[19].mxu0  ;;  %5796 = vmatprep.subr.bf16.mxu0 %v18451_v14  ;;  %v2358_v3 = vmax.f32 %v16712_v7, 0.0  ;;  %v18458_v14 = vld [vmem:[#allocation4 + $0x408] ss:$16 sps:$4 sm:$0xff]   ;;  %v21503_v42 = vpack.c.bf16 %v4456_v27, %v4450_v28  ;;  %v1745_v27 = vadd.f32 %v21326_v59, %v21366_v55 }
 0x2d0   :  { %v16718_v15 = vadd.f32 %v1954_v26, %v1729_v61  ;;  %4150 = vmatmul.mubr.bf16.gmra.mrb[92].mxu1 %v21152_v46  ;;  %v2359_v18 = vmax.f32 %v16714_v2, 0.0  ;;  %v4469_v7 = vld [vmem:[%s24488_s10 + $0x98] sm:$0xff]  ;;  %v1749_v59 = vadd.f32 %v21334_v20, %v21366_v55 }
 0x2d1   :  { %v2362_v39 = vmax.f32 %v16716_v8, 0.0  ;;  %4037 = vmatmul.mubr.bf16.gmra.mrb[60].mxu0 %v21479_v33  ;;  %4189 = vmatpush1.bf16.msra.mxu1 %v18446_v13  ;;  %v18469_v61 = vld [vmem:[#allocation7 + $0x224] ss:$16 sps:$4 sm:$0xff]   ;;  %v18479_v20 = vld [vmem:[#allocation7 + $0x260] ss:$16 sps:$4 sm:$0xff]  }
 0x2d2   :  { %v2363_v54 = vmax.f32 %v16718_v15, 0.0  ;;  %5797 = vmatpush1.bf16.msra.mxu0 %v18449_v23  ;;  %4190 = vmatprep.subr.bf16.mxu1 %v18454_v56  ;;  %v21508_v23 = vpack.c.bf16 %v4469_v7, %v4463_v5  ;;  %v18464_v26 = vld [vmem:[#allocation4 + $0x428] ss:$16 sps:$4 sm:$0xff]   ;;  %v18478_v7 = vld [vmem:[#allocation4 + $0x46c] ss:$16 sps:$4 sm:$0xff]  }
 0x2d3   :  { %v21490_v9 = vpack.c.bf16 %v2362_v39, %v2358_v3  ;;  %5798 = vmatprep.subr.bf16.mxu0 %v18457_v6  ;;  %4192 = vmatprep.mubr.bf16.mxu1 %v21158_v47  ;;  %v18461_v47 = vld [vmem:[#allocation7 + $0x200] ss:$16 sps:$4 sm:$0xff]   ;;  %v4462_v3 = vld [vmem:[%s24488_s10 + $0x60] sm:$0xff]  ;;  %v4468_v39 = vld [vmem:[%s24488_s10 + $0x90] sm:$0xff] }
 0x2d4   :  { %v21494_v46 = vpack.c.bf16 %v2363_v54, %v2359_v18  ;;  %v1958_v43 = vpop.f32.mrb[20].mxu0  ;;  %5800 = vmatprep.mubr.bf16.mxu0 %v21484_v48  ;;  %v1743_v18 = vadd.f32 %v21320_v52, %v21361_v41  ;;  %v18475_v54 = vld [vmem:[#allocation7 + $0x244] ss:$16 sps:$4 sm:$0xff]   ;;  %v1747_v52 = vadd.f32 %v21332_v35, %v21361_v41 }
 0x2d5   :  { %24489 = vst [vmem:[#allocation75_spill] sm:$0xff] %v21490_v9  ;;  %v16720_v60 = vadd.f32 %v1958_v43, %v1733_v32  ;;  %v1960_v13 = vpop.f32.mrb[21].mxu0  ;;  %4191 = vmatpush1.bf16.msra.mxu1 %v18452_v34  ;;  %v4475_v32 = vld [vmem:[%s24488_s10 + $0xc8] sm:$0xff]  ;;  %v21527_v43 = vpack.c.bf16 %v4468_v39, %v4462_v3 }
 0x2d6   :  { %24490 = vst [vmem:[#allocation76_spill] sm:$0xff] %v21494_v46  ;;  %v16722_v50 = vadd.f32 %v1960_v13, %v1735_v4  ;;  %v1962_v1 = vpop.f32.mrb[22].mxu0  ;;  %5799 = vmatpush1.bf16.msra.mxu0 %v18455_v21  ;;  %4273 = vmatprep.subr.bf16.mxu1 %v18460_v22  ;;  %v4481_v4 = vld [vmem:[%s24488_s10 + $0xf8] sm:$0xff] }
 0x2d7   :  { %v16724_v2 = vadd.f32 %v1962_v1, %v1737_v38  ;;  %v1964_v44 = vpop.f32.mrb[23].mxu0  ;;  %5881 = vmatprep.subr.bf16.mxu0 %v18463_v11  ;;  %v2366_v56 = vmax.f32 %v16720_v60, 0.0  ;;  %v18470_v60 = vld [vmem:[#allocation4 + $0x448] ss:$16 sps:$4 sm:$0xff]  }
 0x2d8   :  { %v16726_v51 = vadd.f32 %v1964_v44, %v1739_v36  ;;  %4193 = vmatmul.mubr.bf16.vlgmr.msra.gmra.mrb[64].mxu1 %v21167_v16  ;;  %v2367_v6 = vmax.f32 %v16722_v50, 0.0  ;;  %v18472_v16 = vld [vmem:[#allocation4 + $0x44c] ss:$16 sps:$4 sm:$0xff]   ;;  %v18481_v35 = vld [vmem:[#allocation7 + $0x264] ss:$16 sps:$4 sm:$0xff]   ;;  %v21532_v36 = vpack.c.bf16 %v4481_v4, %v4475_v32 }
 0x2d9   :  { %v2370_v8 = vmax.f32 %v16724_v2, 0.0  ;;  %5801 = vmatmul.mubr.bf16.vlgmr.msra.gmra.mrb[64].mxu0 %v21503_v42  ;;  %4274 = vmatpush1.bf16.msra.mxu1 %v18458_v14  ;;  %v18476_v1 = vld [vmem:[#allocation4 + $0x468] ss:$16 sps:$4 sm:$0xff]   ;;  %v24493_v2 = vld [vmem:[#allocation48_spill] sm:$0xff] }
 0x2da   :  { %v2371_v15 = vmax.f32 %v16726_v51, 0.0  ;;  %5882 = vmatpush1.bf16.msra.mxu0 %v18461_v47  ;;  %4275 = vmatprep.subr.bf16.mxu1 %v18466_v0  ;;  %v4474_v51 = vld [vmem:[%s24488_s10 + $0xc0] sm:$0xff]  ;;  %v4493_v4 = vld [vmem:[%s24488_s10 + $0x158] sm:$0xff] }
 0x2db   :  { %v21514_v34 = vpack.c.bf16 %v2370_v8, %v2366_v56  ;;  %5883 = vmatprep.subr.bf16.mxu0 %v18469_v61  ;;  %4202 = vmatprep.mubr.bf16.mxu1 %v21170_v17  ;;  %v18473_v17 = vld [vmem:[#allocation7 + $0x240] ss:$16 sps:$4 sm:$0xff]   ;;  %v4480_v56 = vld [vmem:[%s24488_s10 + $0xf0] sm:$0xff] }
 0x2dc   :  { %v21518_v21 = vpack.c.bf16 %v2371_v15, %v2367_v6  ;;  %v1968_v28 = vpop.f32.mrb[24].mxu0  ;;  %5810 = vmatprep.mubr.bf16.mxu0 %v21508_v23  ;;  %v18484_v6 = vld [vmem:[#allocation4 + $0x48c] ss:$16 sps:$4 sm:$0xff]   ;;  %v18487_v15 = vld [vmem:[#allocation7 + $0x284] ss:$16 sps:$4 sm:$0xff]  }
 0x2dd   :  { %24491 = vst [vmem:[#allocation77_spill] sm:$0xff] %v21514_v34  ;;  %v16728_v22 = vadd.f32 %v1968_v28, %v1743_v18  ;;  %v1970_v11 = vpop.f32.mrb[25].mxu0  ;;  %4276 = vmatpush1.bf16.msra.mxu1 %v18464_v26  ;;  %v24495_v26 = vld [vmem:[#allocation69_spill] sm:$0xff]  ;;  %v24497_v18 = vld [vmem:[#allocation70_spill] sm:$0xff]  ;;  %v4487_v28 = vld [vmem:[%s24488_s10 + $0x128] sm:$0xff] }
 0x2de   :  { %24492 = vst [vmem:[#allocation78_spill] sm:$0xff] %v21518_v21  ;;  %v16730_v14 = vadd.f32 %v1970_v11, %v1745_v27  ;;  %v1972_v5 = vpop.f32.mrb[26].mxu0  ;;  %5884 = vmatpush1.bf16.msra.mxu0 %v18467_v63  ;;  %4277 = vmatprep.subr.bf16.mxu1 %v18472_v16  ;;  %v1753_v63 = vadd.f32 %v24495_v26, %v21361_v41 }
 0x2df   :  { %v16732_v13 = vadd.f32 %v1972_v5, %v1747_v52  ;;  %v1974_v38 = vpop.f32.mrb[27].mxu0  ;;  %5885 = vmatprep.subr.bf16.mxu0 %v18475_v54  ;;  %v2374_v47 = vmax.f32 %v16728_v22, 0.0  ;;  %v1755_v16 = vadd.f32 %v24497_v18, %v21366_v55  ;;  %v24498_v54 = vld [vmem:[#allocation49_spill] sm:$0xff]  ;;  %v24499_v22 = vld [vmem:[#allocation72_spill] sm:$0xff]  ;;  %v21551_v52 = vpack.c.bf16 %v4480_v56, %v4474_v51  ;;  %v4486_v51 = vld [vmem:[%s24488_s10 + $0x120] sm:$0xff] }
 0x2e0   :  { %v16734_v50 = vadd.f32 %v1974_v38, %v1749_v59  ;;  %4203 = vmatmul.mubr.bf16.gmra.mrb[68].mxu1 %v24493_v2  ;;  %v2375_v44 = vmax.f32 %v16730_v14, 0.0  ;;  %v1757_v11 = vadd.f32 %v24499_v22, %v21361_v41  ;;  %v24500_v59 = vld [vmem:[#allocation73_spill] sm:$0xff]  ;;  %v4492_v56 = vld [vmem:[%s24488_s10 + $0x150] sm:$0xff] }
 0x2e1   :  { %v2378_v0 = vmax.f32 %v16732_v13, 0.0  ;;  %5811 = vmatmul.mubr.bf16.gmra.mrb[68].mxu0 %v21527_v43  ;;  %4278 = vmatpush1.bf16.msra.mxu1 %v18470_v60  ;;  %v1759_v60 = vadd.f32 %v24500_v59, %v21366_v55  ;;  %v18485_v13 = vld [vmem:[#allocation7 + $0x280] ss:$16 sps:$4 sm:$0xff]   ;;  %v18493_v41 = vld [vmem:[#allocation7 + $0x2a4] ss:$16 sps:$4 sm:$0xff]   ;;  %v21568_v18 = vpack.c.bf16 %v4492_v56, %v4486_v51  ;;  %v4498_v59 = vld [vmem:[%s24488_s10 + $0x180] sm:$0xff] }
 0x2e2   :  { %v2379_v61 = vmax.f32 %v16734_v50, 0.0  ;;  %5886 = vmatpush1.bf16.msra.mxu0 %v18473_v17  ;;  %4279 = vmatprep.subr.bf16.mxu1 %v18478_v7  ;;  %v18482_v17 = vld [vmem:[#allocation4 + $0x488] ss:$16 sps:$4 sm:$0xff]   ;;  %v18491_v55 = vld [vmem:[#allocation7 + $0x2a0] ss:$16 sps:$4 sm:$0xff]   ;;  %v4510_v51 = vld [vmem:[%s24488_s10 + $0x1e0] sm:$0xff] }
 0x2e3   :  { %v21538_v8 = vpack.c.bf16 %v2378_v0, %v2374_v47  ;;  %5887 = vmatprep.subr.bf16.mxu0 %v18481_v35  ;;  %4212 = vmatprep.mubr.bf16.mxu1 %v24498_v54  ;;  %v18490_v35 = vld [vmem:[#allocation4 + $0x4ac] ss:$16 sps:$4 sm:$0xff]   ;;  %v18488_v47 = vld [vmem:[#allocation4 + $0x4a8] ss:$16 sps:$4 sm:$0xff]   ;;  %v21556_v0 = vpack.c.bf16 %v4493_v4, %v4487_v28 }
 0x2e4   :  { %v21542_v3 = vpack.c.bf16 %v2379_v61, %v2375_v44  ;;  %v1978_v39 = vpop.f32.mrb[28].mxu0  ;;  %5820 = vmatprep.mubr.bf16.mxu0 %v21532_v36  ;;  %v4505_v54 = vld [vmem:[%s24488_s10 + $0x1b8] sm:$0xff]  ;;  %v4516_v56 = vld [vmem:[%s24488_s10 + $0x210] sm:$0xff] }
 0x2e5   :  { %24494 = vst [vmem:[#allocation48_spill] sm:$0xff] %v21538_v8  ;;  %v16736_v27 = vadd.f32 %v1978_v39, %v1753_v63  ;;  %v1980_v32 = vpop.f32.mrb[29].mxu0  ;;  %4280 = vmatpush1.bf16.msra.mxu1 %v18476_v1  ;;  %v18496_v63 = vld [vmem:[#allocation4 + $0x4cc] ss:$16 sps:$4 sm:$0xff]   ;;  %v24504_v39 = vld [vmem:[#allocation51_spill] sm:$0xff]  ;;  %v4501_v8 = vld [vmem:[%s24488_s10 + $0x198] sm:$0xff] }
 0x2e6   :  { %24496 = vst [vmem:[#allocation69_spill] sm:$0xff] %v21542_v3  ;;  %v16738_v14 = vadd.f32 %v1980_v32, %v1755_v16  ;;  %v1982_v5 = vpop.f32.mrb[30].mxu0  ;;  %5888 = vmatpush1.bf16.msra.mxu0 %v18479_v20  ;;  %4281 = vmatprep.subr.bf16.mxu1 %v18484_v6  ;;  %v24501_v20 = vld [vmem:[#allocation50_spill] sm:$0xff]  ;;  %v18499_v6 = vld [vmem:[#allocation7 + $0x2c4] ss:$16 sps:$4 sm:$0xff]  }
 0x2e7   :  { %v16740_v38 = vadd.f32 %v1982_v5, %v1757_v11  ;;  %v1984_v7 = vpop.f32.mrb[31].mxu0  ;;  %5889 = vmatprep.subr.bf16.mxu0 %v18487_v15  ;;  %v2382_v2 = vmax.f32 %v16736_v27, 0.0  ;;  %v4499_v16 = vld [vmem:[%s24488_s10 + $0x188] sm:$0xff]  ;;  %v18502_v32 = vld [vmem:[#allocation4 + $0x4ec] ss:$16 sps:$4 sm:$0xff]  }
 0x2e8   :  { %v16742_v50 = vadd.f32 %v1984_v7, %v1759_v60  ;;  %4213 = vmatmul.mubr.bf16.gmra.mrb[72].mxu1 %v24501_v20  ;;  %v2383_v44 = vmax.f32 %v16738_v14, 0.0  ;;  %v18494_v28 = vld [vmem:[#allocation4 + $0x4c8] ss:$16 sps:$4 sm:$0xff]   ;;  %v18497_v27 = vld [vmem:[#allocation7 + $0x2c0] ss:$16 sps:$4 sm:$0xff]   ;;  %v21572_v4 = vpack.c.bf16 %v4505_v54, %v4499_v16  ;;  %v24505_v14 = vld [vmem:[#allocation52_spill] sm:$0xff]  ;;  %v21593_v54 = vpack.c.bf16 %v4516_v56, %v4510_v51 }
 0x2e9   :  { %v2386_v1 = vmax.f32 %v16740_v38, 0.0  ;;  %5821 = vmatmul.mubr.bf16.gmra.mrb[72].mxu0 %v21551_v52  ;;  %4282 = vmatpush1.bf16.msra.mxu1 %v18482_v17  ;;  %v18505_v22 = vld [vmem:[#allocation7 + $0x2e4] ss:$16 sps:$4 sm:$0xff]   ;;  %v18503_v5 = vld [vmem:[#allocation7 + $0x2e0] ss:$16 sps:$4 sm:$0xff]   ;;  %v4504_v60 = vld [vmem:[%s24488_s10 + $0x1b0] sm:$0xff] }
 0x2ea   :  { %v2387_v61 = vmax.f32 %v16742_v50, 0.0  ;;  %5890 = vmatpush1.bf16.msra.mxu0 %v18485_v13  ;;  %4283 = vmatprep.subr.bf16.mxu1 %v18490_v35  ;;  %v18500_v11 = vld [vmem:[#allocation4 + $0x4e8] ss:$16 sps:$4 sm:$0xff]   ;;  %v18508_v17 = vld [vmem:[#allocation4 + $0x50c] ss:$16 sps:$4 sm:$0xff]   ;;  %v21581_v35 = vpack.c.bf16 %v4504_v60, %v4498_v59 }
 0x2eb   :  { %v21562_v26 = vpack.c.bf16 %v2386_v1, %v2382_v2  ;;  %5891 = vmatprep.subr.bf16.mxu0 %v18493_v41  ;;  %4222 = vmatprep.mubr.bf16.mxu1 %v24504_v39  ;;  %v18511_v13 = vld [vmem:[#allocation7 + $0x304] ss:$16 sps:$4 sm:$0xff]   ;;  %v18514_v2 = vld [vmem:[#allocation4 + $0x52c] ss:$16 sps:$4 sm:$0xff]   ;;  %v18527_v60 = vld [vmem:[#allocation7 + $0x360] ss:$16 sps:$4 sm:$0xff]  }
 0x2ec   :  { %v21564_v15 = vpack.c.bf16 %v2387_v61, %v2383_v44  ;;  %5830 = vmatprep.mubr.bf16.mxu0 %v21556_v0  ;;  %v24506_v38 = vld [vmem:[#allocation53_spill] sm:$0xff]  ;;  %v4511_v7 = vld [vmem:[%s24488_s10 + $0x1e8] sm:$0xff] }
 0x2ed   :  { %24502 = vst [vmem:[#allocation70_spill] sm:$0xff] %v21562_v26  ;;  %4284 = vmatpush1.bf16.msra.mxu1 %v18488_v47  ;;  %v4517_v41 = vld [vmem:[%s24488_s10 + $0x218] sm:$0xff]  ;;  %v24508_v39 = vld [vmem:[#allocation55_spill] sm:$0xff]  ;;  %v24523_v26 = vld [vmem:[#allocation74_spill] sm:$0xff] }
 0x2ee   :  { %24503 = vst [vmem:[#allocation49_spill] sm:$0xff] %v21564_v15  ;;  %5892 = vmatpush1.bf16.msra.mxu0 %v18491_v55  ;;  %4285 = vmatprep.subr.bf16.mxu1 %v18496_v63  ;;  %v18506_v50 = vld [vmem:[#allocation4 + $0x508] ss:$16 sps:$4 sm:$0xff]   ;;  %v18509_v47 = vld [vmem:[#allocation7 + $0x300] ss:$16 sps:$4 sm:$0xff]   ;;  %v21584_v20 = vpack.c.bf16 %v4517_v41, %v4511_v7  ;;  %v24507_v55 = vld [vmem:[#allocation54_spill] sm:$0xff] }
 0x2ef   :  { %5893 = vmatprep.subr.bf16.mxu0 %v18499_v6  ;;  %v18517_v1 = vld [vmem:[#allocation7 + $0x324] ss:$16 sps:$4 sm:$0xff]   ;;  %v18515_v61 = vld [vmem:[#allocation7 + $0x320] ss:$16 sps:$4 sm:$0xff]   ;;  %v18520_v63 = vld [vmem:[#allocation4 + $0x54c] ss:$16 sps:$4 sm:$0xff]  }
 0x2f0   :  { %4223 = vmatmul.mubr.bf16.gmra.mrb[76].mxu1 %v24505_v14  ;;  %v18512_v44 = vld [vmem:[#allocation4 + $0x528] ss:$16 sps:$4 sm:$0xff]  }
 0x2f1   :  { %5831 = vmatmul.mubr.bf16.gmra.mrb[76].mxu0 %v21568_v18  ;;  %4286 = vmatpush1.bf16.msra.mxu1 %v18494_v28  ;;  %v18523_v6 = vld [vmem:[#allocation7 + $0x344] ss:$16 sps:$4 sm:$0xff]  }
 0x2f2   :  { %5894 = vmatpush1.bf16.msra.mxu0 %v18497_v27  ;;  %4287 = vmatprep.subr.bf16.mxu1 %v18502_v32  ;;  %v4523_v16 = vld [vmem:[%s24488_s10 + $0x248] sm:$0xff]  ;;  %v4529_v28 = vld [vmem:[%s24488_s10 + $0x278] sm:$0xff] }
 0x2f3   :  { %5895 = vmatprep.subr.bf16.mxu0 %v18505_v22  ;;  %4232 = vmatprep.mubr.bf16.mxu1 %v24506_v38  ;;  %v18518_v27 = vld [vmem:[#allocation4 + $0x548] ss:$16 sps:$4 sm:$0xff]   ;;  %v18521_v32 = vld [vmem:[#allocation7 + $0x340] ss:$16 sps:$4 sm:$0xff]   ;;  %v18526_v22 = vld [vmem:[#allocation4 + $0x56c] ss:$16 sps:$4 sm:$0xff]   ;;  %v21596_v14 = vpack.c.bf16 %v4529_v28, %v4523_v16 }
 0x2f4   :  { %5840 = vmatprep.mubr.bf16.mxu0 %v21572_v4  ;;  %v18524_v59 = vld [vmem:[#allocation4 + $0x568] ss:$16 sps:$4 sm:$0xff]   ;;  %v18532_v38 = vld [vmem:[#allocation4 + $0x58c] ss:$16 sps:$4 sm:$0xff]  }
 0x2f5   :  { %4288 = vmatpush1.bf16.msra.mxu1 %v18500_v11  ;;  %v18529_v11 = vld [vmem:[#allocation7 + $0x364] ss:$16 sps:$4 sm:$0xff]   ;;  %v4540_v16 = vld [vmem:[%s24488_s10 + $0x2d0] sm:$0xff] }
 0x2f6   :  { %5896 = vmatpush1.bf16.msra.mxu0 %v18503_v5  ;;  %4289 = vmatprep.subr.bf16.mxu1 %v18508_v17  ;;  %v24509_v5 = vld [vmem:[#allocation56_spill] sm:$0xff]  ;;  %v4522_v17 = vld [vmem:[%s24488_s10 + $0x240] sm:$0xff]  ;;  %v18535_v7 = vld [vmem:[#allocation7 + $0x384] ss:$16 sps:$4 sm:$0xff]  }
 0x2f7   :  { %5897 = vmatprep.subr.bf16.mxu0 %v18511_v13  ;;  %v4528_v13 = vld [vmem:[%s24488_s10 + $0x270] sm:$0xff]  ;;  %v24510_v41 = vld [vmem:[#allocation57_spill] sm:$0xff] }
 0x2f8   :  { %4233 = vmatmul.mubr.bf16.gmra.mrb[80].mxu1 %v24507_v55  ;;  %v18533_v55 = vld [vmem:[#allocation7 + $0x380] ss:$16 sps:$4 sm:$0xff]   ;;  %v18536_v51 = vld [vmem:[#allocation4 + $0x5a8] ss:$16 sps:$4 sm:$0xff]   ;;  %v18544_v28 = vld [vmem:[#allocation4 + $0x5cc] ss:$16 sps:$4 sm:$0xff]  }
 0x2f9   :  { %5841 = vmatmul.mubr.bf16.gmra.mrb[80].mxu0 %v21581_v35  ;;  %4290 = vmatpush1.bf16.msra.mxu1 %v18506_v50  ;;  %v4535_v50 = vld [vmem:[%s24488_s10 + $0x2a8] sm:$0xff] }
 0x2fa   :  { %5898 = vmatpush1.bf16.msra.mxu0 %v18509_v47  ;;  %4291 = vmatprep.subr.bf16.mxu1 %v18514_v2  ;;  %v21605_v47 = vpack.c.bf16 %v4528_v13, %v4522_v17  ;;  %v4541_v2 = vld [vmem:[%s24488_s10 + $0x2d8] sm:$0xff]  ;;  %v18550_v17 = vld [vmem:[#allocation4 + $0x5ec] ss:$16 sps:$4 sm:$0xff]  }
 0x2fb   :  { %5899 = vmatprep.subr.bf16.mxu0 %v18517_v1  ;;  %4242 = vmatprep.mubr.bf16.mxu1 %v24508_v39  ;;  %v18530_v1 = vld [vmem:[#allocation4 + $0x588] ss:$16 sps:$4 sm:$0xff]   ;;  %v21608_v56 = vpack.c.bf16 %v4541_v2, %v4535_v50  ;;  %v4534_v39 = vld [vmem:[%s24488_s10 + $0x2a0] sm:$0xff]  ;;  %v18551_v50 = vld [vmem:[#allocation7 + $0x3e0] ss:$16 sps:$4 sm:$0xff]  }
 0x2fc   :  { %5850 = vmatprep.mubr.bf16.mxu0 %v21584_v20  ;;  %v18553_v13 = vld [vmem:[#allocation7 + $0x3e4] ss:$16 sps:$4 sm:$0xff]   ;;  %v4452_v2 = vld [vmem:[%s24488_s10 + $0x10] sm:$0xff] }
 0x2fd   :  { %4292 = vmatpush1.bf16.msra.mxu1 %v18512_v44  ;;  %v18538_v44 = vld [vmem:[#allocation4 + $0x5ac] ss:$16 sps:$4 sm:$0xff]  }
 0x2fe   :  { %5900 = vmatpush1.bf16.msra.mxu0 %v18515_v61  ;;  %4293 = vmatprep.subr.bf16.mxu1 %v18520_v63  ;;  %v18541_v61 = vld [vmem:[#allocation7 + $0x3a4] ss:$16 sps:$4 sm:$0xff]   ;;  %v24511_v63 = vld [vmem:[#allocation58_spill] sm:$0xff] }
 0x2ff   :  { %5901 = vmatprep.subr.bf16.mxu0 %v18523_v6  ;;  %v18539_v6 = vld [vmem:[#allocation7 + $0x3a0] ss:$16 sps:$4 sm:$0xff]  }
 0x300   :  { %4243 = vmatmul.mubr.bf16.gmra.mrb[84].mxu1 %v24509_v5  ;;  %v4459_v5 = vld [vmem:[%s24488_s10 + $0x48] sm:$0xff] }
 0x301   :  { %5851 = vmatmul.mubr.bf16.gmra.mrb[84].mxu0 %v21593_v54  ;;  %4294 = vmatpush1.bf16.msra.mxu1 %v18518_v27  ;;  %v18547_v27 = vld [vmem:[#allocation7 + $0x3c4] ss:$16 sps:$4 sm:$0xff]  }
 0x302   :  { %5902 = vmatpush1.bf16.msra.mxu0 %v18521_v32  ;;  %4295 = vmatprep.subr.bf16.mxu1 %v18526_v22  ;;  %v24512_v32 = vld [vmem:[#allocation59_spill] sm:$0xff]  ;;  %v4453_v22 = vld [vmem:[%s24488_s10 + $0x18] sm:$0xff] }
 0x303   :  { %5903 = vmatprep.subr.bf16.mxu0 %v18529_v11  ;;  %4252 = vmatprep.mubr.bf16.mxu1 %v24510_v41  ;;  %v21617_v11 = vpack.c.bf16 %v4540_v16, %v4534_v39  ;;  %v24513_v41 = vld [vmem:[#allocation60_spill] sm:$0xff]  ;;  %v18554_v39 = vld [vmem:[#allocation7 + $0x400] ss:$16 sps:$4 sm:$0xff]  }
 0x304   :  { %5860 = vmatprep.mubr.bf16.mxu0 %v21596_v14  ;;  %v18557_v16 = vld [vmem:[#allocation7 + $0x8] ss:$16 sps:$4 sm:$0xff]  }
 0x305   :  { %4296 = vmatpush1.bf16.msra.mxu1 %v18524_v59  ;;  %v18542_v59 = vld [vmem:[#allocation4 + $0x5c8] ss:$16 sps:$4 sm:$0xff]  }
 0x306   :  { %5904 = vmatpush1.bf16.msra.mxu0 %v18527_v60  ;;  %4297 = vmatprep.subr.bf16.mxu1 %v18532_v38  ;;  %v18545_v60 = vld [vmem:[#allocation7 + $0x3c0] ss:$16 sps:$4 sm:$0xff]   ;;  %v18548_v38 = vld [vmem:[#allocation4 + $0x5e8] ss:$16 sps:$4 sm:$0xff]  }
 0x307   :  { %5905 = vmatprep.subr.bf16.mxu0 %v18535_v7  ;;  %v21620_v7 = vpack.c.bf16 %v4459_v5, %v4453_v22  ;;  %v24515_v5 = vld [vmem:[#allocation62_spill] sm:$0xff] }
 0x308   :  { %4253 = vmatmul.mubr.bf16.gmra.mrb[88].mxu1 %v24511_v63  ;;  %v4465_v63 = vld [vmem:[%s24488_s10 + $0x78] sm:$0xff] }
 0x309   :  { %5861 = vmatmul.mubr.bf16.gmra.mrb[88].mxu0 %v21605_v47  ;;  %4298 = vmatpush1.bf16.msra.mxu1 %v18530_v1  ;;  %v4458_v1 = vld [vmem:[%s24488_s10 + $0x40] sm:$0xff] }
 0x30a   :  { %5906 = vmatpush1.bf16.msra.mxu0 %v18533_v55  ;;  %4299 = vmatprep.subr.bf16.mxu1 %v18538_v44  ;;  %v18556_v55 = vld [vmem:[#allocation7 + $0x404] ss:$16 sps:$4 sm:$0xff]   ;;  %v18559_v44 = vld [vmem:[#allocation7 + $0xc] ss:$16 sps:$4 sm:$0xff]  }
 0x30b   :  { %5907 = vmatprep.subr.bf16.mxu0 %v18541_v61  ;;  %4262 = vmatprep.mubr.bf16.mxu1 %v24512_v32  ;;  %v24514_v61 = vld [vmem:[#allocation61_spill] sm:$0xff] }
 0x30c   :  { %5870 = vmatprep.mubr.bf16.mxu0 %v21608_v56  ;;  %v18560_v32 = vld [vmem:[#allocation7 + $0x420] ss:$16 sps:$4 sm:$0xff]  }
 0x30d   :  { %4300 = vmatpush1.bf16.msra.mxu1 %v18536_v51  ;;  %v21628_v51 = vpack.c.bf16 %v4458_v1, %v4452_v2  ;;  %v4483_v1 = vld [vmem:[%s24488_s10 + $0x108] sm:$0xff] }
 0x30e   :  { %5908 = vmatpush1.bf16.msra.mxu0 %v18539_v6  ;;  %4301 = vmatprep.subr.bf16.mxu1 %v18544_v28  ;;  %v4471_v6 = vld [vmem:[%s24488_s10 + $0xa8] sm:$0xff] }
 0x30f   :  { %5909 = vmatprep.subr.bf16.mxu0 %v18547_v27  ;;  %v18562_v28 = vld [vmem:[#allocation7 + $0x424] ss:$16 sps:$4 sm:$0xff]   ;;  %v18565_v27 = vld [vmem:[#allocation7 + $0x2c] ss:$16 sps:$4 sm:$0xff]   ;;  %v21632_v22 = vpack.c.bf16 %v4471_v6, %v4465_v63 }
 0x310   :  { %4263 = vmatmul.mubr.bf16.gmra.mrb[92].mxu1 %v24513_v41  ;;  %v24516_v41 = vld [vmem:[#allocation63_spill] sm:$0xff]  ;;  %v18577_v63 = vld [vmem:[#allocation7 + $0x6c] ss:$16 sps:$4 sm:$0xff]  }
 0x311   :  { %5871 = vmatmul.mubr.bf16.gmra.mrb[92].mxu0 %v21617_v11  ;;  %4302 = vmatpush1.bf16.msra.mxu1 %v18542_v59  ;;  %v18563_v59 = vld [vmem:[#allocation7 + $0x28] ss:$16 sps:$4 sm:$0xff]  }
 0x312   :  { %5910 = vmatpush1.bf16.msra.mxu0 %v18545_v60  ;;  %4303 = vmatprep.subr.bf16.mxu1 %v18550_v17  ;;  %v4464_v60 = vld [vmem:[%s24488_s10 + $0x70] sm:$0xff]  ;;  %v4470_v17 = vld [vmem:[%s24488_s10 + $0xa0] sm:$0xff] }
 0x313   :  { %5911 = vmatprep.subr.bf16.mxu0 %v18553_v13  ;;  %4305 = vmatprep.mubr.bf16.mxu1 %v24514_v61  ;;  %v18568_v13 = vld [vmem:[#allocation7 + $0x444] ss:$16 sps:$4 sm:$0xff]   ;;  %v21641_v2 = vpack.c.bf16 %v4470_v17, %v4464_v60  ;;  %v24518_v60 = vld [vmem:[#allocation66_spill] sm:$0xff] }
 0x314   :  { %5913 = vmatprep.mubr.bf16.mxu0 %v21620_v7  ;;  %v18574_v61 = vld [vmem:[#allocation7 + $0x464] ss:$16 sps:$4 sm:$0xff]  }
 0x315   :  { %4304 = vmatpush1.bf16.msra.mxu1 %v18548_v38  ;;  %v18571_v38 = vld [vmem:[#allocation7 + $0x4c] ss:$16 sps:$4 sm:$0xff]   ;;  %v4489_v17 = vld [vmem:[%s24488_s10 + $0x138] sm:$0xff] }
 0x316   :  { %5912 = vmatpush1.bf16.msra.mxu0 %v18551_v50  ;;  %6107 = vmatprep.subr.bf16.mxu1 %v18559_v44  ;;  %v4477_v50 = vld [vmem:[%s24488_s10 + $0xd8] sm:$0xff]  ;;  %v18569_v44 = vld [vmem:[#allocation7 + $0x48] ss:$16 sps:$4 sm:$0xff]  }
 0x317   :  { %5994 = vmatprep.subr.bf16.mxu0 %v18556_v55  ;;  %v18566_v55 = vld [vmem:[#allocation7 + $0x440] ss:$16 sps:$4 sm:$0xff]   ;;  %v21644_v6 = vpack.c.bf16 %v4483_v1, %v4477_v50 }
 0x318   :  { %4306 = vmatmul.mubr.bf16.vlgmr.msra.gmra.mrb[64].mxu1 %v24515_v5  ;;  %v18580_v5 = vld [vmem:[#allocation7 + $0x484] ss:$16 sps:$4 sm:$0xff]   ;;  %v18578_v1 = vld [vmem:[#allocation7 + $0x480] ss:$16 sps:$4 sm:$0xff]  }
 0x319   :  { %5914 = vmatmul.mubr.bf16.vlgmr.msra.gmra.mrb[64].mxu0 %v21628_v51  ;;  %6108 = vmatpush1.bf16.msra.mxu1 %v18557_v16  ;;  %v18572_v16 = vld [vmem:[#allocation7 + $0x460] ss:$16 sps:$4 sm:$0xff]  }
 0x31a   :  { %5995 = vmatpush1.bf16.msra.mxu0 %v18554_v39  ;;  %6109 = vmatprep.subr.bf16.mxu1 %v18565_v27  ;;  %v24517_v39 = vld [vmem:[#allocation65_spill] sm:$0xff]  ;;  %v4476_v27 = vld [vmem:[%s24488_s10 + $0xd0] sm:$0xff]  ;;  %v4495_v50 = vld [vmem:[%s24488_s10 + $0x168] sm:$0xff] }
 0x31b   :  { %5996 = vmatprep.subr.bf16.mxu0 %v18562_v28  ;;  %4315 = vmatprep.mubr.bf16.mxu1 %v24516_v41  ;;  %v18575_v28 = vld [vmem:[#allocation7 + $0x68] ss:$16 sps:$4 sm:$0xff]  }
 0x31c   :  { %5923 = vmatprep.mubr.bf16.mxu0 %v21632_v22 }
 0x31d   :  { %6110 = vmatpush1.bf16.msra.mxu1 %v18563_v59  ;;  %v18583_v59 = vld [vmem:[#allocation7 + $0x8c] ss:$16 sps:$4 sm:$0xff]  }
 0x31e   :  { %5997 = vmatpush1.bf16.msra.mxu0 %v18560_v32  ;;  %6111 = vmatprep.subr.bf16.mxu1 %v18571_v38  ;;  %v4482_v32 = vld [vmem:[%s24488_s10 + $0x100] sm:$0xff]  ;;  %v24519_v38 = vld [vmem:[#allocation64_spill] sm:$0xff] }
 0x31f   :  { %5998 = vmatprep.subr.bf16.mxu0 %v18568_v13  ;;  %v21653_v13 = vpack.c.bf16 %v4482_v32, %v4476_v27  ;;  %v21656_v41 = vsub.s32 2, %v24519_v38  ;;  %v24522_v27 = vld [vmem:[#allocation71_spill] sm:$0xff]  ;;  %v19938_v32 = vld [vmem:[#allocation2] sm:$0xf] }
 0x320   :  { %4316 = vmatmul.mubr.bf16.gmra.mrb[68].mxu1 %v24517_v39  ;;  %v21662_v39 = vpack.c.bf16 %v4495_v50, %v4489_v17  ;;  %v4494_v17 = vld [vmem:[%s24488_s10 + $0x160] sm:$0xff]  ;;  %v18592_v50 = vld [vmem:[#allocation7 + $0x4c4] ss:$16 sps:$4 sm:$0xff]  }
 0x321   :  { %5924 = vmatmul.mubr.bf16.gmra.mrb[68].mxu0 %v21641_v2  ;;  %6112 = vmatpush1.bf16.msra.mxu1 %v18569_v44  ;;  %24520 = vst [vmem:[#allocation72_spill] sm:$0xff] %v21656_v41  ;;  %v21660_v44 = vsub.s32 3, %v24519_v38 }
 0x322   :  { %5999 = vmatpush1.bf16.msra.mxu0 %v18566_v55  ;;  %6113 = vmatprep.subr.bf16.mxu1 %v18577_v63  ;;  %v18581_v55 = vld [vmem:[#allocation7 + $0x88] ss:$16 sps:$4 sm:$0xff]   ;;  %v18589_v63 = vld [vmem:[#allocation7 + $0xac] ss:$16 sps:$4 sm:$0xff]  }
 0x323   :  { %6000 = vmatprep.subr.bf16.mxu0 %v18574_v61  ;;  %4325 = vmatprep.mubr.bf16.mxu1 %v24518_v60  ;;  %24521 = vst [vmem:[#allocation73_spill] sm:$0xff] %v21660_v44  ;;  %v18586_v61 = vld [vmem:[#allocation7 + $0x4a4] ss:$16 sps:$4 sm:$0xff]   ;;  %v18587_v60 = vld [vmem:[#allocation7 + $0xa8] ss:$16 sps:$4 sm:$0xff]  }
 0x324   :  { %5933 = vmatprep.mubr.bf16.mxu0 %v21644_v6 }
 0x325   :  { %6114 = vmatpush1.bf16.msra.mxu1 %v18575_v28  ;;  %v18584_v28 = vld [vmem:[#allocation7 + $0x4a0] ss:$16 sps:$4 sm:$0xff]  }
 0x326   :  { %6001 = vmatpush1.bf16.msra.mxu0 %v18572_v16  ;;  %6115 = vmatprep.subr.bf16.mxu1 %v18583_v59  ;;  %v21667_v16 = vrot.slane %v19938_v32, %v21656_v41  ;;  %v4488_v59 = vld [vmem:[%s24488_s10 + $0x130] sm:$0xff]  ;;  %v18590_v41 = vld [vmem:[#allocation7 + $0x4c0] ss:$16 sps:$4 sm:$0xff]  }
 0x327   :  { %6002 = vmatprep.subr.bf16.mxu0 %v18580_v5  ;;  %v21670_v5 = vrot.slane %v19938_v32, %v21660_v44  ;;  %v4507_v32 = vld [vmem:[%s24488_s10 + $0x1c8] sm:$0xff] }
 0x328   :  { %4326 = vmatmul.mubr.bf16.gmra.mrb[72].mxu1 %v24522_v27  ;;  %v18595_v27 = vld [vmem:[#allocation7 + $0xcc] ss:$16 sps:$4 sm:$0xff]   ;;  %v21684_v21 = vpack.c.bf16 %v4507_v32, %v4501_v8 }
 0x329   :  { %5934 = vmatmul.mubr.bf16.gmra.mrb[72].mxu0 %v21653_v13  ;;  %6116 = vmatpush1.bf16.msra.mxu1 %v18581_v55  ;;  %v21677_v55 = vpack.c.bf16 %v4494_v17, %v4488_v59  ;;  %v18596_v17 = vld [vmem:[#allocation7 + $0x4e0] ss:$16 sps:$4 sm:$0xff]   ;;  %v18607_v8 = vld [vmem:[#allocation7 + $0x10c] ss:$16 sps:$4 sm:$0xff]  }
 0x32a   :  { %6003 = vmatpush1.bf16.msra.mxu0 %v18578_v1  ;;  %6117 = vmatprep.subr.bf16.mxu1 %v18589_v63  ;;  %v18598_v63 = vld [vmem:[#allocation7 + $0x4e4] ss:$16 sps:$4 sm:$0xff]  }
 0x32b   :  { %6004 = vmatprep.subr.bf16.mxu0 %v18586_v61  ;;  %v2247_v38 = vpop.f32.mrb[32].mxu1  ;;  %4335 = vmatprep.mubr.bf16.mxu1 %v24523_v26  ;;  %v18593_v61 = vld [vmem:[#allocation7 + $0xc8] ss:$16 sps:$4 sm:$0xff]  }
 0x32c   :  { %5943 = vmatprep.mubr.bf16.mxu0 %v21662_v39  ;;  %v16743_v1 = vadd.f32 %v2247_v38, %v21667_v16  ;;  %v2249_v15 = vpop.f32.mrb[33].mxu1  ;;  %v18601_v38 = vld [vmem:[#allocation7 + $0xec] ss:$16 sps:$4 sm:$0xff]  }
 0x32d   :  { %v16744_v44 = vadd.f32 %v2249_v15, %v21670_v5  ;;  %v2251_v3 = vpop.f32.mrb[34].mxu1  ;;  %6118 = vmatpush1.bf16.msra.mxu1 %v18587_v60  ;;  %v4500_v60 = vld [vmem:[%s24488_s10 + $0x190] sm:$0xff] }
 0x32e   :  { %6005 = vmatpush1.bf16.msra.mxu0 %v18584_v28  ;;  %v16745_v26 = vadd.f32 %v2251_v3, %v21667_v16  ;;  %v2253_v34 = vpop.f32.mrb[35].mxu1  ;;  %6119 = vmatprep.subr.bf16.mxu1 %v18595_v27  ;;  %v2328_v9 = vmax.f32 %v16743_v1, 0.0  ;;  %v18599_v28 = vld [vmem:[#allocation7 + $0xe8] ss:$16 sps:$4 sm:$0xff]   ;;  %v18604_v27 = vld [vmem:[#allocation7 + $0x504] ss:$16 sps:$4 sm:$0xff]  }
 0x32f   :  { %6006 = vmatprep.subr.bf16.mxu0 %v18592_v50  ;;  %v16746_v59 = vadd.f32 %v2253_v34, %v21670_v5  ;;  %v2329_v46 = vmax.f32 %v16744_v44, 0.0  ;;  %v4506_v50 = vld [vmem:[%s24488_s10 + $0x1c0] sm:$0xff] }
 0x330   :  { %v2332_v15 = vmax.f32 %v16745_v26, 0.0  ;;  %4336 = vmatmul.mubr.bf16.gmra.mrb[76].mxu1 %v21383_v29  ;;  %v18602_v29 = vld [vmem:[#allocation7 + $0x500] ss:$16 sps:$4 sm:$0xff]  }
 0x331   :  { %5944 = vmatmul.mubr.bf16.gmra.mrb[76].mxu0 %v21677_v55  ;;  %v2333_v3 = vmax.f32 %v16746_v59, 0.0  ;;  %6120 = vmatpush1.bf16.msra.mxu1 %v18593_v61  ;;  %v21697_v61 = vpack.c.bf16 %v4506_v50, %v4500_v60  ;;  %v4513_v26 = vld [vmem:[%s24488_s10 + $0x1f8] sm:$0xff]  ;;  %v4519_v59 = vld [vmem:[%s24488_s10 + $0x228] sm:$0xff] }
 0x332   :  { %6007 = vmatpush1.bf16.msra.mxu0 %v18590_v41  ;;  %v21690_v34 = vpack.c.bf16 %v2332_v15, %v2328_v9  ;;  %6121 = vmatprep.subr.bf16.mxu1 %v18601_v38  ;;  %v18605_v38 = vld [vmem:[#allocation7 + $0x108] ss:$16 sps:$4 sm:$0xff]   ;;  %v21704_v50 = vpack.c.bf16 %v4519_v59, %v4513_v26 }
 0x333   :  { %6008 = vmatprep.subr.bf16.mxu0 %v18598_v63  ;;  %v2257_v1 = vpop.f32.mrb[36].mxu1  ;;  %4345 = vmatprep.mubr.bf16.mxu1 %v21388_v53  ;;  %v21694_v32 = vpack.c.bf16 %v2333_v3, %v2329_v46  ;;  %v18610_v53 = vld [vmem:[#allocation7 + $0x524] ss:$16 sps:$4 sm:$0xff]   ;;  %v18613_v46 = vld [vmem:[#allocation7 + $0x12c] ss:$16 sps:$4 sm:$0xff]  }
 0x334   :  { %24524 = vst [vmem:[#allocation50_spill] sm:$0xff] %v21690_v34  ;;  %5953 = vmatprep.mubr.bf16.mxu0 %v21684_v21  ;;  %v16747_v41 = vadd.f32 %v2257_v1, %v21667_v16  ;;  %v2259_v44 = vpop.f32.mrb[37].mxu1  ;;  %v18608_v3 = vld [vmem:[#allocation7 + $0x520] ss:$16 sps:$4 sm:$0xff]  }
 0x335   :  { %24525 = vst [vmem:[#allocation51_spill] sm:$0xff] %v21694_v32  ;;  %v16748_v9 = vadd.f32 %v2259_v44, %v21670_v5  ;;  %v2261_v63 = vpop.f32.mrb[38].mxu1  ;;  %6122 = vmatpush1.bf16.msra.mxu1 %v18599_v28  ;;  %v4512_v28 = vld [vmem:[%s24488_s10 + $0x1f0] sm:$0xff] }
 0x336   :  { %6009 = vmatpush1.bf16.msra.mxu0 %v18596_v17  ;;  %v16749_v15 = vadd.f32 %v2261_v63, %v21667_v16  ;;  %v2263_v34 = vpop.f32.mrb[39].mxu1  ;;  %6123 = vmatprep.subr.bf16.mxu1 %v18607_v8  ;;  %v2336_v1 = vmax.f32 %v16747_v41, 0.0  ;;  %v18611_v17 = vld [vmem:[#allocation7 + $0x128] ss:$16 sps:$4 sm:$0xff]   ;;  %v18616_v8 = vld [vmem:[#allocation7 + $0x544] ss:$16 sps:$4 sm:$0xff]  }
 0x337   :  { %6010 = vmatprep.subr.bf16.mxu0 %v18604_v27  ;;  %v16750_v60 = vadd.f32 %v2263_v34, %v21670_v5  ;;  %v2337_v32 = vmax.f32 %v16748_v9, 0.0  ;;  %v4518_v27 = vld [vmem:[%s24488_s10 + $0x220] sm:$0xff] }
 0x338   :  { %v2340_v44 = vmax.f32 %v16749_v15, 0.0  ;;  %4346 = vmatmul.mubr.bf16.gmra.mrb[80].mxu1 %v21407_v40  ;;  %v18619_v34 = vld [vmem:[#allocation7 + $0x14c] ss:$16 sps:$4 sm:$0xff]   ;;  %v18614_v40 = vld [vmem:[#allocation7 + $0x540] ss:$16 sps:$4 sm:$0xff]  }
 0x339   :  { %5954 = vmatmul.mubr.bf16.gmra.mrb[80].mxu0 %v21697_v61  ;;  %v2341_v63 = vmax.f32 %v16750_v60, 0.0  ;;  %6124 = vmatpush1.bf16.msra.mxu1 %v18605_v38  ;;  %v21717_v38 = vpack.c.bf16 %v4518_v27, %v4512_v28  ;;  %v4525_v15 = vld [vmem:[%s24488_s10 + $0x258] sm:$0xff]  ;;  %v4531_v60 = vld [vmem:[%s24488_s10 + $0x288] sm:$0xff] }
 0x33a   :  { %6011 = vmatpush1.bf16.msra.mxu0 %v18602_v29  ;;  %6125 = vmatprep.subr.bf16.mxu1 %v18613_v46  ;;  %v21710_v26 = vpack.c.bf16 %v2340_v44, %v2336_v1  ;;  %v18617_v1 = vld [vmem:[#allocation7 + $0x148] ss:$16 sps:$4 sm:$0xff]   ;;  %v21724_v27 = vpack.c.bf16 %v4531_v60, %v4525_v15 }
 0x33b   :  { %6012 = vmatprep.subr.bf16.mxu0 %v18610_v53  ;;  %v2267_v41 = vpop.f32.mrb[40].mxu1  ;;  %4355 = vmatprep.mubr.bf16.mxu1 %v21412_v58  ;;  %v21714_v59 = vpack.c.bf16 %v2341_v63, %v2337_v32  ;;  %v18622_v58 = vld [vmem:[#allocation7 + $0x564] ss:$16 sps:$4 sm:$0xff]   ;;  %v18625_v32 = vld [vmem:[#allocation7 + $0x16c] ss:$16 sps:$4 sm:$0xff]  }
 0x33c   :  { %24526 = vst [vmem:[#allocation52_spill] sm:$0xff] %v21710_v26  ;;  %5963 = vmatprep.mubr.bf16.mxu0 %v21704_v50  ;;  %v16751_v29 = vadd.f32 %v2267_v41, %v21667_v16  ;;  %v2269_v9 = vpop.f32.mrb[41].mxu1  ;;  %v18620_v63 = vld [vmem:[#allocation7 + $0x560] ss:$16 sps:$4 sm:$0xff]  }
 0x33d   :  { %24527 = vst [vmem:[#allocation53_spill] sm:$0xff] %v21714_v59  ;;  %v16752_v53 = vadd.f32 %v2269_v9, %v21670_v5  ;;  %v2271_v46 = vpop.f32.mrb[42].mxu1  ;;  %6126 = vmatpush1.bf16.msra.mxu1 %v18611_v17  ;;  %v4524_v17 = vld [vmem:[%s24488_s10 + $0x250] sm:$0xff] }
 0x33e   :  { %6013 = vmatpush1.bf16.msra.mxu0 %v18608_v3  ;;  %v16753_v44 = vadd.f32 %v2271_v46, %v21667_v16  ;;  %v2273_v26 = vpop.f32.mrb[43].mxu1  ;;  %6127 = vmatprep.subr.bf16.mxu1 %v18619_v34  ;;  %v2344_v41 = vmax.f32 %v16751_v29, 0.0  ;;  %v18623_v3 = vld [vmem:[#allocation7 + $0x168] ss:$16 sps:$4 sm:$0xff]   ;;  %v18628_v34 = vld [vmem:[#allocation7 + $0x584] ss:$16 sps:$4 sm:$0xff]  }
 0x33f   :  { %6014 = vmatprep.subr.bf16.mxu0 %v18616_v8  ;;  %v16754_v28 = vadd.f32 %v2273_v26, %v21670_v5  ;;  %v2345_v59 = vmax.f32 %v16752_v53, 0.0  ;;  %v4530_v8 = vld [vmem:[%s24488_s10 + $0x280] sm:$0xff] }
 0x340   :  { %v2348_v9 = vmax.f32 %v16753_v44, 0.0  ;;  %4356 = vmatmul.mubr.bf16.gmra.mrb[84].mxu1 %v21431_v57  ;;  %v18631_v26 = vld [vmem:[#allocation7 + $0x18c] ss:$16 sps:$4 sm:$0xff]   ;;  %v18626_v57 = vld [vmem:[#allocation7 + $0x580] ss:$16 sps:$4 sm:$0xff]  }
 0x341   :  { %5964 = vmatmul.mubr.bf16.gmra.mrb[84].mxu0 %v21717_v38  ;;  %v2349_v46 = vmax.f32 %v16754_v28, 0.0  ;;  %6128 = vmatpush1.bf16.msra.mxu1 %v18617_v1  ;;  %v21737_v1 = vpack.c.bf16 %v4530_v8, %v4524_v17  ;;  %v4537_v44 = vld [vmem:[%s24488_s10 + $0x2b8] sm:$0xff]  ;;  %v4543_v28 = vld [vmem:[%s24488_s10 + $0x2e8] sm:$0xff] }
 0x342   :  { %6015 = vmatpush1.bf16.msra.mxu0 %v18614_v40  ;;  %6129 = vmatprep.subr.bf16.mxu1 %v18625_v32  ;;  %v21730_v15 = vpack.c.bf16 %v2348_v9, %v2344_v41  ;;  %v18629_v41 = vld [vmem:[#allocation7 + $0x188] ss:$16 sps:$4 sm:$0xff]   ;;  %v21744_v8 = vpack.c.bf16 %v4543_v28, %v4537_v44 }
 0x343   :  { %6016 = vmatprep.subr.bf16.mxu0 %v18622_v58  ;;  %v2277_v29 = vpop.f32.mrb[44].mxu1  ;;  %4365 = vmatprep.mubr.bf16.mxu1 %v21436_v45  ;;  %v21734_v60 = vpack.c.bf16 %v2349_v46, %v2345_v59  ;;  %v18634_v45 = vld [vmem:[#allocation7 + $0x5a4] ss:$16 sps:$4 sm:$0xff]   ;;  %v18637_v59 = vld [vmem:[#allocation7 + $0x1ac] ss:$16 sps:$4 sm:$0xff]  }
 0x344   :  { %24528 = vst [vmem:[#allocation54_spill] sm:$0xff] %v21730_v15  ;;  %5973 = vmatprep.mubr.bf16.mxu0 %v21724_v27  ;;  %v16755_v40 = vadd.f32 %v2277_v29, %v21667_v16  ;;  %v2279_v53 = vpop.f32.mrb[45].mxu1  ;;  %v18632_v46 = vld [vmem:[#allocation7 + $0x5a0] ss:$16 sps:$4 sm:$0xff]  }
 0x345   :  { %24529 = vst [vmem:[#allocation55_spill] sm:$0xff] %v21734_v60  ;;  %v16756_v58 = vadd.f32 %v2279_v53, %v21670_v5  ;;  %v2281_v32 = vpop.f32.mrb[46].mxu1  ;;  %6130 = vmatpush1.bf16.msra.mxu1 %v18623_v3  ;;  %v4536_v3 = vld [vmem:[%s24488_s10 + $0x2b0] sm:$0xff] }
 0x346   :  { %6017 = vmatpush1.bf16.msra.mxu0 %v18620_v63  ;;  %v16757_v9 = vadd.f32 %v2281_v32, %v21667_v16  ;;  %v2283_v15 = vpop.f32.mrb[47].mxu1  ;;  %6131 = vmatprep.subr.bf16.mxu1 %v18631_v26  ;;  %v2352_v29 = vmax.f32 %v16755_v40, 0.0  ;;  %v18635_v63 = vld [vmem:[#allocation7 + $0x1a8] ss:$16 sps:$4 sm:$0xff]   ;;  %v18640_v26 = vld [vmem:[#allocation7 + $0x5c4] ss:$16 sps:$4 sm:$0xff]  }
 0x347   :  { %6018 = vmatprep.subr.bf16.mxu0 %v18628_v34  ;;  %v16758_v17 = vadd.f32 %v2283_v15, %v21670_v5  ;;  %v2353_v60 = vmax.f32 %v16756_v58, 0.0  ;;  %v4542_v34 = vld [vmem:[%s24488_s10 + $0x2e0] sm:$0xff] }
 0x348   :  { %v2356_v53 = vmax.f32 %v16757_v9, 0.0  ;;  %4366 = vmatmul.mubr.bf16.gmra.mrb[88].mxu1 %v21454_v31  ;;  %v18643_v15 = vld [vmem:[#allocation7 + $0x1cc] ss:$16 sps:$4 sm:$0xff]   ;;  %v18638_v31 = vld [vmem:[#allocation7 + $0x5c0] ss:$16 sps:$4 sm:$0xff]  }
 0x349   :  { %5974 = vmatmul.mubr.bf16.gmra.mrb[88].mxu0 %v21737_v1  ;;  %v2357_v32 = vmax.f32 %v16758_v17, 0.0  ;;  %6132 = vmatpush1.bf16.msra.mxu1 %v18629_v41  ;;  %v21757_v41 = vpack.c.bf16 %v4542_v34, %v4536_v3  ;;  %v4455_v9 = vld [vmem:[%s24488_s10 + $0x28] sm:$0xff]  ;;  %v4461_v17 = vld [vmem:[%s24488_s10 + $0x58] sm:$0xff] }
 0x34a   :  { %6019 = vmatpush1.bf16.msra.mxu0 %v18626_v57  ;;  %6133 = vmatprep.subr.bf16.mxu1 %v18637_v59  ;;  %v21750_v44 = vpack.c.bf16 %v2356_v53, %v2352_v29  ;;  %v18641_v29 = vld [vmem:[#allocation7 + $0x1c8] ss:$16 sps:$4 sm:$0xff]   ;;  %v21764_v34 = vpack.c.bf16 %v4461_v17, %v4455_v9 }
 0x34b   :  { %6020 = vmatprep.subr.bf16.mxu0 %v18634_v45  ;;  %v2287_v40 = vpop.f32.mrb[48].mxu1  ;;  %4375 = vmatprep.mubr.bf16.mxu1 %v21460_v19  ;;  %v21754_v28 = vpack.c.bf16 %v2357_v32, %v2353_v60  ;;  %v18646_v19 = vld [vmem:[#allocation7 + $0x5e4] ss:$16 sps:$4 sm:$0xff]   ;;  %v18649_v60 = vld [vmem:[#allocation7 + $0x1ec] ss:$16 sps:$4 sm:$0xff]  }
 0x34c   :  { %24530 = vst [vmem:[#allocation56_spill] sm:$0xff] %v21750_v44  ;;  %5983 = vmatprep.mubr.bf16.mxu0 %v21744_v8  ;;  %v16759_v57 = vadd.f32 %v2287_v40, %v21667_v16  ;;  %v2289_v58 = vpop.f32.mrb[49].mxu1  ;;  %v18644_v32 = vld [vmem:[#allocation7 + $0x5e0] ss:$16 sps:$4 sm:$0xff]   ;;  %v18650_v17 = vld [vmem:[#allocation7 + $0x208] ss:$16 sps:$4 sm:$0xff]  }
 0x34d   :  { %24531 = vst [vmem:[#allocation57_spill] sm:$0xff] %v21754_v28  ;;  %v16760_v45 = vadd.f32 %v2289_v58, %v21670_v5  ;;  %v2291_v59 = vpop.f32.mrb[50].mxu1  ;;  %6134 = vmatpush1.bf16.msra.mxu1 %v18635_v63  ;;  %v4454_v63 = vld [vmem:[%s24488_s10 + $0x20] sm:$0xff] }
 0x34e   :  { %6021 = vmatpush1.bf16.msra.mxu0 %v18632_v46  ;;  %v16761_v53 = vadd.f32 %v2291_v59, %v21667_v16  ;;  %v2293_v44 = vpop.f32.mrb[51].mxu1  ;;  %6135 = vmatprep.subr.bf16.mxu1 %v18643_v15  ;;  %v2360_v40 = vmax.f32 %v16759_v57, 0.0  ;;  %v18647_v46 = vld [vmem:[#allocation7 + $0x1e8] ss:$16 sps:$4 sm:$0xff]   ;;  %v18652_v15 = vld [vmem:[#allocation7 + $0x20c] ss:$16 sps:$4 sm:$0xff]  }
 0x34f   :  { %6022 = vmatprep.subr.bf16.mxu0 %v18640_v26  ;;  %v16762_v3 = vadd.f32 %v2293_v44, %v21670_v5  ;;  %v2361_v28 = vmax.f32 %v16760_v45, 0.0  ;;  %v4460_v26 = vld [vmem:[%s24488_s10 + $0x50] sm:$0xff] }
 0x350   :  { %v2364_v58 = vmax.f32 %v16761_v53, 0.0  ;;  %4376 = vmatmul.mubr.bf16.gmra.mrb[92].mxu1 %v21479_v33  ;;  %v18655_v57 = vld [vmem:[#allocation10 + $0x4] ss:$8 sps:$4 sm:$0xff]   ;;  %v4467_v53 = vld [vmem:[%s24488_s10 + $0x88] sm:$0xff] }
 0x351   :  { %5984 = vmatmul.mubr.bf16.gmra.mrb[92].mxu0 %v21757_v41  ;;  %v2365_v59 = vmax.f32 %v16762_v3, 0.0  ;;  %6136 = vmatpush1.bf16.msra.mxu1 %v18641_v29  ;;  %v21777_v29 = vpack.c.bf16 %v4460_v26, %v4454_v63  ;;  %v4473_v3 = vld [vmem:[%s24488_s10 + $0xb8] sm:$0xff]  ;;  %v18656_v26 = vld [vmem:[#allocation7 + $0x228] ss:$16 sps:$4 sm:$0xff]  }
 0x352   :  { %6023 = vmatpush1.bf16.msra.mxu0 %v18638_v31  ;;  %v21770_v44 = vpack.c.bf16 %v2364_v58, %v2360_v40  ;;  %6137 = vmatprep.subr.bf16.mxu1 %v18649_v60  ;;  %v18658_v60 = vld [vmem:[#allocation7 + $0x22c] ss:$16 sps:$4 sm:$0xff]  }
 0x353   :  { %6024 = vmatprep.subr.bf16.mxu0 %v18646_v19  ;;  %v21772_v9 = vpack.c.bf16 %v2365_v59, %v2361_v28  ;;  %v2297_v33 = vpop.f32.mrb[52].mxu1  ;;  %6026 = vmatprep.mubr.bf16.mxu0 %v21764_v34  ;;  %v18653_v28 = vld [vmem:[#allocation10] ss:$8 sps:$4 sm:$0xff]  }
 0x354   :  { %24532 = vst [vmem:[#allocation58_spill] sm:$0xff] %v21770_v44  ;;  %6139 = vmatprep.mubr.bf16.mxu1 %v21484_v48  ;;  %v16763_v31 = vadd.f32 %v2297_v33, %v21667_v16  ;;  %v2299_v45 = vpop.f32.mrb[53].mxu1  ;;  %v18661_v48 = vld [vmem:[#allocation10 + $0x14] ss:$8 sps:$4 sm:$0xff]   ;;  %v21784_v33 = vpack.c.bf16 %v4473_v3, %v4467_v53 }
 0x355   :  { %24533 = vst [vmem:[#allocation59_spill] sm:$0xff] %v21772_v9  ;;  %v16764_v40 = vadd.f32 %v2299_v45, %v21670_v5  ;;  %v2301_v19 = vpop.f32.mrb[54].mxu1  ;;  %6138 = vmatpush1.bf16.msra.mxu1 %v18647_v46  ;;  %v4466_v46 = vld [vmem:[%s24488_s10 + $0x80] sm:$0xff] }
 0x356   :  { %6025 = vmatpush1.bf16.msra.mxu0 %v18644_v32  ;;  %v16765_v58 = vadd.f32 %v2301_v19, %v21667_v16  ;;  %v2303_v59 = vpop.f32.mrb[55].mxu1  ;;  %6220 = vmatprep.subr.bf16.mxu1 %v18652_v15  ;;  %24534 = vst [vmem:[#allocation60_spill] sm:$0xff] %v21784_v33  ;;  %v2368_v44 = vmax.f32 %v16763_v31, 0.0  ;;  %v18659_v32 = vld [vmem:[#allocation10 + $0x10] ss:$8 sps:$4 sm:$0xff]   ;;  %v4472_v15 = vld [vmem:[%s24488_s10 + $0xb0] sm:$0xff] }
 0x357   :  { %6938 = vmatprep.subr.bf16.mxu0 %v18655_v57  ;;  %v16766_v63 = vadd.f32 %v2303_v59, %v21670_v5  ;;  %v2369_v9 = vmax.f32 %v16764_v40, 0.0  ;;  %v18664_v57 = vld [vmem:[#allocation7 + $0x24c] ss:$16 sps:$4 sm:$0xff]   ;;  %v18667_v31 = vld [vmem:[#allocation10 + $0x24] ss:$8 sps:$4 sm:$0xff]  }
 0x358   :  { %v2372_v45 = vmax.f32 %v16765_v58, 0.0  ;;  %6140 = vmatmul.mubr.bf16.vlgmr.msra.gmra.mrb[96].mxu1 %v21503_v42  ;;  %v18662_v42 = vld [vmem:[#allocation7 + $0x248] ss:$16 sps:$4 sm:$0xff]   ;;  %v4479_v58 = vld [vmem:[%s24488_s10 + $0xe8] sm:$0xff] }
 0x359   :  { %6027 = vmatmul.mubr.bf16.vlgmr.msra.gmra.mrb[64].mxu0 %v21777_v29  ;;  %v2373_v19 = vmax.f32 %v16766_v63, 0.0  ;;  %6221 = vmatpush1.bf16.msra.mxu1 %v18650_v17  ;;  %v4485_v63 = vld [vmem:[%s24488_s10 + $0x118] sm:$0xff] }
 0x35a   :  { %6939 = vmatpush1.bf16.msra.mxu0 %v18653_v28  ;;  %v21790_v59 = vpack.c.bf16 %v2372_v45, %v2368_v44  ;;  %6222 = vmatprep.subr.bf16.mxu1 %v18658_v60  ;;  %v21797_v28 = vpack.c.bf16 %v4472_v15, %v4466_v46  ;;  %v18668_v15 = vld [vmem:[#allocation7 + $0x268] ss:$16 sps:$4 sm:$0xff]  }
 0x35b   :  { %6940 = vmatprep.subr.bf16.mxu0 %v18661_v48  ;;  %v21792_v53 = vpack.c.bf16 %v2373_v19, %v2369_v9  ;;  %v2307_v3 = vpop.f32.mrb[56].mxu1  ;;  %6036 = vmatprep.mubr.bf16.mxu0 %v21784_v33  ;;  %v18665_v9 = vld [vmem:[#allocation10 + $0x20] ss:$8 sps:$4 sm:$0xff]  }
 0x35c   :  { %24535 = vst [vmem:[#allocation61_spill] sm:$0xff] %v21790_v59  ;;  %6149 = vmatprep.mubr.bf16.mxu1 %v21508_v23  ;;  %v16767_v17 = vadd.f32 %v2307_v3, %v21667_v16  ;;  %v2309_v40 = vpop.f32.mrb[57].mxu1  ;;  %24537 = vst [vmem:[#allocation63_spill] sm:$0xff] %v21797_v28  ;;  %v18670_v48 = vld [vmem:[#allocation7 + $0x26c] ss:$16 sps:$4 sm:$0xff]   ;;  %v21804_v3 = vpack.c.bf16 %v4485_v63, %v4479_v58 }
 0x35d   :  { %24536 = vst [vmem:[#allocation62_spill] sm:$0xff] %v21792_v53  ;;  %v16768_v44 = vadd.f32 %v2309_v40, %v21670_v5  ;;  %v2311_v60 = vpop.f32.mrb[58].mxu1  ;;  %6223 = vmatpush1.bf16.msra.mxu1 %v18656_v26  ;;  %v18673_v23 = vld [vmem:[#allocation10 + $0x34] ss:$8 sps:$4 sm:$0xff]   ;;  %v18671_v26 = vld [vmem:[#allocation10 + $0x30] ss:$8 sps:$4 sm:$0xff]  }
 0x35e   :  { %6941 = vmatpush1.bf16.msra.mxu0 %v18659_v32  ;;  %v16769_v45 = vadd.f32 %v2311_v60, %v21667_v16  ;;  %v2313_v19 = vpop.f32.mrb[59].mxu1  ;;  %6224 = vmatprep.subr.bf16.mxu1 %v18664_v57  ;;  %24538 = vst [vmem:[#allocation65_spill] sm:$0xff] %v21804_v3  ;;  %v2376_v59 = vmax.f32 %v16767_v17, 0.0  ;;  %v4478_v32 = vld [vmem:[%s24488_s10 + $0xe0] sm:$0xff]  ;;  %v4484_v57 = vld [vmem:[%s24488_s10 + $0x110] sm:$0xff] }
 0x35f   :  { %6942 = vmatprep.subr.bf16.mxu0 %v18667_v31  ;;  %v16770_v46 = vadd.f32 %v2313_v19, %v21670_v5  ;;  %v2377_v53 = vmax.f32 %v16768_v44, 0.0  ;;  %v18676_v31 = vld [vmem:[#allocation7 + $0x28c] ss:$16 sps:$4 sm:$0xff]   ;;  %v18679_v17 = vld [vmem:[#allocation10 + $0x44] ss:$8 sps:$4 sm:$0xff]  }
 0x360   :  { %v2380_v40 = vmax.f32 %v16769_v45, 0.0  ;;  %6150 = vmatmul.mubr.bf16.gmra.mrb[100].mxu1 %v21527_v43  ;;  %v18674_v43 = vld [vmem:[#allocation7 + $0x288] ss:$16 sps:$4 sm:$0xff]   ;;  %v18677_v44 = vld [vmem:[#allocation10 + $0x40] ss:$8 sps:$4 sm:$0xff]   ;;  %v21817_v45 = vpack.c.bf16 %v4484_v57, %v4478_v32 }
 0x361   :  { %6037 = vmatmul.mubr.bf16.gmra.mrb[68].mxu0 %v21797_v28  ;;  %v2381_v60 = vmax.f32 %v16770_v46, 0.0  ;;  %6225 = vmatpush1.bf16.msra.mxu1 %v18662_v42  ;;  %v18682_v46 = vld [vmem:[#allocation7 + $0x2ac] ss:$16 sps:$4 sm:$0xff]   ;;  %v18680_v57 = vld [vmem:[#allocation7 + $0x2a8] ss:$16 sps:$4 sm:$0xff]  }
 0x362   :  { %6943 = vmatpush1.bf16.msra.mxu0 %v18665_v9  ;;  %v21810_v19 = vpack.c.bf16 %v2380_v40, %v2376_v59  ;;  %6226 = vmatprep.subr.bf16.mxu1 %v18670_v48  ;;  %v4491_v59 = vld [vmem:[%s24488_s10 + $0x148] sm:$0xff]  ;;  %v4497_v48 = vld [vmem:[%s24488_s10 + $0x178] sm:$0xff]  ;;  %v4496_v28 = vld [vmem:[%s24488_s10 + $0x170] sm:$0xff] }
 0x363   :  { %6944 = vmatprep.subr.bf16.mxu0 %v18673_v23  ;;  %v21812_v58 = vpack.c.bf16 %v2381_v60, %v2377_v53  ;;  %v2317_v63 = vpop.f32.mrb[60].mxu1  ;;  %6046 = vmatprep.mubr.bf16.mxu0 %v21804_v3  ;;  %v18685_v40 = vld [vmem:[#allocation10 + $0x54] ss:$8 sps:$4 sm:$0xff]   ;;  %v2726_v60 = vld [vmem:[#allocation6] sm:$0xf] }
 0x364   :  { %24539 = vst [vmem:[#allocation66_spill] sm:$0xff] %v21810_v19  ;;  %6159 = vmatprep.mubr.bf16.mxu1 %v21532_v36  ;;  %v16771_v42 = vadd.f32 %v2317_v63, %v21667_v16  ;;  %v2319_v9 = vpop.f32.mrb[61].mxu1  ;;  %v18683_v63 = vld [vmem:[#allocation10 + $0x50] ss:$8 sps:$4 sm:$0xff]  }
 0x365   :  { %24540 = vst [vmem:[#allocation71_spill] sm:$0xff] %v21812_v58  ;;  %v16772_v53 = vadd.f32 %v2319_v9, %v21670_v5  ;;  %v2321_v23 = vpop.f32.mrb[62].mxu1  ;;  %6227 = vmatpush1.bf16.msra.mxu1 %v18668_v15  ;;  %v21824_v58 = vpack.c.bf16 %v4497_v48, %v4491_v59  ;;  %v4490_v3 = vld [vmem:[%s24488_s10 + $0x140] sm:$0xff] }
 0x366   :  { %6945 = vmatpush1.bf16.msra.mxu0 %v18671_v26  ;;  %v16773_v36 = vadd.f32 %v2321_v23, %v21667_v16  ;;  %v2323_v19 = vpop.f32.mrb[63].mxu1  ;;  %6228 = vmatprep.subr.bf16.mxu1 %v18676_v31  ;;  %v2384_v33 = vmax.f32 %v16771_v42, 0.0  ;;  %v18688_v15 = vld [vmem:[#allocation7 + $0x2cc] ss:$16 sps:$4 sm:$0xff]   ;;  %v18691_v16 = vld [vmem:[#allocation10 + $0x64] ss:$8 sps:$4 sm:$0xff]  }
 0x367   :  { %6946 = vmatprep.subr.bf16.mxu0 %v18679_v17  ;;  %v16774_v32 = vadd.f32 %v2323_v19, %v21670_v5  ;;  %v24541_v26 = vld [vmem:[#allocation67_spill] sm:$0xff]  ;;  %v2385_v17 = vmax.f32 %v16772_v53, 0.0  ;;  %v24542_v19 = vld [vmem:[#allocation68_spill] sm:$0xff] }
 0x368   :  { %v2388_v9 = vmax.f32 %v16773_v36, 0.0  ;;  %6160 = vmatmul.mubr.bf16.gmra.mrb[104].mxu1 %v21551_v52  ;;  %v21831_v31 = vrot.slane %v2726_v60, %v24541_v26  ;;  %v21834_v59 = vrot.slane %v2726_v60, %v24542_v19  ;;  %v18686_v52 = vld [vmem:[#allocation7 + $0x2c8] ss:$16 sps:$4 sm:$0xff]   ;;  %v18689_v23 = vld [vmem:[#allocation10 + $0x60] ss:$8 sps:$4 sm:$0xff]   ;;  %v4509_v60 = vld [vmem:[%s24488_s10 + $0x1d8] sm:$0xff] }
 0x369   :  { %6047 = vmatmul.mubr.bf16.gmra.mrb[72].mxu0 %v21817_v45  ;;  %v2389_v5 = vmax.f32 %v16774_v32, 0.0  ;;  %6229 = vmatpush1.bf16.msra.mxu1 %v18674_v43  ;;  %v4503_v53 = vld [vmem:[%s24488_s10 + $0x1a8] sm:$0xff]  ;;  %v21843_v43 = vpack.c.bf16 %v4496_v28, %v4490_v3  ;;  %v18692_v3 = vld [vmem:[#allocation7 + $0x2e8] ss:$16 sps:$4 sm:$0xff]  }
 0x36a   :  { %6947 = vmatpush1.bf16.msra.mxu0 %v18677_v44  ;;  %v21836_v42 = vpack.c.bf16 %v2388_v9, %v2384_v33  ;;  %6230 = vmatprep.subr.bf16.mxu1 %v18682_v46  ;;  %v18694_v44 = vld [vmem:[#allocation7 + $0x2ec] ss:$16 sps:$4 sm:$0xff]   ;;  %v18697_v32 = vld [vmem:[#allocation10 + $0x74] ss:$8 sps:$4 sm:$0xff]   ;;  %v21849_v19 = vpack.c.bf16 %v4509_v60, %v4503_v53 }
 0x36b   :  { %6948 = vmatprep.subr.bf16.mxu0 %v18685_v40  ;;  %v21838_v48 = vpack.c.bf16 %v2389_v5, %v2385_v17  ;;  %6056 = vmatprep.mubr.bf16.mxu0 %v21824_v58  ;;  %v18695_v5 = vld [vmem:[#allocation10 + $0x70] ss:$8 sps:$4 sm:$0xff]   ;;  %v18698_v60 = vld [vmem:[#allocation7 + $0x308] ss:$16 sps:$4 sm:$0xff]  }
 0x36c   :  { %24543 = vst [vmem:[#allocation74_spill] sm:$0xff] %v21836_v42  ;;  %6169 = vmatprep.mubr.bf16.mxu1 %v21556_v0  ;;  %v3968_v36 = vpop.f32.mrb[32].mxu0  ;;  %v4502_v26 = vld [vmem:[%s24488_s10 + $0x1a0] sm:$0xff]  ;;  %v4508_v42 = vld [vmem:[%s24488_s10 + $0x1d0] sm:$0xff] }
 0x36d   :  { %24544 = vst [vmem:[#allocation79_spill] sm:$0xff] %v21838_v48  ;;  %v16775_v33 = vadd.f32 %v3968_v36, %v21831_v31  ;;  %v3970_v46 = vpop.f32.mrb[33].mxu0  ;;  %6231 = vmatpush1.bf16.msra.mxu1 %v18680_v57  ;;  %v18700_v57 = vld [vmem:[#allocation7 + $0x30c] ss:$16 sps:$4 sm:$0xff]  }
 0x36e   :  { %6949 = vmatpush1.bf16.msra.mxu0 %v18683_v63  ;;  %v16776_v40 = vadd.f32 %v3970_v46, %v21834_v59  ;;  %v3972_v9 = vpop.f32.mrb[34].mxu0  ;;  %6232 = vmatprep.subr.bf16.mxu1 %v18688_v15  ;;  %v18703_v63 = vld [vmem:[#allocation10 + $0x84] ss:$8 sps:$4 sm:$0xff]   ;;  %v4515_v46 = vld [vmem:[%s24488_s10 + $0x208] sm:$0xff] }
 0x36f   :  { %6950 = vmatprep.subr.bf16.mxu0 %v18691_v16  ;;  %v4386_v0 = vmax.f32 %v16775_v33, 0.0  ;;  %v16777_v17 = vadd.f32 %v3972_v9, %v21831_v31  ;;  %v3974_v28 = vpop.f32.mrb[35].mxu0  ;;  %v18701_v33 = vld [vmem:[#allocation10 + $0x80] ss:$8 sps:$4 sm:$0xff]   ;;  %v21863_v9 = vpack.c.bf16 %v4508_v42, %v4502_v26  ;;  %v18704_v42 = vld [vmem:[#allocation7 + $0x328] ss:$16 sps:$4 sm:$0xff]  }
 0x370   :  { %v4387_v48 = vmax.f32 %v16776_v40, 0.0  ;;  %v16778_v36 = vadd.f32 %v3974_v28, %v21834_v59  ;;  %6170 = vmatmul.mubr.bf16.gmra.mrb[108].mxu1 %v21568_v18 }
 0x371   :  { %6057 = vmatmul.mubr.bf16.gmra.mrb[76].mxu0 %v21843_v43  ;;  %v4390_v15 = vmax.f32 %v16777_v17, 0.0  ;;  %6233 = vmatpush1.bf16.msra.mxu1 %v18686_v52  ;;  %v18706_v52 = vld [vmem:[#allocation7 + $0x32c] ss:$16 sps:$4 sm:$0xff]   ;;  %v18709_v17 = vld [vmem:[#allocation10 + $0x94] ss:$8 sps:$4 sm:$0xff]  }
 0x372   :  { %6951 = vmatpush1.bf16.msra.mxu0 %v18689_v23  ;;  %v4391_v16 = vmax.f32 %v16778_v36, 0.0  ;;  %6234 = vmatprep.subr.bf16.mxu1 %v18694_v44  ;;  %v4521_v23 = vld [vmem:[%s24488_s10 + $0x238] sm:$0xff] }
 0x373   :  { %6952 = vmatprep.subr.bf16.mxu0 %v18697_v32  ;;  %v21856_v53 = vpack.c.bf16 %v4390_v15, %v4386_v0  ;;  %6066 = vmatprep.mubr.bf16.mxu0 %v21849_v19  ;;  %v18707_v36 = vld [vmem:[#allocation10 + $0x90] ss:$8 sps:$4 sm:$0xff]   ;;  %v21869_v15 = vpack.c.bf16 %v4521_v23, %v4515_v46  ;;  %v18710_v23 = vld [vmem:[#allocation7 + $0x348] ss:$16 sps:$4 sm:$0xff]  }
 0x374   :  { %6179 = vmatprep.mubr.bf16.mxu1 %v21572_v4  ;;  %v21861_v40 = vpack.c.bf16 %v4391_v16, %v4387_v48  ;;  %v3978_v18 = vpop.f32.mrb[36].mxu0  ;;  %v4514_v16 = vld [vmem:[%s24488_s10 + $0x200] sm:$0xff] }
 0x375   :  { %24545 = vst [vmem:[#allocation80_spill] sm:$0xff] %v21856_v53  ;;  %v16779_v44 = vadd.f32 %v3978_v18, %v21831_v31  ;;  %v3980_v32 = vpop.f32.mrb[37].mxu0  ;;  %6235 = vmatpush1.bf16.msra.mxu1 %v18692_v3  ;;  %v4520_v53 = vld [vmem:[%s24488_s10 + $0x230] sm:$0xff] }
 0x376   :  { %24546 = vst [vmem:[#allocation81_spill] sm:$0xff] %v21861_v40  ;;  %6953 = vmatpush1.bf16.msra.mxu0 %v18695_v5  ;;  %v16780_v4 = vadd.f32 %v3980_v32, %v21834_v59  ;;  %v3982_v0 = vpop.f32.mrb[38].mxu0  ;;  %6236 = vmatprep.subr.bf16.mxu1 %v18700_v57  ;;  %v18712_v3 = vld [vmem:[#allocation7 + $0x34c] ss:$16 sps:$4 sm:$0xff]   ;;  %v18715_v5 = vld [vmem:[#allocation10 + $0xa4] ss:$8 sps:$4 sm:$0xff]  }
 0x377   :  { %6954 = vmatprep.subr.bf16.mxu0 %v18703_v63  ;;  %v4394_v48 = vmax.f32 %v16779_v44, 0.0  ;;  %v16781_v28 = vadd.f32 %v3982_v0, %v21831_v31  ;;  %v3984_v26 = vpop.f32.mrb[39].mxu0  ;;  %v18713_v44 = vld [vmem:[#allocation10 + $0xa0] ss:$8 sps:$4 sm:$0xff]   ;;  %v21883_v0 = vpack.c.bf16 %v4520_v53, %v4514_v16  ;;  %v18716_v16 = vld [vmem:[#allocation7 + $0x368] ss:$16 sps:$4 sm:$0xff]  }
 0x378   :  { %v4395_v40 = vmax.f32 %v16780_v4, 0.0  ;;  %v16782_v18 = vadd.f32 %v3984_v26, %v21834_v59  ;;  %6180 = vmatmul.mubr.bf16.gmra.mrb[112].mxu1 %v21581_v35  ;;  %v4527_v32 = vld [vmem:[%s24488_s10 + $0x268] sm:$0xff] }
 0x379   :  { %6067 = vmatmul.mubr.bf16.gmra.mrb[80].mxu0 %v21863_v9  ;;  %v4398_v57 = vmax.f32 %v16781_v28, 0.0  ;;  %6237 = vmatpush1.bf16.msra.mxu1 %v18698_v60  ;;  %v18718_v60 = vld [vmem:[#allocation7 + $0x36c] ss:$16 sps:$4 sm:$0xff]   ;;  %v18721_v28 = vld [vmem:[#allocation10 + $0xb4] ss:$8 sps:$4 sm:$0xff]  }
 0x37a   :  { %6955 = vmatpush1.bf16.msra.mxu0 %v18701_v33  ;;  %v4399_v63 = vmax.f32 %v16782_v18, 0.0  ;;  %6238 = vmatprep.subr.bf16.mxu1 %v18706_v52  ;;  %v4533_v33 = vld [vmem:[%s24488_s10 + $0x298] sm:$0xff] }
 0x37b   :  { %6956 = vmatprep.subr.bf16.mxu0 %v18709_v17  ;;  %v21876_v46 = vpack.c.bf16 %v4398_v57, %v4394_v48  ;;  %6076 = vmatprep.mubr.bf16.mxu0 %v21869_v15  ;;  %v18719_v18 = vld [vmem:[#allocation10 + $0xb0] ss:$8 sps:$4 sm:$0xff]   ;;  %v21889_v57 = vpack.c.bf16 %v4533_v33, %v4527_v32  ;;  %v18722_v33 = vld [vmem:[#allocation7 + $0x388] ss:$16 sps:$4 sm:$0xff]  }
 0x37c   :  { %6189 = vmatprep.mubr.bf16.mxu1 %v21584_v20  ;;  %v21881_v4 = vpack.c.bf16 %v4399_v63, %v4395_v40  ;;  %v3988_v35 = vpop.f32.mrb[40].mxu0  ;;  %v4526_v63 = vld [vmem:[%s24488_s10 + $0x260] sm:$0xff] }
 0x37d   :  { %24547 = vst [vmem:[#allocation82_spill] sm:$0xff] %v21876_v46  ;;  %v16783_v52 = vadd.f32 %v3988_v35, %v21831_v31  ;;  %v3990_v17 = vpop.f32.mrb[41].mxu0  ;;  %6239 = vmatpush1.bf16.msra.mxu1 %v18704_v42  ;;  %v4532_v46 = vld [vmem:[%s24488_s10 + $0x290] sm:$0xff] }
 0x37e   :  { %24548 = vst [vmem:[#allocation83_spill] sm:$0xff] %v21881_v4  ;;  %6957 = vmatpush1.bf16.msra.mxu0 %v18707_v36  ;;  %v16784_v20 = vadd.f32 %v3990_v17, %v21834_v59  ;;  %v3992_v48 = vpop.f32.mrb[42].mxu0  ;;  %6240 = vmatprep.subr.bf16.mxu1 %v18712_v3  ;;  %v18724_v42 = vld [vmem:[#allocation7 + $0x38c] ss:$16 sps:$4 sm:$0xff]   ;;  %v18727_v36 = vld [vmem:[#allocation10 + $0xc4] ss:$8 sps:$4 sm:$0xff]  }
 0x37f   :  { %6958 = vmatprep.subr.bf16.mxu0 %v18715_v5  ;;  %v4402_v40 = vmax.f32 %v16783_v52, 0.0  ;;  %v16785_v26 = vadd.f32 %v3992_v48, %v21831_v31  ;;  %v3994_v53 = vpop.f32.mrb[43].mxu0  ;;  %v18725_v52 = vld [vmem:[#allocation10 + $0xc0] ss:$8 sps:$4 sm:$0xff]   ;;  %v21903_v48 = vpack.c.bf16 %v4532_v46, %v4526_v63  ;;  %v18728_v63 = vld [vmem:[#allocation7 + $0x3a8] ss:$16 sps:$4 sm:$0xff]  }
 0x380   :  { %v4403_v4 = vmax.f32 %v16784_v20, 0.0  ;;  %v16786_v35 = vadd.f32 %v3994_v53, %v21834_v59  ;;  %6190 = vmatmul.mubr.bf16.gmra.mrb[116].mxu1 %v21593_v54  ;;  %v4539_v17 = vld [vmem:[%s24488_s10 + $0x2c8] sm:$0xff] }
 0x381   :  { %6077 = vmatmul.mubr.bf16.gmra.mrb[84].mxu0 %v21883_v0  ;;  %v4406_v3 = vmax.f32 %v16785_v26, 0.0  ;;  %6241 = vmatpush1.bf16.msra.mxu1 %v18710_v23  ;;  %v18730_v23 = vld [vmem:[#allocation7 + $0x3ac] ss:$16 sps:$4 sm:$0xff]   ;;  %v18733_v26 = vld [vmem:[#allocation10 + $0xd4] ss:$8 sps:$4 sm:$0xff]  }
 0x382   :  { %6959 = vmatpush1.bf16.msra.mxu0 %v18713_v44  ;;  %v4407_v5 = vmax.f32 %v16786_v35, 0.0  ;;  %6242 = vmatprep.subr.bf16.mxu1 %v18718_v60  ;;  %v4545_v44 = vld [vmem:[%s24488_s10 + $0x2f8] sm:$0xff] }
 0x383   :  { %6960 = vmatprep.subr.bf16.mxu0 %v18721_v28  ;;  %v21896_v32 = vpack.c.bf16 %v4406_v3, %v4402_v40  ;;  %6086 = vmatprep.mubr.bf16.mxu0 %v21889_v57  ;;  %v18731_v35 = vld [vmem:[#allocation10 + $0xd0] ss:$8 sps:$4 sm:$0xff]   ;;  %v21909_v3 = vpack.c.bf16 %v4545_v44, %v4539_v17  ;;  %v18734_v17 = vld [vmem:[#allocation7 + $0x3c8] ss:$16 sps:$4 sm:$0xff]   ;;  %v18737_v44 = vld [vmem:[#allocation10 + $0xe0] ss:$8 sps:$4 sm:$0xff]  }
 0x384   :  { %6199 = vmatprep.mubr.bf16.mxu1 %v21596_v14  ;;  %v21901_v20 = vpack.c.bf16 %v4407_v5, %v4403_v4  ;;  %v3998_v54 = vpop.f32.mrb[44].mxu0  ;;  %v4538_v5 = vld [vmem:[%s24488_s10 + $0x2c0] sm:$0xff] }
 0x385   :  { %24549 = vst [vmem:[#allocation84_spill] sm:$0xff] %v21896_v32  ;;  %v16787_v60 = vadd.f32 %v3998_v54, %v21831_v31  ;;  %v4000_v28 = vpop.f32.mrb[45].mxu0  ;;  %6243 = vmatpush1.bf16.msra.mxu1 %v18716_v16  ;;  %v4544_v32 = vld [vmem:[%s24488_s10 + $0x2f0] sm:$0xff] }
 0x386   :  { %24550 = vst [vmem:[#allocation85_spill] sm:$0xff] %v21901_v20  ;;  %6961 = vmatpush1.bf16.msra.mxu0 %v18719_v18  ;;  %v16788_v14 = vadd.f32 %v4000_v28, %v21834_v59  ;;  %v4002_v40 = vpop.f32.mrb[46].mxu0  ;;  %6244 = vmatprep.subr.bf16.mxu1 %v18724_v42  ;;  %v18736_v16 = vld [vmem:[#allocation7 + $0x3cc] ss:$16 sps:$4 sm:$0xff]   ;;  %v18739_v18 = vld [vmem:[#allocation10 + $0xe4] ss:$8 sps:$4 sm:$0xff]  }
 0x387   :  { %6962 = vmatprep.subr.bf16.mxu0 %v18727_v36  ;;  %v4410_v4 = vmax.f32 %v16787_v60, 0.0  ;;  %v16789_v53 = vadd.f32 %v4002_v40, %v21831_v31  ;;  %v4004_v46 = vpop.f32.mrb[47].mxu0  ;;  %v18742_v40 = vld [vmem:[#allocation7 + $0x3ec] ss:$16 sps:$4 sm:$0xff]  }
 0x388   :  { %v4411_v20 = vmax.f32 %v16788_v14, 0.0  ;;  %v16790_v54 = vadd.f32 %v4004_v46, %v21834_v59  ;;  %6200 = vmatmul.mubr.bf16.gmra.mrb[120].mxu1 %v21605_v47  ;;  %v21922_v47 = vpack.c.bf16 %v4544_v32, %v4538_v5  ;;  %v18743_v46 = vld [vmem:[#allocation10 + $0xf0] ss:$8 sps:$4 sm:$0xff]  }
 0x389   :  { %6087 = vmatmul.mubr.bf16.gmra.mrb[88].mxu0 %v21903_v48  ;;  %v4414_v42 = vmax.f32 %v16789_v53, 0.0  ;;  %6245 = vmatpush1.bf16.msra.mxu1 %v18722_v33 }
 0x38a   :  { %6963 = vmatpush1.bf16.msra.mxu0 %v18725_v52  ;;  %v4415_v36 = vmax.f32 %v16790_v54, 0.0  ;;  %6246 = vmatprep.subr.bf16.mxu1 %v18730_v23  ;;  %v18745_v54 = vld [vmem:[#allocation10 + $0xf4] ss:$8 sps:$4 sm:$0xff]  }
 0x38b   :  { %6964 = vmatprep.subr.bf16.mxu0 %v18733_v26  ;;  %v21916_v60 = vpack.c.bf16 %v4414_v42, %v4410_v4  ;;  %6096 = vmatprep.mubr.bf16.mxu0 %v21909_v3 }
 0x38c   :  { %6209 = vmatprep.mubr.bf16.mxu1 %v21608_v56  ;;  %v21920_v28 = vpack.c.bf16 %v4415_v36, %v4411_v20  ;;  %v4008_v14 = vpop.f32.mrb[48].mxu0  ;;  %v18740_v20 = vld [vmem:[#allocation7 + $0x3e8] ss:$16 sps:$4 sm:$0xff]  }
 0x38d   :  { %v16791_v33 = vadd.f32 %v4008_v14, %v21831_v31  ;;  %v4010_v52 = vpop.f32.mrb[49].mxu0  ;;  %6247 = vmatpush1.bf16.msra.mxu1 %v18728_v63  ;;  %v18748_v63 = vld [vmem:[#allocation7 + $0x40c] ss:$16 sps:$4 sm:$0xff]   ;;  %v18746_v36 = vld [vmem:[#allocation7 + $0x408] ss:$16 sps:$4 sm:$0xff]  }
 0x38e   :  { %6965 = vmatpush1.bf16.msra.mxu0 %v18731_v35  ;;  %v16792_v23 = vadd.f32 %v4010_v52, %v21834_v59  ;;  %v4012_v26 = vpop.f32.mrb[50].mxu0  ;;  %6248 = vmatprep.subr.bf16.mxu1 %v18736_v16  ;;  %v18751_v35 = vld [vmem:[#allocation10 + $0x104] ss:$8 sps:$4 sm:$0xff]   ;;  %v18749_v52 = vld [vmem:[#allocation10 + $0x100] ss:$8 sps:$4 sm:$0xff]  }
 0x38f   :  { %6966 = vmatprep.subr.bf16.mxu0 %v18739_v18  ;;  %v4418_v4 = vmax.f32 %v16791_v33, 0.0  ;;  %v16793_v56 = vadd.f32 %v4012_v26, %v21831_v31  ;;  %v4014_v53 = vpop.f32.mrb[51].mxu0 }
 0x390   :  { %v4419_v32 = vmax.f32 %v16792_v23, 0.0  ;;  %v16794_v5 = vadd.f32 %v4014_v53, %v21834_v59  ;;  %6210 = vmatmul.mubr.bf16.gmra.mrb[124].mxu1 %v21617_v11  ;;  %v18754_v11 = vld [vmem:[#allocation7 + $0x42c] ss:$16 sps:$4 sm:$0xff]  }
 0x391   :  { %6097 = vmatmul.mubr.bf16.gmra.mrb[92].mxu0 %v21922_v47  ;;  %v4422_v42 = vmax.f32 %v16793_v56, 0.0  ;;  %6249 = vmatpush1.bf16.msra.mxu1 %v18734_v17  ;;  %v18757_v56 = vld [vmem:[#allocation10 + $0x114] ss:$8 sps:$4 sm:$0xff]  }
 0x392   :  { %6967 = vmatpush1.bf16.msra.mxu0 %v18737_v44  ;;  %v4423_v16 = vmax.f32 %v16794_v5, 0.0  ;;  %6970 = vmatprep.mubr.bf16.mxu0 %v21403_v37 }
 0x393   :  { %6250 = vmatprep.subr.bf16.mxu1 %v18742_v40  ;;  %v21931_v18 = vpack.c.bf16 %v4422_v42, %v4418_v4  ;;  %6968 = vmatprep.subr.bf16.mxu0 %v18745_v54  ;;  %v18752_v4 = vld [vmem:[#allocation7 + $0x428] ss:$16 sps:$4 sm:$0xff]  }
 0x394   :  { %6252 = vmatprep.mubr.bf16.mxu1 %v21620_v7  ;;  %v21934_v14 = vpack.c.bf16 %v4423_v16, %v4419_v32  ;;  %v4018_v33 = vpop.f32.mrb[52].mxu0  ;;  %v18763_v42 = vld [vmem:[#allocation10 + $0x124] ss:$8 sps:$4 sm:$0xff]  }
 0x395   :  { %v16795_v23 = vadd.f32 %v4018_v33, %v21831_v31  ;;  %v4020_v26 = vpop.f32.mrb[53].mxu0  ;;  %6251 = vmatpush1.bf16.msra.mxu1 %v18740_v20  ;;  %v18755_v20 = vld [vmem:[#allocation10 + $0x110] ss:$8 sps:$4 sm:$0xff]  }
 0x396   :  { %6969 = vmatpush1.bf16.msra.mxu0 %v18743_v46  ;;  %v16796_v17 = vadd.f32 %v4020_v26, %v21834_v59  ;;  %v4022_v37 = vpop.f32.mrb[54].mxu0  ;;  %6333 = vmatprep.subr.bf16.mxu1 %v18748_v63  ;;  %v18760_v46 = vld [vmem:[#allocation7 + $0x44c] ss:$16 sps:$4 sm:$0xff]  }
 0x397   :  { %7051 = vmatprep.subr.bf16.mxu0 %v18751_v35  ;;  %v4426_v44 = vmax.f32 %v16795_v23, 0.0  ;;  %v16797_v40 = vadd.f32 %v4022_v37, %v21831_v31  ;;  %v4024_v7 = vpop.f32.mrb[55].mxu0  ;;  %v18758_v35 = vld [vmem:[#allocation7 + $0x448] ss:$16 sps:$4 sm:$0xff]   ;;  %v18766_v33 = vld [vmem:[#allocation7 + $0x46c] ss:$16 sps:$4 sm:$0xff]  }
 0x398   :  { %v4427_v53 = vmax.f32 %v16796_v17, 0.0  ;;  %v16798_v54 = vadd.f32 %v4024_v7, %v21834_v59  ;;  %6253 = vmatmul.mubr.bf16.vlgmr.msra.gmra.mrb[96].mxu1 %v21628_v51  ;;  %v18764_v17 = vld [vmem:[#allocation7 + $0x468] ss:$16 sps:$4 sm:$0xff]   ;;  %v18767_v7 = vld [vmem:[#allocation10 + $0x130] ss:$8 sps:$4 sm:$0xff]  }
 0x399   :  { %6971 = vmatmul.mubr.bf16.vlgmr.msra.gmra.mrb[96].mxu0 %v21396_v62  ;;  %v4430_v32 = vmax.f32 %v16797_v40, 0.0  ;;  %6334 = vmatpush1.bf16.msra.mxu1 %v18746_v36  ;;  %v18761_v62 = vld [vmem:[#allocation10 + $0x120] ss:$8 sps:$4 sm:$0xff]   ;;  %v18769_v37 = vld [vmem:[#allocation10 + $0x134] ss:$8 sps:$4 sm:$0xff]  }
 0x39a   :  { %6980 = vmatprep.mubr.bf16.mxu0 %v21427_v10  ;;  %v4431_v5 = vmax.f32 %v16798_v54, 0.0  ;;  %7052 = vmatpush1.bf16.msra.mxu0 %v18749_v52 }
 0x39b   :  { %6335 = vmatprep.subr.bf16.mxu1 %v18754_v11  ;;  %v21943_v63 = vpack.c.bf16 %v4430_v32, %v4426_v44  ;;  %7053 = vmatprep.subr.bf16.mxu0 %v18757_v56 }
 0x39c   :  { %6262 = vmatprep.mubr.bf16.mxu1 %v21632_v22  ;;  %v21946_v16 = vpack.c.bf16 %v4431_v5, %v4427_v53  ;;  %v4028_v51 = vpop.f32.mrb[56].mxu0  ;;  %v18778_v5 = vld [vmem:[#allocation7 + $0x4ac] ss:$16 sps:$4 sm:$0xff]  }
 0x39d   :  { %v16799_v23 = vadd.f32 %v4028_v51, %v21831_v31  ;;  %v4030_v36 = vpop.f32.mrb[57].mxu0  ;;  %6336 = vmatpush1.bf16.msra.mxu1 %v18752_v4  ;;  %v18772_v4 = vld [vmem:[#allocation7 + $0x48c] ss:$16 sps:$4 sm:$0xff]  }
 0x39e   :  { %v16800_v10 = vadd.f32 %v4030_v36, %v21834_v59  ;;  %v4032_v52 = vpop.f32.mrb[58].mxu0  ;;  %7054 = vmatpush1.bf16.msra.mxu0 %v18755_v20  ;;  %6337 = vmatprep.subr.bf16.mxu1 %v18760_v46  ;;  %v18770_v20 = vld [vmem:[#allocation7 + $0x488] ss:$16 sps:$4 sm:$0xff]  }
 0x39f   :  { %v4434_v11 = vmax.f32 %v16799_v23, 0.0  ;;  %v16801_v26 = vadd.f32 %v4032_v52, %v21831_v31  ;;  %v4034_v22 = vpop.f32.mrb[59].mxu0  ;;  %7055 = vmatprep.subr.bf16.mxu0 %v18763_v42  ;;  %v18775_v46 = vld [vmem:[#allocation10 + $0x144] ss:$8 sps:$4 sm:$0xff]   ;;  %v18781_v36 = vld [vmem:[#allocation10 + $0x154] ss:$8 sps:$4 sm:$0xff]  }
 0x3a0   :  { %v4435_v44 = vmax.f32 %v16800_v10, 0.0  ;;  %v16802_v40 = vadd.f32 %v4034_v22, %v21834_v59  ;;  %6263 = vmatmul.mubr.bf16.gmra.mrb[100].mxu1 %v21641_v2  ;;  %v18776_v23 = vld [vmem:[#allocation7 + $0x4a8] ss:$16 sps:$4 sm:$0xff]  }
 0x3a1   :  { %6981 = vmatmul.mubr.bf16.gmra.mrb[100].mxu0 %v21420_v12  ;;  %v4438_v56 = vmax.f32 %v16801_v26, 0.0  ;;  %6338 = vmatpush1.bf16.msra.mxu1 %v18758_v35  ;;  %v18773_v12 = vld [vmem:[#allocation10 + $0x140] ss:$8 sps:$4 sm:$0xff]  }
 0x3a2   :  { %6990 = vmatprep.mubr.bf16.mxu0 %v21446_v24  ;;  %v4439_v53 = vmax.f32 %v16802_v40, 0.0  ;;  %7056 = vmatpush1.bf16.msra.mxu0 %v18761_v62  ;;  %v18784_v26 = vld [vmem:[#allocation7 + $0x4cc] ss:$16 sps:$4 sm:$0xff]   ;;  %v18788_v40 = vld [vmem:[#allocation7 + $0x4e8] ss:$16 sps:$4 sm:$0xff]  }
 0x3a3   :  { %6339 = vmatprep.subr.bf16.mxu1 %v18766_v33  ;;  %v21955_v54 = vpack.c.bf16 %v4438_v56, %v4434_v11  ;;  %7057 = vmatprep.subr.bf16.mxu0 %v18769_v37  ;;  %v18779_v11 = vld [vmem:[#allocation10 + $0x150] ss:$8 sps:$4 sm:$0xff]   ;;  %v18782_v37 = vld [vmem:[#allocation7 + $0x4c8] ss:$16 sps:$4 sm:$0xff]  }
 0x3a4   :  { %6272 = vmatprep.mubr.bf16.mxu1 %v21644_v6  ;;  %v21958_v32 = vpack.c.bf16 %v4439_v53, %v4435_v44  ;;  %v4038_v2 = vpop.f32.mrb[60].mxu0  ;;  %v18799_v56 = vld [vmem:[#allocation10 + $0x184] ss:$8 sps:$4 sm:$0xff]  }
 0x3a5   :  { %v16803_v42 = vadd.f32 %v4038_v2, %v21831_v31  ;;  %v4040_v35 = vpop.f32.mrb[61].mxu0  ;;  %6340 = vmatpush1.bf16.msra.mxu1 %v18764_v17  ;;  %v18794_v53 = vld [vmem:[#allocation7 + $0x508] ss:$16 sps:$4 sm:$0xff]  }
 0x3a6   :  { %v16804_v24 = vadd.f32 %v4040_v35, %v21834_v59  ;;  %v4042_v51 = vpop.f32.mrb[62].mxu0  ;;  %7058 = vmatpush1.bf16.msra.mxu0 %v18767_v7  ;;  %6341 = vmatprep.subr.bf16.mxu1 %v18772_v4  ;;  %v18791_v7 = vld [vmem:[#allocation10 + $0x170] ss:$8 sps:$4 sm:$0xff]   ;;  %v24551_v4 = vld [vmem:[#allocation76_spill] sm:$0xff] }
 0x3a7   :  { %v4442_v62 = vmax.f32 %v16803_v42, 0.0  ;;  %v16805_v33 = vadd.f32 %v4042_v51, %v21831_v31  ;;  %v4044_v6 = vpop.f32.mrb[63].mxu0  ;;  %7059 = vmatprep.subr.bf16.mxu0 %v18775_v46  ;;  %v18802_v46 = vld [vmem:[#allocation7 + $0x52c] ss:$16 sps:$4 sm:$0xff]   ;;  %v18806_v35 = vld [vmem:[#allocation7 + $0x548] ss:$16 sps:$4 sm:$0xff]  }
 0x3a8   :  { %v4443_v10 = vmax.f32 %v16804_v24, 0.0  ;;  %v16806_v52 = vadd.f32 %v4044_v6, %v21834_v59  ;;  %6273 = vmatmul.mubr.bf16.gmra.mrb[104].mxu1 %v21653_v13  ;;  %v18787_v59 = vld [vmem:[#allocation10 + $0x164] ss:$8 sps:$4 sm:$0xff]   ;;  %v18785_v13 = vld [vmem:[#allocation10 + $0x160] ss:$8 sps:$4 sm:$0xff]   ;;  %v24553_v2 = vld [vmem:[#allocation78_spill] sm:$0xff] }
 0x3a9   :  { %6991 = vmatmul.mubr.bf16.gmra.mrb[104].mxu0 %v21442_v49  ;;  %v4446_v22 = vmax.f32 %v16805_v33, 0.0  ;;  %6342 = vmatpush1.bf16.msra.mxu1 %v18770_v20  ;;  %v18790_v49 = vld [vmem:[#allocation7 + $0x4ec] ss:$16 sps:$4 sm:$0xff]   ;;  %v24555_v33 = vld [vmem:[#allocation69_spill] sm:$0xff]  ;;  %v18812_v6 = vld [vmem:[#allocation7 + $0x568] ss:$16 sps:$4 sm:$0xff]  }
 0x3aa   :  { %7000 = vmatprep.mubr.bf16.mxu0 %v21470_v30  ;;  %v4447_v17 = vmax.f32 %v16806_v52, 0.0  ;;  %7060 = vmatpush1.bf16.msra.mxu0 %v18773_v12  ;;  %v18793_v30 = vld [vmem:[#allocation10 + $0x174] ss:$8 sps:$4 sm:$0xff]   ;;  %v18797_v20 = vld [vmem:[#allocation10 + $0x180] ss:$8 sps:$4 sm:$0xff]  }
 0x3ab   :  { %6343 = vmatprep.subr.bf16.mxu1 %v18778_v5  ;;  %v21967_v31 = vpack.c.bf16 %v4446_v22, %v4442_v62  ;;  %7061 = vmatprep.subr.bf16.mxu0 %v18781_v36  ;;  %v18800_v12 = vld [vmem:[#allocation7 + $0x528] ss:$16 sps:$4 sm:$0xff]   ;;  %v18803_v5 = vld [vmem:[#allocation10 + $0x190] ss:$8 sps:$4 sm:$0xff]   ;;  %v18809_v24 = vld [vmem:[#allocation10 + $0x1a0] ss:$8 sps:$4 sm:$0xff]  }
 0x3ac   :  { %6282 = vmatprep.mubr.bf16.mxu1 %v21662_v39  ;;  %v21970_v44 = vpack.c.bf16 %v4447_v17, %v4443_v10  ;;  %v18796_v39 = vld [vmem:[#allocation7 + $0x50c] ss:$16 sps:$4 sm:$0xff]   ;;  %v24554_v62 = vld [vmem:[#allocation77_spill] sm:$0xff]  ;;  %v18818_v10 = vld [vmem:[#allocation7 + $0x588] ss:$16 sps:$4 sm:$0xff]  }
 0x3ad   :  { %6344 = vmatpush1.bf16.msra.mxu1 %v18776_v23  ;;  %v18808_v42 = vld [vmem:[#allocation7 + $0x54c] ss:$16 sps:$4 sm:$0xff]   ;;  %v24557_v22 = vld [vmem:[#allocation49_spill] sm:$0xff]  ;;  %v18824_v17 = vld [vmem:[#allocation7 + $0x5a8] ss:$16 sps:$4 sm:$0xff]  }
 0x3ae   :  { %7062 = vmatpush1.bf16.msra.mxu0 %v18779_v11  ;;  %6345 = vmatprep.subr.bf16.mxu1 %v18784_v26  ;;  %v18814_v51 = vld [vmem:[#allocation7 + $0x56c] ss:$16 sps:$4 sm:$0xff]  }
 0x3af   :  { %7063 = vmatprep.subr.bf16.mxu0 %v18787_v59  ;;  %v18815_v23 = vld [vmem:[#allocation10 + $0x1b0] ss:$8 sps:$4 sm:$0xff]   ;;  %v18821_v52 = vld [vmem:[#allocation10 + $0x1c0] ss:$8 sps:$4 sm:$0xff]  }
 0x3b0   :  { %6283 = vmatmul.mubr.bf16.gmra.mrb[108].mxu1 %v21677_v55  ;;  %v18805_v55 = vld [vmem:[#allocation10 + $0x194] ss:$8 sps:$4 sm:$0xff]   ;;  %v18820_v36 = vld [vmem:[#allocation7 + $0x58c] ss:$16 sps:$4 sm:$0xff]  }
 0x3b1   :  { %7001 = vmatmul.mubr.bf16.gmra.mrb[108].mxu0 %v21466_v25  ;;  %6346 = vmatpush1.bf16.msra.mxu1 %v18782_v37  ;;  %v24552_v25 = vld [vmem:[#allocation75_spill] sm:$0xff]  ;;  %v18826_v11 = vld [vmem:[#allocation7 + $0x5ac] ss:$16 sps:$4 sm:$0xff]  }
 0x3b2   :  { %7010 = vmatprep.mubr.bf16.mxu0 %v24551_v4  ;;  %7064 = vmatpush1.bf16.msra.mxu0 %v18785_v13  ;;  %v24556_v26 = vld [vmem:[#allocation48_spill] sm:$0xff]  ;;  %v18827_v37 = vld [vmem:[#allocation10 + $0x1d0] ss:$8 sps:$4 sm:$0xff]  }
 0x3b3   :  { %6347 = vmatprep.subr.bf16.mxu1 %v18790_v49  ;;  %7065 = vmatprep.subr.bf16.mxu0 %v18793_v30  ;;  %v18832_v59 = vld [vmem:[#allocation7 + $0x5cc] ss:$16 sps:$4 sm:$0xff]   ;;  %v18830_v13 = vld [vmem:[#allocation7 + $0x5c8] ss:$16 sps:$4 sm:$0xff]  }
 0x3b4   :  { %6292 = vmatprep.mubr.bf16.mxu1 %v21684_v21  ;;  %v18811_v21 = vld [vmem:[#allocation10 + $0x1a4] ss:$8 sps:$4 sm:$0xff]   ;;  %v18833_v49 = vld [vmem:[#allocation10 + $0x1e0] ss:$8 sps:$4 sm:$0xff]   ;;  %v24558_v30 = vld [vmem:[#allocation70_spill] sm:$0xff] }
 0x3b5   :  { %6348 = vmatpush1.bf16.msra.mxu1 %v18788_v40  ;;  %v18838_v40 = vld [vmem:[#allocation7 + $0x5ec] ss:$16 sps:$4 sm:$0xff]   ;;  %v18836_v4 = vld [vmem:[#allocation7 + $0x5e8] ss:$16 sps:$4 sm:$0xff]  }
 0x3b6   :  { %7066 = vmatpush1.bf16.msra.mxu0 %v18791_v7  ;;  %6349 = vmatprep.subr.bf16.mxu1 %v18796_v39  ;;  %v24559_v7 = vld [vmem:[#allocation51_spill] sm:$0xff]  ;;  %v18839_v39 = vld [vmem:[#allocation10 + $0x1f0] ss:$8 sps:$4 sm:$0xff]  }
 0x3b7   :  { %7067 = vmatprep.subr.bf16.mxu0 %v18799_v56  ;;  %v18844_v56 = vld [vmem:[#allocation12 + $0x4] ss:$8 sps:$4 sm:$0xff]  }
 0x3b8   :  { %6293 = vmatmul.mubr.bf16.gmra.mrb[112].mxu1 %v21697_v61  ;;  %v18817_v61 = vld [vmem:[#allocation10 + $0x1b4] ss:$8 sps:$4 sm:$0xff]  }
 0x3b9   :  { %7011 = vmatmul.mubr.bf16.gmra.mrb[112].mxu0 %v24552_v25  ;;  %6350 = vmatpush1.bf16.msra.mxu1 %v18794_v53  ;;  %v18842_v53 = vld [vmem:[#allocation12] ss:$8 sps:$4 sm:$0xff]   ;;  %v18845_v25 = vld [vmem:[#allocation12 + $0x10] ss:$8 sps:$4 sm:$0xff]  }
 0x3ba   :  { %7020 = vmatprep.mubr.bf16.mxu0 %v24553_v2  ;;  %7068 = vmatpush1.bf16.msra.mxu0 %v18797_v20  ;;  %v18847_v20 = vld [vmem:[#allocation12 + $0x14] ss:$8 sps:$4 sm:$0xff]   ;;  %v18850_v2 = vld [vmem:[#allocation12 + $0x24] ss:$8 sps:$4 sm:$0xff]  }
 0x3bb   :  { %6351 = vmatprep.subr.bf16.mxu1 %v18802_v46  ;;  %7069 = vmatprep.subr.bf16.mxu0 %v18805_v55  ;;  %v18914_v46 = vld [vmem:[#allocation15] ss:$8 sps:$4 sm:$0xff]   ;;  %v24560_v55 = vld [vmem:[#allocation50_spill] sm:$0xff] }
 0x3bc   :  { %6302 = vmatprep.mubr.bf16.mxu1 %v21704_v50  ;;  %v18823_v50 = vld [vmem:[#allocation10 + $0x1c4] ss:$8 sps:$4 sm:$0xff]  }
 0x3bd   :  { %6352 = vmatpush1.bf16.msra.mxu1 %v18800_v12  ;;  %v18920_v12 = vld [vmem:[#allocation15 + $0x10] ss:$8 sps:$4 sm:$0xff]  }
 0x3be   :  { %7070 = vmatpush1.bf16.msra.mxu0 %v18803_v5  ;;  %6353 = vmatprep.subr.bf16.mxu1 %v18808_v42  ;;  %v24561_v5 = vld [vmem:[#allocation53_spill] sm:$0xff]  ;;  %v24562_v42 = vld [vmem:[#allocation60_spill] sm:$0xff] }
 0x3bf   :  { %7071 = vmatprep.subr.bf16.mxu0 %v18811_v21  ;;  %v18848_v21 = vld [vmem:[#allocation12 + $0x20] ss:$8 sps:$4 sm:$0xff]  }
 0x3c0   :  { %6303 = vmatmul.mubr.bf16.gmra.mrb[116].mxu1 %v21717_v38  ;;  %v18829_v38 = vld [vmem:[#allocation10 + $0x1d4] ss:$8 sps:$4 sm:$0xff]  }
 0x3c1   :  { %7021 = vmatmul.mubr.bf16.gmra.mrb[116].mxu0 %v24554_v62  ;;  %6354 = vmatpush1.bf16.msra.mxu1 %v18806_v35  ;;  %v18853_v35 = vld [vmem:[#allocation12 + $0x34] ss:$8 sps:$4 sm:$0xff]   ;;  %v18851_v62 = vld [vmem:[#allocation12 + $0x30] ss:$8 sps:$4 sm:$0xff]  }
 0x3c2   :  { %7030 = vmatprep.mubr.bf16.mxu0 %v24555_v33  ;;  %7072 = vmatpush1.bf16.msra.mxu0 %v18809_v24  ;;  %v18926_v24 = vld [vmem:[#allocation15 + $0x20] ss:$8 sps:$4 sm:$0xff]  }
 0x3c3   :  { %6355 = vmatprep.subr.bf16.mxu1 %v18814_v51  ;;  %7073 = vmatprep.subr.bf16.mxu0 %v18817_v61  ;;  %v24563_v51 = vld [vmem:[#allocation63_spill] sm:$0xff]  ;;  %v24564_v61 = vld [vmem:[#allocation52_spill] sm:$0xff] }
 0x3c4   :  { %6312 = vmatprep.mubr.bf16.mxu1 %v21724_v27  ;;  %v18835_v27 = vld [vmem:[#allocation10 + $0x1e4] ss:$8 sps:$4 sm:$0xff]  }
 0x3c5   :  { %6356 = vmatpush1.bf16.msra.mxu1 %v18812_v6  ;;  %v18856_v33 = vld [vmem:[#allocation12 + $0x44] ss:$8 sps:$4 sm:$0xff]   ;;  %v18932_v6 = vld [vmem:[#allocation15 + $0x30] ss:$8 sps:$4 sm:$0xff]  }
 0x3c6   :  { %7074 = vmatpush1.bf16.msra.mxu0 %v18815_v23  ;;  %6357 = vmatprep.subr.bf16.mxu1 %v18820_v36  ;;  %v24565_v23 = vld [vmem:[#allocation55_spill] sm:$0xff]  ;;  %v18940_v36 = vld [vmem:[#allocation15 + $0x44] ss:$8 sps:$4 sm:$0xff]  }
 0x3c7   :  { %7075 = vmatprep.subr.bf16.mxu0 %v18823_v50  ;;  %v24566_v50 = vld [vmem:[#allocation65_spill] sm:$0xff] }
 0x3c8   :  { %6313 = vmatmul.mubr.bf16.gmra.mrb[120].mxu1 %v21737_v1  ;;  %v18841_v1 = vld [vmem:[#allocation10 + $0x1f4] ss:$8 sps:$4 sm:$0xff]  }
 0x3c9   :  { %7031 = vmatmul.mubr.bf16.gmra.mrb[120].mxu0 %v24556_v26  ;;  %6358 = vmatpush1.bf16.msra.mxu1 %v18818_v10  ;;  %v18854_v10 = vld [vmem:[#allocation12 + $0x40] ss:$8 sps:$4 sm:$0xff]   ;;  %v19939_v26 = vld [vmem:[#allocation6] sm:$0xf] }
 0x3ca   :  { %7040 = vmatprep.mubr.bf16.mxu0 %v24557_v22  ;;  %7076 = vmatpush1.bf16.msra.mxu0 %v18821_v52  ;;  %v18859_v52 = vld [vmem:[#allocation12 + $0x54] ss:$8 sps:$4 sm:$0xff]   ;;  %v24567_v22 = vld [vmem:[#allocation72_spill] sm:$0xff] }
 0x3cb   :  { %6359 = vmatprep.subr.bf16.mxu1 %v18826_v11  ;;  %7077 = vmatprep.subr.bf16.mxu0 %v18829_v38  ;;  %v18938_v11 = vld [vmem:[#allocation15 + $0x40] ss:$8 sps:$4 sm:$0xff]   ;;  %v18946_v38 = vld [vmem:[#allocation15 + $0x54] ss:$8 sps:$4 sm:$0xff]  }
 0x3cc   :  { %6322 = vmatprep.mubr.bf16.mxu1 %v21744_v8  ;;  %v18916_v8 = vld [vmem:[#allocation15 + $0x4] ss:$8 sps:$4 sm:$0xff]  }
 0x3cd   :  { %6360 = vmatpush1.bf16.msra.mxu1 %v18824_v17  ;;  %v22002_v17 = vrot.slane %v19939_v26, %v24567_v22 }
 0x3ce   :  { %7078 = vmatpush1.bf16.msra.mxu0 %v18827_v37  ;;  %6361 = vmatprep.subr.bf16.mxu1 %v18832_v59  ;;  %v24568_v37 = vld [vmem:[#allocation54_spill] sm:$0xff]  ;;  %v24569_v59 = vld [vmem:[#allocation73_spill] sm:$0xff] }
 0x3cf   :  { %7079 = vmatprep.subr.bf16.mxu0 %v18835_v27  ;;  %v22006_v27 = vrot.slane %v19939_v26, %v24569_v59 }
 0x3d0   :  { %6323 = vmatmul.mubr.bf16.gmra.mrb[124].mxu1 %v21757_v41  ;;  %v18922_v41 = vld [vmem:[#allocation15 + $0x14] ss:$8 sps:$4 sm:$0xff]  }
 0x3d1   :  { %7041 = vmatmul.mubr.bf16.gmra.mrb[124].mxu0 %v24558_v30  ;;  %6362 = vmatpush1.bf16.msra.mxu1 %v18830_v13  ;;  %v18857_v13 = vld [vmem:[#allocation12 + $0x50] ss:$8 sps:$4 sm:$0xff]  }
 0x3d2   :  { %7083 = vmatprep.mubr.bf16.mxu0 %v24559_v7  ;;  %7080 = vmatpush1.bf16.msra.mxu0 %v18833_v49  ;;  %v18862_v49 = vld [vmem:[#allocation12 + $0x64] ss:$8 sps:$4 sm:$0xff]  }
 0x3d3   :  { %6363 = vmatprep.subr.bf16.mxu1 %v18838_v40  ;;  %7081 = vmatprep.subr.bf16.mxu0 %v18841_v1  ;;  %v24570_v40 = vld [vmem:[#allocation57_spill] sm:$0xff] }
 0x3d4   :  { %6365 = vmatprep.mubr.bf16.mxu1 %v21764_v34  ;;  %v18928_v34 = vld [vmem:[#allocation15 + $0x24] ss:$8 sps:$4 sm:$0xff]   ;;  %v18944_v1 = vld [vmem:[#allocation15 + $0x50] ss:$8 sps:$4 sm:$0xff]  }
 0x3d5   :  { %6364 = vmatpush1.bf16.msra.mxu1 %v18836_v4  ;;  %v18952_v30 = vld [vmem:[#allocation15 + $0x64] ss:$8 sps:$4 sm:$0xff]  }
 0x3d6   :  { %7082 = vmatpush1.bf16.msra.mxu0 %v18839_v39  ;;  %7624 = vmatprep.subr.bf16.mxu1 %v18844_v56  ;;  %v18865_v56 = vld [vmem:[#allocation12 + $0x74] ss:$8 sps:$4 sm:$0xff]  }
 0x3d7   :  { %8310 = vmatprep.subr.bf16.mxu0 %v18916_v8 }
 0x3d8   :  { %6366 = vmatmul.mubr.bf16.vlgmr.msra.gmra.mrb[96].mxu1 %v21777_v29  ;;  %v18934_v29 = vld [vmem:[#allocation15 + $0x34] ss:$8 sps:$4 sm:$0xff]  }
 0x3d9   :  { %7084 = vmatmul.mubr.bf16.vlgmr.msra.gmra.mrb[96].mxu0 %v24560_v55  ;;  %7625 = vmatpush1.bf16.msra.mxu1 %v18842_v53  ;;  %v18958_v55 = vld [vmem:[#allocation15 + $0x74] ss:$8 sps:$4 sm:$0xff]  }
 0x3da   :  { %7093 = vmatprep.mubr.bf16.mxu0 %v24561_v5  ;;  %7626 = vmatprep.subr.bf16.mxu1 %v18847_v20  ;;  %v18950_v20 = vld [vmem:[#allocation15 + $0x60] ss:$8 sps:$4 sm:$0xff]  }
 0x3db   :  { %6375 = vmatprep.mubr.bf16.mxu1 %v24562_v42  ;;  %8311 = vmatpush1.bf16.msra.mxu0 %v18914_v46  ;;  %v24571_v42 = vld [vmem:[#allocation56_spill] sm:$0xff] }
 0x3dc   :  { %8312 = vmatprep.subr.bf16.mxu0 %v18922_v41 }
 0x3dd   :  { %7627 = vmatpush1.bf16.msra.mxu1 %v18845_v25 }
 0x3de   :  { %7628 = vmatprep.subr.bf16.mxu1 %v18850_v2 }
 0x3df   :  { %8313 = vmatpush1.bf16.msra.mxu0 %v18920_v12 }
 0x3e0   :  { %6376 = vmatmul.mubr.bf16.gmra.mrb[100].mxu1 %v24563_v51  ;;  %8314 = vmatprep.subr.bf16.mxu0 %v18928_v34  ;;  %v18964_v51 = vld [vmem:[#allocation15 + $0x84] ss:$8 sps:$4 sm:$0xff]  }
 0x3e1   :  { %7094 = vmatmul.mubr.bf16.gmra.mrb[100].mxu0 %v24564_v61  ;;  %7629 = vmatpush1.bf16.msra.mxu1 %v18848_v21  ;;  %v18868_v21 = vld [vmem:[#allocation12 + $0x84] ss:$8 sps:$4 sm:$0xff]  }
 0x3e2   :  { %7103 = vmatprep.mubr.bf16.mxu0 %v24565_v23  ;;  %7630 = vmatprep.subr.bf16.mxu1 %v18853_v35  ;;  %v18871_v23 = vld [vmem:[#allocation12 + $0x94] ss:$8 sps:$4 sm:$0xff]  }
 0x3e3   :  { %6385 = vmatprep.mubr.bf16.mxu1 %v24566_v50  ;;  %8315 = vmatpush1.bf16.msra.mxu0 %v18926_v24  ;;  %v24572_v24 = vld [vmem:[#allocation59_spill] sm:$0xff] }
 0x3e4   :  { %8316 = vmatprep.subr.bf16.mxu0 %v18934_v29  ;;  %v18956_v29 = vld [vmem:[#allocation15 + $0x70] ss:$8 sps:$4 sm:$0xff]  }
 0x3e5   :  { %7631 = vmatpush1.bf16.msra.mxu1 %v18851_v62 }
 0x3e6   :  { %7632 = vmatprep.subr.bf16.mxu1 %v18856_v33 }
 0x3e7   :  { %8317 = vmatpush1.bf16.msra.mxu0 %v18932_v6 }
 0x3e8   :  { %6386 = vmatmul.mubr.bf16.gmra.mrb[104].mxu1 %v21817_v45  ;;  %8318 = vmatprep.subr.bf16.mxu0 %v18940_v36  ;;  %v18860_v45 = vld [vmem:[#allocation12 + $0x60] ss:$8 sps:$4 sm:$0xff]  }
 0x3e9   :  { %7104 = vmatmul.mubr.bf16.gmra.mrb[104].mxu0 %v24568_v37  ;;  %7633 = vmatpush1.bf16.msra.mxu1 %v18854_v10  ;;  %v18962_v10 = vld [vmem:[#allocation15 + $0x80] ss:$8 sps:$4 sm:$0xff]  }
 0x3ea   :  { %7113 = vmatprep.mubr.bf16.mxu0 %v24570_v40  ;;  %7634 = vmatprep.subr.bf16.mxu1 %v18859_v52 }
 0x3eb   :  { %v4307_v7 = vpop.f32.mrb[64].mxu1  ;;  %6395 = vmatprep.mubr.bf16.mxu1 %v21824_v58  ;;  %8319 = vmatpush1.bf16.msra.mxu0 %v18938_v11  ;;  %v18863_v58 = vld [vmem:[#allocation12 + $0x70] ss:$8 sps:$4 sm:$0xff]  }
 0x3ec   :  { %v16807_v4 = vadd.f32 %v4307_v7, %v22002_v17  ;;  %v4309_v39 = vpop.f32.mrb[65].mxu1  ;;  %8320 = vmatprep.subr.bf16.mxu0 %v18946_v38  ;;  %v18967_v38 = vld [vmem:[#allocation15 + $0x94] ss:$8 sps:$4 sm:$0xff]  }
 0x3ed   :  { %v16808_v8 = vadd.f32 %v4309_v39, %v22006_v27  ;;  %v4311_v53 = vpop.f32.mrb[66].mxu1  ;;  %7635 = vmatpush1.bf16.msra.mxu1 %v18857_v13  ;;  %v18970_v39 = vld [vmem:[#allocation15 + $0xa4] ss:$8 sps:$4 sm:$0xff]  }
 0x3ee   :  { %v16809_v46 = vadd.f32 %v4311_v53, %v22002_v17  ;;  %v4313_v41 = vpop.f32.mrb[67].mxu1  ;;  %7636 = vmatprep.subr.bf16.mxu1 %v18862_v49  ;;  %v4388_v2 = vmax.f32 %v16807_v4, 0.0  ;;  %v18965_v4 = vld [vmem:[#allocation15 + $0x90] ss:$8 sps:$4 sm:$0xff]  }
 0x3ef   :  { %v16810_v25 = vadd.f32 %v4313_v41, %v22006_v27  ;;  %8321 = vmatpush1.bf16.msra.mxu0 %v18944_v1  ;;  %v4389_v5 = vmax.f32 %v16808_v8, 0.0  ;;  %v24573_v1 = vld [vmem:[#allocation58_spill] sm:$0xff] }
 0x3f0   :  { %v4392_v12 = vmax.f32 %v16809_v46, 0.0  ;;  %6396 = vmatmul.mubr.bf16.gmra.mrb[108].mxu1 %v21843_v43  ;;  %8322 = vmatprep.subr.bf16.mxu0 %v18952_v30  ;;  %v18866_v43 = vld [vmem:[#allocation12 + $0x80] ss:$8 sps:$4 sm:$0xff]   ;;  %v18874_v30 = vld [vmem:[#allocation12 + $0xa4] ss:$8 sps:$4 sm:$0xff]  }
 0x3f1   :  { %v4393_v34 = vmax.f32 %v16810_v25, 0.0  ;;  %7114 = vmatmul.mubr.bf16.gmra.mrb[108].mxu0 %v24571_v42  ;;  %7637 = vmatpush1.bf16.msra.mxu1 %v18860_v45  ;;  %v24574_v45 = vld [vmem:[#allocation62_spill] sm:$0xff]  ;;  %v18968_v25 = vld [vmem:[#allocation15 + $0xa0] ss:$8 sps:$4 sm:$0xff]  }
 0x3f2   :  { %v22016_v35 = vpack.c.bf16 %v4392_v12, %v4388_v2  ;;  %7123 = vmatprep.mubr.bf16.mxu0 %v24572_v24  ;;  %7638 = vmatprep.subr.bf16.mxu1 %v18865_v56  ;;  %v18877_v46 = vld [vmem:[#allocation12 + $0xb4] ss:$8 sps:$4 sm:$0xff]  }
 0x3f3   :  { %v22019_v61 = vpack.c.bf16 %v4393_v34, %v4389_v5  ;;  %v4317_v62 = vpop.f32.mrb[68].mxu1  ;;  %6405 = vmatprep.mubr.bf16.mxu1 %v21849_v19  ;;  %8323 = vmatpush1.bf16.msra.mxu0 %v18950_v20  ;;  %v18869_v19 = vld [vmem:[#allocation12 + $0x90] ss:$8 sps:$4 sm:$0xff]  }
 0x3f4   :  { %v16811_v33 = vadd.f32 %v4317_v62, %v22002_v17  ;;  %v4319_v6 = vpop.f32.mrb[69].mxu1  ;;  %8324 = vmatprep.subr.bf16.mxu0 %v18958_v55  ;;  %v18973_v12 = vld [vmem:[#allocation15 + $0xb4] ss:$8 sps:$4 sm:$0xff]  }
 0x3f5   :  { %v16812_v36 = vadd.f32 %v4319_v6, %v22006_v27  ;;  %v4321_v50 = vpop.f32.mrb[70].mxu1  ;;  %7639 = vmatpush1.bf16.msra.mxu1 %v18863_v58  ;;  %v18976_v6 = vld [vmem:[#allocation15 + $0xc4] ss:$8 sps:$4 sm:$0xff]  }
 0x3f6   :  { %v16813_v52 = vadd.f32 %v4321_v50, %v22002_v17  ;;  %v4323_v11 = vpop.f32.mrb[71].mxu1  ;;  %7640 = vmatprep.subr.bf16.mxu1 %v18868_v21  ;;  %v4396_v37 = vmax.f32 %v16811_v33, 0.0  ;;  %v18971_v33 = vld [vmem:[#allocation15 + $0xb0] ss:$8 sps:$4 sm:$0xff]  }
 0x3f7   :  { %v16814_v26 = vadd.f32 %v4323_v11, %v22006_v27  ;;  %8325 = vmatpush1.bf16.msra.mxu0 %v18956_v29  ;;  %v4397_v49 = vmax.f32 %v16812_v36, 0.0  ;;  %v24575_v29 = vld [vmem:[#allocation61_spill] sm:$0xff] }
 0x3f8   :  { %v4400_v13 = vmax.f32 %v16813_v52, 0.0  ;;  %6406 = vmatmul.mubr.bf16.gmra.mrb[112].mxu1 %v21863_v9  ;;  %8326 = vmatprep.subr.bf16.mxu0 %v18964_v51  ;;  %v18872_v9 = vld [vmem:[#allocation12 + $0xa0] ss:$8 sps:$4 sm:$0xff]   ;;  %v18880_v51 = vld [vmem:[#allocation12 + $0xc4] ss:$8 sps:$4 sm:$0xff]  }
 0x3f9   :  { %v4401_v40 = vmax.f32 %v16814_v26, 0.0  ;;  %7124 = vmatmul.mubr.bf16.gmra.mrb[112].mxu0 %v24573_v1  ;;  %7641 = vmatpush1.bf16.msra.mxu1 %v18866_v43  ;;  %v24576_v43 = vld [vmem:[#allocation71_spill] sm:$0xff] }
 0x3fa   :  { %v22028_v7 = vpack.c.bf16 %v4400_v13, %v4396_v37  ;;  %7133 = vmatprep.mubr.bf16.mxu0 %v24574_v45  ;;  %7642 = vmatprep.subr.bf16.mxu1 %v18871_v23  ;;  %v18883_v52 = vld [vmem:[#allocation12 + $0xd4] ss:$8 sps:$4 sm:$0xff]   ;;  %v18974_v26 = vld [vmem:[#allocation15 + $0xc0] ss:$8 sps:$4 sm:$0xff]  }
 0x3fb   :  { %v22031_v56 = vpack.c.bf16 %v4401_v40, %v4397_v49  ;;  %v4327_v8 = vpop.f32.mrb[72].mxu1  ;;  %6415 = vmatprep.mubr.bf16.mxu1 %v21869_v15  ;;  %8327 = vmatpush1.bf16.msra.mxu0 %v18962_v10  ;;  %v18875_v15 = vld [vmem:[#allocation12 + $0xb0] ss:$8 sps:$4 sm:$0xff]  }
 0x3fc   :  { %v16815_v53 = vadd.f32 %v4327_v8, %v22002_v17  ;;  %v4329_v20 = vpop.f32.mrb[73].mxu1  ;;  %8328 = vmatprep.subr.bf16.mxu0 %v18967_v38  ;;  %v18979_v13 = vld [vmem:[#allocation15 + $0xd4] ss:$8 sps:$4 sm:$0xff]  }
 0x3fd   :  { %v16816_v41 = vadd.f32 %v4329_v20, %v22006_v27  ;;  %v4331_v55 = vpop.f32.mrb[74].mxu1  ;;  %7643 = vmatpush1.bf16.msra.mxu1 %v18869_v19  ;;  %v18982_v20 = vld [vmem:[#allocation15 + $0xe4] ss:$8 sps:$4 sm:$0xff]  }
 0x3fe   :  { %v16817_v58 = vadd.f32 %v4331_v55, %v22002_v17  ;;  %v4333_v2 = vpop.f32.mrb[75].mxu1  ;;  %7644 = vmatprep.subr.bf16.mxu1 %v18874_v30  ;;  %v4404_v34 = vmax.f32 %v16815_v53, 0.0  ;;  %v18977_v53 = vld [vmem:[#allocation15 + $0xd0] ss:$8 sps:$4 sm:$0xff]  }
 0x3ff   :  { %v16818_v5 = vadd.f32 %v4333_v2, %v22006_v27  ;;  %8329 = vmatpush1.bf16.msra.mxu0 %v18965_v4  ;;  %v4405_v21 = vmax.f32 %v16816_v41, 0.0  ;;  %v24577_v4 = vld [vmem:[#allocation66_spill] sm:$0xff] }
 0x400   :  { %v4408_v42 = vmax.f32 %v16817_v58, 0.0  ;;  %6416 = vmatmul.mubr.bf16.gmra.mrb[116].mxu1 %v21883_v0  ;;  %8330 = vmatprep.subr.bf16.mxu0 %v18970_v39  ;;  %v18878_v0 = vld [vmem:[#allocation12 + $0xc0] ss:$8 sps:$4 sm:$0xff]   ;;  %v18886_v39 = vld [vmem:[#allocation12 + $0xe4] ss:$8 sps:$4 sm:$0xff]  }
 0x401   :  { %v4409_v24 = vmax.f32 %v16818_v5, 0.0  ;;  %7134 = vmatmul.mubr.bf16.gmra.mrb[116].mxu0 %v24575_v29  ;;  %7645 = vmatpush1.bf16.msra.mxu1 %v18872_v9  ;;  %v24578_v9 = vld [vmem:[#allocation79_spill] sm:$0xff] }
 0x402   :  { %v22040_v62 = vpack.c.bf16 %v4408_v42, %v4404_v34  ;;  %7143 = vmatprep.mubr.bf16.mxu0 %v24576_v43  ;;  %7646 = vmatprep.subr.bf16.mxu1 %v18877_v46  ;;  %v18889_v58 = vld [vmem:[#allocation12 + $0xf4] ss:$8 sps:$4 sm:$0xff]   ;;  %v18980_v5 = vld [vmem:[#allocation15 + $0xe0] ss:$8 sps:$4 sm:$0xff]  }
 0x403   :  { %v22043_v23 = vpack.c.bf16 %v4409_v24, %v4405_v21  ;;  %v4337_v36 = vpop.f32.mrb[76].mxu1  ;;  %6425 = vmatprep.mubr.bf16.mxu1 %v21889_v57  ;;  %8331 = vmatpush1.bf16.msra.mxu0 %v18968_v25  ;;  %v18881_v57 = vld [vmem:[#allocation12 + $0xd0] ss:$8 sps:$4 sm:$0xff]  }
 0x404   :  { %v16819_v50 = vadd.f32 %v4337_v36, %v22002_v17  ;;  %v4339_v10 = vpop.f32.mrb[77].mxu1  ;;  %8332 = vmatprep.subr.bf16.mxu0 %v18973_v12  ;;  %v18985_v24 = vld [vmem:[#allocation15 + $0xf4] ss:$8 sps:$4 sm:$0xff]   ;;  %v24580_v36 = vld [vmem:[#allocation81_spill] sm:$0xff] }
 0x405   :  { %v16820_v11 = vadd.f32 %v4339_v10, %v22006_v27  ;;  %v4341_v38 = vpop.f32.mrb[78].mxu1  ;;  %7647 = vmatpush1.bf16.msra.mxu1 %v18875_v15  ;;  %v24579_v43 = vld [vmem:[#allocation74_spill] sm:$0xff] }
 0x406   :  { %v16821_v19 = vadd.f32 %v4341_v38, %v22002_v17  ;;  %v4343_v37 = vpop.f32.mrb[79].mxu1  ;;  %7648 = vmatprep.subr.bf16.mxu1 %v18880_v51  ;;  %v4412_v40 = vmax.f32 %v16819_v50, 0.0  ;;  %v18988_v38 = vld [vmem:[#allocation15 + $0x104] ss:$8 sps:$4 sm:$0xff]  }
 0x407   :  { %v16822_v49 = vadd.f32 %v4343_v37, %v22006_v27  ;;  %8333 = vmatpush1.bf16.msra.mxu0 %v18971_v33  ;;  %v4413_v30 = vmax.f32 %v16820_v11, 0.0  ;;  %v18887_v33 = vld [vmem:[#allocation12 + $0xf0] ss:$8 sps:$4 sm:$0xff]   ;;  %v18890_v37 = vld [vmem:[#allocation12 + $0x100] ss:$8 sps:$4 sm:$0xff]  }
 0x408   :  { %v4416_v1 = vmax.f32 %v16821_v19, 0.0  ;;  %6426 = vmatmul.mubr.bf16.gmra.mrb[120].mxu1 %v21903_v48  ;;  %8334 = vmatprep.subr.bf16.mxu0 %v18976_v6  ;;  %v18884_v48 = vld [vmem:[#allocation12 + $0xe0] ss:$8 sps:$4 sm:$0xff]  }
 0x409   :  { %v4417_v45 = vmax.f32 %v16822_v49, 0.0  ;;  %7144 = vmatmul.mubr.bf16.gmra.mrb[120].mxu0 %v24577_v4  ;;  %7649 = vmatpush1.bf16.msra.mxu1 %v18878_v0  ;;  %v18892_v0 = vld [vmem:[#allocation12 + $0x104] ss:$8 sps:$4 sm:$0xff]  }
 0x40a   :  { %v22052_v8 = vpack.c.bf16 %v4416_v1, %v4412_v40  ;;  %7153 = vmatprep.mubr.bf16.mxu0 %v24578_v9  ;;  %7650 = vmatprep.subr.bf16.mxu1 %v18883_v52  ;;  %v18983_v52 = vld [vmem:[#allocation15 + $0xf0] ss:$8 sps:$4 sm:$0xff]   ;;  %v24581_v4 = vld [vmem:[#allocation80_spill] sm:$0xff] }
 0x40b   :  { %v22055_v46 = vpack.c.bf16 %v4417_v45, %v4413_v30  ;;  %v4347_v41 = vpop.f32.mrb[80].mxu1  ;;  %6435 = vmatprep.mubr.bf16.mxu1 %v21909_v3  ;;  %8335 = vmatpush1.bf16.msra.mxu0 %v18974_v26  ;;  %v18893_v1 = vld [vmem:[#allocation12 + $0x110] ss:$8 sps:$4 sm:$0xff]  }
 0x40c   :  { %v16823_v55 = vadd.f32 %v4347_v41, %v22002_v17  ;;  %v4349_v25 = vpop.f32.mrb[81].mxu1  ;;  %8336 = vmatprep.subr.bf16.mxu0 %v18979_v13 }
 0x40d   :  { %v16824_v2 = vadd.f32 %v4349_v25, %v22006_v27  ;;  %v4351_v12 = vpop.f32.mrb[82].mxu1  ;;  %7651 = vmatpush1.bf16.msra.mxu1 %v18881_v57  ;;  %v18895_v57 = vld [vmem:[#allocation12 + $0x114] ss:$8 sps:$4 sm:$0xff]   ;;  %v18896_v25 = vld [vmem:[#allocation12 + $0x120] ss:$8 sps:$4 sm:$0xff]  }
 0x40e   :  { %v16825_v15 = vadd.f32 %v4351_v12, %v22002_v17  ;;  %v4353_v34 = vpop.f32.mrb[83].mxu1  ;;  %7652 = vmatprep.subr.bf16.mxu1 %v18886_v39  ;;  %v4420_v3 = vmax.f32 %v16823_v55, 0.0  ;;  %v18898_v39 = vld [vmem:[#allocation12 + $0x124] ss:$8 sps:$4 sm:$0xff]   ;;  %v18901_v12 = vld [vmem:[#allocation12 + $0x134] ss:$8 sps:$4 sm:$0xff]  }
 0x40f   :  { %v16826_v42 = vadd.f32 %v4353_v34, %v22006_v27  ;;  %8337 = vmatpush1.bf16.msra.mxu0 %v18977_v53  ;;  %v4421_v29 = vmax.f32 %v16824_v2, 0.0 }
 0x410   :  { %v4424_v21 = vmax.f32 %v16825_v15, 0.0  ;;  %6436 = vmatmul.mubr.bf16.gmra.mrb[124].mxu1 %v21922_v47  ;;  %8338 = vmatprep.subr.bf16.mxu0 %v18982_v20  ;;  %v24582_v20 = vld [vmem:[#allocation83_spill] sm:$0xff] }
 0x411   :  { %v4425_v51 = vmax.f32 %v16826_v42, 0.0  ;;  %7154 = vmatmul.mubr.bf16.gmra.mrb[124].mxu0 %v24579_v43  ;;  %7653 = vmatpush1.bf16.msra.mxu1 %v18884_v48  ;;  %v18904_v43 = vld [vmem:[#allocation12 + $0x144] ss:$8 sps:$4 sm:$0xff]  }
 0x412   :  { %v22064_v6 = vpack.c.bf16 %v4424_v21, %v4420_v3  ;;  %7656 = vmatprep.mubr.bf16.mxu1 %v24580_v36  ;;  %7654 = vmatprep.subr.bf16.mxu1 %v18889_v58  ;;  %v18899_v21 = vld [vmem:[#allocation12 + $0x130] ss:$8 sps:$4 sm:$0xff]  }
 0x413   :  { %v22067_v50 = vpack.c.bf16 %v4425_v51, %v4421_v29  ;;  %v4357_v10 = vpop.f32.mrb[84].mxu1  ;;  %8339 = vmatpush1.bf16.msra.mxu0 %v18980_v5  ;;  %v24583_v51 = vld [vmem:[#allocation82_spill] sm:$0xff] }
 0x414   :  { %v16827_v47 = vadd.f32 %v4357_v10, %v22002_v17  ;;  %v4359_v11 = vpop.f32.mrb[85].mxu1  ;;  %8340 = vmatprep.subr.bf16.mxu0 %v18985_v24 }
 0x415   :  { %v16828_v26 = vadd.f32 %v4359_v11, %v22006_v27  ;;  %v4361_v19 = vpop.f32.mrb[86].mxu1  ;;  %7655 = vmatpush1.bf16.msra.mxu1 %v18887_v33  ;;  %v18902_v11 = vld [vmem:[#allocation12 + $0x140] ss:$8 sps:$4 sm:$0xff]  }
 0x416   :  { %v16829_v13 = vadd.f32 %v4361_v19, %v22002_v17  ;;  %v4363_v49 = vpop.f32.mrb[87].mxu1  ;;  %7737 = vmatprep.subr.bf16.mxu1 %v18892_v0  ;;  %v4428_v30 = vmax.f32 %v16827_v47, 0.0  ;;  %v24584_v0 = vld [vmem:[#allocation85_spill] sm:$0xff] }
 0x417   :  { %v16830_v40 = vadd.f32 %v4363_v49, %v22006_v27  ;;  %8341 = vmatpush1.bf16.msra.mxu0 %v18983_v52  ;;  %v4429_v9 = vmax.f32 %v16828_v26, 0.0 }
 0x418   :  { %v4432_v45 = vmax.f32 %v16829_v13, 0.0  ;;  %7657 = vmatmul.mubr.bf16.vlgmr.msra.gmra.mrb[128].mxu1 %v24581_v4  ;;  %8423 = vmatprep.subr.bf16.mxu0 %v18988_v38  ;;  %v4786_v38 = vld [vmem:[#allocation9] sm:$0xf] }
 0x419   :  { %v4433_v53 = vmax.f32 %v16830_v40, 0.0  ;;  %7666 = vmatprep.mubr.bf16.mxu1 %v24582_v20  ;;  %7738 = vmatpush1.bf16.msra.mxu1 %v18890_v37  ;;  %v18907_v37 = vld [vmem:[#allocation12 + $0x154] ss:$8 sps:$4 sm:$0xff]  }
 0x41a   :  { %v22075_v41 = vpack.c.bf16 %v4432_v45, %v4428_v30  ;;  %7739 = vmatprep.subr.bf16.mxu1 %v18895_v57  ;;  %v18905_v30 = vld [vmem:[#allocation12 + $0x150] ss:$8 sps:$4 sm:$0xff]  }
 0x41b   :  { %v22077_v48 = vpack.c.bf16 %v4433_v53, %v4429_v9  ;;  %v4367_v55 = vpop.f32.mrb[88].mxu1  ;;  %v24586_v9 = vld [vmem:[#allocation67_spill] sm:$0xff] }
 0x41c   :  { %v16831_v58 = vadd.f32 %v4367_v55, %v22002_v17  ;;  %v4369_v2 = vpop.f32.mrb[89].mxu1  ;;  %v22095_v53 = vrot.slane %v4786_v38, %v24586_v9 }
 0x41d   :  { %v16832_v5 = vadd.f32 %v4369_v2, %v22006_v27  ;;  %v4371_v15 = vpop.f32.mrb[90].mxu1  ;;  %7740 = vmatpush1.bf16.msra.mxu1 %v18893_v1 }
 0x41e   :  { %v16833_v34 = vadd.f32 %v4371_v15, %v22002_v17  ;;  %v4373_v42 = vpop.f32.mrb[91].mxu1  ;;  %7741 = vmatprep.subr.bf16.mxu1 %v18898_v39  ;;  %v4436_v24 = vmax.f32 %v16831_v58, 0.0  ;;  %v24585_v39 = vld [vmem:[#allocation84_spill] sm:$0xff] }
 0x41f   :  { %v16834_v3 = vadd.f32 %v4373_v42, %v22006_v27  ;;  %v4437_v33 = vmax.f32 %v16832_v5, 0.0 }
 0x420   :  { %v4440_v29 = vmax.f32 %v16833_v34, 0.0  ;;  %7667 = vmatmul.mubr.bf16.gmra.mrb[132].mxu1 %v24583_v51  ;;  %v18908_v34 = vld [vmem:[#allocation12 + $0x160] ss:$8 sps:$4 sm:$0xff]   ;;  %v18911_v51 = vld [vmem:[#allocation12 + $0x170] ss:$8 sps:$4 sm:$0xff]  }
 0x421   :  { %v4441_v36 = vmax.f32 %v16834_v3, 0.0  ;;  %7676 = vmatprep.mubr.bf16.mxu1 %v24584_v0  ;;  %7742 = vmatpush1.bf16.msra.mxu1 %v18896_v25  ;;  %v24587_v25 = vld [vmem:[#allocation68_spill] sm:$0xff] }
 0x422   :  { %v22085_v10 = vpack.c.bf16 %v4440_v29, %v4436_v24  ;;  %7743 = vmatprep.subr.bf16.mxu1 %v18901_v12  ;;  %v22099_v58 = vrot.slane %v4786_v38, %v24587_v25 }
 0x423   :  { %v22087_v52 = vpack.c.bf16 %v4441_v36, %v4437_v33  ;;  %v4377_v47 = vpop.f32.mrb[92].mxu1  ;;  %v18919_v36 = vld [vmem:[#allocation12 + $0x184] ss:$8 sps:$4 sm:$0xff]  }
 0x424   :  { %v16835_v26 = vadd.f32 %v4377_v47, %v22002_v17  ;;  %v4379_v19 = vpop.f32.mrb[93].mxu1 }
 0x425   :  { %v16836_v13 = vadd.f32 %v4379_v19, %v22006_v27  ;;  %v4381_v49 = vpop.f32.mrb[94].mxu1  ;;  %7744 = vmatpush1.bf16.msra.mxu1 %v18899_v21  ;;  %v18917_v19 = vld [vmem:[#allocation12 + $0x180] ss:$8 sps:$4 sm:$0xff]  }
 0x426   :  { %v16837_v57 = vadd.f32 %v4381_v49, %v22002_v17  ;;  %v4383_v40 = vpop.f32.mrb[95].mxu1  ;;  %7745 = vmatprep.subr.bf16.mxu1 %v18904_v43  ;;  %v4444_v45 = vmax.f32 %v16835_v26, 0.0  ;;  %v18991_v26 = vld [vmem:[#allocation15 + $0x114] ss:$8 sps:$4 sm:$0xff]  }
 0x427   :  { %v16838_v1 = vadd.f32 %v4383_v40, %v22006_v27  ;;  %v4445_v20 = vmax.f32 %v16836_v13, 0.0  ;;  %v18910_v27 = vld [vmem:[#allocation12 + $0x164] ss:$8 sps:$4 sm:$0xff]   ;;  %v18925_v49 = vld [vmem:[#allocation12 + $0x194] ss:$8 sps:$4 sm:$0xff]  }
 0x428   :  { %v4448_v4 = vmax.f32 %v16837_v57, 0.0  ;;  %7677 = vmatmul.mubr.bf16.gmra.mrb[136].mxu1 %v24585_v39  ;;  %v18994_v39 = vld [vmem:[#allocation15 + $0x124] ss:$8 sps:$4 sm:$0xff]  }
 0x429   :  { %v4449_v55 = vmax.f32 %v16838_v1, 0.0  ;;  %7686 = vmatprep.mubr.bf16.mxu1 %v21920_v28  ;;  %7746 = vmatpush1.bf16.msra.mxu1 %v18902_v11  ;;  %v18913_v28 = vld [vmem:[#allocation12 + $0x174] ss:$8 sps:$4 sm:$0xff]   ;;  %v18986_v11 = vld [vmem:[#allocation15 + $0x100] ss:$8 sps:$4 sm:$0xff]  }
 0x42a   :  { %v22101_v17 = vpack.c.bf16 %v4448_v4, %v4444_v45  ;;  %7747 = vmatprep.subr.bf16.mxu1 %v18907_v37 }
 0x42b   :  { %v22103_v2 = vpack.c.bf16 %v4449_v55, %v4445_v20  ;;  %v18923_v20 = vld [vmem:[#allocation12 + $0x190] ss:$8 sps:$4 sm:$0xff]  }
 0x42c   :  { %v6028_v12 = vpop.f32.mrb[64].mxu0 }
 0x42d   :  { %v16839_v5 = vadd.f32 %v6028_v12, %v22095_v53  ;;  %v6030_v15 = vpop.f32.mrb[65].mxu0  ;;  %7748 = vmatpush1.bf16.msra.mxu1 %v18905_v30  ;;  %v18989_v30 = vld [vmem:[#allocation15 + $0x110] ss:$8 sps:$4 sm:$0xff]   ;;  %v18931_v12 = vld [vmem:[#allocation12 + $0x1a4] ss:$8 sps:$4 sm:$0xff]  }
 0x42e   :  { %v16840_v42 = vadd.f32 %v6030_v15, %v22099_v58  ;;  %v6032_v3 = vpop.f32.mrb[66].mxu0  ;;  %7749 = vmatprep.subr.bf16.mxu1 %v18910_v27 }
 0x42f   :  { %v6446_v21 = vmax.f32 %v16839_v5, 0.0  ;;  %v16841_v24 = vadd.f32 %v6032_v3, %v22095_v53  ;;  %v6034_v29 = vpop.f32.mrb[67].mxu0  ;;  %v18997_v3 = vld [vmem:[#allocation15 + $0x134] ss:$8 sps:$4 sm:$0xff]  }
 0x430   :  { %v6447_v43 = vmax.f32 %v16840_v42, 0.0  ;;  %v16842_v33 = vadd.f32 %v6034_v29, %v22099_v58  ;;  %7687 = vmatmul.mubr.bf16.gmra.mrb[140].mxu1 %v21916_v60  ;;  %v18937_v29 = vld [vmem:[#allocation12 + $0x1b4] ss:$8 sps:$4 sm:$0xff]  }
 0x431   :  { %v6450_v0 = vmax.f32 %v16841_v24, 0.0  ;;  %7696 = vmatprep.mubr.bf16.mxu1 %v21934_v14  ;;  %7750 = vmatpush1.bf16.msra.mxu1 %v18908_v34  ;;  %v18992_v34 = vld [vmem:[#allocation15 + $0x120] ss:$8 sps:$4 sm:$0xff]  }
 0x432   :  { %v6451_v47 = vmax.f32 %v16842_v33, 0.0  ;;  %7751 = vmatprep.subr.bf16.mxu1 %v18913_v28  ;;  %v18929_v28 = vld [vmem:[#allocation12 + $0x1a0] ss:$8 sps:$4 sm:$0xff]  }
 0x433   :  { %v7882_v38 = vpack.c.bf16 %v6450_v0, %v6446_v21 }
 0x434   :  { %v7883_v37 = vpack.c.bf16 %v6451_v47, %v6447_v43  ;;  %v6038_v13 = vpop.f32.mrb[68].mxu0 }
 0x435   :  { %v16843_v57 = vadd.f32 %v6038_v13, %v22095_v53  ;;  %v6040_v40 = vpop.f32.mrb[69].mxu0  ;;  %7752 = vmatpush1.bf16.msra.mxu1 %v18911_v51 }
 0x436   :  { %v16844_v60 = vadd.f32 %v6040_v40, %v22099_v58  ;;  %v6042_v1 = vpop.f32.mrb[70].mxu0  ;;  %8342 = vmatprep.mubr.bf16.mxu0 %v7883_v37  ;;  %7753 = vmatprep.subr.bf16.mxu1 %v18919_v36  ;;  %v18943_v37 = vld [vmem:[#allocation12 + $0x1c4] ss:$8 sps:$4 sm:$0xff]  }
 0x437   :  { %v6454_v14 = vmax.f32 %v16843_v57, 0.0  ;;  %v16845_v45 = vadd.f32 %v6042_v1, %v22095_v53  ;;  %v6044_v4 = vpop.f32.mrb[71].mxu0  ;;  %8343 = vmatmul.mubr.bf16.vlgmr.msra.gmra.mrb[128].mxu0 %v7882_v38  ;;  %v18935_v38 = vld [vmem:[#allocation12 + $0x1b0] ss:$8 sps:$4 sm:$0xff]   ;;  %v18998_v57 = vld [vmem:[#allocation15 + $0x140] ss:$8 sps:$4 sm:$0xff]  }
 0x438   :  { %v6455_v55 = vmax.f32 %v16844_v60, 0.0  ;;  %v16846_v27 = vadd.f32 %v6044_v4, %v22099_v58  ;;  %8424 = vmatpush1.bf16.msra.mxu0 %v18986_v11  ;;  %7697 = vmatmul.mubr.bf16.gmra.mrb[144].mxu1 %v21931_v18  ;;  %v19000_v11 = vld [vmem:[#allocation15 + $0x144] ss:$8 sps:$4 sm:$0xff]   ;;  %v19003_v60 = vld [vmem:[#allocation15 + $0x154] ss:$8 sps:$4 sm:$0xff]  }
 0x439   :  { %v6458_v5 = vmax.f32 %v16845_v45, 0.0  ;;  %8425 = vmatprep.subr.bf16.mxu0 %v18991_v26  ;;  %7706 = vmatprep.mubr.bf16.mxu1 %v21946_v16  ;;  %v18995_v16 = vld [vmem:[#allocation15 + $0x130] ss:$8 sps:$4 sm:$0xff]   ;;  %v18941_v1 = vld [vmem:[#allocation12 + $0x1c0] ss:$8 sps:$4 sm:$0xff]  }
 0x43a   :  { %7754 = vmatpush1.bf16.msra.mxu1 %v18917_v19  ;;  %v6459_v15 = vmax.f32 %v16846_v27, 0.0  ;;  %v18949_v45 = vld [vmem:[#allocation12 + $0x1d4] ss:$8 sps:$4 sm:$0xff]  }
 0x43b   :  { %7755 = vmatprep.subr.bf16.mxu1 %v18925_v49  ;;  %v7886_v42 = vpack.c.bf16 %v6458_v5, %v6454_v14  ;;  %v19006_v5 = vld [vmem:[#allocation15 + $0x164] ss:$8 sps:$4 sm:$0xff]  }
 0x43c   :  { %v7887_v21 = vpack.c.bf16 %v6459_v15, %v6455_v55  ;;  %v6048_v24 = vpop.f32.mrb[72].mxu0  ;;  %8426 = vmatpush1.bf16.msra.mxu0 %v18989_v30  ;;  %v18947_v15 = vld [vmem:[#allocation12 + $0x1d0] ss:$8 sps:$4 sm:$0xff]  }
 0x43d   :  { %v16847_v51 = vadd.f32 %v6048_v24, %v22095_v53  ;;  %v6050_v43 = vpop.f32.mrb[73].mxu0  ;;  %8427 = vmatprep.subr.bf16.mxu0 %v18994_v39  ;;  %v19004_v24 = vld [vmem:[#allocation15 + $0x160] ss:$8 sps:$4 sm:$0xff]  }
 0x43e   :  { %7756 = vmatpush1.bf16.msra.mxu1 %v18923_v20  ;;  %v16848_v18 = vadd.f32 %v6050_v43, %v22099_v58  ;;  %v6052_v33 = vpop.f32.mrb[74].mxu0  ;;  %8352 = vmatprep.mubr.bf16.mxu0 %v7887_v21  ;;  %v18953_v43 = vld [vmem:[#allocation12 + $0x1e0] ss:$8 sps:$4 sm:$0xff]  }
 0x43f   :  { %7757 = vmatprep.subr.bf16.mxu1 %v18931_v12  ;;  %v6462_v36 = vmax.f32 %v16847_v51, 0.0  ;;  %v16849_v0 = vadd.f32 %v6052_v33, %v22095_v53  ;;  %v6054_v47 = vpop.f32.mrb[75].mxu0  ;;  %8353 = vmatmul.mubr.bf16.gmra.mrb[132].mxu0 %v7886_v42  ;;  %v19009_v51 = vld [vmem:[#allocation15 + $0x174] ss:$8 sps:$4 sm:$0xff]  }
 0x440   :  { %v6463_v26 = vmax.f32 %v16848_v18, 0.0  ;;  %v16850_v19 = vadd.f32 %v6054_v47, %v22099_v58  ;;  %8428 = vmatpush1.bf16.msra.mxu0 %v18992_v34  ;;  %7707 = vmatmul.mubr.bf16.gmra.mrb[148].mxu1 %v21943_v63 }
 0x441   :  { %v6466_v13 = vmax.f32 %v16849_v0, 0.0  ;;  %8429 = vmatprep.subr.bf16.mxu0 %v18997_v3  ;;  %7716 = vmatprep.mubr.bf16.mxu1 %v21958_v32  ;;  %v19001_v32 = vld [vmem:[#allocation15 + $0x150] ss:$8 sps:$4 sm:$0xff]   ;;  %v18955_v3 = vld [vmem:[#allocation12 + $0x1e4] ss:$8 sps:$4 sm:$0xff]  }
 0x442   :  { %7758 = vmatpush1.bf16.msra.mxu1 %v18929_v28  ;;  %v6467_v49 = vmax.f32 %v16850_v19, 0.0  ;;  %v19012_v19 = vld [vmem:[#allocation15 + $0x184] ss:$8 sps:$4 sm:$0xff]  }
 0x443   :  { %7759 = vmatprep.subr.bf16.mxu1 %v18937_v29  ;;  %v7890_v40 = vpack.c.bf16 %v6466_v13, %v6462_v36 }
 0x444   :  { %v7891_v30 = vpack.c.bf16 %v6467_v49, %v6463_v26  ;;  %v6058_v14 = vpop.f32.mrb[76].mxu0  ;;  %8430 = vmatpush1.bf16.msra.mxu0 %v18995_v16  ;;  %v18961_v16 = vld [vmem:[#allocation12 + $0x1f4] ss:$8 sps:$4 sm:$0xff]  }
 0x445   :  { %v16851_v4 = vadd.f32 %v6058_v14, %v22095_v53  ;;  %v6060_v39 = vpop.f32.mrb[77].mxu0  ;;  %8431 = vmatprep.subr.bf16.mxu0 %v19000_v11 }
 0x446   :  { %7760 = vmatpush1.bf16.msra.mxu1 %v18935_v38  ;;  %v16852_v63 = vadd.f32 %v6060_v39, %v22099_v58  ;;  %v6062_v20 = vpop.f32.mrb[78].mxu0  ;;  %8362 = vmatprep.mubr.bf16.mxu0 %v7891_v30  ;;  %v19015_v30 = vld [vmem:[#allocation15 + $0x194] ss:$8 sps:$4 sm:$0xff]  }
 0x447   :  { %7761 = vmatprep.subr.bf16.mxu1 %v18943_v37  ;;  %v6470_v55 = vmax.f32 %v16851_v4, 0.0  ;;  %v16853_v27 = vadd.f32 %v6062_v20, %v22095_v53  ;;  %v6064_v12 = vpop.f32.mrb[79].mxu0  ;;  %8363 = vmatmul.mubr.bf16.gmra.mrb[136].mxu0 %v7890_v40  ;;  %v18959_v37 = vld [vmem:[#allocation12 + $0x1f0] ss:$8 sps:$4 sm:$0xff]  }
 0x448   :  { %v6471_v34 = vmax.f32 %v16852_v63, 0.0  ;;  %v16854_v42 = vadd.f32 %v6064_v12, %v22099_v58  ;;  %8432 = vmatpush1.bf16.msra.mxu0 %v18998_v57  ;;  %7717 = vmatmul.mubr.bf16.gmra.mrb[152].mxu1 %v21955_v54  ;;  %v19013_v20 = vld [vmem:[#allocation15 + $0x190] ss:$8 sps:$4 sm:$0xff]  }
 0x449   :  { %v6474_v28 = vmax.f32 %v16853_v27, 0.0  ;;  %8433 = vmatprep.subr.bf16.mxu0 %v19003_v60  ;;  %7726 = vmatprep.mubr.bf16.mxu1 %v21970_v44  ;;  %v19007_v44 = vld [vmem:[#allocation15 + $0x170] ss:$8 sps:$4 sm:$0xff]   ;;  %v19010_v60 = vld [vmem:[#allocation15 + $0x180] ss:$8 sps:$4 sm:$0xff]  }
 0x44a   :  { %7762 = vmatpush1.bf16.msra.mxu1 %v18941_v1  ;;  %v6475_v21 = vmax.f32 %v16854_v42, 0.0  ;;  %v19018_v27 = vld [vmem:[#allocation15 + $0x1a4] ss:$8 sps:$4 sm:$0xff]   ;;  %v19016_v42 = vld [vmem:[#allocation15 + $0x1a0] ss:$8 sps:$4 sm:$0xff]  }
 0x44b   :  { %7763 = vmatprep.subr.bf16.mxu1 %v18949_v45  ;;  %v7894_v29 = vpack.c.bf16 %v6474_v28, %v6470_v55  ;;  %v19021_v28 = vld [vmem:[#allocation15 + $0x1b4] ss:$8 sps:$4 sm:$0xff]  }
 0x44c   :  { %v7895_v18 = vpack.c.bf16 %v6475_v21, %v6471_v34  ;;  %v6068_v33 = vpop.f32.mrb[80].mxu0  ;;  %8434 = vmatpush1.bf16.msra.mxu0 %v19001_v32 }
 0x44d   :  { %v16855_v36 = vadd.f32 %v6068_v33, %v22095_v53  ;;  %v6070_v0 = vpop.f32.mrb[81].mxu0  ;;  %8435 = vmatprep.subr.bf16.mxu0 %v19006_v5 }
 0x44e   :  { %7764 = vmatpush1.bf16.msra.mxu1 %v18947_v15  ;;  %v16856_v54 = vadd.f32 %v6070_v0, %v22099_v58  ;;  %v6072_v47 = vpop.f32.mrb[82].mxu0  ;;  %8372 = vmatprep.mubr.bf16.mxu0 %v7895_v18 }
 0x44f   :  { %7765 = vmatprep.subr.bf16.mxu1 %v18955_v3  ;;  %v6478_v11 = vmax.f32 %v16855_v36, 0.0  ;;  %v16857_v38 = vadd.f32 %v6072_v47, %v22095_v53  ;;  %v6074_v26 = vpop.f32.mrb[83].mxu0  ;;  %8373 = vmatmul.mubr.bf16.gmra.mrb[140].mxu0 %v7894_v29  ;;  %v19024_v36 = vld [vmem:[#allocation15 + $0x1c4] ss:$8 sps:$4 sm:$0xff]  }
 0x450   :  { %v6479_v13 = vmax.f32 %v16856_v54, 0.0  ;;  %v16858_v49 = vadd.f32 %v6074_v26, %v22099_v58  ;;  %8436 = vmatpush1.bf16.msra.mxu0 %v19004_v24  ;;  %7727 = vmatmul.mubr.bf16.gmra.mrb[156].mxu1 %v21967_v31  ;;  %v19027_v26 = vld [vmem:[#allocation15 + $0x1d4] ss:$8 sps:$4 sm:$0xff]  }
 0x451   :  { %v6482_v57 = vmax.f32 %v16857_v38, 0.0  ;;  %8437 = vmatprep.subr.bf16.mxu0 %v19009_v51  ;;  %7769 = vmatprep.mubr.bf16.mxu1 %v22019_v61 }
 0x452   :  { %7766 = vmatpush1.bf16.msra.mxu1 %v18953_v43  ;;  %v6483_v40 = vmax.f32 %v16858_v49, 0.0 }
 0x453   :  { %7767 = vmatprep.subr.bf16.mxu1 %v18961_v16  ;;  %v7898_v1 = vpack.c.bf16 %v6482_v57, %v6478_v11  ;;  %v19022_v11 = vld [vmem:[#allocation15 + $0x1c0] ss:$8 sps:$4 sm:$0xff]  }
 0x454   :  { %v7899_v14 = vpack.c.bf16 %v6483_v40, %v6479_v13  ;;  %v6078_v45 = vpop.f32.mrb[84].mxu0  ;;  %8438 = vmatpush1.bf16.msra.mxu0 %v19007_v44 }
 0x455   :  { %v16859_v4 = vadd.f32 %v6078_v45, %v22095_v53  ;;  %v6080_v39 = vpop.f32.mrb[85].mxu0  ;;  %8439 = vmatprep.subr.bf16.mxu0 %v19012_v19 }
 0x456   :  { %7768 = vmatpush1.bf16.msra.mxu1 %v18959_v37  ;;  %v16860_v31 = vadd.f32 %v6080_v39, %v22099_v58  ;;  %v6082_v63 = vpop.f32.mrb[86].mxu0  ;;  %8382 = vmatprep.mubr.bf16.mxu0 %v7899_v14 }
 0x457   :  { %v6486_v32 = vmax.f32 %v16859_v4, 0.0  ;;  %v16861_v61 = vadd.f32 %v6082_v63, %v22095_v53  ;;  %v6084_v55 = vpop.f32.mrb[87].mxu0  ;;  %8383 = vmatmul.mubr.bf16.gmra.mrb[144].mxu0 %v7898_v1 }
 0x458   :  { %v6487_v12 = vmax.f32 %v16860_v31, 0.0  ;;  %v16862_v5 = vadd.f32 %v6084_v55, %v22099_v58  ;;  %8440 = vmatpush1.bf16.msra.mxu0 %v19010_v60  ;;  %v19028_v31 = vld [vmem:[#allocation15 + $0x1e0] ss:$8 sps:$4 sm:$0xff]   ;;  %v19042_v55 = vld [vmem:[#allocation18 + $0x34] ss:$24 sps:$4 sm:$0xff]  }
 0x459   :  { %7770 = vmatmul.mubr.bf16.vlgmr.msra.gmra.mrb[128].mxu1 %v22016_v35  ;;  %v6490_v15 = vmax.f32 %v16861_v61, 0.0  ;;  %8441 = vmatprep.subr.bf16.mxu0 %v19015_v30  ;;  %v19019_v35 = vld [vmem:[#allocation15 + $0x1b0] ss:$8 sps:$4 sm:$0xff]   ;;  %v19030_v30 = vld [vmem:[#allocation15 + $0x1e4] ss:$8 sps:$4 sm:$0xff]  }
 0x45a   :  { %7779 = vmatprep.mubr.bf16.mxu1 %v22031_v56  ;;  %v6491_v34 = vmax.f32 %v16862_v5, 0.0  ;;  %v19036_v61 = vld [vmem:[#allocation18 + $0x4] ss:$24 sps:$4 sm:$0xff]   ;;  %v19054_v5 = vld [vmem:[#allocation18 + $0x94] ss:$24 sps:$4 sm:$0xff]  }
 0x45b   :  { %v7902_v3 = vpack.c.bf16 %v6490_v15, %v6486_v32  ;;  %9272 = vmatprep.subr.bf16.mxu1 %v19036_v61  ;;  %v19060_v15 = vld [vmem:[#allocation18 + $0xc4] ss:$24 sps:$4 sm:$0xff]  }
 0x45c   :  { %v7903_v21 = vpack.c.bf16 %v6491_v34, %v6487_v12  ;;  %v6088_v24 = vpop.f32.mrb[88].mxu0  ;;  %8442 = vmatpush1.bf16.msra.mxu0 %v19013_v20  ;;  %v19033_v20 = vld [vmem:[#allocation15 + $0x1f4] ss:$8 sps:$4 sm:$0xff]  }
 0x45d   :  { %v16863_v29 = vadd.f32 %v6088_v24, %v22095_v53  ;;  %v6090_v51 = vpop.f32.mrb[89].mxu0  ;;  %8443 = vmatprep.subr.bf16.mxu0 %v19018_v27  ;;  %v19048_v27 = vld [vmem:[#allocation18 + $0x64] ss:$24 sps:$4 sm:$0xff]   ;;  %v19046_v12 = vld [vmem:[#allocation18 + $0x60] ss:$24 sps:$4 sm:$0xff]  }
 0x45e   :  { %v16864_v43 = vadd.f32 %v6090_v51, %v22099_v58  ;;  %v6092_v18 = vpop.f32.mrb[90].mxu0  ;;  %8392 = vmatprep.mubr.bf16.mxu0 %v7903_v21  ;;  %v19066_v34 = vld [vmem:[#allocation18 + $0xf4] ss:$24 sps:$4 sm:$0xff]   ;;  %v19084_v21 = vld [vmem:[#allocation18 + $0x184] ss:$24 sps:$4 sm:$0xff]  }
 0x45f   :  { %v6494_v33 = vmax.f32 %v16863_v29, 0.0  ;;  %v16865_v16 = vadd.f32 %v6092_v18, %v22095_v53  ;;  %v6094_v56 = vpop.f32.mrb[91].mxu0  ;;  %8393 = vmatmul.mubr.bf16.gmra.mrb[148].mxu0 %v7902_v3  ;;  %v19072_v3 = vld [vmem:[#allocation18 + $0x124] ss:$24 sps:$4 sm:$0xff]   ;;  %v19082_v24 = vld [vmem:[#allocation18 + $0x180] ss:$24 sps:$4 sm:$0xff]  }
 0x460   :  { %v6495_v0 = vmax.f32 %v16864_v43, 0.0  ;;  %v16866_v54 = vadd.f32 %v6094_v56, %v22099_v58  ;;  %8444 = vmatpush1.bf16.msra.mxu0 %v19016_v42  ;;  %v19064_v42 = vld [vmem:[#allocation18 + $0xf0] ss:$24 sps:$4 sm:$0xff]   ;;  %v19096_v29 = vld [vmem:[#allocation18 + $0x1e4] ss:$24 sps:$4 sm:$0xff]  }
 0x461   :  { %7780 = vmatmul.mubr.bf16.gmra.mrb[132].mxu1 %v22028_v7  ;;  %v6498_v47 = vmax.f32 %v16865_v16, 0.0  ;;  %8445 = vmatprep.subr.bf16.mxu0 %v19021_v28  ;;  %v19025_v7 = vld [vmem:[#allocation15 + $0x1d0] ss:$8 sps:$4 sm:$0xff]  }
 0x462   :  { %7789 = vmatprep.mubr.bf16.mxu1 %v22043_v23  ;;  %v6499_v44 = vmax.f32 %v16866_v54, 0.0  ;;  %v19070_v28 = vld [vmem:[#allocation18 + $0x120] ss:$24 sps:$4 sm:$0xff]   ;;  %v19100_v43 = vld [vmem:[#allocation18 + $0x210] ss:$24 sps:$4 sm:$0xff]  }
 0x463   :  { %v7906_v38 = vpack.c.bf16 %v6498_v47, %v6494_v33  ;;  %v19094_v51 = vld [vmem:[#allocation18 + $0x1e0] ss:$24 sps:$4 sm:$0xff]   ;;  %v19112_v33 = vld [vmem:[#allocation18 + $0x270] ss:$24 sps:$4 sm:$0xff]  }
 0x464   :  { %v7907_v19 = vpack.c.bf16 %v6499_v44, %v6495_v0  ;;  %v6098_v37 = vpop.f32.mrb[92].mxu0  ;;  %8446 = vmatpush1.bf16.msra.mxu0 %v19019_v35  ;;  %v19106_v18 = vld [vmem:[#allocation18 + $0x240] ss:$24 sps:$4 sm:$0xff]   ;;  %v19114_v35 = vld [vmem:[#allocation18 + $0x274] ss:$24 sps:$4 sm:$0xff]  }
 0x465   :  { %v16867_v13 = vadd.f32 %v6098_v37, %v22095_v53  ;;  %v6100_v49 = vpop.f32.mrb[93].mxu0  ;;  %8447 = vmatprep.subr.bf16.mxu0 %v19024_v36 }
 0x466   :  { %v16868_v57 = vadd.f32 %v6100_v49, %v22099_v58  ;;  %v6102_v40 = vpop.f32.mrb[94].mxu0  ;;  %8402 = vmatprep.mubr.bf16.mxu0 %v7907_v19  ;;  %v19118_v49 = vld [vmem:[#allocation18 + $0x2a0] ss:$24 sps:$4 sm:$0xff]  }
 0x467   :  { %v6502_v60 = vmax.f32 %v16867_v13, 0.0  ;;  %v16869_v1 = vadd.f32 %v6102_v40, %v22095_v53  ;;  %v6104_v23 = vpop.f32.mrb[95].mxu0  ;;  %8403 = vmatmul.mubr.bf16.gmra.mrb[152].mxu0 %v7906_v38  ;;  %v19034_v53 = vld [vmem:[#allocation18] ss:$24 sps:$4 sm:$0xff]  }
 0x468   :  { %v6503_v14 = vmax.f32 %v16868_v57, 0.0  ;;  %v16870_v45 = vadd.f32 %v6104_v23, %v22099_v58  ;;  %8448 = vmatpush1.bf16.msra.mxu0 %v19022_v11  ;;  %v19031_v58 = vld [vmem:[#allocation15 + $0x1f0] ss:$8 sps:$4 sm:$0xff]   ;;  %9273 = vmatpush1.bf16.msra.mxu1 %v19034_v53  ;;  %v19045_v53 = vld [vmem:[#allocation18 + $0x44] ss:$24 sps:$4 sm:$0xff]  }
 0x469   :  { %7790 = vmatmul.mubr.bf16.gmra.mrb[136].mxu1 %v22040_v62  ;;  %v6506_v4 = vmax.f32 %v16869_v1, 0.0  ;;  %8449 = vmatprep.subr.bf16.mxu0 %v19027_v26  ;;  %v19039_v62 = vld [vmem:[#allocation18 + $0x14] ss:$24 sps:$4 sm:$0xff]   ;;  %v19120_v26 = vld [vmem:[#allocation18 + $0x2a4] ss:$24 sps:$4 sm:$0xff]  }
 0x46a   :  { %7799 = vmatprep.mubr.bf16.mxu1 %v22055_v46  ;;  %v6507_v39 = vmax.f32 %v16870_v45, 0.0  ;;  %v19040_v46 = vld [vmem:[#allocation18 + $0x30] ss:$24 sps:$4 sm:$0xff]   ;;  %9274 = vmatprep.subr.bf16.mxu1 %v19042_v55 }
 0x46b   :  { %v7910_v63 = vpack.c.bf16 %v6506_v4, %v6502_v60  ;;  %v19124_v45 = vld [vmem:[#allocation18 + $0x2d0] ss:$24 sps:$4 sm:$0xff]  }
 0x46c   :  { %v7911_v32 = vpack.c.bf16 %v6507_v39, %v6503_v14  ;;  %8450 = vmatpush1.bf16.msra.mxu0 %v19025_v7  ;;  %9275 = vmatpush1.bf16.msra.mxu1 %v19040_v46 }
 0x46d   :  { %8451 = vmatprep.subr.bf16.mxu0 %v19030_v30  ;;  %9276 = vmatprep.subr.bf16.mxu1 %v19048_v27  ;;  %v19126_v30 = vld [vmem:[#allocation18 + $0x2d4] ss:$24 sps:$4 sm:$0xff]  }
 0x46e   :  { %8412 = vmatprep.mubr.bf16.mxu0 %v7911_v32 }
 0x46f   :  { %8413 = vmatmul.mubr.bf16.gmra.mrb[156].mxu0 %v7910_v63 }
 0x470   :  { %8452 = vmatpush1.bf16.msra.mxu0 %v19028_v31  ;;  %9277 = vmatpush1.bf16.msra.mxu1 %v19046_v12  ;;  %v19037_v31 = vld [vmem:[#allocation18 + $0x10] ss:$24 sps:$4 sm:$0xff]  }
 0x471   :  { %7800 = vmatmul.mubr.bf16.gmra.mrb[140].mxu1 %v22052_v8  ;;  %8453 = vmatprep.subr.bf16.mxu0 %v19033_v20  ;;  %v19052_v8 = vld [vmem:[#allocation18 + $0x90] ss:$24 sps:$4 sm:$0xff]  }
 0x472   :  { %7809 = vmatprep.mubr.bf16.mxu1 %v22067_v50  ;;  %9278 = vmatprep.subr.bf16.mxu1 %v19054_v5  ;;  %v19058_v50 = vld [vmem:[#allocation18 + $0xc0] ss:$24 sps:$4 sm:$0xff]  }
 0x474   :  { %8454 = vmatpush1.bf16.msra.mxu0 %v19031_v58  ;;  %9279 = vmatpush1.bf16.msra.mxu1 %v19052_v8 }
 0x475   :  { %9498 = vmatprep.subr.bf16.mxu0 %v19039_v62  ;;  %9280 = vmatprep.subr.bf16.mxu1 %v19060_v15  ;;  %v19132_v62 = vld [vmem:[#allocation18 + $0xc] ss:$24 sps:$4 sm:$0xff]   ;;  %v19043_v15 = vld [vmem:[#allocation18 + $0x40] ss:$24 sps:$4 sm:$0xff]  }
 0x478   :  { %9281 = vmatpush1.bf16.msra.mxu1 %v19058_v50 }
 0x479   :  { %7810 = vmatmul.mubr.bf16.gmra.mrb[144].mxu1 %v22064_v6  ;;  %9282 = vmatprep.subr.bf16.mxu1 %v19066_v34  ;;  %v19078_v6 = vld [vmem:[#allocation18 + $0x154] ss:$24 sps:$4 sm:$0xff]  }
 0x47a   :  { %7819 = vmatprep.mubr.bf16.mxu1 %v22077_v48  ;;  %v19076_v48 = vld [vmem:[#allocation18 + $0x150] ss:$24 sps:$4 sm:$0xff]  }
 0x47c   :  { %9283 = vmatpush1.bf16.msra.mxu1 %v19064_v42  ;;  %v19051_v42 = vld [vmem:[#allocation18 + $0x74] ss:$24 sps:$4 sm:$0xff]  }
 0x47d   :  { %9284 = vmatprep.subr.bf16.mxu1 %v19072_v3 }
 0x480   :  { %9285 = vmatpush1.bf16.msra.mxu1 %v19070_v28 }
 0x481   :  { %7820 = vmatmul.mubr.bf16.gmra.mrb[148].mxu1 %v22075_v41  ;;  %9286 = vmatprep.subr.bf16.mxu1 %v19078_v6  ;;  %v19090_v41 = vld [vmem:[#allocation18 + $0x1b4] ss:$24 sps:$4 sm:$0xff]  }
 0x482   :  { %7829 = vmatprep.mubr.bf16.mxu1 %v22087_v52  ;;  %v19088_v52 = vld [vmem:[#allocation18 + $0x1b0] ss:$24 sps:$4 sm:$0xff]  }
 0x484   :  { %9287 = vmatpush1.bf16.msra.mxu1 %v19076_v48 }
 0x485   :  { %9288 = vmatprep.subr.bf16.mxu1 %v19084_v21 }
 0x488   :  { %9289 = vmatpush1.bf16.msra.mxu1 %v19082_v24  ;;  %v19049_v24 = vld [vmem:[#allocation18 + $0x70] ss:$24 sps:$4 sm:$0xff]  }
 0x489   :  { %7830 = vmatmul.mubr.bf16.gmra.mrb[152].mxu1 %v22085_v10  ;;  %9290 = vmatprep.subr.bf16.mxu1 %v19090_v41  ;;  %v19102_v10 = vld [vmem:[#allocation18 + $0x214] ss:$24 sps:$4 sm:$0xff]  }
 0x48a   :  { %7839 = vmatprep.mubr.bf16.mxu1 %v22103_v2  ;;  %v19108_v2 = vld [vmem:[#allocation18 + $0x244] ss:$24 sps:$4 sm:$0xff]  }
 0x48c   :  { %9291 = vmatpush1.bf16.msra.mxu1 %v19088_v52 }
 0x48d   :  { %9292 = vmatprep.subr.bf16.mxu1 %v19096_v29 }
 0x490   :  { %9293 = vmatpush1.bf16.msra.mxu1 %v19094_v51  ;;  %v19057_v51 = vld [vmem:[#allocation18 + $0xa4] ss:$24 sps:$4 sm:$0xff]  }
 0x491   :  { %7840 = vmatmul.mubr.bf16.gmra.mrb[156].mxu1 %v22101_v17  ;;  %9294 = vmatprep.subr.bf16.mxu1 %v19102_v10  ;;  %v19940_v17 = vld [vmem:[#allocation9] sm:$0xf] }
 0x492   :  { %v22163_v16 = vrot.slane %v19940_v17, %v24567_v22  ;;  %v22166_v56 = vrot.slane %v19940_v17, %v24569_v59  ;;  %v19189_v59 = vld [vmem:[%s24592_s18 + $0x1c4] ss:$24 sps:$4 sm:$0xff]  }
 0x494   :  { %9295 = vmatpush1.bf16.msra.mxu1 %v19100_v43 }
 0x495   :  { %9296 = vmatprep.subr.bf16.mxu1 %v19108_v2 }
 0x498   :  { %9297 = vmatpush1.bf16.msra.mxu1 %v19106_v18 }
 0x499   :  { %9298 = vmatprep.subr.bf16.mxu1 %v19114_v35 }
 0x49c   :  { %9299 = vmatpush1.bf16.msra.mxu1 %v19112_v33 }
 0x49d   :  { %9300 = vmatprep.subr.bf16.mxu1 %v19120_v26 }
 0x4a0   :  { %9301 = vmatpush1.bf16.msra.mxu1 %v19118_v49 }
 0x4a1   :  { %9302 = vmatprep.subr.bf16.mxu1 %v19126_v30  ;;  %v19069_v30 = vld [vmem:[#allocation18 + $0x104] ss:$24 sps:$4 sm:$0xff]  }
 0x4a4   :  { %9303 = vmatpush1.bf16.msra.mxu1 %v19124_v45 }
 0x4a5   :  { %9385 = vmatprep.subr.bf16.mxu1 %v19132_v62 }
 0x4ab   :  { %v6367_v36 = vpop.f32.mrb[96].mxu1 }
 0x4ac   :  { %v16871_v0 = vadd.f32 %v6367_v36, %v22163_v16  ;;  %v22169_v54 = vpop.f32.mrb[96].mxu0  ;;  %v6369_v47 = vpop.f32.mrb[97].mxu1 }
 0x4ad   :  { %v16872_v44 = vadd.f32 %v6369_v47, %v22166_v56  ;;  %v22172_v11 = vpop.f32.mrb[97].mxu0  ;;  %v6371_v38 = vpop.f32.mrb[98].mxu1 }
 0x4ae   :  { %v16873_v19 = vadd.f32 %v6371_v38, %v22163_v16  ;;  %v22175_v37 = vpop.f32.mrb[98].mxu0  ;;  %v6373_v13 = vpop.f32.mrb[99].mxu1  ;;  %v6448_v7 = vmax.f32 %v16871_v0, 0.0  ;;  %v19055_v0 = vld [vmem:[#allocation18 + $0xa0] ss:$24 sps:$4 sm:$0xff]  }
 0x4af   :  { %v16874_v57 = vadd.f32 %v6373_v13, %v22166_v56  ;;  %v22178_v40 = vpop.f32.mrb[99].mxu0  ;;  %v6449_v1 = vmax.f32 %v16872_v44, 0.0  ;;  %v19063_v38 = vld [vmem:[#allocation18 + $0xd4] ss:$24 sps:$4 sm:$0xff]  }
 0x4b0   :  { %v6452_v60 = vmax.f32 %v16873_v19, 0.0 }
 0x4b1   :  { %v6453_v23 = vmax.f32 %v16874_v57, 0.0 }
 0x4b2   :  { %v7884_v14 = vpack.c.bf16 %v6452_v60, %v6448_v7  ;;  %v19061_v7 = vld [vmem:[#allocation18 + $0xd0] ss:$24 sps:$4 sm:$0xff]  }
 0x4b3   :  { %v7885_v4 = vpack.c.bf16 %v6453_v23, %v6449_v1  ;;  %v6377_v39 = vpop.f32.mrb[100].mxu1 }
 0x4b4   :  { %v16875_v63 = vadd.f32 %v6377_v39, %v22163_v16  ;;  %v22181_v20 = vpop.f32.mrb[100].mxu0  ;;  %v6379_v32 = vpop.f32.mrb[101].mxu1 }
 0x4b5   :  { %v16876_v61 = vadd.f32 %v6379_v32, %v22166_v56  ;;  %v22184_v58 = vpop.f32.mrb[101].mxu0  ;;  %v6381_v55 = vpop.f32.mrb[102].mxu1  ;;  %8455 = vmatprep.mubr.bf16.mxu0 %v7885_v4 }
 0x4b6   :  { %v16877_v46 = vadd.f32 %v6381_v55, %v22163_v16  ;;  %v22187_v27 = vpop.f32.mrb[102].mxu0  ;;  %v6383_v12 = vpop.f32.mrb[103].mxu1  ;;  %8456 = vmatmul.mubr.bf16.vlgmr.msra.gmra.mrb[128].mxu0 %v7884_v14  ;;  %v6456_v50 = vmax.f32 %v16875_v63, 0.0 }
 0x4b7   :  { %v16878_v5 = vadd.f32 %v6383_v12, %v22166_v56  ;;  %v22190_v8 = vpop.f32.mrb[103].mxu0  ;;  %9499 = vmatpush1.bf16.msra.mxu0 %v19037_v31  ;;  %v6457_v3 = vmax.f32 %v16876_v61, 0.0  ;;  %v19067_v61 = vld [vmem:[#allocation18 + $0x100] ss:$24 sps:$4 sm:$0xff]  }
 0x4b8   :  { %v6460_v34 = vmax.f32 %v16877_v46, 0.0  ;;  %9500 = vmatprep.subr.bf16.mxu0 %v19045_v53  ;;  %v19075_v46 = vld [vmem:[#allocation18 + $0x134] ss:$24 sps:$4 sm:$0xff]  }
 0x4b9   :  { %v6461_v28 = vmax.f32 %v16878_v5, 0.0 }
 0x4ba   :  { %v7888_v6 = vpack.c.bf16 %v6460_v34, %v6456_v50 }
 0x4bb   :  { %v7889_v48 = vpack.c.bf16 %v6461_v28, %v6457_v3  ;;  %v6387_v21 = vpop.f32.mrb[104].mxu1  ;;  %9501 = vmatpush1.bf16.msra.mxu0 %v19043_v15 }
 0x4bc   :  { %v16879_v41 = vadd.f32 %v6387_v21, %v22163_v16  ;;  %v22193_v52 = vpop.f32.mrb[104].mxu0  ;;  %v6389_v29 = vpop.f32.mrb[105].mxu1  ;;  %9502 = vmatprep.subr.bf16.mxu0 %v19051_v42  ;;  %v19073_v42 = vld [vmem:[#allocation18 + $0x130] ss:$24 sps:$4 sm:$0xff]  }
 0x4bd   :  { %v16880_v10 = vadd.f32 %v6389_v29, %v22166_v56  ;;  %v22196_v43 = vpop.f32.mrb[105].mxu0  ;;  %v6391_v2 = vpop.f32.mrb[106].mxu1  ;;  %8465 = vmatprep.mubr.bf16.mxu0 %v7889_v48  ;;  %v19081_v48 = vld [vmem:[#allocation18 + $0x164] ss:$24 sps:$4 sm:$0xff]  }
 0x4be   :  { %v16881_v18 = vadd.f32 %v6391_v2, %v22163_v16  ;;  %v22199_v35 = vpop.f32.mrb[106].mxu0  ;;  %v6393_v33 = vpop.f32.mrb[107].mxu1  ;;  %8466 = vmatmul.mubr.bf16.gmra.mrb[132].mxu0 %v7888_v6  ;;  %v6464_v47 = vmax.f32 %v16879_v41, 0.0 }
 0x4bf   :  { %v16882_v17 = vadd.f32 %v6393_v33, %v22166_v56  ;;  %v22202_v36 = vpop.f32.mrb[107].mxu0  ;;  %9503 = vmatpush1.bf16.msra.mxu0 %v19049_v24  ;;  %v6465_v26 = vmax.f32 %v16880_v10, 0.0  ;;  %v19079_v33 = vld [vmem:[#allocation18 + $0x160] ss:$24 sps:$4 sm:$0xff]  }
 0x4c0   :  { %v6468_v44 = vmax.f32 %v16881_v18, 0.0  ;;  %9504 = vmatprep.subr.bf16.mxu0 %v19057_v51 }
 0x4c1   :  { %v6469_v19 = vmax.f32 %v16882_v17, 0.0 }
 0x4c2   :  { %v7892_v13 = vpack.c.bf16 %v6468_v44, %v6464_v47  ;;  %v19087_v47 = vld [vmem:[#allocation18 + $0x194] ss:$24 sps:$4 sm:$0xff]  }
 0x4c3   :  { %v7893_v49 = vpack.c.bf16 %v6469_v19, %v6465_v26  ;;  %v6397_v57 = vpop.f32.mrb[108].mxu1  ;;  %9505 = vmatpush1.bf16.msra.mxu0 %v19055_v0 }
 0x4c4   :  { %v16883_v60 = vadd.f32 %v6397_v57, %v22163_v16  ;;  %v22205_v1 = vpop.f32.mrb[108].mxu0  ;;  %v6399_v23 = vpop.f32.mrb[109].mxu1  ;;  %9506 = vmatprep.subr.bf16.mxu0 %v19063_v38 }
 0x4c5   :  { %v16884_v14 = vadd.f32 %v6399_v23, %v22166_v56  ;;  %v22208_v45 = vpop.f32.mrb[109].mxu0  ;;  %v6401_v4 = vpop.f32.mrb[110].mxu1  ;;  %8475 = vmatprep.mubr.bf16.mxu0 %v7893_v49  ;;  %v19085_v49 = vld [vmem:[#allocation18 + $0x190] ss:$24 sps:$4 sm:$0xff]   ;;  %v19093_v23 = vld [vmem:[#allocation18 + $0x1c4] ss:$24 sps:$4 sm:$0xff]  }
 0x4c6   :  { %v16885_v39 = vadd.f32 %v6401_v4, %v22163_v16  ;;  %v22211_v31 = vpop.f32.mrb[110].mxu0  ;;  %v6403_v63 = vpop.f32.mrb[111].mxu1  ;;  %8476 = vmatmul.mubr.bf16.gmra.mrb[136].mxu0 %v7892_v13  ;;  %v6472_v55 = vmax.f32 %v16883_v60, 0.0 }
 0x4c7   :  { %v16886_v32 = vadd.f32 %v6403_v63, %v22166_v56  ;;  %v22214_v53 = vpop.f32.mrb[111].mxu0  ;;  %9507 = vmatpush1.bf16.msra.mxu0 %v19061_v7  ;;  %v6473_v12 = vmax.f32 %v16884_v14, 0.0 }
 0x4c8   :  { %v6476_v62 = vmax.f32 %v16885_v39, 0.0  ;;  %9508 = vmatprep.subr.bf16.mxu0 %v19069_v30 }
 0x4c9   :  { %v6477_v5 = vmax.f32 %v16886_v32, 0.0 }
 0x4ca   :  { %v7896_v15 = vpack.c.bf16 %v6476_v62, %v6472_v55  ;;  %v19091_v62 = vld [vmem:[#allocation18 + $0x1c0] ss:$24 sps:$4 sm:$0xff]  }
 0x4cb   :  { %v7897_v50 = vpack.c.bf16 %v6477_v5, %v6473_v12  ;;  %v6407_v34 = vpop.f32.mrb[112].mxu1  ;;  %9509 = vmatpush1.bf16.msra.mxu0 %v19067_v61  ;;  %v19099_v5 = vld [vmem:[#allocation18 + $0x1f4] ss:$24 sps:$4 sm:$0xff]  }
 0x4cc   :  { %v16887_v3 = vadd.f32 %v6407_v34, %v22163_v16  ;;  %v22217_v28 = vpop.f32.mrb[112].mxu0  ;;  %v6409_v6 = vpop.f32.mrb[113].mxu1  ;;  %9510 = vmatprep.subr.bf16.mxu0 %v19075_v46 }
 0x4cd   :  { %v16888_v21 = vadd.f32 %v6409_v6, %v22166_v56  ;;  %v22220_v24 = vpop.f32.mrb[113].mxu0  ;;  %v6411_v41 = vpop.f32.mrb[114].mxu1  ;;  %8485 = vmatprep.mubr.bf16.mxu0 %v7897_v50  ;;  %v19097_v6 = vld [vmem:[#allocation18 + $0x1f0] ss:$24 sps:$4 sm:$0xff]  }
 0x4ce   :  { %v16889_v29 = vadd.f32 %v6411_v41, %v22163_v16  ;;  %v22223_v51 = vpop.f32.mrb[114].mxu0  ;;  %v6413_v10 = vpop.f32.mrb[115].mxu1  ;;  %8486 = vmatmul.mubr.bf16.gmra.mrb[140].mxu0 %v7896_v15  ;;  %v6480_v17 = vmax.f32 %v16887_v3, 0.0 }
 0x4cf   :  { %v16890_v2 = vadd.f32 %v6413_v10, %v22166_v56  ;;  %v22226_v18 = vpop.f32.mrb[115].mxu0  ;;  %9511 = vmatpush1.bf16.msra.mxu0 %v19073_v42  ;;  %v6481_v44 = vmax.f32 %v16888_v21, 0.0 }
 0x4d0   :  { %v6484_v0 = vmax.f32 %v16889_v29, 0.0  ;;  %9512 = vmatprep.subr.bf16.mxu0 %v19081_v48  ;;  %v19105_v29 = vld [vmem:[#allocation18 + $0x224] ss:$24 sps:$4 sm:$0xff]  }
 0x4d1   :  { %v6485_v38 = vmax.f32 %v16890_v2, 0.0 }
 0x4d2   :  { %v7900_v26 = vpack.c.bf16 %v6484_v0, %v6480_v17 }
 0x4d3   :  { %v7901_v19 = vpack.c.bf16 %v6485_v38, %v6481_v44  ;;  %v6417_v13 = vpop.f32.mrb[116].mxu1  ;;  %9513 = vmatpush1.bf16.msra.mxu0 %v19079_v33 }
 0x4d4   :  { %v16891_v57 = vadd.f32 %v6417_v13, %v22163_v16  ;;  %v22229_v7 = vpop.f32.mrb[116].mxu0  ;;  %v6419_v60 = vpop.f32.mrb[117].mxu1  ;;  %9514 = vmatprep.subr.bf16.mxu0 %v19087_v47 }
 0x4d5   :  { %v16892_v30 = vadd.f32 %v6419_v60, %v22166_v56  ;;  %v22232_v14 = vpop.f32.mrb[117].mxu0  ;;  %v6421_v4 = vpop.f32.mrb[118].mxu1  ;;  %8495 = vmatprep.mubr.bf16.mxu0 %v7901_v19 }
 0x4d6   :  { %v16893_v39 = vadd.f32 %v6421_v4, %v22163_v16  ;;  %v22235_v63 = vpop.f32.mrb[118].mxu0  ;;  %v6423_v32 = vpop.f32.mrb[119].mxu1  ;;  %8496 = vmatmul.mubr.bf16.gmra.mrb[144].mxu0 %v7900_v26  ;;  %v6488_v46 = vmax.f32 %v16891_v57, 0.0  ;;  %v19103_v26 = vld [vmem:[#allocation18 + $0x220] ss:$24 sps:$4 sm:$0xff]  }
 0x4d7   :  { %v16894_v61 = vadd.f32 %v6423_v32, %v22166_v56  ;;  %v22238_v55 = vpop.f32.mrb[119].mxu0  ;;  %9515 = vmatpush1.bf16.msra.mxu0 %v19085_v49  ;;  %v6489_v15 = vmax.f32 %v16892_v30, 0.0  ;;  %v19111_v49 = vld [vmem:[#allocation18 + $0x254] ss:$24 sps:$4 sm:$0xff]  }
 0x4d8   :  { %v6492_v12 = vmax.f32 %v16893_v39, 0.0  ;;  %9516 = vmatprep.subr.bf16.mxu0 %v19093_v23  ;;  %v19109_v39 = vld [vmem:[#allocation18 + $0x250] ss:$24 sps:$4 sm:$0xff]  }
 0x4d9   :  { %v6493_v50 = vmax.f32 %v16894_v61, 0.0 }
 0x4da   :  { %v7904_v34 = vpack.c.bf16 %v6492_v12, %v6488_v46  ;;  %v19117_v46 = vld [vmem:[#allocation18 + $0x284] ss:$24 sps:$4 sm:$0xff]  }
 0x4db   :  { %v7905_v42 = vpack.c.bf16 %v6493_v50, %v6489_v15  ;;  %v6427_v3 = vpop.f32.mrb[120].mxu1  ;;  %9517 = vmatpush1.bf16.msra.mxu0 %v19091_v62 }
 0x4dc   :  { %v16895_v48 = vadd.f32 %v6427_v3, %v22163_v16  ;;  %v22241_v21 = vpop.f32.mrb[120].mxu0  ;;  %v6429_v41 = vpop.f32.mrb[121].mxu1  ;;  %9518 = vmatprep.subr.bf16.mxu0 %v19099_v5 }
 0x4dd   :  { %24588 = vst [vmem:[#allocation76_spill] sm:$0xff] %v22241_v21  ;;  %v16896_v10 = vadd.f32 %v6429_v41, %v22166_v56  ;;  %v22244_v2 = vpop.f32.mrb[121].mxu0  ;;  %v6431_v33 = vpop.f32.mrb[122].mxu1  ;;  %8505 = vmatprep.mubr.bf16.mxu0 %v7905_v42 }
 0x4de   :  { %v16897_v17 = vadd.f32 %v6431_v33, %v22163_v16  ;;  %v22247_v0 = vpop.f32.mrb[122].mxu0  ;;  %v6433_v47 = vpop.f32.mrb[123].mxu1  ;;  %8506 = vmatmul.mubr.bf16.gmra.mrb[148].mxu0 %v7904_v34  ;;  %v6496_v19 = vmax.f32 %v16895_v48, 0.0  ;;  %v19115_v48 = vld [vmem:[#allocation18 + $0x280] ss:$24 sps:$4 sm:$0xff]  }
 0x4df   :  { %v16898_v44 = vadd.f32 %v6433_v47, %v22166_v56  ;;  %v22250_v38 = vpop.f32.mrb[123].mxu0  ;;  %9519 = vmatpush1.bf16.msra.mxu0 %v19097_v6  ;;  %v6497_v57 = vmax.f32 %v16896_v10, 0.0  ;;  %v19123_v10 = vld [vmem:[#allocation18 + $0x2b4] ss:$24 sps:$4 sm:$0xff]  }
 0x4e0   :  { %v6500_v13 = vmax.f32 %v16897_v17, 0.0  ;;  %9520 = vmatprep.subr.bf16.mxu0 %v19105_v29 }
 0x4e1   :  { %v6501_v60 = vmax.f32 %v16898_v44, 0.0 }
 0x4e2   :  { %v7908_v23 = vpack.c.bf16 %v6500_v13, %v6496_v19  ;;  %v19135_v19 = vld [vmem:[%s24592_s18 + $0x14] ss:$24 sps:$4 sm:$0xff]  }
 0x4e3   :  { %v7909_v30 = vpack.c.bf16 %v6501_v60, %v6497_v57  ;;  %v6437_v4 = vpop.f32.mrb[124].mxu1  ;;  %9521 = vmatpush1.bf16.msra.mxu0 %v19103_v26  ;;  %v19129_v26 = vld [vmem:[#allocation18 + $0x2e4] ss:$24 sps:$4 sm:$0xff]  }
 0x4e4   :  { %v16899_v32 = vadd.f32 %v6437_v4, %v22163_v16  ;;  %v22253_v61 = vpop.f32.mrb[124].mxu0  ;;  %v6439_v62 = vpop.f32.mrb[125].mxu1  ;;  %9522 = vmatprep.subr.bf16.mxu0 %v19111_v49  ;;  %v7292_v13 = vld [vmem:[#allocation13] sm:$0x3] }
 0x4e5   :  { %24589 = vst [vmem:[#allocation75_spill] sm:$0xff] %v22253_v61  ;;  %v16900_v12 = vadd.f32 %v6439_v62, %v22166_v56  ;;  %v22256_v5 = vpop.f32.mrb[125].mxu0  ;;  %v6441_v15 = vpop.f32.mrb[126].mxu1  ;;  %8515 = vmatprep.mubr.bf16.mxu0 %v7909_v30  ;;  %v22266_v49 = vrot.slane %v7292_v13, %v24587_v25  ;;  %v22269_v57 = vrot.slane %v7292_v13, %v24586_v9  ;;  %v19201_v61 = vld [vmem:[%s24592_s18 + $0x224] ss:$24 sps:$4 sm:$0xff]  }
 0x4e6   :  { %24590 = vst [vmem:[#allocation78_spill] sm:$0xff] %v22256_v5  ;;  %v16901_v50 = vadd.f32 %v6441_v15, %v22163_v16  ;;  %v22259_v34 = vpop.f32.mrb[126].mxu0  ;;  %v6443_v42 = vpop.f32.mrb[127].mxu1  ;;  %8516 = vmatmul.mubr.bf16.gmra.mrb[152].mxu0 %v7908_v23  ;;  %v6504_v41 = vmax.f32 %v16899_v32, 0.0  ;;  %v19121_v16 = vld [vmem:[#allocation18 + $0x2b0] ss:$24 sps:$4 sm:$0xff]  }
 0x4e7   :  { %24591 = vst [vmem:[#allocation77_spill] sm:$0xff] %v22259_v34  ;;  %v16902_v3 = vadd.f32 %v6443_v42, %v22166_v56  ;;  %v22262_v6 = vpop.f32.mrb[127].mxu0  ;;  %9523 = vmatpush1.bf16.msra.mxu0 %v19109_v39  ;;  %v6505_v33 = vmax.f32 %v16900_v12, 0.0  ;;  %v19127_v56 = vld [vmem:[#allocation18 + $0x2e0] ss:$24 sps:$4 sm:$0xff]  }
 0x4e8   :  { %v6508_v29 = vmax.f32 %v16901_v50, 0.0  ;;  %9524 = vmatprep.subr.bf16.mxu0 %v19117_v46 }
 0x4e9   :  { %v6509_v17 = vmax.f32 %v16902_v3, 0.0 }
 0x4ea   :  { %v7912_v47 = vpack.c.bf16 %v6508_v29, %v6504_v41  ;;  %v19130_v41 = vld [vmem:[#allocation18 + $0x8] ss:$24 sps:$4 sm:$0xff]  }
 0x4eb   :  { %v7913_v44 = vpack.c.bf16 %v6509_v17, %v6505_v33  ;;  %9525 = vmatpush1.bf16.msra.mxu0 %v19115_v48  ;;  %v19133_v29 = vld [vmem:[%s24592_s18 + $0x10] ss:$24 sps:$4 sm:$0xff]   ;;  %v19138_v17 = vld [vmem:[#allocation18 + $0x3c] ss:$24 sps:$4 sm:$0xff]  }
 0x4ec   :  { %9526 = vmatprep.subr.bf16.mxu0 %v19123_v10 }
 0x4ed   :  { %8525 = vmatprep.mubr.bf16.mxu0 %v7913_v44 }
 0x4ee   :  { %8526 = vmatmul.mubr.bf16.gmra.mrb[156].mxu0 %v7912_v47  ;;  %v19141_v47 = vld [vmem:[%s24592_s18 + $0x44] ss:$24 sps:$4 sm:$0xff]  }
 0x4ef   :  { %9527 = vmatpush1.bf16.msra.mxu0 %v19121_v16 }
 0x4f0   :  { %9528 = vmatprep.subr.bf16.mxu0 %v19129_v26 }
 0x4f3   :  { %9529 = vmatpush1.bf16.msra.mxu0 %v19127_v56 }
 0x4f4   :  { %10317 = vmatprep.subr.bf16.mxu0 %v19135_v19 }
 0x52c   :  { %v7771_v60 = vpop.f32.mrb[128].mxu1 }
 0x52d   :  { %v7773_v23 = vpop.f32.mrb[129].mxu1  ;;  %v22275_v39 = vadd.f32 %v7771_v60, %v22269_v57  ;;  %v19136_v60 = vld [vmem:[#allocation18 + $0x38] ss:$24 sps:$4 sm:$0xff]  }
 0x52e   :  { %v22272_v30 = vadd.f32 %v7773_v23, %v22266_v49  ;;  %v7775_v4 = vpop.f32.mrb[130].mxu1  ;;  %v19139_v23 = vld [vmem:[%s24592_s18 + $0x40] ss:$24 sps:$4 sm:$0xff]  }
 0x52f   :  { %24594 = vst [vmem:[#allocation48_spill] sm:$0xff] %v22275_v39  ;;  %v22278_v32 = vadd.f32 %v7775_v4, %v22269_v57  ;;  %v7777_v62 = vpop.f32.mrb[131].mxu1  ;;  %v24286_v42 = vmax.f32 %v22275_v39, 0.0 }
 0x530   :  { %24593 = vst [vmem:[#allocation69_spill] sm:$0xff] %v22272_v30  ;;  %v22281_v46 = vadd.f32 %v7777_v62, %v22266_v49  ;;  %v24284_v15 = vmax.f32 %v22272_v30, 0.0  ;;  %v19144_v62 = vld [vmem:[#allocation18 + $0x6c] ss:$24 sps:$4 sm:$0xff]  }
 0x531   :  { %24595 = vst [vmem:[#allocation49_spill] sm:$0xff] %v22278_v32  ;;  %v24285_v12 = vmax.f32 %v22278_v32, 0.0  ;;  %v19177_v32 = vld [vmem:[%s24592_s18 + $0x164] ss:$24 sps:$4 sm:$0xff]  }
 0x532   :  { %24596 = vst [vmem:[#allocation70_spill] sm:$0xff] %v22281_v46  ;;  %v24283_v50 = vmax.f32 %v22281_v46, 0.0  ;;  %v19165_v46 = vld [vmem:[%s24592_s18 + $0x104] ss:$24 sps:$4 sm:$0xff]  }
 0x533   :  { %v22298_v10 = vpack.c.bf16 %v24285_v12, %v24286_v42  ;;  %v19150_v12 = vld [vmem:[#allocation18 + $0x9c] ss:$24 sps:$4 sm:$0xff]  }
 0x534   :  { %v22291_v3 = vpack.c.bf16 %v24283_v50, %v24284_v15  ;;  %v7781_v48 = vpop.f32.mrb[132].mxu1  ;;  %v19153_v42 = vld [vmem:[%s24592_s18 + $0xa4] ss:$24 sps:$4 sm:$0xff]  }
 0x535   :  { %v7783_v33 = vpop.f32.mrb[133].mxu1  ;;  %v22307_v26 = vadd.f32 %v7781_v48, %v22269_v57  ;;  %v19147_v48 = vld [vmem:[%s24592_s18 + $0x74] ss:$24 sps:$4 sm:$0xff]  }
 0x536   :  { %v22302_v44 = vadd.f32 %v7783_v33, %v22266_v49  ;;  %v7785_v16 = vpop.f32.mrb[134].mxu1  ;;  %9304 = vmatprep.mubr.bf16.mxu1 %v22291_v3  ;;  %9530 = vmatprep.mubr.bf16.mxu0 %v22291_v3 }
 0x537   :  { %24598 = vst [vmem:[#allocation50_spill] sm:$0xff] %v22307_v26  ;;  %v22310_v56 = vadd.f32 %v7785_v16, %v22269_v57  ;;  %v7787_v19 = vpop.f32.mrb[135].mxu1  ;;  %9305 = vmatmul.mubr.bf16.vlgmr.msra.gmra.mrb[160].mxu1 %v22298_v10  ;;  %9531 = vmatmul.mubr.bf16.vlgmr.msra.gmra.mrb[160].mxu0 %v22298_v10  ;;  %v24290_v50 = vmax.f32 %v22307_v26, 0.0 }
 0x538   :  { %24597 = vst [vmem:[#allocation51_spill] sm:$0xff] %v22302_v44  ;;  %v22315_v13 = vadd.f32 %v7787_v19, %v22266_v49  ;;  %9386 = vmatpush1.bf16.msra.mxu1 %v19130_v41  ;;  %10318 = vmatpush1.bf16.msra.mxu0 %v19133_v29  ;;  %v24288_v33 = vmax.f32 %v22302_v44, 0.0 }
 0x539   :  { %24599 = vst [vmem:[#allocation53_spill] sm:$0xff] %v22310_v56  ;;  %v24289_v4 = vmax.f32 %v22310_v56, 0.0  ;;  %9387 = vmatprep.subr.bf16.mxu1 %v19138_v17  ;;  %10319 = vmatprep.subr.bf16.mxu0 %v19141_v47  ;;  %v19142_v17 = vld [vmem:[#allocation18 + $0x68] ss:$24 sps:$4 sm:$0xff]  }
 0x53a   :  { %24600 = vst [vmem:[#allocation60_spill] sm:$0xff] %v22315_v13  ;;  %v24287_v16 = vmax.f32 %v22315_v13, 0.0  ;;  %v19145_v47 = vld [vmem:[%s24592_s18 + $0x70] ss:$24 sps:$4 sm:$0xff]  }
 0x53b   :  { %v22334_v19 = vpack.c.bf16 %v24289_v4, %v24290_v50  ;;  %v19151_v4 = vld [vmem:[%s24592_s18 + $0xa0] ss:$24 sps:$4 sm:$0xff]  }
 0x53c   :  { %v22327_v41 = vpack.c.bf16 %v24287_v16, %v24288_v33  ;;  %v7791_v29 = vpop.f32.mrb[136].mxu1  ;;  %9388 = vmatpush1.bf16.msra.mxu1 %v19136_v60  ;;  %10320 = vmatpush1.bf16.msra.mxu0 %v19139_v23 }
 0x53d   :  { %v7793_v15 = vpop.f32.mrb[137].mxu1  ;;  %9389 = vmatprep.subr.bf16.mxu1 %v19144_v62  ;;  %10321 = vmatprep.subr.bf16.mxu0 %v19147_v48  ;;  %v22343_v60 = vadd.f32 %v7791_v29, %v22269_v57  ;;  %v19148_v48 = vld [vmem:[#allocation18 + $0x98] ss:$24 sps:$4 sm:$0xff]   ;;  %v19156_v29 = vld [vmem:[#allocation18 + $0xcc] ss:$24 sps:$4 sm:$0xff]  }
 0x53e   :  { %v22338_v16 = vadd.f32 %v7793_v15, %v22266_v49  ;;  %v7795_v33 = vpop.f32.mrb[138].mxu1  ;;  %9314 = vmatprep.mubr.bf16.mxu1 %v22327_v41  ;;  %9540 = vmatprep.mubr.bf16.mxu0 %v22327_v41 }
 0x53f   :  { %24602 = vst [vmem:[#allocation52_spill] sm:$0xff] %v22343_v60  ;;  %v22346_v23 = vadd.f32 %v7795_v33, %v22269_v57  ;;  %v7797_v62 = vpop.f32.mrb[139].mxu1  ;;  %9315 = vmatmul.mubr.bf16.gmra.mrb[164].mxu1 %v22334_v19  ;;  %9541 = vmatmul.mubr.bf16.gmra.mrb[164].mxu0 %v22334_v19  ;;  %v19159_v33 = vld [vmem:[%s24592_s18 + $0xd4] ss:$24 sps:$4 sm:$0xff]   ;;  %v24300_v56 = vmax.f32 %v22343_v60, 0.0 }
 0x540   :  { %24601 = vst [vmem:[#allocation63_spill] sm:$0xff] %v22338_v16  ;;  %v22351_v15 = vadd.f32 %v7797_v62, %v22266_v49  ;;  %9390 = vmatpush1.bf16.msra.mxu1 %v19142_v17  ;;  %10322 = vmatpush1.bf16.msra.mxu0 %v19145_v47  ;;  %v24298_v13 = vmax.f32 %v22338_v16, 0.0  ;;  %v19162_v16 = vld [vmem:[#allocation18 + $0xfc] ss:$24 sps:$4 sm:$0xff]  }
 0x541   :  { %24603 = vst [vmem:[#allocation55_spill] sm:$0xff] %v22346_v23  ;;  %v24299_v50 = vmax.f32 %v22346_v23, 0.0  ;;  %9391 = vmatprep.subr.bf16.mxu1 %v19150_v12  ;;  %10323 = vmatprep.subr.bf16.mxu0 %v19153_v42  ;;  %v19154_v12 = vld [vmem:[#allocation18 + $0xc8] ss:$24 sps:$4 sm:$0xff]  }
 0x542   :  { %24604 = vst [vmem:[#allocation65_spill] sm:$0xff] %v22351_v15  ;;  %v24297_v44 = vmax.f32 %v22351_v15, 0.0  ;;  %v19157_v42 = vld [vmem:[%s24592_s18 + $0xd0] ss:$24 sps:$4 sm:$0xff]  }
 0x543   :  { %v22370_v62 = vpack.c.bf16 %v24299_v50, %v24300_v56  ;;  %v19163_v50 = vld [vmem:[%s24592_s18 + $0x100] ss:$24 sps:$4 sm:$0xff]  }
 0x544   :  { %v22363_v17 = vpack.c.bf16 %v24297_v44, %v24298_v13  ;;  %v7801_v47 = vpop.f32.mrb[140].mxu1  ;;  %9392 = vmatpush1.bf16.msra.mxu1 %v19148_v48  ;;  %10324 = vmatpush1.bf16.msra.mxu0 %v19151_v4 }
 0x545   :  { %v7803_v26 = vpop.f32.mrb[141].mxu1  ;;  %9393 = vmatprep.subr.bf16.mxu1 %v19156_v29  ;;  %10325 = vmatprep.subr.bf16.mxu0 %v19159_v33  ;;  %v22379_v4 = vadd.f32 %v7801_v47, %v22269_v57  ;;  %v19160_v33 = vld [vmem:[#allocation18 + $0xf8] ss:$24 sps:$4 sm:$0xff]   ;;  %v19168_v47 = vld [vmem:[#allocation18 + $0x12c] ss:$24 sps:$4 sm:$0xff]  }
 0x546   :  { %v22374_v44 = vadd.f32 %v7803_v26, %v22266_v49  ;;  %v7805_v13 = vpop.f32.mrb[142].mxu1  ;;  %9324 = vmatprep.mubr.bf16.mxu1 %v22363_v17  ;;  %9550 = vmatprep.mubr.bf16.mxu0 %v22363_v17 }
 0x547   :  { %24606 = vst [vmem:[#allocation57_spill] sm:$0xff] %v22379_v4  ;;  %v22382_v48 = vadd.f32 %v7805_v13, %v22269_v57  ;;  %v7807_v29 = vpop.f32.mrb[143].mxu1  ;;  %9325 = vmatmul.mubr.bf16.gmra.mrb[168].mxu1 %v22370_v62  ;;  %9551 = vmatmul.mubr.bf16.gmra.mrb[168].mxu0 %v22370_v62  ;;  %v19171_v13 = vld [vmem:[%s24592_s18 + $0x134] ss:$24 sps:$4 sm:$0xff]   ;;  %v24310_v60 = vmax.f32 %v22379_v4, 0.0 }
 0x548   :  { %24605 = vst [vmem:[#allocation54_spill] sm:$0xff] %v22374_v44  ;;  %v22387_v26 = vadd.f32 %v7807_v29, %v22266_v49  ;;  %9394 = vmatpush1.bf16.msra.mxu1 %v19154_v12  ;;  %10326 = vmatpush1.bf16.msra.mxu0 %v19157_v42  ;;  %v24308_v15 = vmax.f32 %v22374_v44, 0.0  ;;  %v19174_v44 = vld [vmem:[#allocation18 + $0x15c] ss:$24 sps:$4 sm:$0xff]  }
 0x549   :  { %24607 = vst [vmem:[#allocation56_spill] sm:$0xff] %v22382_v48  ;;  %v24309_v56 = vmax.f32 %v22382_v48, 0.0  ;;  %9395 = vmatprep.subr.bf16.mxu1 %v19162_v16  ;;  %10327 = vmatprep.subr.bf16.mxu0 %v19165_v46  ;;  %v19166_v16 = vld [vmem:[#allocation18 + $0x128] ss:$24 sps:$4 sm:$0xff]  }
 0x54a   :  { %24608 = vst [vmem:[#allocation59_spill] sm:$0xff] %v22387_v26  ;;  %v24307_v23 = vmax.f32 %v22387_v26, 0.0  ;;  %v19169_v46 = vld [vmem:[%s24592_s18 + $0x130] ss:$24 sps:$4 sm:$0xff]  }
 0x54b   :  { %v22406_v29 = vpack.c.bf16 %v24309_v56, %v24310_v60  ;;  %v19175_v56 = vld [vmem:[%s24592_s18 + $0x160] ss:$24 sps:$4 sm:$0xff]  }
 0x54c   :  { %v22399_v12 = vpack.c.bf16 %v24307_v23, %v24308_v15  ;;  %v7811_v42 = vpop.f32.mrb[144].mxu1  ;;  %9396 = vmatpush1.bf16.msra.mxu1 %v19160_v33  ;;  %10328 = vmatpush1.bf16.msra.mxu0 %v19163_v50 }
 0x54d   :  { %v7813_v30 = vpop.f32.mrb[145].mxu1  ;;  %9397 = vmatprep.subr.bf16.mxu1 %v19168_v47  ;;  %10329 = vmatprep.subr.bf16.mxu0 %v19171_v13  ;;  %v22415_v50 = vadd.f32 %v7811_v42, %v22269_v57  ;;  %v19172_v13 = vld [vmem:[#allocation18 + $0x158] ss:$24 sps:$4 sm:$0xff]   ;;  %v19180_v42 = vld [vmem:[#allocation18 + $0x18c] ss:$24 sps:$4 sm:$0xff]  }
 0x54e   :  { %v22410_v23 = vadd.f32 %v7813_v30, %v22266_v49  ;;  %v7815_v15 = vpop.f32.mrb[146].mxu1  ;;  %9334 = vmatprep.mubr.bf16.mxu1 %v22399_v12  ;;  %9560 = vmatprep.mubr.bf16.mxu0 %v22399_v12 }
 0x54f   :  { %24610 = vst [vmem:[#allocation62_spill] sm:$0xff] %v22415_v50  ;;  %v22418_v33 = vadd.f32 %v7815_v15, %v22269_v57  ;;  %v7817_v47 = vpop.f32.mrb[147].mxu1  ;;  %9335 = vmatmul.mubr.bf16.gmra.mrb[172].mxu1 %v22406_v29  ;;  %9561 = vmatmul.mubr.bf16.gmra.mrb[172].mxu0 %v22406_v29  ;;  %v19183_v15 = vld [vmem:[%s24592_s18 + $0x194] ss:$24 sps:$4 sm:$0xff]   ;;  %v24320_v4 = vmax.f32 %v22415_v50, 0.0 }
 0x550   :  { %24609 = vst [vmem:[#allocation58_spill] sm:$0xff] %v22410_v23  ;;  %v22423_v30 = vadd.f32 %v7817_v47, %v22266_v49  ;;  %9398 = vmatpush1.bf16.msra.mxu1 %v19166_v16  ;;  %10330 = vmatpush1.bf16.msra.mxu0 %v19169_v46  ;;  %v24318_v26 = vmax.f32 %v22410_v23, 0.0  ;;  %v19186_v23 = vld [vmem:[#allocation18 + $0x1bc] ss:$24 sps:$4 sm:$0xff]  }
 0x551   :  { %24611 = vst [vmem:[#allocation61_spill] sm:$0xff] %v22418_v33  ;;  %v24319_v60 = vmax.f32 %v22418_v33, 0.0  ;;  %9399 = vmatprep.subr.bf16.mxu1 %v19174_v44  ;;  %10331 = vmatprep.subr.bf16.mxu0 %v19177_v32  ;;  %v19178_v44 = vld [vmem:[#allocation18 + $0x188] ss:$24 sps:$4 sm:$0xff]  }
 0x552   :  { %24612 = vst [vmem:[#allocation71_spill] sm:$0xff] %v22423_v30  ;;  %v24317_v48 = vmax.f32 %v22423_v30, 0.0  ;;  %v19181_v32 = vld [vmem:[%s24592_s18 + $0x190] ss:$24 sps:$4 sm:$0xff]  }
 0x553   :  { %v22442_v47 = vpack.c.bf16 %v24319_v60, %v24320_v4  ;;  %v19187_v60 = vld [vmem:[%s24592_s18 + $0x1c0] ss:$24 sps:$4 sm:$0xff]  }
 0x554   :  { %v22435_v16 = vpack.c.bf16 %v24317_v48, %v24318_v26  ;;  %v7821_v46 = vpop.f32.mrb[148].mxu1  ;;  %9400 = vmatpush1.bf16.msra.mxu1 %v19172_v13  ;;  %10332 = vmatpush1.bf16.msra.mxu0 %v19175_v56 }
 0x555   :  { %v7823_v39 = vpop.f32.mrb[149].mxu1  ;;  %9401 = vmatprep.subr.bf16.mxu1 %v19180_v42  ;;  %10333 = vmatprep.subr.bf16.mxu0 %v19183_v15  ;;  %v22451_v56 = vadd.f32 %v7821_v46, %v22269_v57  ;;  %v19184_v15 = vld [vmem:[#allocation18 + $0x1b8] ss:$24 sps:$4 sm:$0xff]   ;;  %v19192_v46 = vld [vmem:[#allocation18 + $0x1ec] ss:$24 sps:$4 sm:$0xff]  }
 0x556   :  { %v22446_v48 = vadd.f32 %v7823_v39, %v22266_v49  ;;  %v7825_v26 = vpop.f32.mrb[150].mxu1  ;;  %9344 = vmatprep.mubr.bf16.mxu1 %v22435_v16  ;;  %9570 = vmatprep.mubr.bf16.mxu0 %v22435_v16 }
 0x557   :  { %24614 = vst [vmem:[#allocation79_spill] sm:$0xff] %v22451_v56  ;;  %v22454_v13 = vadd.f32 %v7825_v26, %v22269_v57  ;;  %v7827_v42 = vpop.f32.mrb[151].mxu1  ;;  %9345 = vmatmul.mubr.bf16.gmra.mrb[176].mxu1 %v22442_v47  ;;  %9571 = vmatmul.mubr.bf16.gmra.mrb[176].mxu0 %v22442_v47  ;;  %v19195_v26 = vld [vmem:[%s24592_s18 + $0x1f4] ss:$24 sps:$4 sm:$0xff]   ;;  %v24329_v50 = vmax.f32 %v22451_v56, 0.0 }
 0x558   :  { %24613 = vst [vmem:[#allocation66_spill] sm:$0xff] %v22446_v48  ;;  %v22459_v39 = vadd.f32 %v7827_v42, %v22266_v49  ;;  %9402 = vmatpush1.bf16.msra.mxu1 %v19178_v44  ;;  %10334 = vmatpush1.bf16.msra.mxu0 %v19181_v32  ;;  %v24327_v30 = vmax.f32 %v22446_v48, 0.0  ;;  %v19198_v48 = vld [vmem:[#allocation18 + $0x21c] ss:$24 sps:$4 sm:$0xff]  }
 0x559   :  { %24615 = vst [vmem:[#allocation74_spill] sm:$0xff] %v22454_v13  ;;  %v24328_v4 = vmax.f32 %v22454_v13, 0.0  ;;  %9403 = vmatprep.subr.bf16.mxu1 %v19186_v23  ;;  %10335 = vmatprep.subr.bf16.mxu0 %v19189_v59  ;;  %v19190_v23 = vld [vmem:[#allocation18 + $0x1e8] ss:$24 sps:$4 sm:$0xff]  }
 0x55a   :  { %24616 = vst [vmem:[#allocation81_spill] sm:$0xff] %v22459_v39  ;;  %v24326_v33 = vmax.f32 %v22459_v39, 0.0  ;;  %v19193_v59 = vld [vmem:[%s24592_s18 + $0x1f0] ss:$24 sps:$4 sm:$0xff]   ;;  %v6606_v39 = vld [vmem:[%s24618_s8] sm:$0x3] }
 0x55b   :  { %v22478_v42 = vpack.c.bf16 %v24328_v4, %v24329_v50  ;;  %v19199_v4 = vld [vmem:[%s24592_s18 + $0x220] ss:$24 sps:$4 sm:$0xff]   ;;  %v22512_v50 = vrot.slane %v6606_v39, %v24587_v25 }
 0x55c   :  { %v22471_v44 = vpack.c.bf16 %v24326_v33, %v24327_v30  ;;  %v7831_v32 = vpop.f32.mrb[152].mxu1  ;;  %9404 = vmatpush1.bf16.msra.mxu1 %v19184_v15  ;;  %10336 = vmatpush1.bf16.msra.mxu0 %v19187_v60 }
 0x55d   :  { %v7833_v22 = vpop.f32.mrb[153].mxu1  ;;  %9405 = vmatprep.subr.bf16.mxu1 %v19192_v46  ;;  %10337 = vmatprep.subr.bf16.mxu0 %v19195_v26  ;;  %v22487_v60 = vadd.f32 %v7831_v32, %v22269_v57  ;;  %v19196_v26 = vld [vmem:[#allocation18 + $0x218] ss:$24 sps:$4 sm:$0xff]   ;;  %v19204_v32 = vld [vmem:[#allocation18 + $0x24c] ss:$24 sps:$4 sm:$0xff]  }
 0x55e   :  { %v22482_v33 = vadd.f32 %v7833_v22, %v22266_v49  ;;  %v7835_v30 = vpop.f32.mrb[154].mxu1  ;;  %9354 = vmatprep.mubr.bf16.mxu1 %v22471_v44  ;;  %9580 = vmatprep.mubr.bf16.mxu0 %v22471_v44 }
 0x55f   :  { %24619 = vst [vmem:[#allocation83_spill] sm:$0xff] %v22487_v60  ;;  %v22490_v15 = vadd.f32 %v7835_v30, %v22269_v57  ;;  %v7837_v46 = vpop.f32.mrb[155].mxu1  ;;  %9355 = vmatmul.mubr.bf16.gmra.mrb[180].mxu1 %v22478_v42  ;;  %9581 = vmatmul.mubr.bf16.gmra.mrb[180].mxu0 %v22478_v42  ;;  %v19207_v30 = vld [vmem:[%s24592_s18 + $0x254] ss:$24 sps:$4 sm:$0xff]  }
 0x560   :  { %24617 = vst [vmem:[#allocation80_spill] sm:$0xff] %v22482_v33  ;;  %v22495_v22 = vadd.f32 %v7837_v46, %v22266_v49  ;;  %9406 = vmatpush1.bf16.msra.mxu1 %v19190_v23  ;;  %10338 = vmatpush1.bf16.msra.mxu0 %v19193_v59  ;;  %v24335_v13 = vmax.f32 %v22482_v33, 0.0  ;;  %v24336_v46 = vmax.f32 %v22487_v60, 0.0  ;;  %v22544_v33 = vadd.f32 %v22172_v11, %v22512_v50  ;;  %v19270_v60 = vld [vmem:[%s24592_s18 + $0x154] ss:$24 sps:$4 sm:$0xff]  }
 0x561   :  { %24620 = vst [vmem:[#allocation82_spill] sm:$0xff] %v22490_v15  ;;  %9407 = vmatprep.subr.bf16.mxu1 %v19198_v48  ;;  %10339 = vmatprep.subr.bf16.mxu0 %v19201_v61  ;;  %v19202_v61 = vld [vmem:[#allocation18 + $0x248] ss:$24 sps:$4 sm:$0xff]   ;;  %v24622_v34 = vmax.f32 %v22490_v15, 0.0 }
 0x562   :  { %24621 = vst [vmem:[#allocation85_spill] sm:$0xff] %v22495_v22  ;;  %v24334_v56 = vmax.f32 %v22495_v22, 0.0  ;;  %v19205_v48 = vld [vmem:[%s24592_s18 + $0x250] ss:$24 sps:$4 sm:$0xff]   ;;  %v19210_v22 = vld [vmem:[#allocation18 + $0x27c] ss:$24 sps:$4 sm:$0xff]  }
 0x563   :  { %v22518_v5 = vpack.c.bf16 %v24622_v34, %v24336_v46  ;;  %v19208_v46 = vld [vmem:[#allocation18 + $0x278] ss:$24 sps:$4 sm:$0xff]   ;;  %24628 = vst [vmem:[#allocation90_spill] sm:$0xff] %v22544_v33 }
 0x564   :  { %v22508_v23 = vpack.c.bf16 %v24334_v56, %v24335_v13  ;;  %v7841_v59 = vpop.f32.mrb[156].mxu1  ;;  %9408 = vmatpush1.bf16.msra.mxu1 %v19196_v26  ;;  %10340 = vmatpush1.bf16.msra.mxu0 %v19199_v4  ;;  %v19213_v56 = vld [vmem:[%s24592_s18 + $0x284] ss:$24 sps:$4 sm:$0xff]   ;;  %v22528_v13 = vadd.f32 %v22178_v40, %v22512_v50  ;;  %v19211_v40 = vld [vmem:[%s24592_s18 + $0x280] ss:$24 sps:$4 sm:$0xff]  }
 0x565   :  { %v7843_v21 = vpop.f32.mrb[157].mxu1  ;;  %9409 = vmatprep.subr.bf16.mxu1 %v19204_v32  ;;  %10341 = vmatprep.subr.bf16.mxu0 %v19207_v30  ;;  %v22531_v34 = vadd.f32 %v7841_v59, %v22269_v57 }
 0x566   :  { %v22522_v26 = vadd.f32 %v7843_v21, %v22266_v49  ;;  %v7845_v4 = vpop.f32.mrb[158].mxu1  ;;  %9364 = vmatprep.mubr.bf16.mxu1 %v22508_v23  ;;  %9590 = vmatprep.mubr.bf16.mxu0 %v22508_v23  ;;  %24624 = vst [vmem:[#allocation86_spill] sm:$0xff] %v22528_v13 }
 0x567   :  { %24625 = vst [vmem:[#allocation87_spill] sm:$0xff] %v22531_v34  ;;  %v22534_v32 = vadd.f32 %v7845_v4, %v22269_v57  ;;  %v7847_v30 = vpop.f32.mrb[159].mxu1  ;;  %9365 = vmatmul.mubr.bf16.gmra.mrb[184].mxu1 %v22518_v5  ;;  %9591 = vmatmul.mubr.bf16.gmra.mrb[184].mxu0 %v22518_v5  ;;  %v19216_v57 = vld [vmem:[#allocation18 + $0x2ac] ss:$24 sps:$4 sm:$0xff]  }
 0x568   :  { %24623 = vst [vmem:[#allocation84_spill] sm:$0xff] %v22522_v26  ;;  %v22539_v21 = vadd.f32 %v7847_v30, %v22266_v49  ;;  %9410 = vmatpush1.bf16.msra.mxu1 %v19202_v61  ;;  %10342 = vmatpush1.bf16.msra.mxu0 %v19205_v48  ;;  %v19219_v4 = vld [vmem:[%s24592_s18 + $0x2b4] ss:$24 sps:$4 sm:$0xff]   ;;  %v24341_v15 = vmax.f32 %v22522_v26, 0.0  ;;  %v24343_v48 = vmax.f32 %v22531_v34, 0.0  ;;  %v22553_v30 = vrot.slane %v6606_v39, %v24586_v9 }
 0x569   :  { %24626 = vst [vmem:[#allocation88_spill] sm:$0xff] %v22534_v32  ;;  %v24342_v59 = vmax.f32 %v22534_v32, 0.0  ;;  %9411 = vmatprep.subr.bf16.mxu1 %v19210_v22  ;;  %10343 = vmatprep.subr.bf16.mxu0 %v19213_v56  ;;  %v19214_v56 = vld [vmem:[#allocation18 + $0x2a8] ss:$24 sps:$4 sm:$0xff]   ;;  %v24344_v22 = vmax.f32 %v22544_v33, 0.0  ;;  %v22704_v32 = vadd.f32 %v22226_v18, %v22512_v50 }
 0x56a   :  { %24627 = vst [vmem:[#allocation89_spill] sm:$0xff] %v22539_v21  ;;  %v24340_v49 = vmax.f32 %v22539_v21, 0.0  ;;  %v19217_v39 = vld [vmem:[%s24592_s18 + $0x2b0] ss:$24 sps:$4 sm:$0xff]   ;;  %v22571_v26 = vadd.f32 %v22175_v37, %v22553_v30  ;;  %v22590_v37 = vadd.f32 %v22169_v54, %v22553_v30  ;;  %v19231_v54 = vld [vmem:[#allocation19 + $0x14] ss:$24 sps:$4 sm:$0xff]  }
 0x56b   :  { %v22566_v61 = vpack.c.bf16 %v24342_v59, %v24343_v48  ;;  %v19228_v59 = vld [vmem:[%s24592_s18 + $0x4] ss:$24 sps:$4 sm:$0xff]   ;;  %24644 = vst [vmem:[#allocation104_spill] sm:$0xff] %v22704_v32  ;;  %v19256_v18 = vld [vmem:[%s24592_s18 + $0xf0] ss:$24 sps:$4 sm:$0xff]  }
 0x56c   :  { %v22559_v11 = vpack.c.bf16 %v24340_v49, %v24341_v15  ;;  %9412 = vmatpush1.bf16.msra.mxu1 %v19208_v46  ;;  %10344 = vmatpush1.bf16.msra.mxu0 %v19211_v40  ;;  %24629 = vst [vmem:[#allocation91_spill] sm:$0xff] %v22571_v26  ;;  %v19222_v46 = vld [vmem:[#allocation18 + $0x2dc] ss:$24 sps:$4 sm:$0xff]   ;;  %v24630_v49 = vmax.f32 %v22528_v13, 0.0  ;;  %24632 = vst [vmem:[#allocation93_spill] sm:$0xff] %v22590_v37  ;;  %v24345_v48 = vmax.f32 %v22571_v26, 0.0 }
 0x56d   :  { %9413 = vmatprep.subr.bf16.mxu1 %v19216_v57  ;;  %10345 = vmatprep.subr.bf16.mxu0 %v19219_v4  ;;  %v19225_v40 = vld [vmem:[%s24592_s18 + $0x2e4] ss:$24 sps:$4 sm:$0xff]   ;;  %v22584_v57 = vadd.f32 %v22190_v8, %v22512_v50  ;;  %v19220_v4 = vld [vmem:[#allocation18 + $0x2d8] ss:$24 sps:$4 sm:$0xff]  }
 0x56e   :  { %9374 = vmatprep.mubr.bf16.mxu1 %v22559_v11  ;;  %9600 = vmatprep.mubr.bf16.mxu0 %v22559_v11  ;;  %v22580_v15 = vpack.c.bf16 %v24630_v49, %v24344_v22  ;;  %v22595_v49 = vadd.f32 %v22184_v58, %v22512_v50  ;;  %v19223_v8 = vld [vmem:[%s24592_s18 + $0x2e0] ss:$24 sps:$4 sm:$0xff]  }
 0x56f   :  { %24631 = vst [vmem:[#allocation92_spill] sm:$0xff] %v22584_v57  ;;  %9375 = vmatmul.mubr.bf16.gmra.mrb[188].mxu1 %v22566_v61  ;;  %9601 = vmatmul.mubr.bf16.gmra.mrb[188].mxu0 %v22566_v61  ;;  %v19226_v58 = vld [vmem:[%s24592_s18] ss:$24 sps:$4 sm:$0xff]  }
 0x570   :  { %9414 = vmatpush1.bf16.msra.mxu1 %v19214_v56  ;;  %9417 = vmatprep.mubr.bf16.mxu1 %v22291_v3  ;;  %24633 = vst [vmem:[#allocation94_spill] sm:$0xff] %v22595_v49  ;;  %v24347_v3 = vmax.f32 %v22590_v37, 0.0  ;;  %v24346_v22 = vmax.f32 %v22595_v49, 0.0  ;;  %v19234_v56 = vld [vmem:[%s24592_s18 + $0x34] ss:$24 sps:$4 sm:$0xff]  }
 0x571   :  { %10346 = vmatpush1.bf16.msra.mxu0 %v19217_v39  ;;  %10349 = vmatprep.mubr.bf16.mxu0 %v22580_v15 }
 0x572   :  { %9415 = vmatprep.subr.bf16.mxu1 %v19222_v46  ;;  %10347 = vmatprep.subr.bf16.mxu0 %v19225_v40  ;;  %v22609_v39 = vpack.c.bf16 %v24345_v48, %v24347_v3  ;;  %v22613_v46 = vadd.f32 %v22187_v27, %v22553_v30  ;;  %v19229_v40 = vld [vmem:[#allocation19 + $0x10] ss:$24 sps:$4 sm:$0xff]   ;;  %v19237_v48 = vld [vmem:[#allocation19 + $0x44] ss:$24 sps:$4 sm:$0xff]   ;;  %v22629_v27 = vadd.f32 %v22181_v20, %v22553_v30  ;;  %v19235_v20 = vld [vmem:[#allocation19 + $0x40] ss:$24 sps:$4 sm:$0xff]  }
 0x574   :  { %9416 = vmatpush1.bf16.msra.mxu1 %v19220_v4  ;;  %24634 = vst [vmem:[#allocation95_spill] sm:$0xff] %v22613_v46  ;;  %v24635_v4 = vmax.f32 %v22584_v57, 0.0  ;;  %24637 = vst [vmem:[#allocation97_spill] sm:$0xff] %v22629_v27  ;;  %v24352_v3 = vmax.f32 %v22629_v27, 0.0 }
 0x575   :  { %10348 = vmatpush1.bf16.msra.mxu0 %v19223_v8  ;;  %10091 = vmatprep.subr.bf16.mxu1 %v19228_v59  ;;  %v22624_v8 = vadd.f32 %v22202_v36, %v22512_v50  ;;  %v19232_v36 = vld [vmem:[%s24592_s18 + $0x30] ss:$24 sps:$4 sm:$0xff]  }
 0x576   :  { %11248 = vmatprep.subr.bf16.mxu0 %v19231_v54  ;;  %v22620_v59 = vpack.c.bf16 %v24635_v4, %v24346_v22  ;;  %v22635_v54 = vadd.f32 %v22196_v43, %v22512_v50  ;;  %v19240_v4 = vld [vmem:[%s24592_s18 + $0x64] ss:$24 sps:$4 sm:$0xff]  }
 0x577   :  { %24636 = vst [vmem:[#allocation96_spill] sm:$0xff] %v22624_v8  ;;  %9418 = vmatmul.mubr.bf16.vlgmr.msra.gmra.mrb[192].mxu1 %v22298_v10  ;;  %v24349_v10 = vmax.f32 %v22613_v46, 0.0  ;;  %v24350_v22 = vmax.f32 %v22624_v8, 0.0  ;;  %v19306_v8 = vld [vmem:[%s24592_s18 + $0x274] ss:$24 sps:$4 sm:$0xff]  }
 0x578   :  { %10350 = vmatmul.mubr.bf16.vlgmr.msra.gmra.mrb[160].mxu0 %v22609_v39  ;;  %9427 = vmatprep.mubr.bf16.mxu1 %v22327_v41  ;;  %24638 = vst [vmem:[#allocation98_spill] sm:$0xff] %v22635_v54  ;;  %v19243_v41 = vld [vmem:[#allocation19 + $0x74] ss:$24 sps:$4 sm:$0xff]   ;;  %v24351_v43 = vmax.f32 %v22635_v54, 0.0  ;;  %v19328_v46 = vld [vmem:[%s24592_s18 + $0x68] ss:$24 sps:$4 sm:$0xff]  }
 0x579   :  { %10092 = vmatpush1.bf16.msra.mxu1 %v19226_v58  ;;  %10359 = vmatprep.mubr.bf16.mxu0 %v22620_v59  ;;  %v19238_v58 = vld [vmem:[%s24592_s18 + $0x60] ss:$24 sps:$4 sm:$0xff]   ;;  %v22649_v21 = vpack.c.bf16 %v24349_v10, %v24352_v3  ;;  %v22664_v10 = vadd.f32 %v22214_v53, %v22512_v50  ;;  %v19244_v53 = vld [vmem:[%s24592_s18 + $0x90] ss:$24 sps:$4 sm:$0xff]  }
 0x57a   :  { %11249 = vmatpush1.bf16.msra.mxu0 %v19229_v40  ;;  %10093 = vmatprep.subr.bf16.mxu1 %v19234_v56  ;;  %v22653_v56 = vadd.f32 %v22199_v35, %v22553_v30  ;;  %v19246_v40 = vld [vmem:[%s24592_s18 + $0x94] ss:$24 sps:$4 sm:$0xff]  }
 0x57b   :  { %11250 = vmatprep.subr.bf16.mxu0 %v19237_v48  ;;  %v19241_v48 = vld [vmem:[#allocation19 + $0x70] ss:$24 sps:$4 sm:$0xff]   ;;  %24640 = vst [vmem:[#allocation100_spill] sm:$0xff] %v22664_v10  ;;  %v19249_v35 = vld [vmem:[#allocation19 + $0xa4] ss:$24 sps:$4 sm:$0xff]  }
 0x57c   :  { %24639 = vst [vmem:[#allocation99_spill] sm:$0xff] %v22653_v56 }
 0x57d   :  { %10094 = vmatpush1.bf16.msra.mxu1 %v19232_v36  ;;  %v22660_v36 = vpack.c.bf16 %v24350_v22, %v24351_v43  ;;  %v24354_v22 = vmax.f32 %v22664_v10, 0.0 }
 0x57e   :  { %11251 = vmatpush1.bf16.msra.mxu0 %v19235_v20  ;;  %10095 = vmatprep.subr.bf16.mxu1 %v19240_v4  ;;  %v22669_v20 = vadd.f32 %v22193_v52, %v22553_v30  ;;  %v22675_v4 = vadd.f32 %v22208_v45, %v22512_v50  ;;  %v19247_v52 = vld [vmem:[#allocation19 + $0xa0] ss:$24 sps:$4 sm:$0xff]  }
 0x57f   :  { %9428 = vmatmul.mubr.bf16.gmra.mrb[196].mxu1 %v22334_v19  ;;  %11252 = vmatprep.subr.bf16.mxu0 %v19243_v41  ;;  %v24356_v19 = vmax.f32 %v22653_v56, 0.0  ;;  %v19252_v41 = vld [vmem:[%s24592_s18 + $0xc4] ss:$24 sps:$4 sm:$0xff]  }
 0x580   :  { %24641 = vst [vmem:[#allocation101_spill] sm:$0xff] %v22669_v20  ;;  %10360 = vmatmul.mubr.bf16.gmra.mrb[164].mxu0 %v22649_v21  ;;  %9437 = vmatprep.mubr.bf16.mxu1 %v22363_v17  ;;  %24642 = vst [vmem:[#allocation102_spill] sm:$0xff] %v22675_v4  ;;  %v19255_v17 = vld [vmem:[#allocation19 + $0xd4] ss:$24 sps:$4 sm:$0xff]   ;;  %v24357_v43 = vmax.f32 %v22669_v20, 0.0  ;;  %v24355_v45 = vmax.f32 %v22675_v4, 0.0  ;;  %v22752_v4 = vadd.f32 %v22238_v55, %v22512_v50 }
 0x581   :  { %10096 = vmatpush1.bf16.msra.mxu1 %v19238_v58  ;;  %10369 = vmatprep.mubr.bf16.mxu0 %v22660_v36  ;;  %v19250_v58 = vld [vmem:[%s24592_s18 + $0xc0] ss:$24 sps:$4 sm:$0xff]   ;;  %v19268_v55 = vld [vmem:[%s24592_s18 + $0x150] ss:$24 sps:$4 sm:$0xff]   ;;  %v19333_v20 = vld [vmem:[%s24592_s18 + $0x9c] ss:$24 sps:$4 sm:$0xff]  }
 0x582   :  { %11253 = vmatpush1.bf16.msra.mxu0 %v19241_v48  ;;  %10097 = vmatprep.subr.bf16.mxu1 %v19246_v40  ;;  %v22689_v3 = vpack.c.bf16 %v24356_v19, %v24357_v43  ;;  %v22693_v48 = vadd.f32 %v22211_v31, %v22553_v30  ;;  %v19253_v40 = vld [vmem:[#allocation19 + $0xd0] ss:$24 sps:$4 sm:$0xff]   ;;  %v19261_v31 = vld [vmem:[#allocation19 + $0x104] ss:$24 sps:$4 sm:$0xff]   ;;  %24650 = vst [vmem:[#allocation108_spill] sm:$0xff] %v22752_v4 }
 0x583   :  { %11254 = vmatprep.subr.bf16.mxu0 %v19249_v35  ;;  %v19258_v35 = vld [vmem:[%s24592_s18 + $0xf4] ss:$24 sps:$4 sm:$0xff]  }
 0x584   :  { %24643 = vst [vmem:[#allocation103_spill] sm:$0xff] %v22693_v48 }
 0x585   :  { %10098 = vmatpush1.bf16.msra.mxu1 %v19244_v53  ;;  %v22700_v53 = vpack.c.bf16 %v24354_v22, %v24355_v45  ;;  %v19264_v22 = vld [vmem:[%s24592_s18 + $0x124] ss:$24 sps:$4 sm:$0xff]  }
 0x586   :  { %11255 = vmatpush1.bf16.msra.mxu0 %v19247_v52  ;;  %10099 = vmatprep.subr.bf16.mxu1 %v19252_v41  ;;  %v22709_v52 = vadd.f32 %v22205_v1, %v22553_v30  ;;  %v22715_v41 = vadd.f32 %v22220_v24, %v22512_v50  ;;  %v19259_v1 = vld [vmem:[#allocation19 + $0x100] ss:$24 sps:$4 sm:$0xff]   ;;  %v19267_v24 = vld [vmem:[#allocation19 + $0x134] ss:$24 sps:$4 sm:$0xff]  }
 0x587   :  { %9438 = vmatmul.mubr.bf16.gmra.mrb[200].mxu1 %v22370_v62  ;;  %11256 = vmatprep.subr.bf16.mxu0 %v19255_v17  ;;  %v19262_v62 = vld [vmem:[%s24592_s18 + $0x120] ss:$24 sps:$4 sm:$0xff]  }
 0x588   :  { %24645 = vst [vmem:[#allocation105_spill] sm:$0xff] %v22709_v52  ;;  %10370 = vmatmul.mubr.bf16.gmra.mrb[168].mxu0 %v22689_v3  ;;  %9447 = vmatprep.mubr.bf16.mxu1 %v22399_v12  ;;  %24646 = vst [vmem:[#allocation106_spill] sm:$0xff] %v22715_v41  ;;  %v24362_v43 = vmax.f32 %v22715_v41, 0.0  ;;  %v19265_v12 = vld [vmem:[#allocation19 + $0x130] ss:$24 sps:$4 sm:$0xff]  }
 0x589   :  { %10100 = vmatpush1.bf16.msra.mxu1 %v19250_v58  ;;  %10379 = vmatprep.mubr.bf16.mxu0 %v22700_v53  ;;  %v22720_v17 = vpop.f32.mrb[128].mxu0  ;;  %v24363_v58 = vmax.f32 %v22709_v52, 0.0  ;;  %v19282_v41 = vld [vmem:[%s24592_s18 + $0x1b4] ss:$24 sps:$4 sm:$0xff]  }
 0x58a   :  { %11257 = vmatpush1.bf16.msra.mxu0 %v19253_v40  ;;  %10101 = vmatprep.subr.bf16.mxu1 %v19258_v35  ;;  %v22724_v45 = vpop.f32.mrb[129].mxu0  ;;  %v24647_v35 = vmax.f32 %v22693_v48, 0.0 }
 0x58b   :  { %11258 = vmatprep.subr.bf16.mxu0 %v19261_v31  ;;  %v22727_v19 = vpop.f32.mrb[130].mxu0  ;;  %v22741_v31 = vadd.f32 %v22223_v51, %v22553_v30  ;;  %v19273_v51 = vld [vmem:[#allocation19 + $0x164] ss:$24 sps:$4 sm:$0xff]  }
 0x58c   :  { %v22730_v40 = vpop.f32.mrb[131].mxu0  ;;  %v22737_v34 = vpack.c.bf16 %v24647_v35, %v24363_v58  ;;  %v19276_v35 = vld [vmem:[%s24592_s18 + $0x184] ss:$24 sps:$4 sm:$0xff]  }
 0x58d   :  { %10102 = vmatpush1.bf16.msra.mxu1 %v19256_v18  ;;  %24648 = vst [vmem:[#allocation107_spill] sm:$0xff] %v22741_v31  ;;  %v24649_v18 = vmax.f32 %v22704_v32, 0.0 }
 0x58e   :  { %11259 = vmatpush1.bf16.msra.mxu0 %v19259_v1  ;;  %10103 = vmatprep.subr.bf16.mxu1 %v19264_v22  ;;  %v22757_v22 = vadd.f32 %v22217_v28, %v22553_v30  ;;  %v22763_v1 = vadd.f32 %v22232_v14, %v22512_v50  ;;  %v19271_v28 = vld [vmem:[#allocation19 + $0x160] ss:$24 sps:$4 sm:$0xff]   ;;  %v19279_v14 = vld [vmem:[#allocation19 + $0x194] ss:$24 sps:$4 sm:$0xff]  }
 0x58f   :  { %v22748_v10 = vpack.c.bf16 %v24649_v18, %v24362_v43  ;;  %9448 = vmatmul.mubr.bf16.gmra.mrb[204].mxu1 %v22406_v29  ;;  %11260 = vmatprep.subr.bf16.mxu0 %v19267_v24  ;;  %v19274_v29 = vld [vmem:[%s24592_s18 + $0x180] ss:$24 sps:$4 sm:$0xff]  }
 0x590   :  { %24651 = vst [vmem:[#allocation109_spill] sm:$0xff] %v22757_v22  ;;  %10380 = vmatmul.mubr.bf16.gmra.mrb[172].mxu0 %v22737_v34  ;;  %9457 = vmatprep.mubr.bf16.mxu1 %v22435_v16  ;;  %24652 = vst [vmem:[#allocation110_spill] sm:$0xff] %v22763_v1  ;;  %v24368_v58 = vmax.f32 %v22763_v1, 0.0  ;;  %v19277_v16 = vld [vmem:[#allocation19 + $0x190] ss:$24 sps:$4 sm:$0xff]  }
 0x591   :  { %10104 = vmatpush1.bf16.msra.mxu1 %v19262_v62  ;;  %10389 = vmatprep.mubr.bf16.mxu0 %v22748_v10  ;;  %v22768_v24 = vpop.f32.mrb[132].mxu0  ;;  %v24369_v62 = vmax.f32 %v22757_v22, 0.0  ;;  %v19294_v1 = vld [vmem:[%s24592_s18 + $0x214] ss:$24 sps:$4 sm:$0xff]  }
 0x592   :  { %11261 = vmatpush1.bf16.msra.mxu0 %v19265_v12  ;;  %10105 = vmatprep.subr.bf16.mxu1 %v19270_v60  ;;  %v22772_v18 = vpop.f32.mrb[133].mxu0  ;;  %v24653_v60 = vmax.f32 %v22741_v31, 0.0  ;;  %v22800_v31 = vadd.f32 %v22250_v38, %v22512_v50  ;;  %v19280_v38 = vld [vmem:[%s24592_s18 + $0x1b0] ss:$24 sps:$4 sm:$0xff]  }
 0x593   :  { %11262 = vmatprep.subr.bf16.mxu0 %v19273_v51  ;;  %v22775_v43 = vpop.f32.mrb[134].mxu0  ;;  %v22789_v51 = vadd.f32 %v22235_v63, %v22553_v30  ;;  %v19285_v63 = vld [vmem:[#allocation19 + $0x1c4] ss:$24 sps:$4 sm:$0xff]  }
 0x594   :  { %v22778_v12 = vpop.f32.mrb[135].mxu0  ;;  %v22785_v32 = vpack.c.bf16 %v24653_v60, %v24369_v62  ;;  %24656 = vst [vmem:[#allocation112_spill] sm:$0xff] %v22800_v31  ;;  %v19288_v60 = vld [vmem:[%s24592_s18 + $0x1e4] ss:$24 sps:$4 sm:$0xff]  }
 0x595   :  { %10106 = vmatpush1.bf16.msra.mxu1 %v19268_v55  ;;  %24654 = vst [vmem:[#allocation111_spill] sm:$0xff] %v22789_v51  ;;  %v24655_v55 = vmax.f32 %v22752_v4, 0.0 }
 0x596   :  { %11263 = vmatpush1.bf16.msra.mxu0 %v19271_v28  ;;  %10107 = vmatprep.subr.bf16.mxu1 %v19276_v35  ;;  %v22805_v28 = vadd.f32 %v22229_v7, %v22553_v30  ;;  %v22811_v35 = vadd.f32 %v22244_v2, %v22512_v50  ;;  %v19283_v7 = vld [vmem:[#allocation19 + $0x1c0] ss:$24 sps:$4 sm:$0xff]   ;;  %v19291_v2 = vld [vmem:[#allocation19 + $0x1f4] ss:$24 sps:$4 sm:$0xff]  }
 0x597   :  { %v22796_v48 = vpack.c.bf16 %v24655_v55, %v24368_v58  ;;  %9458 = vmatmul.mubr.bf16.gmra.mrb[208].mxu1 %v22442_v47  ;;  %11264 = vmatprep.subr.bf16.mxu0 %v19279_v14  ;;  %v19286_v47 = vld [vmem:[%s24592_s18 + $0x1e0] ss:$24 sps:$4 sm:$0xff]  }
 0x598   :  { %24657 = vst [vmem:[#allocation113_spill] sm:$0xff] %v22805_v28  ;;  %10390 = vmatmul.mubr.bf16.gmra.mrb[176].mxu0 %v22785_v32  ;;  %9467 = vmatprep.mubr.bf16.mxu1 %v22471_v44  ;;  %24658 = vst [vmem:[#allocation114_spill] sm:$0xff] %v22811_v35  ;;  %v24374_v62 = vmax.f32 %v22811_v35, 0.0  ;;  %v19289_v44 = vld [vmem:[#allocation19 + $0x1f0] ss:$24 sps:$4 sm:$0xff]  }
 0x599   :  { %10108 = vmatpush1.bf16.msra.mxu1 %v19274_v29  ;;  %10399 = vmatprep.mubr.bf16.mxu0 %v22796_v48  ;;  %v22816_v14 = vpop.f32.mrb[136].mxu0  ;;  %v24375_v29 = vmax.f32 %v22805_v28, 0.0  ;;  %v19298_v35 = vld [vmem:[%s24592_s18 + $0x240] ss:$24 sps:$4 sm:$0xff]  }
 0x59a   :  { %11265 = vmatpush1.bf16.msra.mxu0 %v19277_v16  ;;  %10109 = vmatprep.subr.bf16.mxu1 %v19282_v41  ;;  %v22820_v55 = vpop.f32.mrb[137].mxu0  ;;  %v24659_v41 = vmax.f32 %v22789_v51, 0.0  ;;  %v22848_v51 = vadd.f32 %v22262_v6, %v22512_v50  ;;  %v19292_v6 = vld [vmem:[%s24592_s18 + $0x210] ss:$24 sps:$4 sm:$0xff]  }
 0x59b   :  { %11266 = vmatprep.subr.bf16.mxu0 %v19285_v63  ;;  %v22823_v58 = vpop.f32.mrb[138].mxu0  ;;  %v22837_v63 = vadd.f32 %v22247_v0, %v22553_v30  ;;  %v19297_v0 = vld [vmem:[#allocation19 + $0x224] ss:$24 sps:$4 sm:$0xff]  }
 0x59c   :  { %v22826_v16 = vpop.f32.mrb[139].mxu0  ;;  %v22833_v4 = vpack.c.bf16 %v24659_v41, %v24375_v29  ;;  %24662 = vst [vmem:[#allocation116_spill] sm:$0xff] %v22848_v51  ;;  %v24665_v41 = vld [vmem:[#allocation78_spill] sm:$0xff]  ;;  %v24671_v54 = vmax.f32 %v22848_v51, 0.0 }
 0x59d   :  { %10110 = vmatpush1.bf16.msra.mxu1 %v19280_v38  ;;  %24660 = vst [vmem:[#allocation115_spill] sm:$0xff] %v22837_v63  ;;  %v24661_v38 = vmax.f32 %v22800_v31, 0.0  ;;  %v19300_v29 = vld [vmem:[%s24592_s18 + $0x244] ss:$24 sps:$4 sm:$0xff]  }
 0x59e   :  { %11267 = vmatpush1.bf16.msra.mxu0 %v19283_v7  ;;  %10111 = vmatprep.subr.bf16.mxu1 %v19288_v60  ;;  %v24663_v7 = vld [vmem:[#allocation76_spill] sm:$0xff] }
 0x59f   :  { %v22844_v22 = vpack.c.bf16 %v24661_v38, %v24374_v62  ;;  %9468 = vmatmul.mubr.bf16.gmra.mrb[212].mxu1 %v22478_v42  ;;  %11268 = vmatprep.subr.bf16.mxu0 %v19291_v2  ;;  %v22853_v60 = vadd.f32 %v24663_v7, %v22553_v30  ;;  %v22859_v38 = vadd.f32 %v24665_v41, %v22512_v50  ;;  %v7978_v62 = vld [vmem:[#allocation16] sm:$0x3]  ;;  %v19295_v7 = vld [vmem:[#allocation19 + $0x220] ss:$24 sps:$4 sm:$0xff]   ;;  %v19303_v50 = vld [vmem:[#allocation19 + $0x254] ss:$24 sps:$4 sm:$0xff]  }
 0x5a0   :  { %10400 = vmatmul.mubr.bf16.gmra.mrb[180].mxu0 %v22833_v4  ;;  %9477 = vmatprep.mubr.bf16.mxu1 %v22508_v23  ;;  %v24667_v23 = vmax.f32 %v22837_v63, 0.0  ;;  %v19301_v42 = vld [vmem:[#allocation19 + $0x250] ss:$24 sps:$4 sm:$0xff]  }
 0x5a1   :  { %24664 = vst [vmem:[#allocation76_spill] sm:$0xff] %v22853_v60  ;;  %24666 = vst [vmem:[#allocation78_spill] sm:$0xff] %v22859_v38  ;;  %10112 = vmatpush1.bf16.msra.mxu1 %v19286_v47  ;;  %10409 = vmatprep.mubr.bf16.mxu0 %v22844_v22  ;;  %v22864_v2 = vpop.f32.mrb[140].mxu0  ;;  %v24384_v47 = vmax.f32 %v22853_v60, 0.0 }
 0x5a2   :  { %11269 = vmatpush1.bf16.msra.mxu0 %v19289_v44  ;;  %10113 = vmatprep.subr.bf16.mxu1 %v19294_v1  ;;  %v22868_v31 = vpop.f32.mrb[141].mxu0  ;;  %v22875_v44 = vrot.slane %v7978_v62, %v24587_v25  ;;  %v19334_v25 = vld [vmem:[%s24592_s18 + $0xc8] ss:$24 sps:$4 sm:$0xff]  }
 0x5a3   :  { %11270 = vmatprep.subr.bf16.mxu0 %v19297_v0  ;;  %v22871_v41 = vpop.f32.mrb[142].mxu0  ;;  %v22884_v28 = vpack.c.bf16 %v24667_v23, %v24384_v47  ;;  %v24668_v0 = vld [vmem:[#allocation77_spill] sm:$0xff]  ;;  %v19309_v23 = vld [vmem:[#allocation19 + $0x284] ss:$24 sps:$4 sm:$0xff]   ;;  %v22925_v47 = vrot.slane %v7978_v62, %v24586_v9 }
 0x5a4   :  { %v22877_v1 = vpop.f32.mrb[143].mxu0  ;;  %v22888_v52 = vadd.f32 %v24668_v0, %v22553_v30  ;;  %v22899_v63 = vadd.f32 %v22730_v40, %v22875_v44  ;;  %v19304_v40 = vld [vmem:[%s24592_s18 + $0x270] ss:$24 sps:$4 sm:$0xff]   ;;  %v19312_v0 = vld [vmem:[%s24592_s18 + $0x2a4] ss:$24 sps:$4 sm:$0xff]  }
 0x5a5   :  { %10114 = vmatpush1.bf16.msra.mxu1 %v19292_v6  ;;  %v24670_v6 = vmax.f32 %v22859_v38, 0.0  ;;  %v19318_v38 = vld [vmem:[%s24592_s18 + $0x2d4] ss:$24 sps:$4 sm:$0xff]   ;;  %v22940_v62 = vadd.f32 %v22727_v19, %v22925_v47  ;;  %v22957_v19 = vadd.f32 %v22720_v17, %v22925_v47  ;;  %v23046_v33 = vadd.f32 %v22877_v1, %v22875_v44  ;;  %v19331_v1 = vld [vmem:[%s24592_s18 + $0x98] ss:$24 sps:$4 sm:$0xff]  }
 0x5a6   :  { %24669 = vst [vmem:[#allocation77_spill] sm:$0xff] %v22888_v52  ;;  %11271 = vmatpush1.bf16.msra.mxu0 %v19295_v7  ;;  %10115 = vmatprep.subr.bf16.mxu1 %v19300_v29  ;;  %v24672_v7 = vld [vmem:[#allocation75_spill] sm:$0xff] }
 0x5a7   :  { %v22895_v56 = vpack.c.bf16 %v24671_v54, %v24670_v6  ;;  %9478 = vmatmul.mubr.bf16.gmra.mrb[216].mxu1 %v22518_v5  ;;  %11272 = vmatprep.subr.bf16.mxu0 %v19303_v50  ;;  %v22904_v29 = vadd.f32 %v24672_v7, %v22553_v30  ;;  %v22910_v54 = vadd.f32 %v22724_v45, %v22875_v44  ;;  %v19307_v30 = vld [vmem:[#allocation19 + $0x280] ss:$24 sps:$4 sm:$0xff]   ;;  %v19315_v45 = vld [vmem:[#allocation19 + $0x2b4] ss:$24 sps:$4 sm:$0xff]   ;;  %v19310_v5 = vld [vmem:[%s24592_s18 + $0x2a0] ss:$24 sps:$4 sm:$0xff]  }
 0x5a8   :  { %10410 = vmatmul.mubr.bf16.gmra.mrb[184].mxu0 %v22884_v28  ;;  %9487 = vmatprep.mubr.bf16.mxu1 %v22559_v11  ;;  %v24674_v11 = vmax.f32 %v22888_v52, 0.0  ;;  %24680 = vst [vmem:[#allocation119_spill] sm:$0xff] %v23046_v33 }
 0x5a9   :  { %24673 = vst [vmem:[#allocation75_spill] sm:$0xff] %v22904_v29  ;;  %10116 = vmatpush1.bf16.msra.mxu1 %v19298_v35  ;;  %10419 = vmatprep.mubr.bf16.mxu0 %v22895_v56  ;;  %v22915_v50 = vpop.f32.mrb[144].mxu0  ;;  %v24388_v35 = vmax.f32 %v22904_v29, 0.0 }
 0x5aa   :  { %11273 = vmatpush1.bf16.msra.mxu0 %v19301_v42  ;;  %10117 = vmatprep.subr.bf16.mxu1 %v19306_v8  ;;  %v22919_v6 = vpop.f32.mrb[145].mxu0  ;;  %v24389_v42 = vmax.f32 %v22910_v54, 0.0 }
 0x5ab   :  { %11274 = vmatprep.subr.bf16.mxu0 %v19309_v23  ;;  %v22922_v7 = vpop.f32.mrb[146].mxu0  ;;  %v22935_v51 = vpack.c.bf16 %v24674_v11, %v24388_v35  ;;  %v19313_v23 = vld [vmem:[#allocation19 + $0x2b0] ss:$24 sps:$4 sm:$0xff]   ;;  %v19321_v11 = vld [vmem:[#allocation19 + $0x2e4] ss:$24 sps:$4 sm:$0xff]   ;;  %v24392_v35 = vmax.f32 %v22940_v62, 0.0 }
 0x5ac   :  { %v22928_v8 = vpop.f32.mrb[147].mxu0 }
 0x5ad   :  { %10118 = vmatpush1.bf16.msra.mxu1 %v19304_v40  ;;  %v24675_v40 = vmax.f32 %v22899_v63, 0.0 }
 0x5ae   :  { %11275 = vmatpush1.bf16.msra.mxu0 %v19307_v30  ;;  %10119 = vmatprep.subr.bf16.mxu1 %v19312_v0  ;;  %v22951_v30 = vadd.f32 %v22778_v12, %v22875_v44  ;;  %v19316_v0 = vld [vmem:[%s24592_s18 + $0x2d0] ss:$24 sps:$4 sm:$0xff]  }
 0x5af   :  { %v22946_v60 = vpack.c.bf16 %v24675_v40, %v24389_v42  ;;  %9488 = vmatmul.mubr.bf16.gmra.mrb[220].mxu1 %v22566_v61  ;;  %11276 = vmatprep.subr.bf16.mxu0 %v19315_v45  ;;  %v22963_v61 = vadd.f32 %v22772_v18, %v22875_v44  ;;  %v19319_v45 = vld [vmem:[#allocation19 + $0x2e0] ss:$24 sps:$4 sm:$0xff]   ;;  %v19324_v40 = vld [vmem:[%s24592_s18 + $0xc] ss:$24 sps:$4 sm:$0xff]   ;;  %v24394_v18 = vmax.f32 %v22957_v19, 0.0 }
 0x5b0   :  { %10420 = vmatmul.mubr.bf16.gmra.mrb[188].mxu0 %v22935_v51  ;;  %10123 = vmatprep.mubr.bf16.mxu1 %v22580_v15  ;;  %v24676_v29 = vmax.f32 %v22951_v30, 0.0 }
 0x5b1   :  { %10120 = vmatpush1.bf16.msra.mxu1 %v19310_v5  ;;  %11280 = vmatprep.mubr.bf16.mxu0 %v22946_v60  ;;  %v22965_v12 = vpop.f32.mrb[148].mxu0  ;;  %v22987_v5 = vadd.f32 %v22775_v43, %v22925_v47  ;;  %v23009_v43 = vadd.f32 %v22820_v55, %v22875_v44 }
 0x5b2   :  { %11277 = vmatpush1.bf16.msra.mxu0 %v19313_v23  ;;  %10121 = vmatprep.subr.bf16.mxu1 %v19318_v38  ;;  %v22969_v17 = vpop.f32.mrb[149].mxu0  ;;  %v24393_v23 = vmax.f32 %v22963_v61, 0.0  ;;  %v19322_v38 = vld [vmem:[%s24592_s18 + $0x8] ss:$24 sps:$4 sm:$0xff]  }
 0x5b3   :  { %11278 = vmatprep.subr.bf16.mxu0 %v19321_v11  ;;  %v22972_v42 = vpop.f32.mrb[150].mxu0  ;;  %v22983_v11 = vpack.c.bf16 %v24392_v35, %v24394_v18  ;;  %v23003_v35 = vadd.f32 %v22768_v24, %v22925_v47  ;;  %24678 = vst [vmem:[#allocation118_spill] sm:$0xff] %v23009_v43  ;;  %v19330_v18 = vld [vmem:[%s24592_s18 + $0x6c] ss:$24 sps:$4 sm:$0xff]  }
 0x5b4   :  { %v22975_v52 = vpop.f32.mrb[151].mxu0 }
 0x5b5   :  { %10122 = vmatpush1.bf16.msra.mxu1 %v19316_v0  ;;  %v19327_v0 = vld [vmem:[%s24592_s18 + $0x3c] ss:$24 sps:$4 sm:$0xff]   ;;  %v24404_v55 = vmax.f32 %v23003_v35, 0.0 }
 0x5b6   :  { %11279 = vmatpush1.bf16.msra.mxu0 %v19319_v45  ;;  %10204 = vmatprep.subr.bf16.mxu1 %v19324_v40  ;;  %v22994_v45 = vpack.c.bf16 %v24676_v29, %v24393_v23  ;;  %v22998_v40 = vadd.f32 %v22826_v16, %v22875_v44  ;;  %v19325_v29 = vld [vmem:[%s24592_s18 + $0x38] ss:$24 sps:$4 sm:$0xff]   ;;  %v24402_v23 = vmax.f32 %v22987_v5, 0.0 }
 0x5b8   :  { %24677 = vst [vmem:[#allocation117_spill] sm:$0xff] %v22998_v40  ;;  %10124 = vmatmul.mubr.bf16.vlgmr.msra.gmra.mrb[160].mxu1 %v22609_v39  ;;  %v23031_v27 = vpack.c.bf16 %v24402_v23, %v24404_v55  ;;  %v24679_v13 = vmax.f32 %v22998_v40, 0.0  ;;  %v23051_v23 = vadd.f32 %v22816_v14, %v22925_v47  ;;  %v19339_v55 = vld [vmem:[%s24592_s18 + $0xfc] ss:$24 sps:$4 sm:$0xff]   ;;  %v24682_v40 = vmax.f32 %v23046_v33, 0.0 }
 0x5b9   :  { %11281 = vmatmul.mubr.bf16.vlgmr.msra.gmra.mrb[160].mxu0 %v22983_v11  ;;  %10133 = vmatprep.mubr.bf16.mxu1 %v22620_v59  ;;  %v23012_v16 = vpop.f32.mrb[152].mxu0  ;;  %v19340_v33 = vld [vmem:[%s24592_s18 + $0x128] ss:$24 sps:$4 sm:$0xff]  }
 0x5ba   :  { %10205 = vmatpush1.bf16.msra.mxu1 %v19322_v38  ;;  %11290 = vmatprep.mubr.bf16.mxu0 %v22994_v45  ;;  %v23016_v24 = vpop.f32.mrb[153].mxu0  ;;  %v24403_v38 = vmax.f32 %v23009_v43, 0.0 }
 0x5bb   :  { %10206 = vmatprep.subr.bf16.mxu1 %v19327_v0  ;;  %v23020_v57 = vpop.f32.mrb[154].mxu0  ;;  %v23035_v0 = vadd.f32 %v22823_v58, %v22925_v47  ;;  %v23057_v58 = vadd.f32 %v22868_v31, %v22875_v44  ;;  %v24413_v31 = vmax.f32 %v23051_v23, 0.0 }
 0x5bc   :  { %v23023_v49 = vpop.f32.mrb[155].mxu0 }
 0x5bd   :  { %24681 = vst [vmem:[#allocation120_spill] sm:$0xff] %v23057_v58 }
 0x5be   :  { %10207 = vmatpush1.bf16.msra.mxu1 %v19325_v29  ;;  %v23042_v29 = vpack.c.bf16 %v24679_v13, %v24403_v38  ;;  %v19336_v38 = vld [vmem:[%s24592_s18 + $0xcc] ss:$24 sps:$4 sm:$0xff]  }
 0x5bf   :  { %10208 = vmatprep.subr.bf16.mxu1 %v19330_v18  ;;  %v24411_v18 = vmax.f32 %v23035_v0, 0.0 }
 0x5c0   :  { %10134 = vmatmul.mubr.bf16.gmra.mrb[164].mxu1 %v22649_v21 }
 0x5c1   :  { %11291 = vmatmul.mubr.bf16.gmra.mrb[164].mxu0 %v23031_v27  ;;  %10143 = vmatprep.mubr.bf16.mxu1 %v22660_v36  ;;  %v23060_v13 = vpop.f32.mrb[156].mxu0  ;;  %v23079_v9 = vpack.c.bf16 %v24411_v18, %v24413_v31  ;;  %v23099_v18 = vadd.f32 %v22864_v2, %v22925_v47 }
 0x5c2   :  { %10209 = vmatpush1.bf16.msra.mxu1 %v19328_v46  ;;  %11300 = vmatprep.mubr.bf16.mxu0 %v23042_v29  ;;  %v23064_v14 = vpop.f32.mrb[157].mxu0  ;;  %v24412_v46 = vmax.f32 %v23057_v58, 0.0 }
 0x5c3   :  { %10210 = vmatprep.subr.bf16.mxu1 %v19333_v20  ;;  %v23068_v26 = vpop.f32.mrb[158].mxu0  ;;  %v23083_v20 = vadd.f32 %v22871_v41, %v22925_v47  ;;  %v23105_v41 = vadd.f32 %v22919_v6, %v22875_v44  ;;  %v23123_v6 = vadd.f32 %v22922_v7, %v22925_v47  ;;  %v23145_v7 = vadd.f32 %v22969_v17, %v22875_v44 }
 0x5c4   :  { %v23071_v37 = vpop.f32.mrb[159].mxu0  ;;  %v23090_v43 = vpack.c.bf16 %v24682_v40, %v24412_v46  ;;  %v24419_v46 = vmax.f32 %v23099_v18, 0.0  ;;  %v23163_v17 = vadd.f32 %v22972_v42, %v22925_v47  ;;  %v23185_v42 = vadd.f32 %v23016_v24, %v22875_v44 }
 0x5c5   :  { %24684 = vst [vmem:[#allocation122_spill] sm:$0xff] %v23105_v41  ;;  %v24416_v40 = vmax.f32 %v23083_v20, 0.0  ;;  %v24418_v31 = vmax.f32 %v23105_v41, 0.0  ;;  %24686 = vst [vmem:[#allocation124_spill] sm:$0xff] %v23145_v7 }
 0x5c6   :  { %10211 = vmatpush1.bf16.msra.mxu1 %v19331_v1  ;;  %v23094_v1 = vadd.f32 %v22928_v8, %v22875_v44  ;;  %v19337_v8 = vld [vmem:[%s24592_s18 + $0xf8] ss:$24 sps:$4 sm:$0xff]  }
 0x5c7   :  { %10212 = vmatprep.subr.bf16.mxu1 %v19336_v38  ;;  %v19342_v38 = vld [vmem:[%s24592_s18 + $0x12c] ss:$24 sps:$4 sm:$0xff]  }
 0x5c8   :  { %24683 = vst [vmem:[#allocation121_spill] sm:$0xff] %v23094_v1  ;;  %10144 = vmatmul.mubr.bf16.gmra.mrb[168].mxu1 %v22689_v3  ;;  %v24417_v2 = vmax.f32 %v23094_v1, 0.0  ;;  %v19346_v1 = vld [vmem:[%s24592_s18 + $0x188] ss:$24 sps:$4 sm:$0xff]  }
 0x5c9   :  { %11301 = vmatmul.mubr.bf16.gmra.mrb[168].mxu0 %v23079_v9  ;;  %10153 = vmatprep.mubr.bf16.mxu1 %v22700_v53 }
 0x5ca   :  { %10213 = vmatpush1.bf16.msra.mxu1 %v19334_v25  ;;  %11310 = vmatprep.mubr.bf16.mxu0 %v23090_v43  ;;  %v23119_v25 = vpack.c.bf16 %v24416_v40, %v24419_v46  ;;  %v23130_v58 = vpack.c.bf16 %v24417_v2, %v24418_v31  ;;  %v23139_v40 = vadd.f32 %v22915_v50, %v22925_v47  ;;  %v19348_v2 = vld [vmem:[%s24592_s18 + $0x18c] ss:$24 sps:$4 sm:$0xff]   ;;  %v24424_v46 = vmax.f32 %v23145_v7, 0.0 }
 0x5cb   :  { %10214 = vmatprep.subr.bf16.mxu1 %v19339_v55  ;;  %v19345_v55 = vld [vmem:[%s24592_s18 + $0x15c] ss:$24 sps:$4 sm:$0xff]  }
 0x5cc   :  { %v24425_v31 = vmax.f32 %v23139_v40, 0.0 }
 0x5ce   :  { %10215 = vmatpush1.bf16.msra.mxu1 %v19337_v8  ;;  %v23134_v8 = vadd.f32 %v22975_v52, %v22875_v44  ;;  %v19343_v52 = vld [vmem:[%s24592_s18 + $0x158] ss:$24 sps:$4 sm:$0xff]  }
 0x5cf   :  { %10216 = vmatprep.subr.bf16.mxu1 %v19342_v38  ;;  %v24422_v38 = vmax.f32 %v23123_v6, 0.0 }
 0x5d0   :  { %24685 = vst [vmem:[#allocation123_spill] sm:$0xff] %v23134_v8  ;;  %10154 = vmatmul.mubr.bf16.gmra.mrb[172].mxu1 %v22737_v34  ;;  %v24423_v50 = vmax.f32 %v23134_v8, 0.0  ;;  %v19352_v8 = vld [vmem:[%s24592_s18 + $0x1e8] ss:$24 sps:$4 sm:$0xff]  }
 0x5d1   :  { %11311 = vmatmul.mubr.bf16.gmra.mrb[172].mxu0 %v23119_v25  ;;  %10163 = vmatprep.mubr.bf16.mxu1 %v22748_v10 }
 0x5d2   :  { %10217 = vmatpush1.bf16.msra.mxu1 %v19340_v33  ;;  %11320 = vmatprep.mubr.bf16.mxu0 %v23130_v58  ;;  %v23159_v33 = vpack.c.bf16 %v24422_v38, %v24425_v31  ;;  %v23170_v41 = vpack.c.bf16 %v24423_v50, %v24424_v46  ;;  %v23179_v38 = vadd.f32 %v22965_v12, %v22925_v47  ;;  %v19354_v50 = vld [vmem:[%s24592_s18 + $0x1ec] ss:$24 sps:$4 sm:$0xff]   ;;  %v24430_v31 = vmax.f32 %v23185_v42, 0.0 }
 0x5d3   :  { %10218 = vmatprep.subr.bf16.mxu1 %v19345_v55  ;;  %v19351_v55 = vld [vmem:[%s24592_s18 + $0x1bc] ss:$24 sps:$4 sm:$0xff]  }
 0x5d4   :  { %v24431_v46 = vmax.f32 %v23179_v38, 0.0 }
 0x5d6   :  { %10219 = vmatpush1.bf16.msra.mxu1 %v19343_v52  ;;  %v23174_v52 = vadd.f32 %v23023_v49, %v22875_v44  ;;  %v19349_v49 = vld [vmem:[%s24592_s18 + $0x1b8] ss:$24 sps:$4 sm:$0xff]  }
 0x5d7   :  { %10220 = vmatprep.subr.bf16.mxu1 %v19348_v2  ;;  %v24428_v2 = vmax.f32 %v23163_v17, 0.0 }
 0x5d8   :  { %24687 = vst [vmem:[#allocation125_spill] sm:$0xff] %v23174_v52  ;;  %10164 = vmatmul.mubr.bf16.gmra.mrb[176].mxu1 %v22785_v32  ;;  %v24429_v12 = vmax.f32 %v23174_v52, 0.0  ;;  %v19358_v52 = vld [vmem:[%s24592_s18 + $0x248] ss:$24 sps:$4 sm:$0xff]  }
 0x5d9   :  { %11321 = vmatmul.mubr.bf16.gmra.mrb[176].mxu0 %v23159_v33  ;;  %10173 = vmatprep.mubr.bf16.mxu1 %v22796_v48  ;;  %v23199_v24 = vpack.c.bf16 %v24428_v2, %v24431_v46  ;;  %v23219_v2 = vadd.f32 %v23012_v16, %v22925_v47 }
 0x5da   :  { %10221 = vmatpush1.bf16.msra.mxu1 %v19346_v1  ;;  %11330 = vmatprep.mubr.bf16.mxu0 %v23170_v41  ;;  %v23203_v1 = vadd.f32 %v23020_v57, %v22925_v47  ;;  %v23210_v7 = vpack.c.bf16 %v24429_v12, %v24430_v31  ;;  %v23225_v57 = vadd.f32 %v23064_v14, %v22875_v44  ;;  %v19360_v12 = vld [vmem:[%s24592_s18 + $0x24c] ss:$24 sps:$4 sm:$0xff]  }
 0x5db   :  { %10222 = vmatprep.subr.bf16.mxu1 %v19351_v55  ;;  %v19357_v55 = vld [vmem:[%s24592_s18 + $0x21c] ss:$24 sps:$4 sm:$0xff]   ;;  %v24436_v31 = vmax.f32 %v23219_v2, 0.0  ;;  %v23243_v14 = vadd.f32 %v23068_v26, %v22925_v47  ;;  %v19361_v26 = vld [vmem:[%s24592_s18 + $0x278] ss:$24 sps:$4 sm:$0xff]  }
 0x5dc   :  { %v24434_v46 = vmax.f32 %v23225_v57, 0.0 }
 0x5de   :  { %10223 = vmatpush1.bf16.msra.mxu1 %v19349_v49  ;;  %v23214_v49 = vadd.f32 %v23071_v37, %v22875_v44  ;;  %v19355_v37 = vld [vmem:[%s24592_s18 + $0x218] ss:$24 sps:$4 sm:$0xff]  }
 0x5df   :  { %10224 = vmatprep.subr.bf16.mxu1 %v19354_v50  ;;  %v24435_v50 = vmax.f32 %v23203_v1, 0.0 }
 0x5e0   :  { %10174 = vmatmul.mubr.bf16.gmra.mrb[180].mxu1 %v22833_v4  ;;  %v24433_v16 = vmax.f32 %v23214_v49, 0.0 }
 0x5e1   :  { %11331 = vmatmul.mubr.bf16.gmra.mrb[180].mxu0 %v23199_v24  ;;  %10183 = vmatprep.mubr.bf16.mxu1 %v22844_v22  ;;  %v23239_v44 = vpack.c.bf16 %v24435_v50, %v24436_v31  ;;  %v19364_v50 = vld [vmem:[%s24592_s18 + $0x2a8] ss:$24 sps:$4 sm:$0xff]   ;;  %v19375_v31 = vld [vmem:[#allocation19 + $0x34] ss:$24 sps:$4 sm:$0xff]  }
 0x5e2   :  { %10225 = vmatpush1.bf16.msra.mxu1 %v19352_v8  ;;  %11340 = vmatprep.mubr.bf16.mxu0 %v23210_v7  ;;  %v19363_v8 = vld [vmem:[%s24592_s18 + $0x27c] ss:$24 sps:$4 sm:$0xff]  }
 0x5e3   :  { %10226 = vmatprep.subr.bf16.mxu1 %v19357_v55  ;;  %v23250_v55 = vpack.c.bf16 %v24433_v16, %v24434_v46  ;;  %v19366_v16 = vld [vmem:[%s24592_s18 + $0x2ac] ss:$24 sps:$4 sm:$0xff]  }
 0x5e6   :  { %10227 = vmatpush1.bf16.msra.mxu1 %v19355_v37  ;;  %v23255_v37 = vadd.f32 %v23060_v13, %v22925_v47  ;;  %v19369_v13 = vld [vmem:[%s24592_s18 + $0x2dc] ss:$24 sps:$4 sm:$0xff]  }
 0x5e7   :  { %10228 = vmatprep.subr.bf16.mxu1 %v19360_v12  ;;  %v24437_v12 = vmax.f32 %v23243_v14, 0.0 }
 0x5e8   :  { %10184 = vmatmul.mubr.bf16.gmra.mrb[184].mxu1 %v22884_v28  ;;  %v24438_v46 = vmax.f32 %v23255_v37, 0.0 }
 0x5e9   :  { %11341 = vmatmul.mubr.bf16.gmra.mrb[184].mxu0 %v23239_v44  ;;  %10193 = vmatprep.mubr.bf16.mxu1 %v22895_v56 }
 0x5ea   :  { %10229 = vmatpush1.bf16.msra.mxu1 %v19358_v52  ;;  %11350 = vmatprep.mubr.bf16.mxu0 %v23250_v55  ;;  %v23269_v47 = vpack.c.bf16 %v24437_v12, %v24438_v46  ;;  %v19367_v52 = vld [vmem:[%s24592_s18 + $0x2d8] ss:$24 sps:$4 sm:$0xff]   ;;  %v19378_v12 = vld [vmem:[#allocation19 + $0x64] ss:$24 sps:$4 sm:$0xff]  }
 0x5eb   :  { %10230 = vmatprep.subr.bf16.mxu1 %v19363_v8  ;;  %v19372_v8 = vld [vmem:[#allocation19 + $0x4] ss:$24 sps:$4 sm:$0xff]   ;;  %v19376_v46 = vld [vmem:[#allocation19 + $0x60] ss:$24 sps:$4 sm:$0xff]  }
 0x5ee   :  { %10231 = vmatpush1.bf16.msra.mxu1 %v19361_v26  ;;  %v19370_v26 = vld [vmem:[#allocation19] ss:$24 sps:$4 sm:$0xff]  }
 0x5ef   :  { %10232 = vmatprep.subr.bf16.mxu1 %v19366_v16  ;;  %v19373_v16 = vld [vmem:[#allocation19 + $0x30] ss:$24 sps:$4 sm:$0xff]  }
 0x5f0   :  { %10194 = vmatmul.mubr.bf16.gmra.mrb[188].mxu1 %v22935_v51 }
 0x5f1   :  { %11351 = vmatmul.mubr.bf16.gmra.mrb[188].mxu0 %v23269_v47  ;;  %10236 = vmatprep.mubr.bf16.mxu1 %v22580_v15  ;;  %v19381_v15 = vld [vmem:[#allocation19 + $0x94] ss:$24 sps:$4 sm:$0xff]  }
 0x5f2   :  { %10233 = vmatpush1.bf16.msra.mxu1 %v19364_v50  ;;  %v19379_v50 = vld [vmem:[#allocation19 + $0x90] ss:$24 sps:$4 sm:$0xff]  }
 0x5f3   :  { %10234 = vmatprep.subr.bf16.mxu1 %v19369_v13  ;;  %v19384_v13 = vld [vmem:[#allocation19 + $0xc4] ss:$24 sps:$4 sm:$0xff]  }
 0x5f6   :  { %10235 = vmatpush1.bf16.msra.mxu1 %v19367_v52  ;;  %v19396_v52 = vld [vmem:[#allocation19 + $0x184] ss:$24 sps:$4 sm:$0xff]  }
 0x5f7   :  { %11022 = vmatprep.subr.bf16.mxu1 %v19372_v8  ;;  %v19397_v8 = vld [vmem:[#allocation19 + $0x1b0] ss:$24 sps:$4 sm:$0xff]  }
 0x5f9   :  { %10237 = vmatmul.mubr.bf16.vlgmr.msra.gmra.mrb[192].mxu1 %v22609_v39  ;;  %v19382_v39 = vld [vmem:[#allocation19 + $0xc0] ss:$24 sps:$4 sm:$0xff]  }
 0x5fa   :  { %10246 = vmatprep.mubr.bf16.mxu1 %v22620_v59  ;;  %11023 = vmatpush1.bf16.msra.mxu1 %v19370_v26  ;;  %v19387_v59 = vld [vmem:[#allocation19 + $0xf4] ss:$24 sps:$4 sm:$0xff]   ;;  %v19402_v26 = vld [vmem:[#allocation19 + $0x1e4] ss:$24 sps:$4 sm:$0xff]  }
 0x5fb   :  { %11024 = vmatprep.subr.bf16.mxu1 %v19375_v31  ;;  %v19385_v31 = vld [vmem:[#allocation19 + $0xf0] ss:$24 sps:$4 sm:$0xff]  }
 0x5fe   :  { %11025 = vmatpush1.bf16.msra.mxu1 %v19373_v16  ;;  %v19403_v16 = vld [vmem:[#allocation19 + $0x210] ss:$24 sps:$4 sm:$0xff]  }
 0x5ff   :  { %11026 = vmatprep.subr.bf16.mxu1 %v19378_v12  ;;  %v19390_v12 = vld [vmem:[#allocation19 + $0x124] ss:$24 sps:$4 sm:$0xff]  }
 0x601   :  { %10247 = vmatmul.mubr.bf16.gmra.mrb[196].mxu1 %v22649_v21  ;;  %v19388_v21 = vld [vmem:[#allocation19 + $0x120] ss:$24 sps:$4 sm:$0xff]  }
 0x602   :  { %10256 = vmatprep.mubr.bf16.mxu1 %v22660_v36  ;;  %11027 = vmatpush1.bf16.msra.mxu1 %v19376_v46  ;;  %v19393_v36 = vld [vmem:[#allocation19 + $0x154] ss:$24 sps:$4 sm:$0xff]   ;;  %v19391_v46 = vld [vmem:[#allocation19 + $0x150] ss:$24 sps:$4 sm:$0xff]  }
 0x603   :  { %11028 = vmatprep.subr.bf16.mxu1 %v19381_v15  ;;  %v19408_v15 = vld [vmem:[#allocation19 + $0x244] ss:$24 sps:$4 sm:$0xff]  }
 0x606   :  { %11029 = vmatpush1.bf16.msra.mxu1 %v19379_v50  ;;  %v19409_v50 = vld [vmem:[#allocation19 + $0x270] ss:$24 sps:$4 sm:$0xff]  }
 0x607   :  { %11030 = vmatprep.subr.bf16.mxu1 %v19384_v13  ;;  %v19414_v13 = vld [vmem:[#allocation19 + $0x2a4] ss:$24 sps:$4 sm:$0xff]  }
 0x609   :  { %10257 = vmatmul.mubr.bf16.gmra.mrb[200].mxu1 %v22689_v3  ;;  %v19394_v3 = vld [vmem:[#allocation19 + $0x180] ss:$24 sps:$4 sm:$0xff]  }
 0x60a   :  { %10266 = vmatprep.mubr.bf16.mxu1 %v22700_v53  ;;  %11031 = vmatpush1.bf16.msra.mxu1 %v19382_v39  ;;  %v19399_v53 = vld [vmem:[#allocation19 + $0x1b4] ss:$24 sps:$4 sm:$0xff]   ;;  %v19415_v39 = vld [vmem:[#allocation19 + $0x2d0] ss:$24 sps:$4 sm:$0xff]  }
 0x60b   :  { %11032 = vmatprep.subr.bf16.mxu1 %v19387_v59  ;;  %v19420_v59 = vld [vmem:[#allocation19 + $0xc] ss:$24 sps:$4 sm:$0xff]  }
 0x60e   :  { %11033 = vmatpush1.bf16.msra.mxu1 %v19385_v31  ;;  %v19421_v31 = vld [vmem:[#allocation19 + $0x38] ss:$24 sps:$4 sm:$0xff]  }
 0x60f   :  { %11034 = vmatprep.subr.bf16.mxu1 %v19390_v12  ;;  %v19426_v12 = vld [vmem:[#allocation19 + $0x6c] ss:$24 sps:$4 sm:$0xff]  }
 0x611   :  { %10267 = vmatmul.mubr.bf16.gmra.mrb[204].mxu1 %v22737_v34  ;;  %v19400_v34 = vld [vmem:[#allocation19 + $0x1e0] ss:$24 sps:$4 sm:$0xff]  }
 0x612   :  { %10276 = vmatprep.mubr.bf16.mxu1 %v22748_v10  ;;  %11035 = vmatpush1.bf16.msra.mxu1 %v19388_v21  ;;  %v19405_v10 = vld [vmem:[#allocation19 + $0x214] ss:$24 sps:$4 sm:$0xff]  }
 0x613   :  { %11036 = vmatprep.subr.bf16.mxu1 %v19393_v36  ;;  %v19429_v21 = vld [vmem:[#allocation19 + $0x9c] ss:$24 sps:$4 sm:$0xff]   ;;  %v19427_v36 = vld [vmem:[#allocation19 + $0x98] ss:$24 sps:$4 sm:$0xff]  }
 0x616   :  { %11037 = vmatpush1.bf16.msra.mxu1 %v19391_v46  ;;  %v19432_v46 = vld [vmem:[#allocation19 + $0xcc] ss:$24 sps:$4 sm:$0xff]  }
 0x617   :  { %11038 = vmatprep.subr.bf16.mxu1 %v19396_v52  ;;  %v19430_v52 = vld [vmem:[#allocation19 + $0xc8] ss:$24 sps:$4 sm:$0xff]  }
 0x619   :  { %10277 = vmatmul.mubr.bf16.gmra.mrb[208].mxu1 %v22785_v32  ;;  %v19406_v32 = vld [vmem:[#allocation19 + $0x240] ss:$24 sps:$4 sm:$0xff]  }
 0x61a   :  { %10286 = vmatprep.mubr.bf16.mxu1 %v22796_v48  ;;  %11039 = vmatpush1.bf16.msra.mxu1 %v19394_v3  ;;  %v19411_v48 = vld [vmem:[#allocation19 + $0x274] ss:$24 sps:$4 sm:$0xff]  }
 0x61b   :  { %11040 = vmatprep.subr.bf16.mxu1 %v19399_v53  ;;  %v19435_v3 = vld [vmem:[#allocation19 + $0xfc] ss:$24 sps:$4 sm:$0xff]   ;;  %v19433_v53 = vld [vmem:[#allocation19 + $0xf8] ss:$24 sps:$4 sm:$0xff]  }
 0x61e   :  { %11041 = vmatpush1.bf16.msra.mxu1 %v19397_v8  ;;  %v19438_v8 = vld [vmem:[#allocation19 + $0x12c] ss:$24 sps:$4 sm:$0xff]  }
 0x61f   :  { %11042 = vmatprep.subr.bf16.mxu1 %v19402_v26  ;;  %v19436_v26 = vld [vmem:[#allocation19 + $0x128] ss:$24 sps:$4 sm:$0xff]  }
 0x621   :  { %10287 = vmatmul.mubr.bf16.gmra.mrb[212].mxu1 %v22833_v4  ;;  %v19412_v4 = vld [vmem:[#allocation19 + $0x2a0] ss:$24 sps:$4 sm:$0xff]  }
 0x622   :  { %10296 = vmatprep.mubr.bf16.mxu1 %v22844_v22  ;;  %11043 = vmatpush1.bf16.msra.mxu1 %v19400_v34  ;;  %v19417_v22 = vld [vmem:[#allocation19 + $0x2d4] ss:$24 sps:$4 sm:$0xff]  }
 0x623   :  { %11044 = vmatprep.subr.bf16.mxu1 %v19405_v10  ;;  %v19441_v34 = vld [vmem:[#allocation19 + $0x15c] ss:$24 sps:$4 sm:$0xff]   ;;  %v19439_v10 = vld [vmem:[#allocation19 + $0x158] ss:$24 sps:$4 sm:$0xff]  }
 0x626   :  { %11045 = vmatpush1.bf16.msra.mxu1 %v19403_v16  ;;  %v19444_v16 = vld [vmem:[#allocation19 + $0x18c] ss:$24 sps:$4 sm:$0xff]  }
 0x627   :  { %11046 = vmatprep.subr.bf16.mxu1 %v19408_v15  ;;  %v19442_v15 = vld [vmem:[#allocation19 + $0x188] ss:$24 sps:$4 sm:$0xff]  }
 0x629   :  { %10297 = vmatmul.mubr.bf16.gmra.mrb[216].mxu1 %v22884_v28  ;;  %v19418_v28 = vld [vmem:[#allocation19 + $0x8] ss:$24 sps:$4 sm:$0xff]  }
 0x62a   :  { %10306 = vmatprep.mubr.bf16.mxu1 %v22895_v56  ;;  %11047 = vmatpush1.bf16.msra.mxu1 %v19406_v32  ;;  %v19423_v56 = vld [vmem:[#allocation19 + $0x3c] ss:$24 sps:$4 sm:$0xff]  }
 0x62b   :  { %11048 = vmatprep.subr.bf16.mxu1 %v19411_v48  ;;  %v19447_v32 = vld [vmem:[#allocation19 + $0x1bc] ss:$24 sps:$4 sm:$0xff]   ;;  %v19445_v48 = vld [vmem:[#allocation19 + $0x1b8] ss:$24 sps:$4 sm:$0xff]  }
 0x62e   :  { %11049 = vmatpush1.bf16.msra.mxu1 %v19409_v50  ;;  %v19450_v50 = vld [vmem:[#allocation19 + $0x1ec] ss:$24 sps:$4 sm:$0xff]  }
 0x62f   :  { %11050 = vmatprep.subr.bf16.mxu1 %v19414_v13  ;;  %v19448_v13 = vld [vmem:[#allocation19 + $0x1e8] ss:$24 sps:$4 sm:$0xff]  }
 0x631   :  { %10307 = vmatmul.mubr.bf16.gmra.mrb[220].mxu1 %v22935_v51  ;;  %v19424_v51 = vld [vmem:[#allocation19 + $0x68] ss:$24 sps:$4 sm:$0xff]  }
 0x632   :  { %11051 = vmatpush1.bf16.msra.mxu1 %v19412_v4  ;;  %11054 = vmatprep.mubr.bf16.mxu1 %v22946_v60  ;;  %v19453_v4 = vld [vmem:[#allocation19 + $0x21c] ss:$24 sps:$4 sm:$0xff]  }
 0x633   :  { %11052 = vmatprep.subr.bf16.mxu1 %v19417_v22  ;;  %v19451_v22 = vld [vmem:[#allocation19 + $0x218] ss:$24 sps:$4 sm:$0xff]  }
 0x636   :  { %11053 = vmatpush1.bf16.msra.mxu1 %v19415_v39  ;;  %v19456_v39 = vld [vmem:[#allocation19 + $0x24c] ss:$24 sps:$4 sm:$0xff]  }
 0x637   :  { %11135 = vmatprep.subr.bf16.mxu1 %v19420_v59  ;;  %v19454_v59 = vld [vmem:[#allocation19 + $0x248] ss:$24 sps:$4 sm:$0xff]  }
 0x639   :  { %11055 = vmatmul.mubr.bf16.vlgmr.msra.gmra.mrb[160].mxu1 %v22983_v11 }
 0x63a   :  { %11064 = vmatprep.mubr.bf16.mxu1 %v22994_v45  ;;  %11136 = vmatpush1.bf16.msra.mxu1 %v19418_v28  ;;  %v19459_v28 = vld [vmem:[#allocation19 + $0x27c] ss:$24 sps:$4 sm:$0xff]  }
 0x63b   :  { %11137 = vmatprep.subr.bf16.mxu1 %v19423_v56  ;;  %v19457_v56 = vld [vmem:[#allocation19 + $0x278] ss:$24 sps:$4 sm:$0xff]  }
 0x63e   :  { %11138 = vmatpush1.bf16.msra.mxu1 %v19421_v31  ;;  %v19462_v31 = vld [vmem:[#allocation19 + $0x2ac] ss:$24 sps:$4 sm:$0xff]  }
 0x63f   :  { %11139 = vmatprep.subr.bf16.mxu1 %v19426_v12  ;;  %v19460_v12 = vld [vmem:[#allocation19 + $0x2a8] ss:$24 sps:$4 sm:$0xff]  }
 0x641   :  { %11065 = vmatmul.mubr.bf16.gmra.mrb[164].mxu1 %v23031_v27 }
 0x642   :  { %11074 = vmatprep.mubr.bf16.mxu1 %v23042_v29  ;;  %11140 = vmatpush1.bf16.msra.mxu1 %v19424_v51  ;;  %v19465_v51 = vld [vmem:[#allocation19 + $0x2dc] ss:$24 sps:$4 sm:$0xff]  }
 0x643   :  { %11141 = vmatprep.subr.bf16.mxu1 %v19429_v21  ;;  %v19463_v21 = vld [vmem:[#allocation19 + $0x2d8] ss:$24 sps:$4 sm:$0xff]  }
 0x646   :  { %11142 = vmatpush1.bf16.msra.mxu1 %v19427_v36  ;;  %v24689_v36 = vld [vmem:[#allocation64_spill] sm:$0xff] }
 0x647   :  { %11143 = vmatprep.subr.bf16.mxu1 %v19432_v46  ;;  %v11477_v46 = vsub.s32 4, %v24689_v36 }
 0x649   :  { %11075 = vmatmul.mubr.bf16.gmra.mrb[168].mxu1 %v23079_v9 }
 0x64a   :  { %11084 = vmatprep.mubr.bf16.mxu1 %v23090_v43  ;;  %11144 = vmatpush1.bf16.msra.mxu1 %v19430_v52  ;;  %v23314_v52 = vld [vmem:[%s24688_s4] sm:$0x3f] }
 0x64b   :  { %11145 = vmatprep.subr.bf16.mxu1 %v19435_v3  ;;  %v11481_v3 = vsub.s32 5, %v24689_v36 }
 0x64e   :  { %11146 = vmatpush1.bf16.msra.mxu1 %v19433_v53 }
 0x64f   :  { %11147 = vmatprep.subr.bf16.mxu1 %v19438_v8 }
 0x651   :  { %11085 = vmatmul.mubr.bf16.gmra.mrb[172].mxu1 %v23119_v25 }
 0x652   :  { %11094 = vmatprep.mubr.bf16.mxu1 %v23130_v58  ;;  %11148 = vmatpush1.bf16.msra.mxu1 %v19436_v26 }
 0x653   :  { %11149 = vmatprep.subr.bf16.mxu1 %v19441_v34 }
 0x656   :  { %11150 = vmatpush1.bf16.msra.mxu1 %v19439_v10 }
 0x657   :  { %11151 = vmatprep.subr.bf16.mxu1 %v19444_v16 }
 0x659   :  { %11095 = vmatmul.mubr.bf16.gmra.mrb[176].mxu1 %v23159_v33 }
 0x65a   :  { %11104 = vmatprep.mubr.bf16.mxu1 %v23170_v41  ;;  %11152 = vmatpush1.bf16.msra.mxu1 %v19442_v15 }
 0x65b   :  { %11153 = vmatprep.subr.bf16.mxu1 %v19447_v32  ;;  %v24690_v32 = vmax.f32 %v22957_v19, 0.0 }
 0x65e   :  { %11154 = vmatpush1.bf16.msra.mxu1 %v19445_v48 }
 0x65f   :  { %11155 = vmatprep.subr.bf16.mxu1 %v19450_v50  ;;  %v24691_v50 = vmax.f32 %v22940_v62, 0.0 }
 0x661   :  { %11105 = vmatmul.mubr.bf16.gmra.mrb[180].mxu1 %v23199_v24 }
 0x662   :  { %11114 = vmatprep.mubr.bf16.mxu1 %v23210_v7  ;;  %11156 = vmatpush1.bf16.msra.mxu1 %v19448_v13 }
 0x663   :  { %11157 = vmatprep.subr.bf16.mxu1 %v19453_v4  ;;  %v24692_v4 = vmax.f32 %v22910_v54, 0.0  ;;  %v19468_v54 = vld [vmem:[#allocation22 + $0x4] ss:$16 sps:$4 sm:$0xff]  }
 0x664   :  { %12257 = vmatprep.subr.bf16.mxu0 %v19468_v54 }
 0x666   :  { %11158 = vmatpush1.bf16.msra.mxu1 %v19451_v22 }
 0x667   :  { %11159 = vmatprep.subr.bf16.mxu1 %v19456_v39  ;;  %v24693_v39 = vmax.f32 %v22899_v63, 0.0 }
 0x669   :  { %11115 = vmatmul.mubr.bf16.gmra.mrb[184].mxu1 %v23239_v44 }
 0x66a   :  { %11124 = vmatprep.mubr.bf16.mxu1 %v23250_v55  ;;  %11160 = vmatpush1.bf16.msra.mxu1 %v19454_v59 }
 0x66b   :  { %11161 = vmatprep.subr.bf16.mxu1 %v19459_v28 }
 0x66e   :  { %11162 = vmatpush1.bf16.msra.mxu1 %v19457_v56 }
 0x66f   :  { %11163 = vmatprep.subr.bf16.mxu1 %v19462_v31 }
 0x671   :  { %11125 = vmatmul.mubr.bf16.gmra.mrb[188].mxu1 %v23269_v47 }
 0x672   :  { %11164 = vmatpush1.bf16.msra.mxu1 %v19460_v12  ;;  %11167 = vmatprep.mubr.bf16.mxu1 %v22946_v60  ;;  %v23319_v60 = vrot.slane %v23314_v52, %v11477_v46  ;;  %v19466_v46 = vld [vmem:[#allocation22] ss:$16 sps:$4 sm:$0xff]  }
 0x673   :  { %11165 = vmatprep.subr.bf16.mxu1 %v19465_v51  ;;  %12258 = vmatpush1.bf16.msra.mxu0 %v19466_v46 }
 0x676   :  { %11166 = vmatpush1.bf16.msra.mxu1 %v19463_v21 }
 0x679   :  { %11168 = vmatmul.mubr.bf16.vlgmr.msra.gmra.mrb[192].mxu1 %v22983_v11  ;;  %v23323_v11 = vrot.slane %v23314_v52, %v11481_v3 }
 0x67a   :  { %11177 = vmatprep.mubr.bf16.mxu1 %v22994_v45 }
 0x681   :  { %11178 = vmatmul.mubr.bf16.gmra.mrb[196].mxu1 %v23031_v27 }
 0x682   :  { %11187 = vmatprep.mubr.bf16.mxu1 %v23042_v29 }
 0x689   :  { %11188 = vmatmul.mubr.bf16.gmra.mrb[200].mxu1 %v23079_v9 }
 0x68a   :  { %11197 = vmatprep.mubr.bf16.mxu1 %v23090_v43 }
 0x68c   :  { %v11282_v45 = vpop.f32.mrb[160].mxu0 }
 0x68d   :  { %v11493_v27 = vadd.f32 %v23319_v60, %v11282_v45  ;;  %v11284_v29 = vpop.f32.mrb[161].mxu0 }
 0x68e   :  { %v11494_v53 = vadd.f32 %v23323_v11, %v11284_v29  ;;  %v11286_v8 = vpop.f32.mrb[162].mxu0 }
 0x68f   :  { %v11589_v26 = vmax.f32 %v11493_v27, 0.0  ;;  %v11499_v34 = vadd.f32 %v23319_v60, %v11286_v8  ;;  %v11288_v10 = vpop.f32.mrb[163].mxu0  ;;  %v24694_v27 = vmax.f32 %v23003_v35, 0.0 }
 0x690   :  { %v11590_v9 = vmax.f32 %v11494_v53, 0.0  ;;  %v11500_v16 = vadd.f32 %v23323_v11, %v11288_v10  ;;  %v24695_v53 = vmax.f32 %v22987_v5, 0.0 }
 0x691   :  { %v11595_v15 = vmax.f32 %v11499_v34, 0.0  ;;  %11198 = vmatmul.mubr.bf16.gmra.mrb[204].mxu1 %v23119_v25  ;;  %v11745_v48 = vadd.f32 %v11589_v26, %v24690_v32  ;;  %v19471_v26 = vld [vmem:[#allocation22 + $0x24] ss:$16 sps:$4 sm:$0xff]   ;;  %v24696_v34 = vmax.f32 %v22963_v61, 0.0 }
 0x692   :  { %v11596_v43 = vmax.f32 %v11500_v16, 0.0  ;;  %11207 = vmatprep.mubr.bf16.mxu1 %v23130_v58  ;;  %v11746_v22 = vadd.f32 %v11590_v9, %v24692_v4  ;;  %v24697_v9 = vmax.f32 %v22951_v30, 0.0  ;;  %12259 = vmatprep.subr.bf16.mxu0 %v19471_v26  ;;  %v19474_v30 = vld [vmem:[#allocation22 + $0x44] ss:$16 sps:$4 sm:$0xff]  }
 0x693   :  { %v11747_v13 = vadd.f32 %v11595_v15, %v24691_v50 }
 0x694   :  { %v11748_v59 = vadd.f32 %v11596_v43, %v24693_v39  ;;  %v11292_v28 = vpop.f32.mrb[164].mxu0  ;;  %v19472_v39 = vld [vmem:[#allocation22 + $0x40] ss:$16 sps:$4 sm:$0xff]  }
 0x695   :  { %v23339_v56 = vpack.c.bf16 %v11747_v13, %v11745_v48  ;;  %v11505_v25 = vadd.f32 %v23319_v60, %v11292_v28  ;;  %v11294_v31 = vpop.f32.mrb[165].mxu0 }
 0x696   :  { %v11506_v58 = vadd.f32 %v23323_v11, %v11294_v31  ;;  %v11296_v12 = vpop.f32.mrb[166].mxu0  ;;  %v23343_v19 = vpack.c.bf16 %v11748_v59, %v11746_v22 }
 0x697   :  { %v11601_v51 = vmax.f32 %v11505_v25, 0.0  ;;  %v11511_v62 = vadd.f32 %v23319_v60, %v11296_v12  ;;  %v11298_v21 = vpop.f32.mrb[167].mxu0  ;;  %v24698_v25 = vmax.f32 %v23051_v23, 0.0 }
 0x698   :  { %v11602_v36 = vmax.f32 %v11506_v58, 0.0  ;;  %v11512_v63 = vadd.f32 %v23323_v11, %v11298_v21  ;;  %v24699_v58 = vmax.f32 %v23035_v0, 0.0 }
 0x699   :  { %v11607_v3 = vmax.f32 %v11511_v62, 0.0  ;;  %11208 = vmatmul.mubr.bf16.gmra.mrb[208].mxu1 %v23159_v33  ;;  %v11749_v29 = vadd.f32 %v11601_v51, %v24694_v27  ;;  %v19469_v33 = vld [vmem:[#allocation22 + $0x20] ss:$16 sps:$4 sm:$0xff]   ;;  %v19477_v51 = vld [vmem:[#allocation22 + $0x64] ss:$16 sps:$4 sm:$0xff]  }
 0x69a   :  { %v11608_v45 = vmax.f32 %v11512_v63, 0.0  ;;  %11217 = vmatprep.mubr.bf16.mxu1 %v23170_v41  ;;  %v11750_v10 = vadd.f32 %v11602_v36, %v24696_v34  ;;  %12260 = vmatpush1.bf16.msra.mxu0 %v19469_v33  ;;  %v24700_v62 = vld [vmem:[#allocation118_spill] sm:$0xff]  ;;  %v24702_v36 = vld [vmem:[#allocation117_spill] sm:$0xff] }
 0x69b   :  { %v11751_v8 = vadd.f32 %v11607_v3, %v24695_v53  ;;  %12261 = vmatprep.subr.bf16.mxu0 %v19474_v30  ;;  %v24701_v21 = vmax.f32 %v24700_v62, 0.0  ;;  %v24703_v63 = vmax.f32 %v24702_v36, 0.0  ;;  %v19480_v34 = vld [vmem:[#allocation22 + $0x84] ss:$16 sps:$4 sm:$0xff]   ;;  %v19484_v36 = vld [vmem:[#allocation22 + $0xc0] ss:$16 sps:$4 sm:$0xff]  }
 0x69c   :  { %v11752_v16 = vadd.f32 %v11608_v45, %v24697_v9  ;;  %v11302_v15 = vpop.f32.mrb[168].mxu0  ;;  %v19486_v62 = vld [vmem:[#allocation22 + $0xc4] ss:$16 sps:$4 sm:$0xff]  }
 0x69d   :  { %v11517_v43 = vadd.f32 %v23319_v60, %v11302_v15  ;;  %v11304_v32 = vpop.f32.mrb[169].mxu0  ;;  %v23358_v41 = vpack.c.bf16 %v11751_v8, %v11749_v29 }
 0x69e   :  { %v11518_v35 = vadd.f32 %v23323_v11, %v11304_v32  ;;  %v11306_v48 = vpop.f32.mrb[170].mxu0  ;;  %v23361_v5 = vpack.c.bf16 %v11752_v16, %v11750_v10  ;;  %12262 = vmatpush1.bf16.msra.mxu0 %v19472_v39  ;;  %v19478_v16 = vld [vmem:[#allocation22 + $0x80] ss:$16 sps:$4 sm:$0xff]  }
 0x69f   :  { %v11613_v50 = vmax.f32 %v11517_v43, 0.0  ;;  %v11523_v61 = vadd.f32 %v23319_v60, %v11306_v48  ;;  %v11308_v13 = vpop.f32.mrb[171].mxu0  ;;  %12263 = vmatprep.subr.bf16.mxu0 %v19477_v51  ;;  %v24704_v43 = vmax.f32 %v23099_v18, 0.0 }
 0x6a0   :  { %v11614_v4 = vmax.f32 %v11518_v35, 0.0  ;;  %v11524_v22 = vadd.f32 %v23323_v11, %v11308_v13  ;;  %v24705_v35 = vmax.f32 %v23083_v20, 0.0 }
 0x6a1   :  { %v11619_v59 = vmax.f32 %v11523_v61, 0.0  ;;  %11218 = vmatmul.mubr.bf16.gmra.mrb[212].mxu1 %v23199_v24  ;;  %v11753_v31 = vadd.f32 %v11613_v50, %v24698_v25  ;;  %v19475_v24 = vld [vmem:[#allocation22 + $0x60] ss:$16 sps:$4 sm:$0xff]   ;;  %v19483_v50 = vld [vmem:[#allocation22 + $0xa4] ss:$16 sps:$4 sm:$0xff]  }
 0x6a2   :  { %v11620_v28 = vmax.f32 %v11524_v22, 0.0  ;;  %11227 = vmatprep.mubr.bf16.mxu1 %v23210_v7  ;;  %v11754_v54 = vadd.f32 %v11614_v4, %v24701_v21  ;;  %12264 = vmatpush1.bf16.msra.mxu0 %v19475_v24  ;;  %v24706_v61 = vld [vmem:[#allocation120_spill] sm:$0xff]  ;;  %v24708_v4 = vld [vmem:[#allocation119_spill] sm:$0xff] }
 0x6a3   :  { %v11755_v12 = vadd.f32 %v11619_v59, %v24699_v58  ;;  %12265 = vmatprep.subr.bf16.mxu0 %v19480_v34  ;;  %v24707_v13 = vmax.f32 %v24706_v61, 0.0  ;;  %v24709_v22 = vmax.f32 %v24708_v4, 0.0 }
 0x6a4   :  { %v11756_v46 = vadd.f32 %v11620_v28, %v24703_v63  ;;  %v11312_v3 = vpop.f32.mrb[172].mxu0 }
 0x6a5   :  { %v11529_v45 = vadd.f32 %v23319_v60, %v11312_v3  ;;  %v11314_v27 = vpop.f32.mrb[173].mxu0  ;;  %v23376_v7 = vpack.c.bf16 %v11755_v12, %v11753_v31  ;;  %v24710_v3 = vmax.f32 %v23139_v40, 0.0 }
 0x6a6   :  { %v11530_v23 = vadd.f32 %v23323_v11, %v11314_v27  ;;  %v11316_v29 = vpop.f32.mrb[174].mxu0  ;;  %v23379_v0 = vpack.c.bf16 %v11756_v46, %v11754_v54  ;;  %12266 = vmatpush1.bf16.msra.mxu0 %v19478_v16  ;;  %v19487_v16 = vld [vmem:[#allocation22 + $0xe0] ss:$16 sps:$4 sm:$0xff]  }
 0x6a7   :  { %v11625_v53 = vmax.f32 %v11529_v45, 0.0  ;;  %v11535_v8 = vadd.f32 %v23319_v60, %v11316_v29  ;;  %v11318_v26 = vpop.f32.mrb[175].mxu0  ;;  %12267 = vmatprep.subr.bf16.mxu0 %v19483_v50  ;;  %v24711_v45 = vmax.f32 %v23123_v6, 0.0  ;;  %v24712_v29 = vld [vmem:[#allocation122_spill] sm:$0xff] }
 0x6a8   :  { %v11626_v10 = vmax.f32 %v11530_v23, 0.0  ;;  %v11536_v9 = vadd.f32 %v23323_v11, %v11318_v26  ;;  %v19489_v23 = vld [vmem:[#allocation22 + $0xe4] ss:$16 sps:$4 sm:$0xff]   ;;  %v24714_v26 = vld [vmem:[#allocation121_spill] sm:$0xff] }
 0x6a9   :  { %v11631_v15 = vmax.f32 %v11535_v8, 0.0  ;;  %11228 = vmatmul.mubr.bf16.gmra.mrb[216].mxu1 %v23239_v44  ;;  %v11757_v32 = vadd.f32 %v11625_v53, %v24704_v43  ;;  %v19481_v44 = vld [vmem:[#allocation22 + $0xa0] ss:$16 sps:$4 sm:$0xff]   ;;  %v24713_v53 = vmax.f32 %v24712_v29, 0.0  ;;  %v24715_v34 = vmax.f32 %v24714_v26, 0.0 }
 0x6aa   :  { %v11632_v33 = vmax.f32 %v11536_v9, 0.0  ;;  %11237 = vmatprep.mubr.bf16.mxu1 %v23250_v55  ;;  %v11758_v30 = vadd.f32 %v11626_v10, %v24707_v13  ;;  %12268 = vmatpush1.bf16.msra.mxu0 %v19481_v44  ;;  %v19492_v50 = vld [vmem:[#allocation22 + $0x104] ss:$16 sps:$4 sm:$0xff]   ;;  %v24717_v44 = vmax.f32 %v23163_v17, 0.0 }
 0x6ab   :  { %v11759_v48 = vadd.f32 %v11631_v15, %v24705_v35  ;;  %12269 = vmatprep.subr.bf16.mxu0 %v19486_v62 }
 0x6ac   :  { %v11760_v39 = vadd.f32 %v11632_v33, %v24709_v22  ;;  %v11322_v59 = vpop.f32.mrb[176].mxu0 }
 0x6ad   :  { %v11541_v28 = vadd.f32 %v23319_v60, %v11322_v59  ;;  %v11324_v25 = vpop.f32.mrb[177].mxu0  ;;  %v23394_v55 = vpack.c.bf16 %v11759_v48, %v11757_v32 }
 0x6ae   :  { %v11542_v18 = vadd.f32 %v23323_v11, %v11324_v25  ;;  %v11326_v31 = vpop.f32.mrb[178].mxu0  ;;  %v23397_v20 = vpack.c.bf16 %v11760_v39, %v11758_v30  ;;  %12270 = vmatpush1.bf16.msra.mxu0 %v19484_v36  ;;  %v19490_v30 = vld [vmem:[#allocation22 + $0x100] ss:$16 sps:$4 sm:$0xff]   ;;  %v24716_v39 = vmax.f32 %v23179_v38, 0.0  ;;  %v19495_v25 = vld [vmem:[#allocation22 + $0x124] ss:$16 sps:$4 sm:$0xff]  }
 0x6af   :  { %v11637_v58 = vmax.f32 %v11541_v28, 0.0  ;;  %v11547_v12 = vadd.f32 %v23319_v60, %v11326_v31  ;;  %v11328_v51 = vpop.f32.mrb[179].mxu0  ;;  %12271 = vmatprep.subr.bf16.mxu0 %v19489_v23  ;;  %v19498_v23 = vld [vmem:[#allocation22 + $0x144] ss:$16 sps:$4 sm:$0xff]  }
 0x6b0   :  { %v11638_v21 = vmax.f32 %v11542_v18, 0.0  ;;  %v11548_v54 = vadd.f32 %v23323_v11, %v11328_v51  ;;  %v24718_v18 = vld [vmem:[#allocation124_spill] sm:$0xff] }
 0x6b1   :  { %v11643_v63 = vmax.f32 %v11547_v12, 0.0  ;;  %11238 = vmatmul.mubr.bf16.gmra.mrb[220].mxu1 %v23269_v47  ;;  %v11761_v24 = vadd.f32 %v11637_v58, %v24710_v3  ;;  %v24719_v31 = vmax.f32 %v24718_v18, 0.0  ;;  %v24720_v12 = vld [vmem:[#allocation123_spill] sm:$0xff]  ;;  %v19502_v18 = vld [vmem:[#allocation22 + $0x180] ss:$16 sps:$4 sm:$0xff]  }
 0x6b2   :  { %v11644_v46 = vmax.f32 %v11548_v54, 0.0  ;;  %v11762_v8 = vadd.f32 %v11638_v21, %v24713_v53  ;;  %12272 = vmatpush1.bf16.msra.mxu0 %v19487_v16  ;;  %v24721_v51 = vmax.f32 %v24720_v12, 0.0  ;;  %v19493_v54 = vld [vmem:[#allocation22 + $0x120] ss:$16 sps:$4 sm:$0xff]   ;;  %v24724_v16 = vmax.f32 %v23203_v1, 0.0 }
 0x6b3   :  { %v11763_v27 = vadd.f32 %v11643_v63, %v24711_v45  ;;  %12273 = vmatprep.subr.bf16.mxu0 %v19492_v50  ;;  %v24730_v12 = vmax.f32 %v23255_v37, 0.0  ;;  %v19508_v37 = vld [vmem:[#allocation22 + $0x1c0] ss:$16 sps:$4 sm:$0xff]  }
 0x6b4   :  { %v11764_v10 = vadd.f32 %v11644_v46, %v24715_v34  ;;  %v11332_v9 = vpop.f32.mrb[180].mxu0 }
 0x6b5   :  { %v11553_v47 = vadd.f32 %v23319_v60, %v11332_v9  ;;  %v11334_v15 = vpop.f32.mrb[181].mxu0  ;;  %v23411_v33 = vpack.c.bf16 %v11763_v27, %v11761_v24 }
 0x6b6   :  { %v11554_v40 = vadd.f32 %v23323_v11, %v11334_v15  ;;  %v11336_v43 = vpop.f32.mrb[182].mxu0  ;;  %v23414_v6 = vpack.c.bf16 %v11764_v10, %v11762_v8  ;;  %12274 = vmatpush1.bf16.msra.mxu0 %v19490_v30  ;;  %v19496_v8 = vld [vmem:[#allocation22 + $0x140] ss:$16 sps:$4 sm:$0xff]   ;;  %v24723_v10 = vmax.f32 %v23219_v2, 0.0  ;;  %v19501_v15 = vld [vmem:[#allocation22 + $0x164] ss:$16 sps:$4 sm:$0xff]  }
 0x6b7   :  { %v11649_v32 = vmax.f32 %v11553_v47, 0.0  ;;  %v11559_v35 = vadd.f32 %v23319_v60, %v11336_v43  ;;  %v11338_v48 = vpop.f32.mrb[183].mxu0  ;;  %12275 = vmatprep.subr.bf16.mxu0 %v19495_v25 }
 0x6b8   :  { %v11650_v61 = vmax.f32 %v11554_v40, 0.0  ;;  %v11560_v13 = vadd.f32 %v23323_v11, %v11338_v48  ;;  %v24725_v40 = vmax.f32 %v23185_v42, 0.0 }
 0x6b9   :  { %v11655_v4 = vmax.f32 %v11559_v35, 0.0  ;;  %v11765_v59 = vadd.f32 %v11649_v32, %v24716_v39  ;;  %v24726_v32 = vld [vmem:[#allocation125_spill] sm:$0xff] }
 0x6ba   :  { %v11656_v22 = vmax.f32 %v11560_v13, 0.0  ;;  %v11766_v58 = vadd.f32 %v11650_v61, %v24719_v31  ;;  %12276 = vmatpush1.bf16.msra.mxu0 %v19493_v54  ;;  %v24727_v35 = vmax.f32 %v24726_v32, 0.0  ;;  %v19499_v61 = vld [vmem:[#allocation22 + $0x160] ss:$16 sps:$4 sm:$0xff]   ;;  %v19507_v54 = vld [vmem:[#allocation22 + $0x1a4] ss:$16 sps:$4 sm:$0xff]  }
 0x6bb   :  { %v11767_v28 = vadd.f32 %v11655_v4, %v24717_v44  ;;  %12277 = vmatprep.subr.bf16.mxu0 %v19498_v23  ;;  %v19504_v44 = vld [vmem:[#allocation22 + $0x184] ss:$16 sps:$4 sm:$0xff]   ;;  %v24736_v23 = vld [vmem:[#allocation67_spill] sm:$0xff] }
 0x6bc   :  { %v11768_v62 = vadd.f32 %v11656_v22, %v24721_v51  ;;  %v11342_v21 = vpop.f32.mrb[184].mxu0 }
 0x6bd   :  { %v11565_v36 = vadd.f32 %v23319_v60, %v11342_v21  ;;  %v11344_v63 = vpop.f32.mrb[185].mxu0  ;;  %v23427_v46 = vpack.c.bf16 %v11767_v28, %v11765_v59 }
 0x6be   :  { %v11566_v38 = vadd.f32 %v23323_v11, %v11344_v63  ;;  %v11346_v3 = vpop.f32.mrb[186].mxu0  ;;  %v23430_v17 = vpack.c.bf16 %v11768_v62, %v11766_v58  ;;  %12278 = vmatpush1.bf16.msra.mxu0 %v19496_v8  ;;  %v24731_v62 = vmax.f32 %v23243_v14, 0.0  ;;  %v24733_v63 = vmax.f32 %v23214_v49, 0.0  ;;  %v19513_v14 = vld [vmem:[#allocation22 + $0x1e4] ss:$16 sps:$4 sm:$0xff]  }
 0x6bf   :  { %24722 = vst [vmem:[#allocation64_spill] sm:$0xff] %v23427_v46  ;;  %v11661_v24 = vmax.f32 %v11565_v36, 0.0  ;;  %v11571_v45 = vadd.f32 %v23319_v60, %v11346_v3  ;;  %v11348_v27 = vpop.f32.mrb[187].mxu0  ;;  %12279 = vmatprep.subr.bf16.mxu0 %v19501_v15  ;;  %v24732_v36 = vmax.f32 %v23225_v57, 0.0  ;;  %v19505_v3 = vld [vmem:[#allocation22 + $0x1a0] ss:$16 sps:$4 sm:$0xff]   ;;  %v23464_v49 = vrot.slane %v23314_v52, %v24736_v23 }
 0x6c0   :  { %v11662_v29 = vmax.f32 %v11566_v38, 0.0  ;;  %v11572_v53 = vadd.f32 %v23323_v11, %v11348_v27  ;;  %v19511_v27 = vld [vmem:[#allocation22 + $0x1e0] ss:$16 sps:$4 sm:$0xff]   ;;  %v19516_v57 = vld [vmem:[#allocation22 + $0xc] ss:$16 sps:$4 sm:$0xff]  }
 0x6c1   :  { %v11667_v26 = vmax.f32 %v11571_v45, 0.0  ;;  %v11769_v9 = vadd.f32 %v11661_v24, %v24723_v10  ;;  %v19510_v45 = vld [vmem:[#allocation22 + $0x1c4] ss:$16 sps:$4 sm:$0xff]  }
 0x6c2   :  { %v11668_v34 = vmax.f32 %v11572_v53, 0.0  ;;  %v11770_v43 = vadd.f32 %v11662_v29, %v24725_v40  ;;  %12280 = vmatpush1.bf16.msra.mxu0 %v19499_v61  ;;  %v24737_v29 = vld [vmem:[#allocation68_spill] sm:$0xff] }
 0x6c3   :  { %v11771_v47 = vadd.f32 %v11667_v26, %v24724_v16  ;;  %12281 = vmatprep.subr.bf16.mxu0 %v19504_v44  ;;  %v23468_v53 = vrot.slane %v23314_v52, %v24737_v29 }
 0x6c4   :  { %v11772_v48 = vadd.f32 %v11668_v34, %v24727_v35  ;;  %v11352_v50 = vpop.f32.mrb[188].mxu0 }
 0x6c5   :  { %v11577_v13 = vadd.f32 %v23319_v60, %v11352_v50  ;;  %v11354_v30 = vpop.f32.mrb[189].mxu0  ;;  %v23443_v4 = vpack.c.bf16 %v11771_v47, %v11769_v9 }
 0x6c6   :  { %v11578_v2 = vadd.f32 %v23323_v11, %v11354_v30  ;;  %v11356_v22 = vpop.f32.mrb[190].mxu0  ;;  %v23446_v1 = vpack.c.bf16 %v11772_v48, %v11770_v43  ;;  %12282 = vmatpush1.bf16.msra.mxu0 %v19502_v18  ;;  %v24738_v48 = vld [vmem:[#allocation93_spill] sm:$0xff] }
 0x6c7   :  { %24728 = vst [vmem:[#allocation118_spill] sm:$0xff] %v23443_v4  ;;  %v11673_v39 = vmax.f32 %v11577_v13, 0.0  ;;  %v11583_v42 = vadd.f32 %v23319_v60, %v11356_v22  ;;  %v11358_v59 = vpop.f32.mrb[191].mxu0  ;;  %12283 = vmatprep.subr.bf16.mxu0 %v19507_v54  ;;  %v24739_v50 = vmax.f32 %v24738_v48, 0.0  ;;  %v24740_v13 = vld [vmem:[#allocation91_spill] sm:$0xff]  ;;  %v24742_v22 = vld [vmem:[#allocation90_spill] sm:$0xff] }
 0x6c8   :  { %24729 = vst [vmem:[#allocation117_spill] sm:$0xff] %v23446_v1  ;;  %v11674_v28 = vmax.f32 %v11578_v2, 0.0  ;;  %v11584_v25 = vadd.f32 %v23323_v11, %v11358_v59  ;;  %v24741_v30 = vmax.f32 %v24740_v13, 0.0  ;;  %v24744_v59 = vld [vmem:[#allocation86_spill] sm:$0xff] }
 0x6c9   :  { %v11679_v31 = vmax.f32 %v11583_v42, 0.0  ;;  %v11773_v51 = vadd.f32 %v11673_v39, %v24730_v12  ;;  %v24743_v39 = vmax.f32 %v24742_v22, 0.0  ;;  %v24745_v44 = vmax.f32 %v24744_v59, 0.0  ;;  %v24754_v59 = vld [vmem:[#allocation101_spill] sm:$0xff] }
 0x6ca   :  { %v11680_v58 = vmax.f32 %v11584_v25, 0.0  ;;  %v11774_v60 = vadd.f32 %v11674_v28, %v24732_v36  ;;  %12284 = vmatpush1.bf16.msra.mxu0 %v19505_v3 }
 0x6cb   :  { %v11775_v21 = vadd.f32 %v11679_v31, %v24731_v62  ;;  %12285 = vmatprep.subr.bf16.mxu0 %v19510_v45  ;;  %v24746_v45 = vld [vmem:[#allocation97_spill] sm:$0xff] }
 0x6cc   :  { %v11776_v38 = vadd.f32 %v11680_v58, %v24733_v63 }
 0x6cd   :  { %v23458_v11 = vpack.c.bf16 %v11775_v21, %v11773_v51 }
 0x6ce   :  { %v23460_v24 = vpack.c.bf16 %v11776_v38, %v11774_v60  ;;  %12286 = vmatpush1.bf16.msra.mxu0 %v19508_v37  ;;  %v24747_v37 = vmax.f32 %v24746_v45, 0.0 }
 0x6cf   :  { %24734 = vst [vmem:[#allocation120_spill] sm:$0xff] %v23458_v11  ;;  %12287 = vmatprep.subr.bf16.mxu0 %v19513_v14 }
 0x6d0   :  { %24735 = vst [vmem:[#allocation119_spill] sm:$0xff] %v23460_v24 }
 0x6d2   :  { %12288 = vmatpush1.bf16.msra.mxu0 %v19511_v27  ;;  %v24748_v27 = vld [vmem:[#allocation95_spill] sm:$0xff] }
 0x6d3   :  { %12370 = vmatprep.subr.bf16.mxu0 %v19516_v57  ;;  %v24749_v57 = vmax.f32 %v24748_v27, 0.0 }
 0x70c   :  { %v11056_v8 = vpop.f32.mrb[160].mxu1 }
 0x70d   :  { %v11489_v26 = vadd.f32 %v23464_v49, %v11056_v8  ;;  %v11058_v34 = vpop.f32.mrb[161].mxu1 }
 0x70e   :  { %v11490_v10 = vadd.f32 %v23468_v53, %v11058_v34  ;;  %v11060_v9 = vpop.f32.mrb[162].mxu1 }
 0x70f   :  { %v11585_v16 = vmax.f32 %v11489_v26, 0.0  ;;  %v11495_v47 = vadd.f32 %v23464_v49, %v11060_v9  ;;  %v11062_v15 = vpop.f32.mrb[163].mxu1  ;;  %v24750_v26 = vld [vmem:[#allocation94_spill] sm:$0xff]  ;;  %v24752_v9 = vld [vmem:[#allocation92_spill] sm:$0xff] }
 0x710   :  { %v11586_v40 = vmax.f32 %v11490_v10, 0.0  ;;  %v11496_v43 = vadd.f32 %v23468_v53, %v11062_v15  ;;  %v24751_v34 = vmax.f32 %v24750_v26, 0.0 }
 0x711   :  { %v11591_v32 = vmax.f32 %v11495_v47, 0.0  ;;  %v11681_v61 = vadd.f32 %v11585_v16, %v24739_v50  ;;  %v24753_v16 = vmax.f32 %v24752_v9, 0.0 }
 0x712   :  { %v11592_v35 = vmax.f32 %v11496_v43, 0.0  ;;  %v11682_v42 = vadd.f32 %v11586_v40, %v24743_v39 }
 0x713   :  { %v11683_v2 = vadd.f32 %v11591_v32, %v24741_v30 }
 0x714   :  { %v11684_v28 = vadd.f32 %v11592_v35, %v24745_v44  ;;  %v11066_v25 = vpop.f32.mrb[164].mxu1  ;;  %v24755_v44 = vmax.f32 %v24754_v59, 0.0 }
 0x715   :  { %v23482_v18 = vpack.c.bf16 %v11683_v2, %v11681_v61  ;;  %v11501_v31 = vadd.f32 %v23464_v49, %v11066_v25  ;;  %v11068_v58 = vpop.f32.mrb[165].mxu1  ;;  %v24756_v25 = vld [vmem:[#allocation99_spill] sm:$0xff] }
 0x716   :  { %v11502_v12 = vadd.f32 %v23468_v53, %v11068_v58  ;;  %v11070_v51 = vpop.f32.mrb[166].mxu1  ;;  %v23486_v62 = vpack.c.bf16 %v11684_v28, %v11682_v42 }
 0x717   :  { %v11597_v21 = vmax.f32 %v11501_v31, 0.0  ;;  %v11507_v54 = vadd.f32 %v23464_v49, %v11070_v51  ;;  %v11072_v36 = vpop.f32.mrb[167].mxu1  ;;  %v24757_v31 = vmax.f32 %v24756_v25, 0.0 }
 0x718   :  { %v11598_v60 = vmax.f32 %v11502_v12, 0.0  ;;  %v11508_v63 = vadd.f32 %v23468_v53, %v11072_v36  ;;  %v24758_v12 = vld [vmem:[#allocation98_spill] sm:$0xff] }
 0x719   :  { %v11603_v38 = vmax.f32 %v11507_v54, 0.0  ;;  %v11685_v14 = vadd.f32 %v11597_v21, %v24747_v37  ;;  %v24759_v51 = vmax.f32 %v24758_v12, 0.0  ;;  %v24760_v54 = vld [vmem:[#allocation96_spill] sm:$0xff] }
 0x71a   :  { %v11604_v3 = vmax.f32 %v11508_v63, 0.0  ;;  %v11686_v10 = vadd.f32 %v11598_v60, %v24751_v34  ;;  %v24761_v36 = vmax.f32 %v24760_v54, 0.0 }
 0x71b   :  { %v11687_v8 = vadd.f32 %v11603_v38, %v24749_v57 }
 0x71c   :  { %v11688_v47 = vadd.f32 %v11604_v3, %v24753_v16  ;;  %v11076_v15 = vpop.f32.mrb[168].mxu1 }
 0x71d   :  { %v11513_v40 = vadd.f32 %v23464_v49, %v11076_v15  ;;  %v11078_v43 = vpop.f32.mrb[169].mxu1  ;;  %v23499_v32 = vpack.c.bf16 %v11687_v8, %v11685_v14 }
 0x71e   :  { %v11514_v35 = vadd.f32 %v23468_v53, %v11078_v43  ;;  %v11080_v48 = vpop.f32.mrb[170].mxu1  ;;  %v23502_v50 = vpack.c.bf16 %v11688_v47, %v11686_v10  ;;  %v24762_v47 = vld [vmem:[#allocation105_spill] sm:$0xff]  ;;  %v24764_v43 = vld [vmem:[#allocation103_spill] sm:$0xff] }
 0x71f   :  { %v11609_v61 = vmax.f32 %v11513_v40, 0.0  ;;  %v11519_v13 = vadd.f32 %v23464_v49, %v11080_v48  ;;  %v11082_v30 = vpop.f32.mrb[171].mxu1  ;;  %v24763_v15 = vmax.f32 %v24762_v47, 0.0 }
 0x720   :  { %v11610_v2 = vmax.f32 %v11514_v35, 0.0  ;;  %v11520_v22 = vadd.f32 %v23468_v53, %v11082_v30  ;;  %v24765_v35 = vmax.f32 %v24764_v43, 0.0 }
 0x721   :  { %v11615_v39 = vmax.f32 %v11519_v13, 0.0  ;;  %v11689_v28 = vadd.f32 %v11609_v61, %v24755_v44  ;;  %v24766_v61 = vld [vmem:[#allocation102_spill] sm:$0xff] }
 0x722   :  { %v11616_v42 = vmax.f32 %v11520_v22, 0.0  ;;  %v11690_v21 = vadd.f32 %v11610_v2, %v24759_v51  ;;  %v24767_v13 = vmax.f32 %v24766_v61, 0.0  ;;  %v24768_v2 = vld [vmem:[#allocation100_spill] sm:$0xff] }
 0x723   :  { %v11691_v58 = vadd.f32 %v11615_v39, %v24757_v31  ;;  %v24769_v22 = vmax.f32 %v24768_v2, 0.0 }
 0x724   :  { %v11692_v60 = vadd.f32 %v11616_v42, %v24761_v36  ;;  %v11086_v63 = vpop.f32.mrb[172].mxu1 }
 0x725   :  { %v11525_v38 = vadd.f32 %v23464_v49, %v11086_v63  ;;  %v11088_v3 = vpop.f32.mrb[173].mxu1  ;;  %v23515_v45 = vpack.c.bf16 %v11691_v58, %v11689_v28 }
 0x726   :  { %v11526_v37 = vadd.f32 %v23468_v53, %v11088_v3  ;;  %v11090_v14 = vpop.f32.mrb[174].mxu1  ;;  %v23518_v27 = vpack.c.bf16 %v11692_v60, %v11690_v21 }
 0x727   :  { %v11621_v57 = vmax.f32 %v11525_v38, 0.0  ;;  %v11531_v8 = vadd.f32 %v23464_v49, %v11090_v14  ;;  %v11092_v26 = vpop.f32.mrb[175].mxu1  ;;  %v24770_v38 = vld [vmem:[#allocation109_spill] sm:$0xff]  ;;  %v24772_v14 = vld [vmem:[#allocation107_spill] sm:$0xff] }
 0x728   :  { %v11622_v34 = vmax.f32 %v11526_v37, 0.0  ;;  %v11532_v10 = vadd.f32 %v23468_v53, %v11092_v26  ;;  %v24771_v3 = vmax.f32 %v24770_v38, 0.0  ;;  %v24774_v26 = vld [vmem:[#allocation106_spill] sm:$0xff]  ;;  %v24784_v38 = vld [vmem:[#allocation108_spill] sm:$0xff] }
 0x729   :  { %v11627_v9 = vmax.f32 %v11531_v8, 0.0  ;;  %v11693_v40 = vadd.f32 %v11621_v57, %v24763_v15  ;;  %v24773_v57 = vmax.f32 %v24772_v14, 0.0 }
 0x72a   :  { %v11628_v16 = vmax.f32 %v11532_v10, 0.0  ;;  %v11694_v30 = vadd.f32 %v11622_v34, %v24767_v13  ;;  %v24775_v34 = vmax.f32 %v24774_v26, 0.0 }
 0x72b   :  { %v11695_v48 = vadd.f32 %v11627_v9, %v24765_v35  ;;  %v24776_v9 = vld [vmem:[#allocation104_spill] sm:$0xff] }
 0x72c   :  { %v11696_v39 = vadd.f32 %v11628_v16, %v24769_v22  ;;  %v11096_v42 = vpop.f32.mrb[176].mxu1  ;;  %v24777_v16 = vmax.f32 %v24776_v9, 0.0 }
 0x72d   :  { %v11537_v59 = vadd.f32 %v23464_v49, %v11096_v42  ;;  %v11098_v44 = vpop.f32.mrb[177].mxu1  ;;  %v23531_v28 = vpack.c.bf16 %v11695_v48, %v11693_v40 }
 0x72e   :  { %v11538_v25 = vadd.f32 %v23468_v53, %v11098_v44  ;;  %v11100_v31 = vpop.f32.mrb[178].mxu1  ;;  %v23534_v58 = vpack.c.bf16 %v11696_v39, %v11694_v30 }
 0x72f   :  { %v11633_v12 = vmax.f32 %v11537_v59, 0.0  ;;  %v11543_v51 = vadd.f32 %v23464_v49, %v11100_v31  ;;  %v11102_v21 = vpop.f32.mrb[179].mxu1 }
 0x730   :  { %v11634_v54 = vmax.f32 %v11538_v25, 0.0  ;;  %v11544_v36 = vadd.f32 %v23468_v53, %v11102_v21  ;;  %v24778_v25 = vld [vmem:[#allocation113_spill] sm:$0xff] }
 0x731   :  { %v11639_v60 = vmax.f32 %v11543_v51, 0.0  ;;  %v11697_v37 = vadd.f32 %v11633_v12, %v24771_v3  ;;  %v24779_v31 = vmax.f32 %v24778_v25, 0.0  ;;  %v24780_v51 = vld [vmem:[#allocation111_spill] sm:$0xff]  ;;  %v24785_v3 = vmax.f32 %v24784_v38, 0.0 }
 0x732   :  { %v11640_v63 = vmax.f32 %v11544_v36, 0.0  ;;  %v11698_v10 = vadd.f32 %v11634_v54, %v24775_v34  ;;  %v24781_v21 = vmax.f32 %v24780_v51, 0.0  ;;  %v24782_v36 = vld [vmem:[#allocation110_spill] sm:$0xff] }
 0x733   :  { %v11699_v8 = vadd.f32 %v11639_v60, %v24773_v57  ;;  %v24783_v60 = vmax.f32 %v24782_v36, 0.0 }
 0x734   :  { %v11700_v47 = vadd.f32 %v11640_v63, %v24777_v16  ;;  %v11106_v15 = vpop.f32.mrb[180].mxu1 }
 0x735   :  { %v11549_v40 = vadd.f32 %v23464_v49, %v11106_v15  ;;  %v11108_v43 = vpop.f32.mrb[181].mxu1  ;;  %v23547_v35 = vpack.c.bf16 %v11699_v8, %v11697_v37 }
 0x736   :  { %v11550_v48 = vadd.f32 %v23468_v53, %v11108_v43  ;;  %v11110_v61 = vpop.f32.mrb[182].mxu1  ;;  %v23550_v13 = vpack.c.bf16 %v11700_v47, %v11698_v10 }
 0x737   :  { %v11645_v30 = vmax.f32 %v11549_v40, 0.0  ;;  %v11555_v2 = vadd.f32 %v23464_v49, %v11110_v61  ;;  %v11112_v22 = vpop.f32.mrb[183].mxu1 }
 0x738   :  { %v11646_v39 = vmax.f32 %v11550_v48, 0.0  ;;  %v11556_v42 = vadd.f32 %v23468_v53, %v11112_v22 }
 0x739   :  { %v11651_v59 = vmax.f32 %v11555_v2, 0.0  ;;  %v11701_v12 = vadd.f32 %v11645_v30, %v24779_v31  ;;  %v24786_v30 = vld [vmem:[#allocation76_spill] sm:$0xff] }
 0x73a   :  { %v11652_v44 = vmax.f32 %v11556_v42, 0.0  ;;  %v11702_v63 = vadd.f32 %v11646_v39, %v24783_v60  ;;  %v24787_v2 = vmax.f32 %v24786_v30, 0.0  ;;  %v24788_v39 = vld [vmem:[#allocation115_spill] sm:$0xff] }
 0x73b   :  { %v11703_v54 = vadd.f32 %v11651_v59, %v24781_v21  ;;  %v24789_v42 = vmax.f32 %v24788_v39, 0.0 }
 0x73c   :  { %v11704_v37 = vadd.f32 %v11652_v44, %v24785_v3  ;;  %v11116_v14 = vpop.f32.mrb[184].mxu1  ;;  %v24790_v44 = vld [vmem:[#allocation114_spill] sm:$0xff] }
 0x73d   :  { %v11561_v57 = vadd.f32 %v23464_v49, %v11116_v14  ;;  %v11118_v8 = vpop.f32.mrb[185].mxu1  ;;  %v23563_v26 = vpack.c.bf16 %v11703_v54, %v11701_v12  ;;  %v24791_v25 = vmax.f32 %v24790_v44, 0.0  ;;  %v24792_v12 = vld [vmem:[#allocation112_spill] sm:$0xff] }
 0x73e   :  { %v11562_v34 = vadd.f32 %v23468_v53, %v11118_v8  ;;  %v11120_v10 = vpop.f32.mrb[186].mxu1  ;;  %v23566_v9 = vpack.c.bf16 %v11704_v37, %v11702_v63  ;;  %v24793_v51 = vmax.f32 %v24792_v12, 0.0 }
 0x73f   :  { %v11657_v16 = vmax.f32 %v11561_v57, 0.0  ;;  %v11567_v47 = vadd.f32 %v23464_v49, %v11120_v10  ;;  %v11122_v15 = vpop.f32.mrb[187].mxu1 }
 0x740   :  { %v11658_v40 = vmax.f32 %v11562_v34, 0.0  ;;  %v11568_v43 = vadd.f32 %v23468_v53, %v11122_v15 }
 0x741   :  { %v11663_v48 = vmax.f32 %v11567_v47, 0.0  ;;  %v11705_v22 = vadd.f32 %v11657_v16, %v24787_v2  ;;  %v24794_v47 = vld [vmem:[#allocation72_spill] sm:$0xff] }
 0x742   :  { %v11664_v61 = vmax.f32 %v11568_v43, 0.0  ;;  %v11706_v31 = vadd.f32 %v11658_v40, %v24791_v25  ;;  %v23588_v15 = vrot.slane %v23314_v52, %v24794_v47  ;;  %v24795_v43 = vld [vmem:[#allocation73_spill] sm:$0xff] }
 0x743   :  { %v11707_v59 = vadd.f32 %v11663_v48, %v24789_v42  ;;  %v23592_v48 = vrot.slane %v23314_v52, %v24795_v43  ;;  %v24800_v42 = vld [vmem:[#allocation78_spill] sm:$0xff] }
 0x744   :  { %v11708_v21 = vadd.f32 %v11664_v61, %v24793_v51  ;;  %v11126_v54 = vpop.f32.mrb[188].mxu1  ;;  %v24796_v61 = vld [vmem:[#allocation75_spill] sm:$0xff] }
 0x745   :  { %v11573_v36 = vadd.f32 %v23464_v49, %v11126_v54  ;;  %v11128_v60 = vpop.f32.mrb[189].mxu1  ;;  %v23579_v63 = vpack.c.bf16 %v11707_v59, %v11705_v22  ;;  %v24797_v30 = vmax.f32 %v24796_v61, 0.0  ;;  %v24798_v22 = vld [vmem:[#allocation77_spill] sm:$0xff]  ;;  %v24801_v59 = vmax.f32 %v24800_v42, 0.0 }
 0x746   :  { %v11574_v38 = vadd.f32 %v23468_v53, %v11128_v60  ;;  %v11130_v3 = vpop.f32.mrb[190].mxu1  ;;  %v23582_v37 = vpack.c.bf16 %v11708_v21, %v11706_v31  ;;  %v24799_v39 = vmax.f32 %v24798_v22, 0.0 }
 0x747   :  { %v11669_v14 = vmax.f32 %v11573_v36, 0.0  ;;  %v11579_v57 = vadd.f32 %v23464_v49, %v11130_v3  ;;  %v11132_v8 = vpop.f32.mrb[191].mxu1 }
 0x748   :  { %v11670_v34 = vmax.f32 %v11574_v38, 0.0  ;;  %v11580_v10 = vadd.f32 %v23468_v53, %v11132_v8  ;;  %v24802_v53 = vld [vmem:[#allocation116_spill] sm:$0xff] }
 0x749   :  { %v11675_v16 = vmax.f32 %v11579_v57, 0.0  ;;  %v11709_v2 = vadd.f32 %v11669_v14, %v24797_v30  ;;  %v24803_v25 = vmax.f32 %v24802_v53, 0.0  ;;  %v24806_v30 = vld [vmem:[#allocation49_spill] sm:$0xff] }
 0x74a   :  { %v11676_v40 = vmax.f32 %v11580_v10, 0.0  ;;  %v11710_v44 = vadd.f32 %v11670_v34, %v24801_v59  ;;  %v24810_v59 = vld [vmem:[#allocation70_spill] sm:$0xff] }
 0x74b   :  { %v11711_v49 = vadd.f32 %v11675_v16, %v24799_v39  ;;  %v24804_v16 = vld [vmem:[#allocation48_spill] sm:$0xff]  ;;  %v24808_v39 = vld [vmem:[#allocation69_spill] sm:$0xff] }
 0x74c   :  { %v11712_v31 = vadd.f32 %v11676_v40, %v24803_v25  ;;  %v11169_v12 = vpop.f32.mrb[192].mxu1  ;;  %v24805_v40 = vmax.f32 %v24804_v16, 0.0 }
 0x74d   :  { %v11491_v51 = vadd.f32 %v23588_v15, %v11169_v12  ;;  %v11171_v21 = vpop.f32.mrb[193].mxu1  ;;  %v23603_v54 = vpack.c.bf16 %v11711_v49, %v11709_v2  ;;  %v24807_v2 = vmax.f32 %v24806_v30, 0.0  ;;  %v24809_v49 = vmax.f32 %v24808_v39, 0.0  ;;  %v24812_v30 = vld [vmem:[#allocation50_spill] sm:$0xff]  ;;  %v24814_v39 = vld [vmem:[#allocation53_spill] sm:$0xff] }
 0x74e   :  { %v11492_v52 = vadd.f32 %v23592_v48, %v11171_v21  ;;  %v11173_v36 = vpop.f32.mrb[194].mxu1  ;;  %v23606_v60 = vpack.c.bf16 %v11712_v31, %v11710_v44  ;;  %v24811_v44 = vmax.f32 %v24810_v59, 0.0  ;;  %v19522_v59 = vld [vmem:[#allocation22 + $0x4c] ss:$16 sps:$4 sm:$0xff]  }
 0x74f   :  { %v11587_v38 = vmax.f32 %v11491_v51, 0.0  ;;  %v11497_v3 = vadd.f32 %v23588_v15, %v11173_v36  ;;  %v11175_v14 = vpop.f32.mrb[195].mxu1 }
 0x750   :  { %v11588_v57 = vmax.f32 %v11492_v52, 0.0  ;;  %v11498_v8 = vadd.f32 %v23592_v48, %v11175_v14 }
 0x751   :  { %v11593_v34 = vmax.f32 %v11497_v3, 0.0  ;;  %v11713_v61 = vadd.f32 %v11587_v38, %v24805_v40  ;;  %v19514_v38 = vld [vmem:[#allocation22 + $0x8] ss:$16 sps:$4 sm:$0xff]  }
 0x752   :  { %v11594_v10 = vmax.f32 %v11498_v8, 0.0  ;;  %v11714_v42 = vadd.f32 %v11588_v57, %v24809_v49  ;;  %v19519_v57 = vld [vmem:[#allocation22 + $0x2c] ss:$16 sps:$4 sm:$0xff]   ;;  %v24815_v49 = vmax.f32 %v24814_v39, 0.0 }
 0x753   :  { %v11715_v22 = vadd.f32 %v11593_v34, %v24807_v2  ;;  %v24813_v2 = vmax.f32 %v24812_v30, 0.0  ;;  %v19525_v39 = vld [vmem:[#allocation22 + $0x6c] ss:$16 sps:$4 sm:$0xff]  }
 0x754   :  { %v11716_v53 = vadd.f32 %v11594_v10, %v24811_v44  ;;  %v11179_v25 = vpop.f32.mrb[196].mxu1  ;;  %v24816_v44 = vld [vmem:[#allocation51_spill] sm:$0xff] }
 0x755   :  { %v23618_v31 = vpack.c.bf16 %v11715_v22, %v11713_v61  ;;  %v11503_v12 = vadd.f32 %v23588_v15, %v11179_v25  ;;  %v11181_v51 = vpop.f32.mrb[197].mxu1  ;;  %v19517_v61 = vld [vmem:[#allocation22 + $0x28] ss:$16 sps:$4 sm:$0xff]  }
 0x756   :  { %v11504_v21 = vadd.f32 %v23592_v48, %v11181_v51  ;;  %v11183_v52 = vpop.f32.mrb[198].mxu1  ;;  %v23622_v36 = vpack.c.bf16 %v11716_v53, %v11714_v42  ;;  %v24817_v53 = vmax.f32 %v24816_v44, 0.0  ;;  %v24820_v44 = vld [vmem:[#allocation52_spill] sm:$0xff] }
 0x757   :  { %v11599_v3 = vmax.f32 %v11503_v12, 0.0  ;;  %v11509_v14 = vadd.f32 %v23588_v15, %v11183_v52  ;;  %v11185_v8 = vpop.f32.mrb[199].mxu1  ;;  %v24818_v12 = vld [vmem:[#allocation60_spill] sm:$0xff] }
 0x758   :  { %v11600_v34 = vmax.f32 %v11504_v21, 0.0  ;;  %v11510_v10 = vadd.f32 %v23592_v48, %v11185_v8  ;;  %12289 = vmatprep.mubr.bf16.mxu0 %v23622_v36  ;;  %v24819_v51 = vmax.f32 %v24818_v12, 0.0  ;;  %v24822_v12 = vld [vmem:[#allocation55_spill] sm:$0xff] }
 0x759   :  { %v11605_v16 = vmax.f32 %v11509_v14, 0.0  ;;  %12290 = vmatmul.mubr.bf16.vlgmr.msra.gmra.mrb[192].mxu0 %v23618_v31  ;;  %v11717_v22 = vadd.f32 %v11599_v3, %v24813_v2 }
 0x75a   :  { %v11606_v40 = vmax.f32 %v11510_v10, 0.0  ;;  %12371 = vmatpush1.bf16.msra.mxu0 %v19514_v38  ;;  %v11718_v25 = vadd.f32 %v11600_v34, %v24817_v53  ;;  %v24821_v53 = vmax.f32 %v24820_v44, 0.0 }
 0x75b   :  { %v11719_v42 = vadd.f32 %v11605_v16, %v24815_v49  ;;  %12372 = vmatprep.subr.bf16.mxu0 %v19519_v57  ;;  %v19520_v57 = vld [vmem:[#allocation22 + $0x48] ss:$16 sps:$4 sm:$0xff]  }
 0x75c   :  { %v11720_v21 = vadd.f32 %v11606_v40, %v24819_v51  ;;  %v11189_v52 = vpop.f32.mrb[200].mxu1  ;;  %v24823_v51 = vmax.f32 %v24822_v12, 0.0 }
 0x75d   :  { %v11515_v14 = vadd.f32 %v23588_v15, %v11189_v52  ;;  %v11191_v8 = vpop.f32.mrb[201].mxu1  ;;  %v23637_v38 = vpack.c.bf16 %v11719_v42, %v11717_v22  ;;  %v24824_v52 = vld [vmem:[#allocation63_spill] sm:$0xff] }
 0x75e   :  { %v11516_v10 = vadd.f32 %v23592_v48, %v11191_v8  ;;  %v11193_v3 = vpop.f32.mrb[202].mxu1  ;;  %12373 = vmatpush1.bf16.msra.mxu0 %v19517_v61  ;;  %v23640_v30 = vpack.c.bf16 %v11720_v21, %v11718_v25  ;;  %v19523_v61 = vld [vmem:[#allocation22 + $0x68] ss:$16 sps:$4 sm:$0xff]  }
 0x75f   :  { %v11611_v16 = vmax.f32 %v11515_v14, 0.0  ;;  %v11521_v2 = vadd.f32 %v23588_v15, %v11193_v3  ;;  %v11195_v34 = vpop.f32.mrb[203].mxu1  ;;  %12374 = vmatprep.subr.bf16.mxu0 %v19522_v59  ;;  %v19528_v59 = vld [vmem:[#allocation22 + $0x8c] ss:$16 sps:$4 sm:$0xff]   ;;  %v24825_v14 = vmax.f32 %v24824_v52, 0.0 }
 0x760   :  { %v11612_v40 = vmax.f32 %v11516_v10, 0.0  ;;  %v11522_v49 = vadd.f32 %v23592_v48, %v11195_v34  ;;  %12299 = vmatprep.mubr.bf16.mxu0 %v23640_v30  ;;  %v24826_v10 = vld [vmem:[#allocation65_spill] sm:$0xff] }
 0x761   :  { %v11617_v22 = vmax.f32 %v11521_v2, 0.0  ;;  %12300 = vmatmul.mubr.bf16.gmra.mrb[196].mxu0 %v23637_v38  ;;  %v11721_v25 = vadd.f32 %v11611_v16, %v24821_v53  ;;  %v24827_v3 = vmax.f32 %v24826_v10, 0.0 }
 0x762   :  { %v11618_v42 = vmax.f32 %v11522_v49, 0.0  ;;  %12375 = vmatpush1.bf16.msra.mxu0 %v19520_v57  ;;  %v11722_v8 = vadd.f32 %v11612_v40, %v24825_v14  ;;  %v24828_v14 = vld [vmem:[#allocation57_spill] sm:$0xff] }
 0x763   :  { %v11723_v21 = vadd.f32 %v11617_v22, %v24823_v51  ;;  %12376 = vmatprep.subr.bf16.mxu0 %v19525_v39  ;;  %v19526_v39 = vld [vmem:[#allocation22 + $0x88] ss:$16 sps:$4 sm:$0xff]   ;;  %v19531_v51 = vld [vmem:[#allocation22 + $0xac] ss:$16 sps:$4 sm:$0xff]  }
 0x764   :  { %v11724_v34 = vadd.f32 %v11618_v42, %v24827_v3  ;;  %v11199_v2 = vpop.f32.mrb[204].mxu1 }
 0x765   :  { %v11527_v43 = vadd.f32 %v23588_v15, %v11199_v2  ;;  %v11201_v49 = vpop.f32.mrb[205].mxu1  ;;  %v23655_v57 = vpack.c.bf16 %v11723_v21, %v11721_v25  ;;  %v24832_v2 = vld [vmem:[#allocation54_spill] sm:$0xff] }
 0x766   :  { %v11528_v44 = vadd.f32 %v23592_v48, %v11201_v49  ;;  %v11203_v16 = vpop.f32.mrb[206].mxu1  ;;  %12377 = vmatpush1.bf16.msra.mxu0 %v19523_v61  ;;  %v23658_v53 = vpack.c.bf16 %v11724_v34, %v11722_v8  ;;  %v19529_v61 = vld [vmem:[#allocation22 + $0xa8] ss:$16 sps:$4 sm:$0xff]   ;;  %v24829_v8 = vmax.f32 %v24828_v14, 0.0  ;;  %v24833_v49 = vmax.f32 %v24832_v2, 0.0 }
 0x767   :  { %v11623_v22 = vmax.f32 %v11527_v43, 0.0  ;;  %v11533_v12 = vadd.f32 %v23588_v15, %v11203_v16  ;;  %v11205_v40 = vpop.f32.mrb[207].mxu1  ;;  %12378 = vmatprep.subr.bf16.mxu0 %v19528_v59  ;;  %v24830_v43 = vld [vmem:[#allocation56_spill] sm:$0xff]  ;;  %v19534_v59 = vld [vmem:[#allocation22 + $0xcc] ss:$16 sps:$4 sm:$0xff]  }
 0x768   :  { %v11624_v42 = vmax.f32 %v11528_v44, 0.0  ;;  %v11534_v52 = vadd.f32 %v23592_v48, %v11205_v40  ;;  %12309 = vmatprep.mubr.bf16.mxu0 %v23658_v53  ;;  %v24831_v3 = vmax.f32 %v24830_v43, 0.0  ;;  %v24834_v16 = vld [vmem:[#allocation59_spill] sm:$0xff] }
 0x769   :  { %v11629_v25 = vmax.f32 %v11533_v12, 0.0  ;;  %12310 = vmatmul.mubr.bf16.gmra.mrb[200].mxu0 %v23655_v57  ;;  %v11725_v10 = vadd.f32 %v11623_v22, %v24829_v8  ;;  %v24835_v40 = vmax.f32 %v24834_v16, 0.0 }
 0x76a   :  { %v11630_v21 = vmax.f32 %v11534_v52, 0.0  ;;  %12379 = vmatpush1.bf16.msra.mxu0 %v19526_v39  ;;  %v11726_v44 = vadd.f32 %v11624_v42, %v24833_v49 }
 0x76b   :  { %v11727_v34 = vadd.f32 %v11629_v25, %v24831_v3  ;;  %12380 = vmatprep.subr.bf16.mxu0 %v19531_v51  ;;  %v19532_v51 = vld [vmem:[#allocation22 + $0xc8] ss:$16 sps:$4 sm:$0xff]   ;;  %v19537_v3 = vld [vmem:[#allocation22 + $0xec] ss:$16 sps:$4 sm:$0xff]  }
 0x76c   :  { %v11728_v47 = vadd.f32 %v11630_v21, %v24835_v40  ;;  %v11209_v12 = vpop.f32.mrb[208].mxu1 }
 0x76d   :  { %v11539_v29 = vadd.f32 %v23588_v15, %v11209_v12  ;;  %v11211_v52 = vpop.f32.mrb[209].mxu1  ;;  %v23673_v39 = vpack.c.bf16 %v11727_v34, %v11725_v10  ;;  %v24840_v12 = vld [vmem:[#allocation58_spill] sm:$0xff] }
 0x76e   :  { %v11540_v14 = vadd.f32 %v23592_v48, %v11211_v52  ;;  %v11213_v22 = vpop.f32.mrb[210].mxu1  ;;  %12381 = vmatpush1.bf16.msra.mxu0 %v19529_v61  ;;  %v23676_v8 = vpack.c.bf16 %v11728_v47, %v11726_v44  ;;  %v19535_v61 = vld [vmem:[#allocation22 + $0xe8] ss:$16 sps:$4 sm:$0xff]   ;;  %v24836_v47 = vld [vmem:[#allocation62_spill] sm:$0xff]  ;;  %v24841_v52 = vmax.f32 %v24840_v12, 0.0 }
 0x76f   :  { %v11635_v25 = vmax.f32 %v11539_v29, 0.0  ;;  %v11545_v43 = vadd.f32 %v23588_v15, %v11213_v22  ;;  %v11215_v42 = vpop.f32.mrb[211].mxu1  ;;  %12382 = vmatprep.subr.bf16.mxu0 %v19534_v59  ;;  %v24837_v49 = vmax.f32 %v24836_v47, 0.0  ;;  %v24838_v29 = vld [vmem:[#allocation61_spill] sm:$0xff]  ;;  %v24842_v22 = vld [vmem:[#allocation71_spill] sm:$0xff] }
 0x770   :  { %v11636_v21 = vmax.f32 %v11540_v14, 0.0  ;;  %v11546_v2 = vadd.f32 %v23592_v48, %v11215_v42  ;;  %12319 = vmatprep.mubr.bf16.mxu0 %v23676_v8  ;;  %v24839_v16 = vmax.f32 %v24838_v29, 0.0  ;;  %v19540_v59 = vld [vmem:[#allocation22 + $0x10c] ss:$16 sps:$4 sm:$0xff]   ;;  %v24843_v42 = vmax.f32 %v24842_v22, 0.0 }
 0x771   :  { %v11641_v10 = vmax.f32 %v11545_v43, 0.0  ;;  %12320 = vmatmul.mubr.bf16.gmra.mrb[204].mxu0 %v23673_v39  ;;  %v11729_v44 = vadd.f32 %v11635_v25, %v24837_v49 }
 0x772   :  { %v11642_v34 = vmax.f32 %v11546_v2, 0.0  ;;  %12383 = vmatpush1.bf16.msra.mxu0 %v19532_v51  ;;  %v11730_v14 = vadd.f32 %v11636_v21, %v24841_v52 }
 0x773   :  { %v11731_v40 = vadd.f32 %v11641_v10, %v24839_v16  ;;  %12384 = vmatprep.subr.bf16.mxu0 %v19537_v3  ;;  %v19538_v3 = vld [vmem:[#allocation22 + $0x108] ss:$16 sps:$4 sm:$0xff]   ;;  %v19543_v16 = vld [vmem:[#allocation22 + $0x12c] ss:$16 sps:$4 sm:$0xff]  }
 0x774   :  { %v11732_v23 = vadd.f32 %v11642_v34, %v24843_v42  ;;  %v11219_v43 = vpop.f32.mrb[212].mxu1 }
 0x775   :  { %v11551_v11 = vadd.f32 %v23588_v15, %v11219_v43  ;;  %v11221_v2 = vpop.f32.mrb[213].mxu1  ;;  %v23691_v51 = vpack.c.bf16 %v11731_v40, %v11729_v44  ;;  %v24848_v43 = vld [vmem:[#allocation66_spill] sm:$0xff] }
 0x776   :  { %v11552_v47 = vadd.f32 %v23592_v48, %v11221_v2  ;;  %v11223_v25 = vpop.f32.mrb[214].mxu1  ;;  %12385 = vmatpush1.bf16.msra.mxu0 %v19535_v61  ;;  %v23694_v49 = vpack.c.bf16 %v11732_v23, %v11730_v14  ;;  %v19541_v61 = vld [vmem:[#allocation22 + $0x128] ss:$16 sps:$4 sm:$0xff]   ;;  %v24849_v2 = vmax.f32 %v24848_v43, 0.0 }
 0x777   :  { %v11647_v10 = vmax.f32 %v11551_v11, 0.0  ;;  %v11557_v29 = vadd.f32 %v23588_v15, %v11223_v25  ;;  %v11225_v21 = vpop.f32.mrb[215].mxu1  ;;  %12386 = vmatprep.subr.bf16.mxu0 %v19540_v59  ;;  %v24844_v23 = vld [vmem:[#allocation79_spill] sm:$0xff]  ;;  %v24846_v11 = vld [vmem:[#allocation74_spill] sm:$0xff]  ;;  %v24850_v25 = vld [vmem:[#allocation81_spill] sm:$0xff] }
 0x778   :  { %v11648_v34 = vmax.f32 %v11552_v47, 0.0  ;;  %v11558_v12 = vadd.f32 %v23592_v48, %v11225_v21  ;;  %12329 = vmatprep.mubr.bf16.mxu0 %v23694_v49  ;;  %v24845_v52 = vmax.f32 %v24844_v23, 0.0  ;;  %v24847_v22 = vmax.f32 %v24846_v11, 0.0  ;;  %v19546_v59 = vld [vmem:[#allocation22 + $0x14c] ss:$16 sps:$4 sm:$0xff]  }
 0x779   :  { %v11653_v44 = vmax.f32 %v11557_v29, 0.0  ;;  %12330 = vmatmul.mubr.bf16.gmra.mrb[208].mxu0 %v23691_v51  ;;  %v24851_v21 = vmax.f32 %v24850_v25, 0.0 }
 0x77a   :  { %v11654_v40 = vmax.f32 %v11558_v12, 0.0  ;;  %12387 = vmatpush1.bf16.msra.mxu0 %v19538_v3  ;;  %v11733_v14 = vadd.f32 %v11647_v10, %v24845_v52  ;;  %v11734_v47 = vadd.f32 %v11648_v34, %v24849_v2 }
 0x77b   :  { %v11735_v42 = vadd.f32 %v11653_v44, %v24847_v22  ;;  %12388 = vmatprep.subr.bf16.mxu0 %v19543_v16  ;;  %v19544_v16 = vld [vmem:[#allocation22 + $0x148] ss:$16 sps:$4 sm:$0xff]   ;;  %v19549_v22 = vld [vmem:[#allocation22 + $0x16c] ss:$16 sps:$4 sm:$0xff]  }
 0x77c   :  { %v11736_v24 = vadd.f32 %v11654_v40, %v24851_v21  ;;  %v11229_v29 = vpop.f32.mrb[216].mxu1 }
 0x77d   :  { %v11563_v4 = vadd.f32 %v23588_v15, %v11229_v29  ;;  %v11231_v12 = vpop.f32.mrb[217].mxu1  ;;  %v23709_v3 = vpack.c.bf16 %v11735_v42, %v11733_v14  ;;  %v24856_v29 = vld [vmem:[#allocation80_spill] sm:$0xff] }
 0x77e   :  { %v11564_v23 = vadd.f32 %v23592_v48, %v11231_v12  ;;  %v11233_v10 = vpop.f32.mrb[218].mxu1  ;;  %12389 = vmatpush1.bf16.msra.mxu0 %v19541_v61  ;;  %v23712_v52 = vpack.c.bf16 %v11736_v24, %v11734_v47  ;;  %v19547_v61 = vld [vmem:[#allocation22 + $0x168] ss:$16 sps:$4 sm:$0xff]   ;;  %v24857_v12 = vmax.f32 %v24856_v29, 0.0 }
 0x77f   :  { %v11659_v44 = vmax.f32 %v11563_v4, 0.0  ;;  %v11569_v11 = vadd.f32 %v23588_v15, %v11233_v10  ;;  %v11235_v34 = vpop.f32.mrb[219].mxu1  ;;  %12390 = vmatprep.subr.bf16.mxu0 %v19546_v59  ;;  %v24852_v24 = vld [vmem:[#allocation83_spill] sm:$0xff]  ;;  %v24854_v4 = vld [vmem:[#allocation82_spill] sm:$0xff]  ;;  %v24858_v10 = vld [vmem:[#allocation85_spill] sm:$0xff] }
 0x780   :  { %v11660_v40 = vmax.f32 %v11564_v23, 0.0  ;;  %v11570_v43 = vadd.f32 %v23592_v48, %v11235_v34  ;;  %12339 = vmatprep.mubr.bf16.mxu0 %v23712_v52  ;;  %v24853_v2 = vmax.f32 %v24852_v24, 0.0  ;;  %v24855_v25 = vmax.f32 %v24854_v4, 0.0  ;;  %v19552_v59 = vld [vmem:[#allocation22 + $0x18c] ss:$16 sps:$4 sm:$0xff]  }
 0x781   :  { %v11665_v14 = vmax.f32 %v11569_v11, 0.0  ;;  %12340 = vmatmul.mubr.bf16.gmra.mrb[212].mxu0 %v23709_v3  ;;  %v24859_v34 = vmax.f32 %v24858_v10, 0.0 }
 0x782   :  { %v11666_v42 = vmax.f32 %v11570_v43, 0.0  ;;  %12391 = vmatpush1.bf16.msra.mxu0 %v19544_v16  ;;  %v11737_v47 = vadd.f32 %v11659_v44, %v24853_v2  ;;  %v11738_v23 = vadd.f32 %v11660_v40, %v24857_v12 }
 0x783   :  { %v11739_v21 = vadd.f32 %v11665_v14, %v24855_v25  ;;  %12392 = vmatprep.subr.bf16.mxu0 %v19549_v22  ;;  %v19550_v22 = vld [vmem:[#allocation22 + $0x188] ss:$16 sps:$4 sm:$0xff]   ;;  %v19555_v25 = vld [vmem:[#allocation22 + $0x1ac] ss:$16 sps:$4 sm:$0xff]  }
 0x784   :  { %v11740_v1 = vadd.f32 %v11666_v42, %v24859_v34  ;;  %v11239_v11 = vpop.f32.mrb[220].mxu1  ;;  %v24864_v34 = vld [vmem:[#allocation84_spill] sm:$0xff] }
 0x785   :  { %v11575_v46 = vadd.f32 %v23588_v15, %v11239_v11  ;;  %v11241_v43 = vpop.f32.mrb[221].mxu1  ;;  %v23727_v16 = vpack.c.bf16 %v11739_v21, %v11737_v47  ;;  %v24865_v11 = vmax.f32 %v24864_v34, 0.0  ;;  %v19589_v34 = vld [vmem:[#allocation21 + $0x120] ss:$16 sps:$4 sm:$0xff]  }
 0x786   :  { %v11576_v24 = vadd.f32 %v23592_v48, %v11241_v43  ;;  %v11243_v44 = vpop.f32.mrb[222].mxu1  ;;  %12393 = vmatpush1.bf16.msra.mxu0 %v19547_v61  ;;  %v23730_v2 = vpack.c.bf16 %v11740_v1, %v11738_v23  ;;  %v19553_v61 = vld [vmem:[#allocation22 + $0x1a8] ss:$16 sps:$4 sm:$0xff]  }
 0x787   :  { %v11671_v14 = vmax.f32 %v11575_v46, 0.0  ;;  %v11581_v4 = vadd.f32 %v23588_v15, %v11243_v44  ;;  %v11245_v40 = vpop.f32.mrb[223].mxu1  ;;  %12394 = vmatprep.subr.bf16.mxu0 %v19552_v59  ;;  %v24860_v1 = vld [vmem:[#allocation87_spill] sm:$0xff]  ;;  %v24862_v46 = vld [vmem:[#allocation88_spill] sm:$0xff] }
 0x788   :  { %v11672_v42 = vmax.f32 %v11576_v24, 0.0  ;;  %v11582_v29 = vadd.f32 %v23592_v48, %v11245_v40  ;;  %12349 = vmatprep.mubr.bf16.mxu0 %v23730_v2  ;;  %v24861_v12 = vmax.f32 %v24860_v1, 0.0  ;;  %v24863_v10 = vmax.f32 %v24862_v46, 0.0  ;;  %v19558_v59 = vld [vmem:[#allocation22 + $0x1cc] ss:$16 sps:$4 sm:$0xff]  }
 0x789   :  { %v11677_v47 = vmax.f32 %v11581_v4, 0.0  ;;  %12350 = vmatmul.mubr.bf16.gmra.mrb[216].mxu0 %v23727_v16  ;;  %v24866_v48 = vld [vmem:[#allocation89_spill] sm:$0xff]  ;;  %v19568_v1 = vld [vmem:[#allocation21 + $0x40] ss:$16 sps:$4 sm:$0xff]  }
 0x78a   :  { %v11678_v21 = vmax.f32 %v11582_v29, 0.0  ;;  %12395 = vmatpush1.bf16.msra.mxu0 %v19550_v22  ;;  %v11741_v23 = vadd.f32 %v11671_v14, %v24861_v12  ;;  %v11742_v43 = vadd.f32 %v11672_v42, %v24865_v11  ;;  %v24867_v24 = vmax.f32 %v24866_v48, 0.0  ;;  %v19556_v22 = vld [vmem:[#allocation22 + $0x1c8] ss:$16 sps:$4 sm:$0xff]   ;;  %v19561_v29 = vld [vmem:[#allocation22 + $0x1ec] ss:$16 sps:$4 sm:$0xff]  }
 0x78b   :  { %v11743_v15 = vadd.f32 %v11677_v47, %v24863_v10  ;;  %12396 = vmatprep.subr.bf16.mxu0 %v19555_v25  ;;  %v19559_v14 = vld [vmem:[#allocation22 + $0x1e8] ss:$16 sps:$4 sm:$0xff]   ;;  %v19564_v25 = vld [vmem:[#allocation21 + $0x4] ss:$16 sps:$4 sm:$0xff]   ;;  %v19562_v42 = vld [vmem:[#allocation21] ss:$16 sps:$4 sm:$0xff]  }
 0x78c   :  { %v11744_v44 = vadd.f32 %v11678_v21, %v24867_v24  ;;  %v19567_v47 = vld [vmem:[#allocation21 + $0x24] ss:$16 sps:$4 sm:$0xff]   ;;  %v19565_v21 = vld [vmem:[#allocation21 + $0x20] ss:$16 sps:$4 sm:$0xff]  }
 0x78d   :  { %v23744_v4 = vpack.c.bf16 %v11743_v15, %v11741_v23  ;;  %v19573_v12 = vld [vmem:[#allocation21 + $0x64] ss:$16 sps:$4 sm:$0xff]   ;;  %v19577_v46 = vld [vmem:[#allocation21 + $0xa0] ss:$16 sps:$4 sm:$0xff]  }
 0x78e   :  { %12397 = vmatpush1.bf16.msra.mxu0 %v19553_v61  ;;  %v23746_v40 = vpack.c.bf16 %v11744_v44, %v11742_v43  ;;  %v19570_v61 = vld [vmem:[#allocation21 + $0x44] ss:$16 sps:$4 sm:$0xff]   ;;  %v19583_v15 = vld [vmem:[#allocation21 + $0xe0] ss:$16 sps:$4 sm:$0xff]  }
 0x78f   :  { %12398 = vmatprep.subr.bf16.mxu0 %v19558_v59  ;;  %v19576_v23 = vld [vmem:[#allocation21 + $0x84] ss:$16 sps:$4 sm:$0xff]   ;;  %v19595_v43 = vld [vmem:[#allocation21 + $0x160] ss:$16 sps:$4 sm:$0xff]  }
 0x790   :  { %12359 = vmatprep.mubr.bf16.mxu0 %v23746_v40  ;;  %v19582_v10 = vld [vmem:[#allocation21 + $0xc4] ss:$16 sps:$4 sm:$0xff]   ;;  %v19601_v24 = vld [vmem:[#allocation21 + $0x1a0] ss:$16 sps:$4 sm:$0xff]  }
 0x791   :  { %12360 = vmatmul.mubr.bf16.gmra.mrb[220].mxu0 %v23744_v4  ;;  %v19588_v59 = vld [vmem:[#allocation21 + $0x104] ss:$16 sps:$4 sm:$0xff]  }
 0x792   :  { %12399 = vmatpush1.bf16.msra.mxu0 %v19556_v22  ;;  %12402 = vmatprep.mubr.bf16.mxu0 %v23622_v36  ;;  %v19571_v36 = vld [vmem:[#allocation21 + $0x60] ss:$16 sps:$4 sm:$0xff]   ;;  %v19594_v11 = vld [vmem:[#allocation21 + $0x144] ss:$16 sps:$4 sm:$0xff]  }
 0x793   :  { %12400 = vmatprep.subr.bf16.mxu0 %v19561_v29  ;;  %v19600_v48 = vld [vmem:[#allocation21 + $0x184] ss:$16 sps:$4 sm:$0xff]   ;;  %v19607_v22 = vld [vmem:[#allocation21 + $0x1e0] ss:$16 sps:$4 sm:$0xff]   ;;  %v19612_v29 = vld [vmem:[#allocation21 + $0xc] ss:$16 sps:$4 sm:$0xff]  }
 0x794   :  { %v19606_v44 = vld [vmem:[#allocation21 + $0x1c4] ss:$16 sps:$4 sm:$0xff]  }
 0x796   :  { %12401 = vmatpush1.bf16.msra.mxu0 %v19559_v14  ;;  %v19613_v14 = vld [vmem:[#allocation21 + $0x28] ss:$16 sps:$4 sm:$0xff]  }
 0x797   :  { %12803 = vmatprep.subr.bf16.mxu0 %v19564_v25  ;;  %v19618_v25 = vld [vmem:[#allocation21 + $0x4c] ss:$16 sps:$4 sm:$0xff]  }
 0x799   :  { %12403 = vmatmul.mubr.bf16.vlgmr.msra.gmra.mrb[224].mxu0 %v23618_v31  ;;  %v19574_v31 = vld [vmem:[#allocation21 + $0x80] ss:$16 sps:$4 sm:$0xff]  }
 0x79a   :  { %12412 = vmatprep.mubr.bf16.mxu0 %v23640_v30  ;;  %12804 = vmatpush1.bf16.msra.mxu0 %v19562_v42  ;;  %v19579_v30 = vld [vmem:[#allocation21 + $0xa4] ss:$16 sps:$4 sm:$0xff]   ;;  %v19621_v42 = vld [vmem:[#allocation21 + $0x6c] ss:$16 sps:$4 sm:$0xff]  }
 0x79b   :  { %12805 = vmatprep.subr.bf16.mxu0 %v19567_v47  ;;  %v19619_v47 = vld [vmem:[#allocation21 + $0x68] ss:$16 sps:$4 sm:$0xff]  }
 0x79e   :  { %12806 = vmatpush1.bf16.msra.mxu0 %v19565_v21  ;;  %v19624_v21 = vld [vmem:[#allocation21 + $0x8c] ss:$16 sps:$4 sm:$0xff]  }
 0x79f   :  { %12807 = vmatprep.subr.bf16.mxu0 %v19570_v61  ;;  %v19622_v61 = vld [vmem:[#allocation21 + $0x88] ss:$16 sps:$4 sm:$0xff]  }
 0x7a1   :  { %12413 = vmatmul.mubr.bf16.gmra.mrb[228].mxu0 %v23637_v38  ;;  %v19580_v38 = vld [vmem:[#allocation21 + $0xc0] ss:$16 sps:$4 sm:$0xff]  }
 0x7a2   :  { %12422 = vmatprep.mubr.bf16.mxu0 %v23658_v53  ;;  %12808 = vmatpush1.bf16.msra.mxu0 %v19568_v1  ;;  %v19585_v53 = vld [vmem:[#allocation21 + $0xe4] ss:$16 sps:$4 sm:$0xff]   ;;  %v19627_v1 = vld [vmem:[#allocation21 + $0xac] ss:$16 sps:$4 sm:$0xff]  }
 0x7a3   :  { %12809 = vmatprep.subr.bf16.mxu0 %v19573_v12  ;;  %v19625_v12 = vld [vmem:[#allocation21 + $0xa8] ss:$16 sps:$4 sm:$0xff]  }
 0x7a6   :  { %12810 = vmatpush1.bf16.msra.mxu0 %v19571_v36  ;;  %v19630_v36 = vld [vmem:[#allocation21 + $0xcc] ss:$16 sps:$4 sm:$0xff]  }
 0x7a7   :  { %12811 = vmatprep.subr.bf16.mxu0 %v19576_v23  ;;  %v19628_v23 = vld [vmem:[#allocation21 + $0xc8] ss:$16 sps:$4 sm:$0xff]  }
 0x7a9   :  { %12423 = vmatmul.mubr.bf16.gmra.mrb[232].mxu0 %v23655_v57  ;;  %v19586_v57 = vld [vmem:[#allocation21 + $0x100] ss:$16 sps:$4 sm:$0xff]  }
 0x7aa   :  { %12432 = vmatprep.mubr.bf16.mxu0 %v23676_v8  ;;  %12812 = vmatpush1.bf16.msra.mxu0 %v19574_v31  ;;  %v19591_v8 = vld [vmem:[#allocation21 + $0x124] ss:$16 sps:$4 sm:$0xff]   ;;  %v19633_v31 = vld [vmem:[#allocation21 + $0xec] ss:$16 sps:$4 sm:$0xff]  }
 0x7ab   :  { %12813 = vmatprep.subr.bf16.mxu0 %v19579_v30  ;;  %v19631_v30 = vld [vmem:[#allocation21 + $0xe8] ss:$16 sps:$4 sm:$0xff]  }
 0x7ae   :  { %12814 = vmatpush1.bf16.msra.mxu0 %v19577_v46  ;;  %v19636_v46 = vld [vmem:[#allocation21 + $0x10c] ss:$16 sps:$4 sm:$0xff]  }
 0x7af   :  { %12815 = vmatprep.subr.bf16.mxu0 %v19582_v10  ;;  %v19634_v10 = vld [vmem:[#allocation21 + $0x108] ss:$16 sps:$4 sm:$0xff]  }
 0x7b1   :  { %12433 = vmatmul.mubr.bf16.gmra.mrb[236].mxu0 %v23673_v39  ;;  %v19592_v39 = vld [vmem:[#allocation21 + $0x140] ss:$16 sps:$4 sm:$0xff]  }
 0x7b2   :  { %12442 = vmatprep.mubr.bf16.mxu0 %v23694_v49  ;;  %12816 = vmatpush1.bf16.msra.mxu0 %v19580_v38  ;;  %v19597_v49 = vld [vmem:[#allocation21 + $0x164] ss:$16 sps:$4 sm:$0xff]   ;;  %v19639_v38 = vld [vmem:[#allocation21 + $0x12c] ss:$16 sps:$4 sm:$0xff]  }
 0x7b3   :  { %12817 = vmatprep.subr.bf16.mxu0 %v19585_v53  ;;  %v19637_v53 = vld [vmem:[#allocation21 + $0x128] ss:$16 sps:$4 sm:$0xff]  }
 0x7b6   :  { %12818 = vmatpush1.bf16.msra.mxu0 %v19583_v15  ;;  %v19642_v15 = vld [vmem:[#allocation21 + $0x14c] ss:$16 sps:$4 sm:$0xff]  }
 0x7b7   :  { %12819 = vmatprep.subr.bf16.mxu0 %v19588_v59  ;;  %v19640_v59 = vld [vmem:[#allocation21 + $0x148] ss:$16 sps:$4 sm:$0xff]  }
 0x7b9   :  { %12443 = vmatmul.mubr.bf16.gmra.mrb[240].mxu0 %v23691_v51  ;;  %v19598_v51 = vld [vmem:[#allocation21 + $0x180] ss:$16 sps:$4 sm:$0xff]  }
 0x7ba   :  { %12452 = vmatprep.mubr.bf16.mxu0 %v23712_v52  ;;  %12820 = vmatpush1.bf16.msra.mxu0 %v19586_v57  ;;  %v19603_v52 = vld [vmem:[#allocation21 + $0x1a4] ss:$16 sps:$4 sm:$0xff]   ;;  %v19645_v57 = vld [vmem:[#allocation21 + $0x16c] ss:$16 sps:$4 sm:$0xff]  }
 0x7bb   :  { %12821 = vmatprep.subr.bf16.mxu0 %v19591_v8  ;;  %v19643_v8 = vld [vmem:[#allocation21 + $0x168] ss:$16 sps:$4 sm:$0xff]  }
 0x7be   :  { %12822 = vmatpush1.bf16.msra.mxu0 %v19589_v34  ;;  %v19648_v34 = vld [vmem:[#allocation21 + $0x18c] ss:$16 sps:$4 sm:$0xff]  }
 0x7bf   :  { %12823 = vmatprep.subr.bf16.mxu0 %v19594_v11  ;;  %v19646_v11 = vld [vmem:[#allocation21 + $0x188] ss:$16 sps:$4 sm:$0xff]  }
 0x7c1   :  { %12453 = vmatmul.mubr.bf16.gmra.mrb[244].mxu0 %v23709_v3  ;;  %v19604_v3 = vld [vmem:[#allocation21 + $0x1c0] ss:$16 sps:$4 sm:$0xff]  }
 0x7c2   :  { %12462 = vmatprep.mubr.bf16.mxu0 %v23730_v2  ;;  %12824 = vmatpush1.bf16.msra.mxu0 %v19592_v39  ;;  %v19609_v2 = vld [vmem:[#allocation21 + $0x1e4] ss:$16 sps:$4 sm:$0xff]   ;;  %v19651_v39 = vld [vmem:[#allocation21 + $0x1ac] ss:$16 sps:$4 sm:$0xff]  }
 0x7c3   :  { %12825 = vmatprep.subr.bf16.mxu0 %v19597_v49  ;;  %v19649_v49 = vld [vmem:[#allocation21 + $0x1a8] ss:$16 sps:$4 sm:$0xff]  }
 0x7c6   :  { %12826 = vmatpush1.bf16.msra.mxu0 %v19595_v43  ;;  %v19654_v43 = vld [vmem:[#allocation21 + $0x1cc] ss:$16 sps:$4 sm:$0xff]  }
 0x7c7   :  { %12827 = vmatprep.subr.bf16.mxu0 %v19600_v48  ;;  %v19652_v48 = vld [vmem:[#allocation21 + $0x1c8] ss:$16 sps:$4 sm:$0xff]  }
 0x7c9   :  { %12463 = vmatmul.mubr.bf16.gmra.mrb[248].mxu0 %v23727_v16  ;;  %v19610_v16 = vld [vmem:[#allocation21 + $0x8] ss:$16 sps:$4 sm:$0xff]  }
 0x7ca   :  { %12472 = vmatprep.mubr.bf16.mxu0 %v23746_v40  ;;  %12828 = vmatpush1.bf16.msra.mxu0 %v19598_v51  ;;  %v19615_v40 = vld [vmem:[#allocation21 + $0x2c] ss:$16 sps:$4 sm:$0xff]  }
 0x7cb   :  { %12829 = vmatprep.subr.bf16.mxu0 %v19603_v52  ;;  %v19657_v51 = vld [vmem:[#allocation21 + $0x1ec] ss:$16 sps:$4 sm:$0xff]   ;;  %v19655_v52 = vld [vmem:[#allocation21 + $0x1e8] ss:$16 sps:$4 sm:$0xff]  }
 0x7ce   :  { %12830 = vmatpush1.bf16.msra.mxu0 %v19601_v24  ;;  %v19660_v24 = vld [vmem:[#allocation24 + $0x4] ss:$16 sps:$4 sm:$0xff]  }
 0x7cf   :  { %12831 = vmatprep.subr.bf16.mxu0 %v19606_v44  ;;  %v19658_v44 = vld [vmem:[#allocation24] ss:$16 sps:$4 sm:$0xff]  }
 0x7d1   :  { %12473 = vmatmul.mubr.bf16.gmra.mrb[252].mxu0 %v23744_v4  ;;  %v19616_v4 = vld [vmem:[#allocation21 + $0x48] ss:$16 sps:$4 sm:$0xff]  }
 0x7d2   :  { %12832 = vmatpush1.bf16.msra.mxu0 %v19604_v3  ;;  %12835 = vmatprep.mubr.bf16.mxu0 %v23486_v62  ;;  %v19663_v3 = vld [vmem:[#allocation24 + $0x24] ss:$16 sps:$4 sm:$0xff]  }
 0x7d3   :  { %12833 = vmatprep.subr.bf16.mxu0 %v19609_v2  ;;  %v19661_v2 = vld [vmem:[#allocation24 + $0x20] ss:$16 sps:$4 sm:$0xff]  }
 0x7d6   :  { %12834 = vmatpush1.bf16.msra.mxu0 %v19607_v22  ;;  %v19666_v22 = vld [vmem:[#allocation24 + $0x44] ss:$16 sps:$4 sm:$0xff]  }
 0x7d7   :  { %12916 = vmatprep.subr.bf16.mxu0 %v19612_v29  ;;  %v19664_v29 = vld [vmem:[#allocation24 + $0x40] ss:$16 sps:$4 sm:$0xff]  }
 0x7d9   :  { %12836 = vmatmul.mubr.bf16.vlgmr.msra.gmra.mrb[192].mxu0 %v23482_v18 }
 0x7da   :  { %12845 = vmatprep.mubr.bf16.mxu0 %v23502_v50  ;;  %12917 = vmatpush1.bf16.msra.mxu0 %v19610_v16  ;;  %v19669_v16 = vld [vmem:[#allocation24 + $0x64] ss:$16 sps:$4 sm:$0xff]  }
 0x7db   :  { %12918 = vmatprep.subr.bf16.mxu0 %v19615_v40  ;;  %v19672_v40 = vld [vmem:[#allocation24 + $0x84] ss:$16 sps:$4 sm:$0xff]  }
 0x7de   :  { %12919 = vmatpush1.bf16.msra.mxu0 %v19613_v14  ;;  %v19673_v14 = vld [vmem:[#allocation24 + $0xa0] ss:$16 sps:$4 sm:$0xff]  }
 0x7df   :  { %12920 = vmatprep.subr.bf16.mxu0 %v19618_v25  ;;  %v19678_v25 = vld [vmem:[#allocation24 + $0xc4] ss:$16 sps:$4 sm:$0xff]  }
 0x7e1   :  { %12846 = vmatmul.mubr.bf16.gmra.mrb[196].mxu0 %v23499_v32 }
 0x7e2   :  { %12855 = vmatprep.mubr.bf16.mxu0 %v23518_v27  ;;  %12921 = vmatpush1.bf16.msra.mxu0 %v19616_v4  ;;  %v19679_v4 = vld [vmem:[#allocation24 + $0xe0] ss:$16 sps:$4 sm:$0xff]  }
 0x7e3   :  { %12922 = vmatprep.subr.bf16.mxu0 %v19621_v42  ;;  %v19684_v42 = vld [vmem:[#allocation24 + $0x104] ss:$16 sps:$4 sm:$0xff]  }
 0x7e6   :  { %12923 = vmatpush1.bf16.msra.mxu0 %v19619_v47  ;;  %v19685_v47 = vld [vmem:[#allocation24 + $0x120] ss:$16 sps:$4 sm:$0xff]  }
 0x7e7   :  { %12924 = vmatprep.subr.bf16.mxu0 %v19624_v21  ;;  %v19690_v21 = vld [vmem:[#allocation24 + $0x144] ss:$16 sps:$4 sm:$0xff]  }
 0x7e9   :  { %12856 = vmatmul.mubr.bf16.gmra.mrb[200].mxu0 %v23515_v45 }
 0x7ea   :  { %12865 = vmatprep.mubr.bf16.mxu0 %v23534_v58  ;;  %12925 = vmatpush1.bf16.msra.mxu0 %v19622_v61  ;;  %v19691_v61 = vld [vmem:[#allocation24 + $0x160] ss:$16 sps:$4 sm:$0xff]  }
 0x7eb   :  { %12926 = vmatprep.subr.bf16.mxu0 %v19627_v1  ;;  %v19696_v1 = vld [vmem:[#allocation24 + $0x184] ss:$16 sps:$4 sm:$0xff]  }
 0x7ee   :  { %12927 = vmatpush1.bf16.msra.mxu0 %v19625_v12  ;;  %v19697_v12 = vld [vmem:[#allocation24 + $0x1a0] ss:$16 sps:$4 sm:$0xff]  }
 0x7ef   :  { %12928 = vmatprep.subr.bf16.mxu0 %v19630_v36  ;;  %v19702_v36 = vld [vmem:[#allocation24 + $0x1c4] ss:$16 sps:$4 sm:$0xff]  }
 0x7f1   :  { %12866 = vmatmul.mubr.bf16.gmra.mrb[204].mxu0 %v23531_v28 }
 0x7f2   :  { %12875 = vmatprep.mubr.bf16.mxu0 %v23550_v13  ;;  %12929 = vmatpush1.bf16.msra.mxu0 %v19628_v23  ;;  %v19754_v23 = vld [vmem:[#allocation25] ss:$8 sps:$4 sm:$0xff]  }
 0x7f3   :  { %12930 = vmatprep.subr.bf16.mxu0 %v19633_v31  ;;  %v19756_v31 = vld [vmem:[#allocation25 + $0x4] ss:$8 sps:$4 sm:$0xff]  }
 0x7f4   :  { %14297 = vmatprep.subr.bf16.mxu1 %v19756_v31  ;;  %v19744_v31 = vld [vmem:[#allocation24 + $0x18c] ss:$16 sps:$4 sm:$0xff]  }
 0x7f5   :  { %14298 = vmatpush1.bf16.msra.mxu1 %v19754_v23  ;;  %v19739_v23 = vld [vmem:[#allocation24 + $0x168] ss:$16 sps:$4 sm:$0xff]  }
 0x7f6   :  { %12931 = vmatpush1.bf16.msra.mxu0 %v19631_v30  ;;  %v19703_v30 = vld [vmem:[#allocation24 + $0x1e0] ss:$16 sps:$4 sm:$0xff]  }
 0x7f7   :  { %12932 = vmatprep.subr.bf16.mxu0 %v19636_v46  ;;  %v19759_v46 = vld [vmem:[#allocation25 + $0x14] ss:$8 sps:$4 sm:$0xff]  }
 0x7f8   :  { %14299 = vmatprep.subr.bf16.mxu1 %v19759_v46  ;;  %v19742_v46 = vld [vmem:[#allocation24 + $0x188] ss:$16 sps:$4 sm:$0xff]  }
 0x7f9   :  { %12876 = vmatmul.mubr.bf16.gmra.mrb[208].mxu0 %v23547_v35 }
 0x7fa   :  { %12885 = vmatprep.mubr.bf16.mxu0 %v23566_v9  ;;  %12933 = vmatpush1.bf16.msra.mxu0 %v19634_v10  ;;  %v19762_v10 = vld [vmem:[#allocation25 + $0x24] ss:$8 sps:$4 sm:$0xff]  }
 0x7fb   :  { %12934 = vmatprep.subr.bf16.mxu0 %v19639_v38  ;;  %v19706_v38 = vld [vmem:[#allocation24 + $0x8] ss:$16 sps:$4 sm:$0xff]  }
 0x7fe   :  { %12935 = vmatpush1.bf16.msra.mxu0 %v19637_v53  ;;  %v19711_v53 = vld [vmem:[#allocation24 + $0x2c] ss:$16 sps:$4 sm:$0xff]  }
 0x7ff   :  { %12936 = vmatprep.subr.bf16.mxu0 %v19642_v15  ;;  %v19765_v15 = vld [vmem:[#allocation25 + $0x34] ss:$8 sps:$4 sm:$0xff]  }
 0x801   :  { %12886 = vmatmul.mubr.bf16.gmra.mrb[212].mxu0 %v23563_v26 }
 0x802   :  { %12895 = vmatprep.mubr.bf16.mxu0 %v23582_v37  ;;  %12937 = vmatpush1.bf16.msra.mxu0 %v19640_v59  ;;  %v19709_v59 = vld [vmem:[#allocation24 + $0x28] ss:$16 sps:$4 sm:$0xff]  }
 0x803   :  { %12938 = vmatprep.subr.bf16.mxu0 %v19645_v57  ;;  %v19714_v57 = vld [vmem:[#allocation24 + $0x4c] ss:$16 sps:$4 sm:$0xff]  }
 0x806   :  { %12939 = vmatpush1.bf16.msra.mxu0 %v19643_v8  ;;  %v19763_v8 = vld [vmem:[#allocation25 + $0x30] ss:$8 sps:$4 sm:$0xff]  }
 0x807   :  { %12940 = vmatprep.subr.bf16.mxu0 %v19648_v34  ;;  %v19768_v34 = vld [vmem:[#allocation25 + $0x44] ss:$8 sps:$4 sm:$0xff]  }
 0x809   :  { %12896 = vmatmul.mubr.bf16.gmra.mrb[216].mxu0 %v23579_v63 }
 0x80a   :  { %12905 = vmatprep.mubr.bf16.mxu0 %v23606_v60  ;;  %12941 = vmatpush1.bf16.msra.mxu0 %v19646_v11  ;;  %v19712_v11 = vld [vmem:[#allocation24 + $0x48] ss:$16 sps:$4 sm:$0xff]  }
 0x80b   :  { %12942 = vmatprep.subr.bf16.mxu0 %v19651_v39  ;;  %v19717_v39 = vld [vmem:[#allocation24 + $0x6c] ss:$16 sps:$4 sm:$0xff]  }
 0x80e   :  { %12943 = vmatpush1.bf16.msra.mxu0 %v19649_v49  ;;  %v19766_v49 = vld [vmem:[#allocation25 + $0x40] ss:$8 sps:$4 sm:$0xff]  }
 0x80f   :  { %12944 = vmatprep.subr.bf16.mxu0 %v19654_v43  ;;  %v19771_v43 = vld [vmem:[#allocation25 + $0x54] ss:$8 sps:$4 sm:$0xff]  }
 0x811   :  { %12906 = vmatmul.mubr.bf16.gmra.mrb[220].mxu0 %v23603_v54 }
 0x812   :  { %12945 = vmatpush1.bf16.msra.mxu0 %v19652_v48  ;;  %12948 = vmatprep.mubr.bf16.mxu0 %v23486_v62  ;;  %v19667_v62 = vld [vmem:[#allocation24 + $0x60] ss:$16 sps:$4 sm:$0xff]   ;;  %v19715_v48 = vld [vmem:[#allocation24 + $0x68] ss:$16 sps:$4 sm:$0xff]  }
 0x813   :  { %12946 = vmatprep.subr.bf16.mxu0 %v19657_v51  ;;  %v19720_v51 = vld [vmem:[#allocation24 + $0x8c] ss:$16 sps:$4 sm:$0xff]  }
 0x816   :  { %12947 = vmatpush1.bf16.msra.mxu0 %v19655_v52  ;;  %v19769_v52 = vld [vmem:[#allocation25 + $0x50] ss:$8 sps:$4 sm:$0xff]  }
 0x817   :  { %13429 = vmatprep.subr.bf16.mxu0 %v19660_v24  ;;  %v19774_v24 = vld [vmem:[#allocation25 + $0x64] ss:$8 sps:$4 sm:$0xff]  }
 0x819   :  { %12949 = vmatmul.mubr.bf16.vlgmr.msra.gmra.mrb[224].mxu0 %v23482_v18  ;;  %v19670_v18 = vld [vmem:[#allocation24 + $0x80] ss:$16 sps:$4 sm:$0xff]  }
 0x81a   :  { %12958 = vmatprep.mubr.bf16.mxu0 %v23502_v50  ;;  %13430 = vmatpush1.bf16.msra.mxu0 %v19658_v44  ;;  %v19675_v50 = vld [vmem:[#allocation24 + $0xa4] ss:$16 sps:$4 sm:$0xff]   ;;  %v19718_v44 = vld [vmem:[#allocation24 + $0x88] ss:$16 sps:$4 sm:$0xff]  }
 0x81b   :  { %13431 = vmatprep.subr.bf16.mxu0 %v19663_v3  ;;  %v19723_v3 = vld [vmem:[#allocation24 + $0xac] ss:$16 sps:$4 sm:$0xff]  }
 0x81e   :  { %13432 = vmatpush1.bf16.msra.mxu0 %v19661_v2  ;;  %v19772_v2 = vld [vmem:[#allocation25 + $0x60] ss:$8 sps:$4 sm:$0xff]  }
 0x81f   :  { %13433 = vmatprep.subr.bf16.mxu0 %v19666_v22  ;;  %v19777_v22 = vld [vmem:[#allocation25 + $0x74] ss:$8 sps:$4 sm:$0xff]  }
 0x821   :  { %12959 = vmatmul.mubr.bf16.gmra.mrb[228].mxu0 %v23499_v32  ;;  %v19676_v32 = vld [vmem:[#allocation24 + $0xc0] ss:$16 sps:$4 sm:$0xff]  }
 0x822   :  { %12968 = vmatprep.mubr.bf16.mxu0 %v23518_v27  ;;  %13434 = vmatpush1.bf16.msra.mxu0 %v19664_v29  ;;  %v19681_v27 = vld [vmem:[#allocation24 + $0xe4] ss:$16 sps:$4 sm:$0xff]   ;;  %v19721_v29 = vld [vmem:[#allocation24 + $0xa8] ss:$16 sps:$4 sm:$0xff]  }
 0x823   :  { %13435 = vmatprep.subr.bf16.mxu0 %v19669_v16  ;;  %v19726_v16 = vld [vmem:[#allocation24 + $0xcc] ss:$16 sps:$4 sm:$0xff]  }
 0x826   :  { %13436 = vmatpush1.bf16.msra.mxu0 %v19667_v62  ;;  %v19775_v62 = vld [vmem:[#allocation25 + $0x70] ss:$8 sps:$4 sm:$0xff]  }
 0x827   :  { %13437 = vmatprep.subr.bf16.mxu0 %v19672_v40  ;;  %v19780_v40 = vld [vmem:[#allocation25 + $0x84] ss:$8 sps:$4 sm:$0xff]  }
 0x829   :  { %12969 = vmatmul.mubr.bf16.gmra.mrb[232].mxu0 %v23515_v45  ;;  %v19682_v45 = vld [vmem:[#allocation24 + $0x100] ss:$16 sps:$4 sm:$0xff]  }
 0x82a   :  { %12978 = vmatprep.mubr.bf16.mxu0 %v23534_v58  ;;  %13438 = vmatpush1.bf16.msra.mxu0 %v19670_v18  ;;  %v19687_v58 = vld [vmem:[#allocation24 + $0x124] ss:$16 sps:$4 sm:$0xff]   ;;  %v19724_v18 = vld [vmem:[#allocation24 + $0xc8] ss:$16 sps:$4 sm:$0xff]  }
 0x82b   :  { %13439 = vmatprep.subr.bf16.mxu0 %v19675_v50  ;;  %v19729_v50 = vld [vmem:[#allocation24 + $0xec] ss:$16 sps:$4 sm:$0xff]  }
 0x82e   :  { %13440 = vmatpush1.bf16.msra.mxu0 %v19673_v14  ;;  %v19778_v14 = vld [vmem:[#allocation25 + $0x80] ss:$8 sps:$4 sm:$0xff]  }
 0x82f   :  { %13441 = vmatprep.subr.bf16.mxu0 %v19678_v25  ;;  %v19783_v25 = vld [vmem:[#allocation25 + $0x94] ss:$8 sps:$4 sm:$0xff]  }
 0x831   :  { %12979 = vmatmul.mubr.bf16.gmra.mrb[236].mxu0 %v23531_v28  ;;  %v19688_v28 = vld [vmem:[#allocation24 + $0x140] ss:$16 sps:$4 sm:$0xff]  }
 0x832   :  { %12988 = vmatprep.mubr.bf16.mxu0 %v23550_v13  ;;  %13442 = vmatpush1.bf16.msra.mxu0 %v19676_v32  ;;  %v19693_v13 = vld [vmem:[#allocation24 + $0x164] ss:$16 sps:$4 sm:$0xff]   ;;  %v19727_v32 = vld [vmem:[#allocation24 + $0xe8] ss:$16 sps:$4 sm:$0xff]  }
 0x833   :  { %13443 = vmatprep.subr.bf16.mxu0 %v19681_v27  ;;  %v19732_v27 = vld [vmem:[#allocation24 + $0x10c] ss:$16 sps:$4 sm:$0xff]  }
 0x836   :  { %13444 = vmatpush1.bf16.msra.mxu0 %v19679_v4  ;;  %v19781_v4 = vld [vmem:[#allocation25 + $0x90] ss:$8 sps:$4 sm:$0xff]  }
 0x837   :  { %13445 = vmatprep.subr.bf16.mxu0 %v19684_v42  ;;  %v19786_v42 = vld [vmem:[#allocation25 + $0xa4] ss:$8 sps:$4 sm:$0xff]  }
 0x839   :  { %12989 = vmatmul.mubr.bf16.gmra.mrb[240].mxu0 %v23547_v35  ;;  %v19694_v35 = vld [vmem:[#allocation24 + $0x180] ss:$16 sps:$4 sm:$0xff]  }
 0x83a   :  { %12998 = vmatprep.mubr.bf16.mxu0 %v23566_v9  ;;  %13446 = vmatpush1.bf16.msra.mxu0 %v19682_v45  ;;  %v19699_v9 = vld [vmem:[#allocation24 + $0x1a4] ss:$16 sps:$4 sm:$0xff]   ;;  %v19730_v45 = vld [vmem:[#allocation24 + $0x108] ss:$16 sps:$4 sm:$0xff]  }
 0x83b   :  { %13447 = vmatprep.subr.bf16.mxu0 %v19687_v58  ;;  %v19735_v58 = vld [vmem:[#allocation24 + $0x12c] ss:$16 sps:$4 sm:$0xff]  }
 0x83e   :  { %13448 = vmatpush1.bf16.msra.mxu0 %v19685_v47  ;;  %v19784_v47 = vld [vmem:[#allocation25 + $0xa0] ss:$8 sps:$4 sm:$0xff]  }
 0x83f   :  { %13449 = vmatprep.subr.bf16.mxu0 %v19690_v21  ;;  %v19789_v21 = vld [vmem:[#allocation25 + $0xb4] ss:$8 sps:$4 sm:$0xff]  }
 0x841   :  { %12999 = vmatmul.mubr.bf16.gmra.mrb[244].mxu0 %v23563_v26  ;;  %v19700_v26 = vld [vmem:[#allocation24 + $0x1c0] ss:$16 sps:$4 sm:$0xff]  }
 0x842   :  { %13008 = vmatprep.mubr.bf16.mxu0 %v23582_v37  ;;  %13450 = vmatpush1.bf16.msra.mxu0 %v19688_v28  ;;  %v19705_v37 = vld [vmem:[#allocation24 + $0x1e4] ss:$16 sps:$4 sm:$0xff]   ;;  %v19733_v28 = vld [vmem:[#allocation24 + $0x128] ss:$16 sps:$4 sm:$0xff]  }
 0x843   :  { %13451 = vmatprep.subr.bf16.mxu0 %v19693_v13  ;;  %v19738_v13 = vld [vmem:[#allocation24 + $0x14c] ss:$16 sps:$4 sm:$0xff]  }
 0x846   :  { %13452 = vmatpush1.bf16.msra.mxu0 %v19691_v61  ;;  %v19787_v61 = vld [vmem:[#allocation25 + $0xb0] ss:$8 sps:$4 sm:$0xff]  }
 0x847   :  { %13453 = vmatprep.subr.bf16.mxu0 %v19696_v1  ;;  %v19792_v1 = vld [vmem:[#allocation25 + $0xc4] ss:$8 sps:$4 sm:$0xff]  }
 0x849   :  { %13009 = vmatmul.mubr.bf16.gmra.mrb[248].mxu0 %v23579_v63  ;;  %v19708_v63 = vld [vmem:[#allocation24 + $0xc] ss:$16 sps:$4 sm:$0xff]  }
 0x84a   :  { %13018 = vmatprep.mubr.bf16.mxu0 %v23606_v60  ;;  %13454 = vmatpush1.bf16.msra.mxu0 %v19694_v35  ;;  %v19757_v60 = vld [vmem:[#allocation25 + $0x10] ss:$8 sps:$4 sm:$0xff]  }
 0x84b   :  { %13455 = vmatprep.subr.bf16.mxu0 %v19699_v9  ;;  %14300 = vmatpush1.bf16.msra.mxu1 %v19757_v60  ;;  %v19736_v35 = vld [vmem:[#allocation24 + $0x148] ss:$16 sps:$4 sm:$0xff]   ;;  %v19741_v9 = vld [vmem:[#allocation24 + $0x16c] ss:$16 sps:$4 sm:$0xff]   ;;  %v24870_v60 = vld [vmem:[#allocation118_spill] sm:$0xff] }
 0x84c   :  { %14301 = vmatprep.subr.bf16.mxu1 %v19762_v10  ;;  %v24871_v10 = vld [vmem:[#allocation119_spill] sm:$0xff] }
 0x84e   :  { %13456 = vmatpush1.bf16.msra.mxu0 %v19697_v12  ;;  %v19790_v12 = vld [vmem:[#allocation25 + $0xc0] ss:$8 sps:$4 sm:$0xff]  }
 0x84f   :  { %13457 = vmatprep.subr.bf16.mxu0 %v19702_v36  ;;  %v24868_v36 = vld [vmem:[#allocation64_spill] sm:$0xff] }
 0x851   :  { %13019 = vmatmul.mubr.bf16.gmra.mrb[252].mxu0 %v23603_v54  ;;  %v19760_v54 = vld [vmem:[#allocation25 + $0x20] ss:$8 sps:$4 sm:$0xff]  }
 0x852   :  { %13458 = vmatpush1.bf16.msra.mxu0 %v19700_v26  ;;  %13461 = vmatprep.mubr.bf16.mxu0 %v23343_v19  ;;  %v19795_v26 = vld [vmem:[#allocation25 + $0xd4] ss:$8 sps:$4 sm:$0xff]  }
 0x853   :  { %13459 = vmatprep.subr.bf16.mxu0 %v19705_v37  ;;  %14302 = vmatpush1.bf16.msra.mxu1 %v19760_v54  ;;  %v24869_v37 = vld [vmem:[#allocation117_spill] sm:$0xff] }
 0x854   :  { %14303 = vmatprep.subr.bf16.mxu1 %v19765_v15  ;;  %v19748_v54 = vld [vmem:[#allocation24 + $0x1c8] ss:$16 sps:$4 sm:$0xff]   ;;  %v19753_v15 = vld [vmem:[#allocation24 + $0x1ec] ss:$16 sps:$4 sm:$0xff]  }
 0x856   :  { %13460 = vmatpush1.bf16.msra.mxu0 %v19703_v30  ;;  %v19793_v30 = vld [vmem:[#allocation25 + $0xd0] ss:$8 sps:$4 sm:$0xff]  }
 0x857   :  { %13542 = vmatprep.subr.bf16.mxu0 %v19708_v63  ;;  %14304 = vmatpush1.bf16.msra.mxu1 %v19763_v8  ;;  %v19747_v63 = vld [vmem:[#allocation24 + $0x1ac] ss:$16 sps:$4 sm:$0xff]  }
 0x858   :  { %14305 = vmatprep.subr.bf16.mxu1 %v19768_v34  ;;  %v19798_v8 = vld [vmem:[#allocation25 + $0xe4] ss:$8 sps:$4 sm:$0xff]   ;;  %v19796_v34 = vld [vmem:[#allocation25 + $0xe0] ss:$8 sps:$4 sm:$0xff]  }
 0x859   :  { %13462 = vmatmul.mubr.bf16.vlgmr.msra.gmra.mrb[192].mxu0 %v23339_v56 }
 0x85a   :  { %13471 = vmatprep.mubr.bf16.mxu0 %v23361_v5  ;;  %13543 = vmatpush1.bf16.msra.mxu0 %v19706_v38  ;;  %v19745_v38 = vld [vmem:[#allocation24 + $0x1a8] ss:$16 sps:$4 sm:$0xff]  }
 0x85b   :  { %13544 = vmatprep.subr.bf16.mxu0 %v19711_v53  ;;  %14306 = vmatpush1.bf16.msra.mxu1 %v19766_v49  ;;  %v19750_v53 = vld [vmem:[#allocation24 + $0x1cc] ss:$16 sps:$4 sm:$0xff]   ;;  %v23858_v49 = vld [vmem:[#allocation25 + $0x150] ss:$8 sps:$4 sm:$0xff]  }
 0x85c   :  { %14307 = vmatprep.subr.bf16.mxu1 %v19771_v43  ;;  %v23862_v43 = vld [vmem:[#allocation25 + $0x164] ss:$8 sps:$4 sm:$0xff]  }
 0x85e   :  { %13545 = vmatpush1.bf16.msra.mxu0 %v19709_v59  ;;  %v24872_v59 = vld [vmem:[#allocation120_spill] sm:$0xff] }
 0x85f   :  { %13546 = vmatprep.subr.bf16.mxu0 %v19714_v57  ;;  %14308 = vmatpush1.bf16.msra.mxu1 %v19769_v52  ;;  %v19751_v57 = vld [vmem:[#allocation24 + $0x1e8] ss:$16 sps:$4 sm:$0xff]  }
 0x860   :  { %14309 = vmatprep.subr.bf16.mxu1 %v19774_v24  ;;  %v23871_v52 = vld [vmem:[#allocation25 + $0x170] ss:$8 sps:$4 sm:$0xff]   ;;  %v23875_v24 = vld [vmem:[#allocation25 + $0x184] ss:$8 sps:$4 sm:$0xff]  }
 0x861   :  { %13472 = vmatmul.mubr.bf16.gmra.mrb[196].mxu0 %v23358_v41 }
 0x862   :  { %13481 = vmatprep.mubr.bf16.mxu0 %v23379_v0  ;;  %13547 = vmatpush1.bf16.msra.mxu0 %v19712_v11  ;;  %v23850_v11 = vld [vmem:[#allocation25 + $0x140] ss:$8 sps:$4 sm:$0xff]  }
 0x863   :  { %13548 = vmatprep.subr.bf16.mxu0 %v19717_v39  ;;  %14310 = vmatpush1.bf16.msra.mxu1 %v19772_v2  ;;  %v23855_v39 = vld [vmem:[#allocation25 + $0x154] ss:$8 sps:$4 sm:$0xff]   ;;  %v23883_v2 = vld [vmem:[#allocation25 + $0x190] ss:$8 sps:$4 sm:$0xff]  }
 0x864   :  { %14311 = vmatprep.subr.bf16.mxu1 %v19777_v22  ;;  %v23887_v22 = vld [vmem:[#allocation25 + $0x1a4] ss:$8 sps:$4 sm:$0xff]  }
 0x866   :  { %13549 = vmatpush1.bf16.msra.mxu0 %v19715_v48  ;;  %v23864_v48 = vld [vmem:[#allocation25 + $0x160] ss:$8 sps:$4 sm:$0xff]  }
 0x867   :  { %13550 = vmatprep.subr.bf16.mxu0 %v19720_v51  ;;  %14312 = vmatpush1.bf16.msra.mxu1 %v19775_v62  ;;  %v23869_v51 = vld [vmem:[#allocation25 + $0x174] ss:$8 sps:$4 sm:$0xff]   ;;  %v23895_v62 = vld [vmem:[#allocation25 + $0x1b0] ss:$8 sps:$4 sm:$0xff]  }
 0x868   :  { %14313 = vmatprep.subr.bf16.mxu1 %v19780_v40  ;;  %v23899_v40 = vld [vmem:[#allocation25 + $0x1c4] ss:$8 sps:$4 sm:$0xff]  }
 0x869   :  { %13482 = vmatmul.mubr.bf16.gmra.mrb[200].mxu0 %v23376_v7 }
 0x86a   :  { %13491 = vmatprep.mubr.bf16.mxu0 %v23397_v20  ;;  %13551 = vmatpush1.bf16.msra.mxu0 %v19718_v44  ;;  %v23877_v44 = vld [vmem:[#allocation25 + $0x180] ss:$8 sps:$4 sm:$0xff]  }
 0x86b   :  { %13552 = vmatprep.subr.bf16.mxu0 %v19723_v3  ;;  %14314 = vmatpush1.bf16.msra.mxu1 %v19778_v14  ;;  %v23881_v3 = vld [vmem:[#allocation25 + $0x194] ss:$8 sps:$4 sm:$0xff]   ;;  %v23907_v14 = vld [vmem:[#allocation25 + $0x1d0] ss:$8 sps:$4 sm:$0xff]  }
 0x86c   :  { %14315 = vmatprep.subr.bf16.mxu1 %v19783_v25  ;;  %v23911_v25 = vld [vmem:[#allocation25 + $0x1e4] ss:$8 sps:$4 sm:$0xff]  }
 0x86e   :  { %13553 = vmatpush1.bf16.msra.mxu0 %v19721_v29  ;;  %v23889_v29 = vld [vmem:[#allocation25 + $0x1a0] ss:$8 sps:$4 sm:$0xff]  }
 0x86f   :  { %13554 = vmatprep.subr.bf16.mxu0 %v19726_v16  ;;  %14316 = vmatpush1.bf16.msra.mxu1 %v19781_v4  ;;  %v23893_v16 = vld [vmem:[#allocation25 + $0x1b4] ss:$8 sps:$4 sm:$0xff]   ;;  %v23919_v4 = vld [vmem:[#allocation25 + $0x1f0] ss:$8 sps:$4 sm:$0xff]  }
 0x870   :  { %14317 = vmatprep.subr.bf16.mxu1 %v19786_v42  ;;  %v23924_v42 = vld [vmem:[%s24873_s22] sm:$0xf] }
 0x871   :  { %13492 = vmatmul.mubr.bf16.gmra.mrb[204].mxu0 %v23394_v55 }
 0x872   :  { %13501 = vmatprep.mubr.bf16.mxu0 %v23414_v6  ;;  %13555 = vmatpush1.bf16.msra.mxu0 %v19724_v18  ;;  %v23901_v18 = vld [vmem:[#allocation25 + $0x1c0] ss:$8 sps:$4 sm:$0xff]  }
 0x873   :  { %13556 = vmatprep.subr.bf16.mxu0 %v19729_v50  ;;  %14318 = vmatpush1.bf16.msra.mxu1 %v19784_v47  ;;  %v23905_v50 = vld [vmem:[#allocation25 + $0x1d4] ss:$8 sps:$4 sm:$0xff]   ;;  %v24875_v47 = vld [vmem:[#allocation68_spill] sm:$0xff] }
 0x874   :  { %14319 = vmatprep.subr.bf16.mxu1 %v19789_v21  ;;  %v23932_v21 = vrot.slane %v23924_v42, %v24875_v47 }
 0x876   :  { %13557 = vmatpush1.bf16.msra.mxu0 %v19727_v32  ;;  %v23913_v32 = vld [vmem:[#allocation25 + $0x1e0] ss:$8 sps:$4 sm:$0xff]  }
 0x877   :  { %13558 = vmatprep.subr.bf16.mxu0 %v19732_v27  ;;  %14320 = vmatpush1.bf16.msra.mxu1 %v19787_v61  ;;  %v23917_v27 = vld [vmem:[#allocation25 + $0x1f4] ss:$8 sps:$4 sm:$0xff]  }
 0x878   :  { %14321 = vmatprep.subr.bf16.mxu1 %v19792_v1 }
 0x879   :  { %13502 = vmatmul.mubr.bf16.gmra.mrb[208].mxu0 %v23411_v33 }
 0x87a   :  { %13511 = vmatprep.mubr.bf16.mxu0 %v23430_v17  ;;  %13559 = vmatpush1.bf16.msra.mxu0 %v19730_v45  ;;  %v24874_v45 = vld [vmem:[#allocation67_spill] sm:$0xff] }
 0x87b   :  { %13560 = vmatprep.subr.bf16.mxu0 %v19735_v58  ;;  %14322 = vmatpush1.bf16.msra.mxu1 %v19790_v12  ;;  %v23928_v58 = vrot.slane %v23924_v42, %v24874_v45 }
 0x87c   :  { %14323 = vmatprep.subr.bf16.mxu1 %v19795_v26 }
 0x87e   :  { %13561 = vmatpush1.bf16.msra.mxu0 %v19733_v28 }
 0x87f   :  { %13562 = vmatprep.subr.bf16.mxu0 %v19738_v13  ;;  %14324 = vmatpush1.bf16.msra.mxu1 %v19793_v30 }
 0x880   :  { %14325 = vmatprep.subr.bf16.mxu1 %v19798_v8 }
 0x881   :  { %13512 = vmatmul.mubr.bf16.gmra.mrb[212].mxu0 %v24868_v36 }
 0x882   :  { %13521 = vmatprep.mubr.bf16.mxu0 %v24869_v37  ;;  %13563 = vmatpush1.bf16.msra.mxu0 %v19736_v35 }
 0x883   :  { %13564 = vmatprep.subr.bf16.mxu0 %v19741_v9  ;;  %14326 = vmatpush1.bf16.msra.mxu1 %v19796_v34 }
 0x886   :  { %13565 = vmatpush1.bf16.msra.mxu0 %v19739_v23 }
 0x887   :  { %13566 = vmatprep.subr.bf16.mxu0 %v19744_v31 }
 0x889   :  { %13522 = vmatmul.mubr.bf16.gmra.mrb[216].mxu0 %v24870_v60 }
 0x88a   :  { %13531 = vmatprep.mubr.bf16.mxu0 %v24871_v10  ;;  %13567 = vmatpush1.bf16.msra.mxu0 %v19742_v46 }
 0x88b   :  { %13568 = vmatprep.subr.bf16.mxu0 %v19747_v63 }
 0x88e   :  { %13569 = vmatpush1.bf16.msra.mxu0 %v19745_v38 }
 0x88f   :  { %13570 = vmatprep.subr.bf16.mxu0 %v19750_v53 }
 0x891   :  { %13532 = vmatmul.mubr.bf16.gmra.mrb[220].mxu0 %v24872_v59 }
 0x892   :  { %13571 = vmatpush1.bf16.msra.mxu0 %v19748_v54  ;;  %13574 = vmatprep.mubr.bf16.mxu0 %v23343_v19  ;;  %v19801_v19 = vld [vmem:[#allocation25 + $0xf4] ss:$8 sps:$4 sm:$0xff]  }
 0x893   :  { %13572 = vmatprep.subr.bf16.mxu0 %v19753_v15  ;;  %14327 = vmatprep.subr.bf16.mxu1 %v19801_v19 }
 0x896   :  { %13573 = vmatpush1.bf16.msra.mxu0 %v19751_v57 }
 0x899   :  { %13575 = vmatmul.mubr.bf16.vlgmr.msra.gmra.mrb[224].mxu0 %v23339_v56  ;;  %v19799_v56 = vld [vmem:[#allocation25 + $0xf0] ss:$8 sps:$4 sm:$0xff]  }
 0x89a   :  { %13584 = vmatprep.mubr.bf16.mxu0 %v23361_v5  ;;  %14328 = vmatpush1.bf16.msra.mxu1 %v19799_v56  ;;  %v19804_v5 = vld [vmem:[#allocation25 + $0x104] ss:$8 sps:$4 sm:$0xff]  }
 0x89b   :  { %14410 = vmatprep.subr.bf16.mxu0 %v19804_v5  ;;  %16647 = vmatprep.subr.bf16.mxu1 %v19804_v5 }
 0x8a1   :  { %13585 = vmatmul.mubr.bf16.gmra.mrb[228].mxu0 %v23358_v41  ;;  %v23823_v41 = vld [vmem:[#allocation25 + $0x100] ss:$8 sps:$4 sm:$0xff]  }
 0x8a2   :  { %13594 = vmatprep.mubr.bf16.mxu0 %v23379_v0  ;;  %14411 = vmatpush1.bf16.msra.mxu0 %v23823_v41  ;;  %v23830_v0 = vld [vmem:[#allocation25 + $0x110] ss:$8 sps:$4 sm:$0xff]  }
 0x8a9   :  { %13595 = vmatmul.mubr.bf16.gmra.mrb[232].mxu0 %v23376_v7  ;;  %v23827_v7 = vld [vmem:[#allocation25 + $0x114] ss:$8 sps:$4 sm:$0xff]  }
 0x8aa   :  { %13604 = vmatprep.mubr.bf16.mxu0 %v23397_v20  ;;  %14412 = vmatprep.subr.bf16.mxu0 %v23827_v7  ;;  %v23836_v20 = vld [vmem:[#allocation25 + $0x120] ss:$8 sps:$4 sm:$0xff]  }
 0x8ab   :  { %14413 = vmatpush1.bf16.msra.mxu0 %v23830_v0 }
 0x8b1   :  { %13605 = vmatmul.mubr.bf16.gmra.mrb[236].mxu0 %v23394_v55  ;;  %v23834_v55 = vld [vmem:[#allocation25 + $0x124] ss:$8 sps:$4 sm:$0xff]  }
 0x8b2   :  { %13614 = vmatprep.mubr.bf16.mxu0 %v23414_v6  ;;  %14414 = vmatprep.subr.bf16.mxu0 %v23834_v55  ;;  %v23844_v6 = vld [vmem:[#allocation25 + $0x130] ss:$8 sps:$4 sm:$0xff]  }
 0x8b3   :  { %14415 = vmatpush1.bf16.msra.mxu0 %v23836_v20 }
 0x8b9   :  { %13615 = vmatmul.mubr.bf16.gmra.mrb[240].mxu0 %v23411_v33  ;;  %v23841_v33 = vld [vmem:[#allocation25 + $0x134] ss:$8 sps:$4 sm:$0xff]  }
 0x8ba   :  { %13624 = vmatprep.mubr.bf16.mxu0 %v23430_v17  ;;  %14416 = vmatprep.subr.bf16.mxu0 %v23841_v33  ;;  %v23848_v17 = vld [vmem:[#allocation25 + $0x144] ss:$8 sps:$4 sm:$0xff]  }
 0x8bb   :  { %14417 = vmatpush1.bf16.msra.mxu0 %v23844_v6 }
 0x8bc   :  { %14418 = vmatprep.subr.bf16.mxu0 %v23848_v17 }
 0x8bf   :  { %14419 = vmatpush1.bf16.msra.mxu0 %v23850_v11 }
 0x8c0   :  { %14420 = vmatprep.subr.bf16.mxu0 %v23855_v39 }
 0x8c1   :  { %13625 = vmatmul.mubr.bf16.gmra.mrb[244].mxu0 %v24868_v36 }
 0x8c2   :  { %13634 = vmatprep.mubr.bf16.mxu0 %v24869_v37 }
 0x8c3   :  { %14421 = vmatpush1.bf16.msra.mxu0 %v23858_v49 }
 0x8c4   :  { %14422 = vmatprep.subr.bf16.mxu0 %v23862_v43 }
 0x8c7   :  { %14423 = vmatpush1.bf16.msra.mxu0 %v23864_v48 }
 0x8c8   :  { %14424 = vmatprep.subr.bf16.mxu0 %v23869_v51 }
 0x8c9   :  { %13635 = vmatmul.mubr.bf16.gmra.mrb[248].mxu0 %v24870_v60 }
 0x8ca   :  { %13644 = vmatprep.mubr.bf16.mxu0 %v24871_v10 }
 0x8cb   :  { %14425 = vmatpush1.bf16.msra.mxu0 %v23871_v52 }
 0x8cc   :  { %14426 = vmatprep.subr.bf16.mxu0 %v23875_v24 }
 0x8cf   :  { %14427 = vmatpush1.bf16.msra.mxu0 %v23877_v44 }
 0x8d0   :  { %14428 = vmatprep.subr.bf16.mxu0 %v23881_v3 }
 0x8d1   :  { %13645 = vmatmul.mubr.bf16.gmra.mrb[252].mxu0 %v24872_v59 }
 0x8d3   :  { %14429 = vmatpush1.bf16.msra.mxu0 %v23883_v2 }
 0x8d4   :  { %14430 = vmatprep.subr.bf16.mxu0 %v23887_v22 }
 0x8d7   :  { %14431 = vmatpush1.bf16.msra.mxu0 %v23889_v29 }
 0x8d8   :  { %14432 = vmatprep.subr.bf16.mxu0 %v23893_v16 }
 0x8db   :  { %14433 = vmatpush1.bf16.msra.mxu0 %v23895_v62 }
 0x8dc   :  { %14434 = vmatprep.subr.bf16.mxu0 %v23899_v40 }
 0x8df   :  { %14435 = vmatpush1.bf16.msra.mxu0 %v23901_v18 }
 0x8e0   :  { %14436 = vmatprep.subr.bf16.mxu0 %v23905_v50 }
 0x8e3   :  { %14437 = vmatpush1.bf16.msra.mxu0 %v23907_v14 }
 0x8e4   :  { %14438 = vmatprep.subr.bf16.mxu0 %v23911_v25 }
 0x8e7   :  { %14439 = vmatpush1.bf16.msra.mxu0 %v23913_v32 }
 0x8e8   :  { %14440 = vmatprep.subr.bf16.mxu0 %v23917_v27 }
 0x8eb   :  { %14441 = vmatpush1.bf16.msra.mxu0 %v23919_v4 }
 0x92c   :  { %v13463_v28 = vpop.f32.mrb[192].mxu0 }
 0x92d   :  { %v13741_v13 = vadd.f32 %v23928_v58, %v13463_v28  ;;  %v13465_v61 = vpop.f32.mrb[193].mxu0 }
 0x92e   :  { %v13742_v1 = vadd.f32 %v23932_v21, %v13465_v61  ;;  %v13467_v35 = vpop.f32.mrb[194].mxu0 }
 0x92f   :  { %v13745_v9 = vadd.f32 %v23928_v58, %v13467_v35  ;;  %v13469_v12 = vpop.f32.mrb[195].mxu0  ;;  %v13805_v26 = vmax.f32 %v13741_v13, 0.0 }
 0x930   :  { %v13746_v36 = vadd.f32 %v23932_v21, %v13469_v12  ;;  %v13806_v23 = vmax.f32 %v13742_v1, 0.0 }
 0x931   :  { %v13809_v37 = vmax.f32 %v13745_v9, 0.0 }
 0x932   :  { %v13810_v31 = vmax.f32 %v13746_v36, 0.0 }
 0x933   :  { %v13869_v30 = vpack.c.bf16 %v13809_v37, %v13805_v26 }
 0x934   :  { %v13870_v46 = vpack.c.bf16 %v13810_v31, %v13806_v23  ;;  %v13473_v63 = vpop.f32.mrb[196].mxu0 }
 0x935   :  { %v13749_v60 = vadd.f32 %v23928_v58, %v13473_v63  ;;  %v13475_v10 = vpop.f32.mrb[197].mxu0 }
 0x936   :  { %v13750_v38 = vadd.f32 %v23932_v21, %v13475_v10  ;;  %v13477_v53 = vpop.f32.mrb[198].mxu0  ;;  %14329 = vmatprep.mubr.bf16.mxu1 %v13870_v46 }
 0x937   :  { %v13753_v54 = vadd.f32 %v23928_v58, %v13477_v53  ;;  %v13479_v15 = vpop.f32.mrb[199].mxu0  ;;  %14330 = vmatmul.mubr.bf16.vlgmr.msra.gmra.mrb[224].mxu1 %v13869_v30  ;;  %v13813_v57 = vmax.f32 %v13749_v60, 0.0 }
 0x938   :  { %v13754_v59 = vadd.f32 %v23932_v21, %v13479_v15  ;;  %16663 = vmatpush1.bf16.msra.mxu1 %v23823_v41  ;;  %v13814_v34 = vmax.f32 %v13750_v38, 0.0 }
 0x939   :  { %v13817_v8 = vmax.f32 %v13753_v54, 0.0  ;;  %16648 = vmatprep.subr.bf16.mxu1 %v23827_v7 }
 0x93a   :  { %v13818_v19 = vmax.f32 %v13754_v59, 0.0 }
 0x93b   :  { %v13873_v56 = vpack.c.bf16 %v13817_v8, %v13813_v57 }
 0x93c   :  { %v13874_v5 = vpack.c.bf16 %v13818_v19, %v13814_v34  ;;  %v13483_v28 = vpop.f32.mrb[200].mxu0  ;;  %16664 = vmatpush1.bf16.msra.mxu1 %v23830_v0 }
 0x93d   :  { %v13757_v13 = vadd.f32 %v23928_v58, %v13483_v28  ;;  %v13485_v61 = vpop.f32.mrb[201].mxu0  ;;  %16649 = vmatprep.subr.bf16.mxu1 %v23834_v55 }
 0x93e   :  { %v13758_v1 = vadd.f32 %v23932_v21, %v13485_v61  ;;  %v13487_v35 = vpop.f32.mrb[202].mxu0  ;;  %14339 = vmatprep.mubr.bf16.mxu1 %v13874_v5 }
 0x93f   :  { %v13761_v41 = vadd.f32 %v23928_v58, %v13487_v35  ;;  %v13489_v9 = vpop.f32.mrb[203].mxu0  ;;  %14340 = vmatmul.mubr.bf16.gmra.mrb[228].mxu1 %v13873_v56  ;;  %v13821_v12 = vmax.f32 %v13757_v13, 0.0 }
 0x940   :  { %v13762_v7 = vadd.f32 %v23932_v21, %v13489_v9  ;;  %16665 = vmatpush1.bf16.msra.mxu1 %v23836_v20  ;;  %v13822_v0 = vmax.f32 %v13758_v1, 0.0 }
 0x941   :  { %v13825_v36 = vmax.f32 %v13761_v41, 0.0  ;;  %16650 = vmatprep.subr.bf16.mxu1 %v23841_v33 }
 0x942   :  { %v13826_v26 = vmax.f32 %v13762_v7, 0.0 }
 0x943   :  { %v13877_v37 = vpack.c.bf16 %v13825_v36, %v13821_v12 }
 0x944   :  { %v13878_v55 = vpack.c.bf16 %v13826_v26, %v13822_v0  ;;  %v13493_v23 = vpop.f32.mrb[204].mxu0  ;;  %16666 = vmatpush1.bf16.msra.mxu1 %v23844_v6 }
 0x945   :  { %v13765_v31 = vadd.f32 %v23928_v58, %v13493_v23  ;;  %v13495_v30 = vpop.f32.mrb[205].mxu0  ;;  %16651 = vmatprep.subr.bf16.mxu1 %v23848_v17 }
 0x946   :  { %v13766_v46 = vadd.f32 %v23932_v21, %v13495_v30  ;;  %v13497_v63 = vpop.f32.mrb[206].mxu0  ;;  %14349 = vmatprep.mubr.bf16.mxu1 %v13878_v55 }
 0x947   :  { %v13769_v20 = vadd.f32 %v23928_v58, %v13497_v63  ;;  %v13499_v60 = vpop.f32.mrb[207].mxu0  ;;  %14350 = vmatmul.mubr.bf16.gmra.mrb[232].mxu1 %v13877_v37  ;;  %v13829_v10 = vmax.f32 %v13765_v31, 0.0 }
 0x948   :  { %v13770_v33 = vadd.f32 %v23932_v21, %v13499_v60  ;;  %16667 = vmatpush1.bf16.msra.mxu1 %v23850_v11  ;;  %v13830_v6 = vmax.f32 %v13766_v46, 0.0 }
 0x949   :  { %v13833_v38 = vmax.f32 %v13769_v20, 0.0  ;;  %16652 = vmatprep.subr.bf16.mxu1 %v23855_v39 }
 0x94a   :  { %v13834_v53 = vmax.f32 %v13770_v33, 0.0 }
 0x94b   :  { %v13881_v54 = vpack.c.bf16 %v13833_v38, %v13829_v10 }
 0x94c   :  { %v13882_v17 = vpack.c.bf16 %v13834_v53, %v13830_v6  ;;  %v13503_v15 = vpop.f32.mrb[208].mxu0  ;;  %16668 = vmatpush1.bf16.msra.mxu1 %v23858_v49 }
 0x94d   :  { %v13773_v59 = vadd.f32 %v23928_v58, %v13503_v15  ;;  %v13505_v57 = vpop.f32.mrb[209].mxu0  ;;  %16653 = vmatprep.subr.bf16.mxu1 %v23862_v43 }
 0x94e   :  { %v13774_v8 = vadd.f32 %v23932_v21, %v13505_v57  ;;  %v13507_v34 = vpop.f32.mrb[210].mxu0  ;;  %14359 = vmatprep.mubr.bf16.mxu1 %v13882_v17 }
 0x94f   :  { %v13777_v11 = vadd.f32 %v23928_v58, %v13507_v34  ;;  %v13509_v19 = vpop.f32.mrb[211].mxu0  ;;  %14360 = vmatmul.mubr.bf16.gmra.mrb[236].mxu1 %v13881_v54  ;;  %v13837_v56 = vmax.f32 %v13773_v59, 0.0  ;;  %v24877_v34 = vld [vmem:[#allocation73_spill] sm:$0xff] }
 0x950   :  { %v13778_v39 = vadd.f32 %v23932_v21, %v13509_v19  ;;  %16669 = vmatpush1.bf16.msra.mxu1 %v23864_v48  ;;  %v13838_v49 = vmax.f32 %v13774_v8, 0.0 }
 0x951   :  { %v13841_v5 = vmax.f32 %v13777_v11, 0.0  ;;  %16654 = vmatprep.subr.bf16.mxu1 %v23869_v51  ;;  %v23998_v11 = vrot.slane %v23924_v42, %v24877_v34 }
 0x952   :  { %v13842_v28 = vmax.f32 %v13778_v39, 0.0 }
 0x953   :  { %v13885_v13 = vpack.c.bf16 %v13841_v5, %v13837_v56 }
 0x954   :  { %v13886_v43 = vpack.c.bf16 %v13842_v28, %v13838_v49  ;;  %v13513_v61 = vpop.f32.mrb[212].mxu0  ;;  %16670 = vmatpush1.bf16.msra.mxu1 %v23871_v52 }
 0x955   :  { %v13781_v1 = vadd.f32 %v23928_v58, %v13513_v61  ;;  %v13515_v35 = vpop.f32.mrb[213].mxu0  ;;  %16655 = vmatprep.subr.bf16.mxu1 %v23875_v24 }
 0x956   :  { %v13782_v41 = vadd.f32 %v23932_v21, %v13515_v35  ;;  %v13517_v9 = vpop.f32.mrb[214].mxu0  ;;  %14369 = vmatprep.mubr.bf16.mxu1 %v13886_v43 }
 0x957   :  { %v13785_v48 = vadd.f32 %v23928_v58, %v13517_v9  ;;  %v13519_v7 = vpop.f32.mrb[215].mxu0  ;;  %14370 = vmatmul.mubr.bf16.gmra.mrb[240].mxu1 %v13885_v13  ;;  %v13845_v12 = vmax.f32 %v13781_v1, 0.0 }
 0x958   :  { %v13786_v51 = vadd.f32 %v23932_v21, %v13519_v7  ;;  %16671 = vmatpush1.bf16.msra.mxu1 %v23877_v44  ;;  %v13846_v52 = vmax.f32 %v13782_v41, 0.0 }
 0x959   :  { %v13849_v36 = vmax.f32 %v13785_v48, 0.0  ;;  %16656 = vmatprep.subr.bf16.mxu1 %v23881_v3 }
 0x95a   :  { %v13850_v0 = vmax.f32 %v13786_v51, 0.0 }
 0x95b   :  { %v13889_v26 = vpack.c.bf16 %v13849_v36, %v13845_v12 }
 0x95c   :  { %v13890_v24 = vpack.c.bf16 %v13850_v0, %v13846_v52  ;;  %v13523_v37 = vpop.f32.mrb[216].mxu0  ;;  %16672 = vmatpush1.bf16.msra.mxu1 %v23883_v2 }
 0x95d   :  { %v13789_v55 = vadd.f32 %v23928_v58, %v13523_v37  ;;  %v13525_v23 = vpop.f32.mrb[217].mxu0  ;;  %16657 = vmatprep.subr.bf16.mxu1 %v23887_v22 }
 0x95e   :  { %v13790_v31 = vadd.f32 %v23932_v21, %v13525_v23  ;;  %v13527_v30 = vpop.f32.mrb[218].mxu0  ;;  %14379 = vmatprep.mubr.bf16.mxu1 %v13890_v24 }
 0x95f   :  { %v13793_v44 = vadd.f32 %v23928_v58, %v13527_v30  ;;  %v13529_v46 = vpop.f32.mrb[219].mxu0  ;;  %14380 = vmatmul.mubr.bf16.gmra.mrb[244].mxu1 %v13889_v26  ;;  %v13853_v63 = vmax.f32 %v13789_v55, 0.0 }
 0x960   :  { %v13794_v3 = vadd.f32 %v23932_v21, %v13529_v46  ;;  %16673 = vmatpush1.bf16.msra.mxu1 %v23889_v29  ;;  %v13854_v2 = vmax.f32 %v13790_v31, 0.0 }
 0x961   :  { %v13857_v20 = vmax.f32 %v13793_v44, 0.0  ;;  %16658 = vmatprep.subr.bf16.mxu1 %v23893_v16 }
 0x962   :  { %v13858_v60 = vmax.f32 %v13794_v3, 0.0 }
 0x963   :  { %v13893_v33 = vpack.c.bf16 %v13857_v20, %v13853_v63 }
 0x964   :  { %v13894_v22 = vpack.c.bf16 %v13858_v60, %v13854_v2  ;;  %v13533_v10 = vpop.f32.mrb[220].mxu0  ;;  %16674 = vmatpush1.bf16.msra.mxu1 %v23895_v62  ;;  %v24876_v62 = vld [vmem:[#allocation72_spill] sm:$0xff] }
 0x965   :  { %v13797_v38 = vadd.f32 %v23928_v58, %v13533_v10  ;;  %v13535_v6 = vpop.f32.mrb[221].mxu0  ;;  %16659 = vmatprep.subr.bf16.mxu1 %v23899_v40  ;;  %v23993_v57 = vrot.slane %v23924_v42, %v24876_v62 }
 0x966   :  { %v13798_v53 = vadd.f32 %v23932_v21, %v13535_v6  ;;  %v13537_v54 = vpop.f32.mrb[222].mxu0  ;;  %14389 = vmatprep.mubr.bf16.mxu1 %v13894_v22 }
 0x967   :  { %v13801_v29 = vadd.f32 %v23928_v58, %v13537_v54  ;;  %v13539_v17 = vpop.f32.mrb[223].mxu0  ;;  %14390 = vmatmul.mubr.bf16.gmra.mrb[248].mxu1 %v13893_v33  ;;  %v13861_v15 = vmax.f32 %v13797_v38, 0.0 }
 0x968   :  { %v13802_v16 = vadd.f32 %v23932_v21, %v13539_v17  ;;  %16675 = vmatpush1.bf16.msra.mxu1 %v23901_v18  ;;  %v13862_v40 = vmax.f32 %v13798_v53, 0.0 }
 0x969   :  { %v13865_v59 = vmax.f32 %v13801_v29, 0.0  ;;  %16660 = vmatprep.subr.bf16.mxu1 %v23905_v50 }
 0x96a   :  { %v13866_v8 = vmax.f32 %v13802_v16, 0.0 }
 0x96b   :  { %v13897_v58 = vpack.c.bf16 %v13865_v59, %v13861_v15 }
 0x96c   :  { %v13898_v19 = vpack.c.bf16 %v13866_v8, %v13862_v40  ;;  %v13576_v39 = vpop.f32.mrb[224].mxu0  ;;  %16676 = vmatpush1.bf16.msra.mxu1 %v23907_v14 }
 0x96d   :  { %v13743_v18 = vadd.f32 %v23993_v57, %v13576_v39  ;;  %v13578_v21 = vpop.f32.mrb[225].mxu0  ;;  %16661 = vmatprep.subr.bf16.mxu1 %v23911_v25 }
 0x96e   :  { %v13744_v56 = vadd.f32 %v23998_v11, %v13578_v21  ;;  %v13580_v5 = vpop.f32.mrb[226].mxu0  ;;  %14399 = vmatprep.mubr.bf16.mxu1 %v13898_v19 }
 0x96f   :  { %v13747_v50 = vadd.f32 %v23993_v57, %v13580_v5  ;;  %v13582_v49 = vpop.f32.mrb[227].mxu0  ;;  %14400 = vmatmul.mubr.bf16.gmra.mrb[252].mxu1 %v13897_v58  ;;  %v13807_v28 = vmax.f32 %v13743_v18, 0.0 }
 0x970   :  { %v13748_v42 = vadd.f32 %v23998_v11, %v13582_v49  ;;  %16677 = vmatpush1.bf16.msra.mxu1 %v23913_v32  ;;  %v13808_v14 = vmax.f32 %v13744_v56, 0.0 }
 0x971   :  { %v13811_v13 = vmax.f32 %v13747_v50, 0.0  ;;  %16662 = vmatprep.subr.bf16.mxu1 %v23917_v27 }
 0x972   :  { %v13812_v43 = vmax.f32 %v13748_v42, 0.0 }
 0x973   :  { %v13871_v61 = vpack.c.bf16 %v13811_v13, %v13807_v28 }
 0x974   :  { %v13872_v25 = vpack.c.bf16 %v13812_v43, %v13808_v14  ;;  %v13586_v1 = vpop.f32.mrb[228].mxu0  ;;  %16678 = vmatpush1.bf16.msra.mxu1 %v23919_v4 }
 0x975   :  { %v13751_v35 = vadd.f32 %v23993_v57, %v13586_v1  ;;  %v13588_v41 = vpop.f32.mrb[229].mxu0 }
 0x976   :  { %v13752_v9 = vadd.f32 %v23998_v11, %v13588_v41  ;;  %v13590_v48 = vpop.f32.mrb[230].mxu0  ;;  %14442 = vmatprep.mubr.bf16.mxu0 %v13872_v25  ;;  %v19851_v41 = vld [vmem:[%s24878_s23] sm:$0xff]  }
 0x977   :  { %v13755_v32 = vadd.f32 %v23993_v57, %v13590_v48  ;;  %v13592_v7 = vpop.f32.mrb[231].mxu0  ;;  %14443 = vmatmul.mubr.bf16.vlgmr.msra.gmra.mrb[0].mxu0 %v13871_v61  ;;  %v13815_v51 = vmax.f32 %v13751_v35, 0.0  ;;  %v19850_v35 = vld [vmem:[%s24878_s23 + $0x40] sm:$0xff]  }
 0x978   :  { %v13756_v27 = vadd.f32 %v23998_v11, %v13592_v7  ;;  %v13816_v36 = vmax.f32 %v13752_v9, 0.0  ;;  %v19852_v9 = vld [vmem:[%s24878_s23 + $0x48] sm:$0xff]   ;;  %16535 = vmatprep.subr.bf16.mxu1 %v19850_v35  ;;  %v13965_v35 = vld [vmem:[%s24879_s14] sm:$0x3] }
 0x979   :  { %v13819_v12 = vmax.f32 %v13755_v32, 0.0 }
 0x97a   :  { %v13820_v52 = vmax.f32 %v13756_v27, 0.0 }
 0x97b   :  { %v13875_v0 = vpack.c.bf16 %v13819_v12, %v13815_v51  ;;  %v19853_v12 = vld [vmem:[%s24878_s23 + $0x8] sm:$0xff]  }
 0x97c   :  { %v13876_v26 = vpack.c.bf16 %v13820_v52, %v13816_v36  ;;  %v13596_v4 = vpop.f32.mrb[232].mxu0 }
 0x97d   :  { %v13759_v24 = vadd.f32 %v23993_v57, %v13596_v4  ;;  %v13598_v37 = vpop.f32.mrb[233].mxu0 }
 0x97e   :  { %v13760_v55 = vadd.f32 %v23998_v11, %v13598_v37  ;;  %v13600_v23 = vpop.f32.mrb[234].mxu0  ;;  %14452 = vmatprep.mubr.bf16.mxu0 %v13876_v26 }
 0x97f   :  { %v13763_v31 = vadd.f32 %v23993_v57, %v13600_v23  ;;  %v13602_v30 = vpop.f32.mrb[235].mxu0  ;;  %14453 = vmatmul.mubr.bf16.gmra.mrb[4].mxu0 %v13875_v0  ;;  %v13823_v46 = vmax.f32 %v13759_v24, 0.0  ;;  %v19854_v0 = vld [vmem:[%s24878_s23 + $0x50] sm:$0xff]  }
 0x980   :  { %v13764_v44 = vadd.f32 %v23998_v11, %v13602_v30  ;;  %v13824_v63 = vmax.f32 %v13760_v55, 0.0  ;;  %v19855_v23 = vld [vmem:[%s24878_s23 + $0x10] sm:$0xff]  }
 0x981   :  { %v13827_v3 = vmax.f32 %v13763_v31, 0.0 }
 0x982   :  { %v13828_v20 = vmax.f32 %v13764_v44, 0.0  ;;  %v19856_v44 = vld [vmem:[%s24878_s23 + $0x58] sm:$0xff]  }
 0x983   :  { %v13879_v2 = vpack.c.bf16 %v13827_v3, %v13823_v46 }
 0x984   :  { %v13880_v60 = vpack.c.bf16 %v13828_v20, %v13824_v63  ;;  %v13606_v33 = vpop.f32.mrb[236].mxu0 }
 0x985   :  { %v13767_v22 = vadd.f32 %v23993_v57, %v13606_v33  ;;  %v13608_v10 = vpop.f32.mrb[237].mxu0 }
 0x986   :  { %v13768_v38 = vadd.f32 %v23998_v11, %v13608_v10  ;;  %v13610_v6 = vpop.f32.mrb[238].mxu0  ;;  %14462 = vmatprep.mubr.bf16.mxu1 %v13880_v60  ;;  %v19857_v60 = vld [vmem:[%s24878_s23 + $0x18] sm:$0xff]   ;;  %v19858_v10 = vld [vmem:[%s24878_s23 + $0x60] sm:$0xff]  }
 0x987   :  { %v13771_v53 = vadd.f32 %v23993_v57, %v13610_v6  ;;  %v13612_v54 = vpop.f32.mrb[239].mxu0  ;;  %14463 = vmatmul.mubr.bf16.vlgmr.msra.gmra.mrb[232].mxu1 %v13879_v2  ;;  %v13831_v17 = vmax.f32 %v13767_v22, 0.0 }
 0x988   :  { %v13772_v29 = vadd.f32 %v23998_v11, %v13612_v54  ;;  %v13832_v15 = vmax.f32 %v13768_v38, 0.0  ;;  %16536 = vmatpush3.bf16.msra.mxu1 %v19851_v41  ;;  %v24056_v41 = vrot.slane %v13965_v35, %v24874_v45 }
 0x989   :  { %v13835_v16 = vmax.f32 %v13771_v53, 0.0  ;;  %16537 = vmatprep.subr.bf16.mxu1 %v19852_v9  ;;  %v24059_v9 = vrot.slane %v13965_v35, %v24875_v47 }
 0x98a   :  { %v13836_v59 = vmax.f32 %v13772_v29, 0.0 }
 0x98b   :  { %v13883_v62 = vpack.c.bf16 %v13835_v16, %v13831_v17  ;;  %v19859_v17 = vld [vmem:[%s24878_s23 + $0x20] sm:$0xff]  }
 0x98c   :  { %v13884_v40 = vpack.c.bf16 %v13836_v59, %v13832_v15  ;;  %v13616_v8 = vpop.f32.mrb[240].mxu0  ;;  %16538 = vmatpush3.bf16.msra.mxu1 %v19853_v12  ;;  %v19860_v59 = vld [vmem:[%s24878_s23 + $0x68] sm:$0xff]  }
 0x98d   :  { %v13775_v34 = vadd.f32 %v23993_v57, %v13616_v8  ;;  %v13618_v58 = vpop.f32.mrb[241].mxu0  ;;  %16539 = vmatprep.subr.bf16.mxu1 %v19854_v0 }
 0x98e   :  { %v13776_v19 = vadd.f32 %v23998_v11, %v13618_v58  ;;  %v13620_v39 = vpop.f32.mrb[242].mxu0  ;;  %14472 = vmatprep.mubr.bf16.mxu1 %v13884_v40 }
 0x98f   :  { %v13779_v18 = vadd.f32 %v23993_v57, %v13620_v39  ;;  %v13622_v21 = vpop.f32.mrb[243].mxu0  ;;  %14473 = vmatmul.mubr.bf16.gmra.mrb[236].mxu1 %v13883_v62  ;;  %v13839_v5 = vmax.f32 %v13775_v34, 0.0 }
 0x990   :  { %v13780_v56 = vadd.f32 %v23998_v11, %v13622_v21  ;;  %v13840_v49 = vmax.f32 %v13776_v19, 0.0  ;;  %16540 = vmatpush3.bf16.msra.mxu1 %v19855_v23  ;;  %v19861_v19 = vld [vmem:[%s24878_s23 + $0x28] sm:$0xff]   ;;  %v19862_v21 = vld [vmem:[%s24878_s23 + $0x70] sm:$0xff]  }
 0x991   :  { %v13843_v50 = vmax.f32 %v13779_v18, 0.0  ;;  %16541 = vmatprep.subr.bf16.mxu1 %v19856_v44 }
 0x992   :  { %v13844_v42 = vmax.f32 %v13780_v56, 0.0 }
 0x993   :  { %v13887_v28 = vpack.c.bf16 %v13843_v50, %v13839_v5  ;;  %v19865_v50 = vld [vmem:[%s24878_s23 + $0x38] sm:$0xff]  }
 0x994   :  { %v13888_v13 = vpack.c.bf16 %v13844_v42, %v13840_v49  ;;  %v13626_v14 = vpop.f32.mrb[244].mxu0  ;;  %16542 = vmatpush3.bf16.msra.mxu1 %v19857_v60 }
 0x995   :  { %v13783_v43 = vadd.f32 %v23993_v57, %v13626_v14  ;;  %v13628_v61 = vpop.f32.mrb[245].mxu0  ;;  %16543 = vmatprep.subr.bf16.mxu1 %v19858_v10  ;;  %v19866_v14 = vld [vmem:[%s20505_s5] sm:$0xff]  }
 0x996   :  { %v13784_v25 = vadd.f32 %v23998_v11, %v13628_v61  ;;  %v13630_v1 = vpop.f32.mrb[246].mxu0  ;;  %14482 = vmatprep.mubr.bf16.mxu1 %v13888_v13 }
 0x997   :  { %v13787_v48 = vadd.f32 %v23993_v57, %v13630_v1  ;;  %v13632_v32 = vpop.f32.mrb[247].mxu0  ;;  %14483 = vmatmul.mubr.bf16.gmra.mrb[240].mxu1 %v13887_v28  ;;  %v13847_v27 = vmax.f32 %v13783_v43, 0.0 }
 0x998   :  { %v13788_v7 = vadd.f32 %v23998_v11, %v13632_v32  ;;  %v13848_v36 = vmax.f32 %v13784_v25, 0.0  ;;  %16544 = vmatpush3.bf16.msra.mxu1 %v19859_v17 }
 0x999   :  { %v13851_v51 = vmax.f32 %v13787_v48, 0.0  ;;  %16545 = vmatprep.subr.bf16.mxu1 %v19860_v59 }
 0x99a   :  { %v13852_v52 = vmax.f32 %v13788_v7, 0.0 }
 0x99b   :  { %v13891_v26 = vpack.c.bf16 %v13851_v51, %v13847_v27 }
 0x99c   :  { %v13892_v4 = vpack.c.bf16 %v13852_v52, %v13848_v36  ;;  %v13636_v24 = vpop.f32.mrb[248].mxu0  ;;  %16546 = vmatpush3.bf16.msra.mxu1 %v19861_v19 }
 0x99d   :  { %v13791_v37 = vadd.f32 %v23993_v57, %v13636_v24  ;;  %v13638_v55 = vpop.f32.mrb[249].mxu0  ;;  %16547 = vmatprep.subr.bf16.mxu1 %v19862_v21 }
 0x99e   :  { %v13792_v31 = vadd.f32 %v23998_v11, %v13638_v55  ;;  %v13640_v30 = vpop.f32.mrb[250].mxu0  ;;  %14492 = vmatprep.mubr.bf16.mxu1 %v13892_v4 }
 0x99f   :  { %v13795_v46 = vadd.f32 %v23993_v57, %v13640_v30  ;;  %v13642_v3 = vpop.f32.mrb[251].mxu0  ;;  %14493 = vmatmul.mubr.bf16.gmra.mrb[244].mxu1 %v13891_v26  ;;  %v13855_v20 = vmax.f32 %v13791_v37, 0.0 }
 0x9a0   :  { %v13796_v63 = vadd.f32 %v23998_v11, %v13642_v3  ;;  %v13856_v33 = vmax.f32 %v13792_v31, 0.0 }
 0x9a1   :  { %v13859_v2 = vmax.f32 %v13795_v46, 0.0 }
 0x9a2   :  { %v13860_v22 = vmax.f32 %v13796_v63, 0.0 }
 0x9a3   :  { %v13895_v38 = vpack.c.bf16 %v13859_v2, %v13855_v20  ;;  %v19867_v2 = vld [vmem:[%s20505_s5 + $0x8] sm:$0xff]  }
 0x9a4   :  { %v13896_v6 = vpack.c.bf16 %v13860_v22, %v13856_v33  ;;  %v13646_v53 = vpop.f32.mrb[252].mxu0 }
 0x9a5   :  { %v13799_v54 = vadd.f32 %v23993_v57, %v13646_v53  ;;  %v13648_v29 = vpop.f32.mrb[253].mxu0 }
 0x9a6   :  { %v13800_v16 = vadd.f32 %v23998_v11, %v13648_v29  ;;  %v13650_v15 = vpop.f32.mrb[254].mxu0  ;;  %14502 = vmatprep.mubr.bf16.mxu1 %v13896_v6  ;;  %v19868_v29 = vld [vmem:[%s20505_s5 + $0x10] sm:$0xff]  }
 0x9a7   :  { %v13803_v62 = vadd.f32 %v23993_v57, %v13650_v15  ;;  %v13652_v40 = vpop.f32.mrb[255].mxu0  ;;  %14503 = vmatmul.mubr.bf16.gmra.mrb[248].mxu1 %v13895_v38  ;;  %v13863_v34 = vmax.f32 %v13799_v54, 0.0  ;;  %v19863_v57 = vld [vmem:[%s24878_s23 + $0x30] sm:$0xff]  }
 0x9a8   :  { %v13804_v8 = vadd.f32 %v23998_v11, %v13652_v40  ;;  %v13864_v39 = vmax.f32 %v13800_v16, 0.0  ;;  %16548 = vmatpush3.bf16.msra.mxu1 %v19863_v57  ;;  %v19864_v11 = vld [vmem:[%s24878_s23 + $0x78] sm:$0xff]  }
 0x9a9   :  { %v13867_v58 = vmax.f32 %v13803_v62, 0.0  ;;  %16549 = vmatprep.subr.bf16.mxu1 %v19864_v11 }
 0x9aa   :  { %v13868_v18 = vmax.f32 %v13804_v8, 0.0 }
 0x9ab   :  { %v13899_v56 = vpack.c.bf16 %v13867_v58, %v13863_v34 }
 0x9ac   :  { %v13900_v5 = vpack.c.bf16 %v13868_v18, %v13864_v39  ;;  %16550 = vmatpush3.bf16.msra.mxu1 %v19865_v50 }
 0x9ad   :  { %16615 = vmatprep.subr.bf16.mxu1 %v19866_v14 }
 0x9ae   :  { %14512 = vmatprep.mubr.bf16.mxu1 %v13900_v5 }
 0x9af   :  { %14513 = vmatmul.mubr.bf16.gmra.mrb[252].mxu1 %v13899_v56 }
 0xa0a   :  { %v14331_v49 = vpop.f32.mrb[224].mxu1 }
 0xa0b   :  { %v14333_v42 = vpop.f32.mrb[225].mxu1  ;;  %v14332_v48 = vadd.f32 %v14331_v49, %v24056_v41 }
 0xa0c   :  { %v14335_v28 = vpop.f32.mrb[226].mxu1  ;;  %v14334_v32 = vadd.f32 %v14333_v42, %v24059_v9 }
 0xa0d   :  { %v14337_v13 = vpop.f32.mrb[227].mxu1  ;;  %v14336_v27 = vadd.f32 %v14335_v28, %v24056_v41 }
 0xa0e   :  { %v14338_v36 = vadd.f32 %v14337_v13, %v24059_v9 }
 0xa12   :  { %v14341_v43 = vpop.f32.mrb[228].mxu1 }
 0xa13   :  { %v14343_v61 = vpop.f32.mrb[229].mxu1  ;;  %v14342_v23 = vadd.f32 %v14341_v43, %v24056_v41 }
 0xa14   :  { %v14345_v25 = vpop.f32.mrb[230].mxu1  ;;  %v14344_v30 = vadd.f32 %v14343_v61, %v24059_v9 }
 0xa15   :  { %v14347_v1 = vpop.f32.mrb[231].mxu1  ;;  %v14346_v3 = vadd.f32 %v14345_v25, %v24056_v41 }
 0xa16   :  { %v14348_v60 = vadd.f32 %v14347_v1, %v24059_v9 }
 0xa4a   :  { %v14444_v7 = vpop.f32.mrb[0].mxu0 }
 0xa4b   :  { %v14445_v51 = vadd.f32 %v14444_v7, %v14332_v48  ;;  %v14446_v12 = vpop.f32.mrb[1].mxu0 }
 0xa4c   :  { %v14447_v52 = vadd.f32 %v14446_v12, %v14334_v32  ;;  %v14448_v0 = vpop.f32.mrb[2].mxu0 }
 0xa4d   :  { %v14449_v26 = vadd.f32 %v14448_v0, %v14336_v27  ;;  %v14450_v45 = vpop.f32.mrb[3].mxu0  ;;  %v14523_v24 = vmax.f32 %v14445_v51, 0.0 }
 0xa4e   :  { %v14451_v4 = vadd.f32 %v14450_v45, %v14338_v36  ;;  %v14524_v37 = vmax.f32 %v14447_v52, 0.0 }
 0xa4f   :  { %v14525_v47 = vmax.f32 %v14449_v26, 0.0 }
 0xa50   :  { %v14526_v55 = vmax.f32 %v14451_v4, 0.0 }
 0xa51   :  { %v14555_v31 = vpack.c.bf16 %v14525_v47, %v14523_v24 }
 0xa52   :  { %v14556_v44 = vpack.c.bf16 %v14526_v55, %v14524_v37  ;;  %v14454_v46 = vpop.f32.mrb[4].mxu0 }
 0xa53   :  { %v14455_v63 = vadd.f32 %v14454_v46, %v14342_v23  ;;  %v14456_v20 = vpop.f32.mrb[5].mxu0 }
 0xa54   :  { %v14457_v33 = vadd.f32 %v14456_v20, %v14344_v30  ;;  %v14458_v22 = vpop.f32.mrb[6].mxu0  ;;  %14738 = vmatprep.mubr.bf16.mxu1 %v14556_v44 }
 0xa55   :  { %v14459_v10 = vadd.f32 %v14458_v22, %v14346_v3  ;;  %v14460_v38 = vpop.f32.mrb[7].mxu0  ;;  %14739 = vmatmul.mubr.bf16.vlgmr.msra.gmra.mrb[0].mxu1 %v14555_v31  ;;  %v14527_v53 = vmax.f32 %v14455_v63, 0.0 }
 0xa56   :  { %v14461_v6 = vadd.f32 %v14460_v38, %v14348_v60  ;;  %16616 = vmatpush3.bf16.msra.mxu1 %v19866_v14  ;;  %v14528_v17 = vmax.f32 %v14457_v33, 0.0 }
 0xa57   :  { %v14529_v54 = vmax.f32 %v14459_v10, 0.0  ;;  %16617 = vmatprep.subr.bf16.mxu1 %v19867_v2 }
 0xa58   :  { %v14530_v16 = vmax.f32 %v14461_v6, 0.0 }
 0xa59   :  { %v14557_v15 = vpack.c.bf16 %v14529_v54, %v14527_v53 }
 0xa5a   :  { %v14558_v59 = vpack.c.bf16 %v14530_v16, %v14528_v17  ;;  %v14464_v62 = vpop.f32.mrb[232].mxu1  ;;  %16618 = vmatpush3.bf16.msra.mxu1 %v19867_v2 }
 0xa5b   :  { %v17015_v40 = vadd.f32 %v14464_v62, %v24056_v41  ;;  %v14466_v8 = vpop.f32.mrb[233].mxu1  ;;  %16619 = vmatprep.subr.bf16.mxu1 %v19868_v29 }
 0xa5c   :  { %v17016_v34 = vadd.f32 %v14466_v8, %v24059_v9  ;;  %v14468_v58 = vpop.f32.mrb[234].mxu1  ;;  %14746 = vmatprep.mubr.bf16.mxu1 %v14558_v59 }
 0xa5d   :  { %v17017_v19 = vadd.f32 %v14468_v58, %v24056_v41  ;;  %v14470_v39 = vpop.f32.mrb[235].mxu1  ;;  %14747 = vmatmul.mubr.bf16.gmra.mrb[4].mxu1 %v14557_v15  ;;  %v14531_v21 = vmax.f32 %v17015_v40, 0.0 }
 0xa5e   :  { %v17018_v18 = vadd.f32 %v14470_v39, %v24059_v9  ;;  %16620 = vmatpush3.bf16.msra.mxu1 %v19868_v29  ;;  %v14532_v5 = vmax.f32 %v17016_v34, 0.0 }
 0xa5f   :  { %v14533_v56 = vmax.f32 %v17017_v19, 0.0 }
 0xa60   :  { %v14534_v57 = vmax.f32 %v17018_v18, 0.0 }
 0xa61   :  { %v14559_v11 = vpack.c.bf16 %v14533_v56, %v14531_v21 }
 0xa62   :  { %v14560_v50 = vpack.c.bf16 %v14534_v57, %v14532_v5  ;;  %v14474_v49 = vpop.f32.mrb[236].mxu1 }
 0xa63   :  { %v17019_v42 = vadd.f32 %v14474_v49, %v24056_v41  ;;  %v14476_v28 = vpop.f32.mrb[237].mxu1 }
 0xa64   :  { %v17020_v13 = vadd.f32 %v14476_v28, %v24059_v9  ;;  %v14478_v14 = vpop.f32.mrb[238].mxu1  ;;  %14754 = vmatprep.mubr.bf16.mxu1 %v14560_v50 }
 0xa65   :  { %v17021_v43 = vadd.f32 %v14478_v14, %v24056_v41  ;;  %v14480_v61 = vpop.f32.mrb[239].mxu1  ;;  %14755 = vmatmul.mubr.bf16.gmra.mrb[8].mxu1 %v14559_v11  ;;  %v14535_v1 = vmax.f32 %v17019_v42, 0.0 }
 0xa66   :  { %v17022_v25 = vadd.f32 %v14480_v61, %v24059_v9  ;;  %v14536_v48 = vmax.f32 %v17020_v13, 0.0 }
 0xa67   :  { %v14537_v35 = vmax.f32 %v17021_v43, 0.0 }
 0xa68   :  { %v14538_v32 = vmax.f32 %v17022_v25, 0.0 }
 0xa69   :  { %v14561_v7 = vpack.c.bf16 %v14537_v35, %v14535_v1  ;;  %v19869_v1 = vld [vmem:[%s20505_s5 + $0x18] sm:$0xff]   ;;  %v19871_v35 = vld [vmem:[%s20505_s5 + $0x28] sm:$0xff]  }
 0xa6a   :  { %v14562_v27 = vpack.c.bf16 %v14538_v32, %v14536_v48  ;;  %v14484_v51 = vpop.f32.mrb[240].mxu1  ;;  %16621 = vmatprep.subr.bf16.mxu1 %v19869_v1  ;;  %v19873_v48 = vld [vmem:[%s20505_s5 + $0x38] sm:$0xff]  }
 0xa6b   :  { %v17023_v12 = vadd.f32 %v14484_v51, %v24056_v41  ;;  %v14486_v36 = vpop.f32.mrb[241].mxu1  ;;  %16622 = vmatpush3.bf16.msra.mxu1 %v19869_v1 }
 0xa6c   :  { %v17024_v52 = vadd.f32 %v14486_v36, %v24059_v9  ;;  %v14488_v0 = vpop.f32.mrb[242].mxu1  ;;  %14762 = vmatprep.mubr.bf16.mxu1 %v14562_v27 }
 0xa6d   :  { %v17025_v26 = vadd.f32 %v14488_v0, %v24056_v41  ;;  %v14490_v45 = vpop.f32.mrb[243].mxu1  ;;  %14763 = vmatmul.mubr.bf16.gmra.mrb[12].mxu1 %v14561_v7  ;;  %v14539_v24 = vmax.f32 %v17023_v12, 0.0  ;;  %v24101_v7 = vld [vmem:[%s20500_s19] ss:$0 sm:$0xff] }
 0xa6e   :  { %v17026_v4 = vadd.f32 %v14490_v45, %v24059_v9  ;;  %v14540_v37 = vmax.f32 %v17024_v52, 0.0 }
 0xa6f   :  { %v14541_v47 = vmax.f32 %v17025_v26, 0.0 }
 0xa70   :  { %v14542_v55 = vmax.f32 %v17026_v4, 0.0 }
 0xa71   :  { %v14563_v23 = vpack.c.bf16 %v14541_v47, %v14539_v24 }
 0xa72   :  { %v14564_v31 = vpack.c.bf16 %v14542_v55, %v14540_v37  ;;  %v14494_v30 = vpop.f32.mrb[244].mxu1 }
 0xa73   :  { %v17027_v44 = vadd.f32 %v14494_v30, %v24056_v41  ;;  %v14496_v46 = vpop.f32.mrb[245].mxu1 }
 0xa74   :  { %v17028_v3 = vadd.f32 %v14496_v46, %v24059_v9  ;;  %v14498_v63 = vpop.f32.mrb[246].mxu1  ;;  %14770 = vmatprep.mubr.bf16.mxu1 %v14564_v31 }
 0xa75   :  { %v17029_v20 = vadd.f32 %v14498_v63, %v24056_v41  ;;  %v14500_v2 = vpop.f32.mrb[247].mxu1  ;;  %14771 = vmatmul.mubr.bf16.gmra.mrb[16].mxu1 %v14563_v23  ;;  %v14543_v33 = vmax.f32 %v17027_v44, 0.0 }
 0xa76   :  { %v17030_v60 = vadd.f32 %v14500_v2, %v24059_v9  ;;  %v14544_v10 = vmax.f32 %v17028_v3, 0.0 }
 0xa77   :  { %v14545_v22 = vmax.f32 %v17029_v20, 0.0 }
 0xa78   :  { %v14546_v38 = vmax.f32 %v17030_v60, 0.0 }
 0xa79   :  { %v14565_v6 = vpack.c.bf16 %v14545_v22, %v14543_v33 }
 0xa7a   :  { %v14566_v53 = vpack.c.bf16 %v14546_v38, %v14544_v10  ;;  %v14504_v54 = vpop.f32.mrb[248].mxu1 }
 0xa7b   :  { %v17031_v29 = vadd.f32 %v14504_v54, %v24056_v41  ;;  %v14506_v17 = vpop.f32.mrb[249].mxu1 }
 0xa7c   :  { %v17032_v16 = vadd.f32 %v14506_v17, %v24059_v9  ;;  %v14508_v15 = vpop.f32.mrb[250].mxu1  ;;  %14778 = vmatprep.mubr.bf16.mxu1 %v14566_v53 }
 0xa7d   :  { %v17033_v59 = vadd.f32 %v14508_v15, %v24056_v41  ;;  %v14510_v62 = vpop.f32.mrb[251].mxu1  ;;  %14779 = vmatmul.mubr.bf16.gmra.mrb[20].mxu1 %v14565_v6  ;;  %v14547_v8 = vmax.f32 %v17031_v29, 0.0 }
 0xa7e   :  { %v17034_v40 = vadd.f32 %v14510_v62, %v24059_v9  ;;  %v14548_v58 = vmax.f32 %v17032_v16, 0.0 }
 0xa7f   :  { %v14549_v34 = vmax.f32 %v17033_v59, 0.0 }
 0xa80   :  { %v14550_v19 = vmax.f32 %v17034_v40, 0.0 }
 0xa81   :  { %v14567_v39 = vpack.c.bf16 %v14549_v34, %v14547_v8 }
 0xa82   :  { %v14568_v18 = vpack.c.bf16 %v14550_v19, %v14548_v58  ;;  %v14514_v21 = vpop.f32.mrb[252].mxu1 }
 0xa83   :  { %v17035_v56 = vadd.f32 %v14514_v21, %v24056_v41  ;;  %v14516_v5 = vpop.f32.mrb[253].mxu1 }
 0xa84   :  { %v17036_v57 = vadd.f32 %v14516_v5, %v24059_v9  ;;  %v14518_v11 = vpop.f32.mrb[254].mxu1  ;;  %14786 = vmatprep.mubr.bf16.mxu1 %v14568_v18 }
 0xa85   :  { %v17037_v50 = vadd.f32 %v14518_v11, %v24056_v41  ;;  %v14520_v49 = vpop.f32.mrb[255].mxu1  ;;  %14787 = vmatmul.mubr.bf16.gmra.mrb[24].mxu1 %v14567_v39  ;;  %v14551_v28 = vmax.f32 %v17035_v56, 0.0  ;;  %v19870_v41 = vld [vmem:[%s20505_s5 + $0x20] sm:$0xff]  }
 0xa86   :  { %v17038_v42 = vadd.f32 %v14520_v49, %v24059_v9  ;;  %v14552_v14 = vmax.f32 %v17036_v57, 0.0  ;;  %16623 = vmatprep.subr.bf16.mxu1 %v19870_v41  ;;  %v19872_v9 = vld [vmem:[%s20505_s5 + $0x30] sm:$0xff]  }
 0xa87   :  { %v14553_v13 = vmax.f32 %v17037_v50, 0.0  ;;  %16624 = vmatpush3.bf16.msra.mxu1 %v19870_v41 }
 0xa88   :  { %v14554_v43 = vmax.f32 %v17038_v42, 0.0  ;;  %16625 = vmatprep.subr.bf16.mxu1 %v19871_v35 }
 0xa89   :  { %v14569_v61 = vpack.c.bf16 %v14553_v13, %v14551_v28 }
 0xa8a   :  { %v14570_v25 = vpack.c.bf16 %v14554_v43, %v14552_v14 }
 0xa8b   :  { %16626 = vmatpush3.bf16.msra.mxu1 %v19871_v35 }
 0xa8c   :  { %14794 = vmatprep.mubr.bf16.mxu1 %v14570_v25  ;;  %16627 = vmatprep.subr.bf16.mxu1 %v19872_v9 }
 0xa8d   :  { %14795 = vmatmul.mubr.bf16.gmra.mrb[28].mxu1 %v14569_v61 }
 0xa8f   :  { %16628 = vmatpush3.bf16.msra.mxu1 %v19872_v9 }
 0xa90   :  { %16629 = vmatprep.subr.bf16.mxu1 %v19873_v48 }
 0xa93   :  { %16630 = vmatpush3.bf16.msra.mxu1 %v19873_v48 }
 0xb28   :  { %v16551_v32 = vpop.f32.mrb[0].mxu1 }
 0xb29   :  { %v16552_v27 = vpop.f32.mrb[1].mxu1 }
 0xb2a   :  { %v16553_v51 = vadd.f32 %v16552_v27, %v16551_v32  ;;  %v16554_v12 = vpop.f32.mrb[2].mxu1 }
 0xb2b   :  { %v16555_v36 = vpop.f32.mrb[3].mxu1 }
 0xb2c   :  { %v14741_v52 = vadd.f32 %v16553_v51, %v24101_v7  ;;  %v16556_v0 = vadd.f32 %v16555_v36, %v16554_v12 }
 0xb2e   :  { %v14744_v26 = vadd.f32 %v16556_v0, %v24101_v7  ;;  %v14803_v45 = vmax.f32 %v14741_v52, 0.0 }
 0xb30   :  { %v14804_v4 = vmax.f32 %v14744_v26, 0.0  ;;  %v16557_v24 = vpop.f32.mrb[4].mxu1 }
 0xb31   :  { %v16558_v47 = vpop.f32.mrb[5].mxu1 }
 0xb32   :  { %v16559_v37 = vadd.f32 %v16558_v47, %v16557_v24  ;;  %v16560_v55 = vpop.f32.mrb[6].mxu1  ;;  %v14819_v23 = vpack.c.bf16 %v14804_v4, %v14803_v45 }
 0xb33   :  { %v16561_v31 = vpop.f32.mrb[7].mxu1 }
 0xb34   :  { %v14749_v30 = vadd.f32 %v16559_v37, %v24101_v7  ;;  %v16562_v44 = vadd.f32 %v16561_v31, %v16560_v55  ;;  %16631 = vmatprep.mubr.bf16.mxu1 %v14819_v23 }
 0xb36   :  { %v14752_v46 = vadd.f32 %v16562_v44, %v24101_v7  ;;  %v14805_v3 = vmax.f32 %v14749_v30, 0.0 }
 0xb38   :  { %v14806_v63 = vmax.f32 %v14752_v46, 0.0  ;;  %v16563_v20 = vpop.f32.mrb[8].mxu1 }
 0xb39   :  { %v16564_v2 = vpop.f32.mrb[9].mxu1 }
 0xb3a   :  { %v14820_v60 = vpack.c.bf16 %v14806_v63, %v14805_v3  ;;  %v16565_v33 = vadd.f32 %v16564_v2, %v16563_v20  ;;  %v16566_v22 = vpop.f32.mrb[10].mxu1 }
 0xb3b   :  { %v16567_v10 = vpop.f32.mrb[11].mxu1 }
 0xb3c   :  { %v14757_v38 = vadd.f32 %v16565_v33, %v24101_v7  ;;  %v16568_v6 = vadd.f32 %v16567_v10, %v16566_v22  ;;  %16632 = vmatmul.mubr.bf16.vlgmr.msra.gmra.mrb[32].mxu1 %v14820_v60  ;;  %v16526_v22 = vld [vmem:[%s20510_s17] ss:$0 sm:$0xff] }
 0xb3e   :  { %v14760_v53 = vadd.f32 %v16568_v6, %v24101_v7  ;;  %v14807_v54 = vmax.f32 %v14757_v38, 0.0 }
 0xb40   :  { %v14808_v29 = vmax.f32 %v14760_v53, 0.0  ;;  %v16569_v17 = vpop.f32.mrb[12].mxu1 }
 0xb41   :  { %v16570_v16 = vpop.f32.mrb[13].mxu1 }
 0xb42   :  { %v16571_v15 = vadd.f32 %v16570_v16, %v16569_v17  ;;  %v16572_v59 = vpop.f32.mrb[14].mxu1  ;;  %v14821_v62 = vpack.c.bf16 %v14808_v29, %v14807_v54 }
 0xb43   :  { %v16573_v40 = vpop.f32.mrb[15].mxu1 }
 0xb44   :  { %v14765_v8 = vadd.f32 %v16571_v15, %v24101_v7  ;;  %v16574_v34 = vadd.f32 %v16573_v40, %v16572_v59  ;;  %16635 = vmatprep.mubr.bf16.mxu1 %v14821_v62 }
 0xb46   :  { %v14768_v58 = vadd.f32 %v16574_v34, %v24101_v7  ;;  %v14809_v19 = vmax.f32 %v14765_v8, 0.0 }
 0xb48   :  { %v14810_v39 = vmax.f32 %v14768_v58, 0.0  ;;  %v16575_v18 = vpop.f32.mrb[16].mxu1 }
 0xb49   :  { %v16576_v21 = vpop.f32.mrb[17].mxu1 }
 0xb4a   :  { %v14822_v56 = vpack.c.bf16 %v14810_v39, %v14809_v19  ;;  %v16577_v5 = vadd.f32 %v16576_v21, %v16575_v18  ;;  %v16578_v57 = vpop.f32.mrb[18].mxu1 }
 0xb4b   :  { %v16579_v11 = vpop.f32.mrb[19].mxu1 }
 0xb4c   :  { %v14773_v50 = vadd.f32 %v16577_v5, %v24101_v7  ;;  %v16580_v49 = vadd.f32 %v16579_v11, %v16578_v57  ;;  %16636 = vmatmul.mubr.bf16.gmra.mrb[36].mxu1 %v14822_v56 }
 0xb4e   :  { %v14776_v42 = vadd.f32 %v16580_v49, %v24101_v7  ;;  %v14811_v28 = vmax.f32 %v14773_v50, 0.0 }
 0xb50   :  { %v14812_v13 = vmax.f32 %v14776_v42, 0.0  ;;  %v16581_v14 = vpop.f32.mrb[20].mxu1 }
 0xb51   :  { %v16582_v43 = vpop.f32.mrb[21].mxu1 }
 0xb52   :  { %v16583_v61 = vadd.f32 %v16582_v43, %v16581_v14  ;;  %v16584_v25 = vpop.f32.mrb[22].mxu1  ;;  %v14823_v1 = vpack.c.bf16 %v14812_v13, %v14811_v28 }
 0xb53   :  { %v16585_v41 = vpop.f32.mrb[23].mxu1 }
 0xb54   :  { %v14781_v35 = vadd.f32 %v16583_v61, %v24101_v7  ;;  %v16586_v9 = vadd.f32 %v16585_v41, %v16584_v25  ;;  %16639 = vmatprep.mubr.bf16.mxu1 %v14823_v1 }
 0xb56   :  { %v14784_v48 = vadd.f32 %v16586_v9, %v24101_v7  ;;  %v14813_v32 = vmax.f32 %v14781_v35, 0.0 }
 0xb58   :  { %v14814_v27 = vmax.f32 %v14784_v48, 0.0  ;;  %v16587_v51 = vpop.f32.mrb[24].mxu1 }
 0xb59   :  { %v16588_v12 = vpop.f32.mrb[25].mxu1 }
 0xb5a   :  { %v14824_v36 = vpack.c.bf16 %v14814_v27, %v14813_v32  ;;  %v16589_v52 = vadd.f32 %v16588_v12, %v16587_v51  ;;  %v16590_v0 = vpop.f32.mrb[26].mxu1 }
 0xb5b   :  { %v16591_v26 = vpop.f32.mrb[27].mxu1 }
 0xb5c   :  { %v14789_v45 = vadd.f32 %v16589_v52, %v24101_v7  ;;  %v16592_v4 = vadd.f32 %v16591_v26, %v16590_v0  ;;  %16640 = vmatmul.mubr.bf16.gmra.mrb[40].mxu1 %v14824_v36 }
 0xb5e   :  { %v14792_v24 = vadd.f32 %v16592_v4, %v24101_v7  ;;  %v14815_v47 = vmax.f32 %v14789_v45, 0.0 }
 0xb60   :  { %v14816_v37 = vmax.f32 %v14792_v24, 0.0  ;;  %v16593_v55 = vpop.f32.mrb[28].mxu1 }
 0xb61   :  { %v16594_v23 = vpop.f32.mrb[29].mxu1 }
 0xb62   :  { %v16595_v31 = vadd.f32 %v16594_v23, %v16593_v55  ;;  %v16596_v30 = vpop.f32.mrb[30].mxu1  ;;  %v14825_v44 = vpack.c.bf16 %v14816_v37, %v14815_v47 }
 0xb63   :  { %v16597_v46 = vpop.f32.mrb[31].mxu1 }
 0xb64   :  { %v14797_v3 = vadd.f32 %v16595_v31, %v24101_v7  ;;  %v16598_v63 = vadd.f32 %v16597_v46, %v16596_v30  ;;  %16643 = vmatprep.mubr.bf16.mxu1 %v14825_v44 }
 0xb66   :  { %v14800_v20 = vadd.f32 %v16598_v63, %v24101_v7  ;;  %v14817_v2 = vmax.f32 %v14797_v3, 0.0 }
 0xb68   :  { %v14818_v60 = vmax.f32 %v14800_v20, 0.0 }
 0xb6a   :  { %v14826_v33 = vpack.c.bf16 %v14818_v60, %v14817_v2 }
 0xb6c   :  { %16644 = vmatmul.mubr.bf16.gmra.mrb[44].mxu1 %v14826_v33 }
 0xc0f   :  { %v16633_v10 = vpop.f32.mrb[32].mxu1 }
 0xc10   :  { %v14941_v38 = vadd.f32 %v16633_v10, %v16526_v22  ;;  %v14932_v6 = vpop.f32.mrb[33].mxu1 }
 0xc11   :  { %v14933_v53 = vadd.f32 %v16526_v22, %v14932_v6  ;;  %v16634_v54 = vpop.f32.mrb[34].mxu1 }
 0xc12   :  { %14999 = vmax.xlane.f32.xlu1 %v14941_v38  ;;  %v14935_v29 = vpop.f32.mrb[35].mxu1  ;;  %v14944_v17 = vadd.f32 %v16634_v54, %v16526_v22 }
 0xc13   :  { %14995 = vmax.xlane.f32.xlu0 %v14933_v53  ;;  %v14936_v16 = vadd.f32 %v16526_v22, %v14935_v29 }
 0xc16   :  { %15001 = vmax.xlane.f32.xlu1 %v14944_v17 }
 0xc17   :  { %14997 = vmax.xlane.f32.xlu0 %v14936_v16 }
 0xc1f   :  { %v16637_v15 = vpop.f32.mrb[36].mxu1 }
 0xc20   :  { %v14957_v59 = vadd.f32 %v16637_v15, %v16526_v22  ;;  %v14948_v7 = vpop.f32.mrb[37].mxu1 }
 0xc21   :  { %v16638_v62 = vpop.f32.mrb[38].mxu1  ;;  %v24120_v34 = vadd.f32 %v16526_v22, %v14948_v7 }
 0xc22   :  { %v14960_v40 = vadd.f32 %v16638_v62, %v16526_v22  ;;  %v14951_v8 = vpop.f32.mrb[39].mxu1  ;;  %15007 = vmax.xlane.f32.xlu0 %v14957_v59 }
 0xc23   :  { %v24122_v58 = vadd.f32 %v16526_v22, %v14951_v8 }
 0xc24   :  { %15009 = vmax.xlane.f32.xlu1 %v14960_v40 }
 0xc26   :  { %15003 = vmax.xlane.f32.xlu0 %v24120_v34 }
 0xc28   :  { %15005 = vmax.xlane.f32.xlu1 %v24122_v58 }
 0xc2f   :  { %v16641_v19 = vpop.f32.mrb[40].mxu1 }
 0xc30   :  { %v24126_v39 = vadd.f32 %v16641_v19, %v16526_v22  ;;  %v14964_v18 = vpop.f32.mrb[41].mxu1 }
 0xc31   :  { %v16642_v21 = vpop.f32.mrb[42].mxu1  ;;  %v24131_v57 = vadd.f32 %v16526_v22, %v14964_v18 }
 0xc32   :  { %v24128_v56 = vadd.f32 %v16642_v21, %v16526_v22  ;;  %v14967_v5 = vpop.f32.mrb[43].mxu1  ;;  %15015 = vmax.xlane.f32.xlu0 %v24126_v39 }
 0xc33   :  { %v24134_v11 = vadd.f32 %v16526_v22, %v14967_v5 }
 0xc34   :  { %15017 = vmax.xlane.f32.xlu1 %v24128_v56 }
 0xc36   :  { %15011 = vmax.xlane.f32.xlu0 %v24131_v57 }
 0xc38   :  { %15013 = vmax.xlane.f32.xlu1 %v24134_v11 }
 0xc3f   :  { %v16645_v50 = vpop.f32.mrb[44].mxu1 }
 0xc40   :  { %v14980_v49 = vpop.f32.mrb[45].mxu1  ;;  %v24143_v43 = vadd.f32 %v16645_v50, %v16526_v22 }
 0xc41   :  { %v24138_v42 = vadd.f32 %v16526_v22, %v14980_v49  ;;  %v16646_v28 = vpop.f32.mrb[46].mxu1 }
 0xc42   :  { %v14983_v13 = vpop.f32.mrb[47].mxu1  ;;  %v24146_v61 = vadd.f32 %v16646_v28, %v16526_v22 }
 0xc43   :  { %v24140_v14 = vadd.f32 %v16526_v22, %v14983_v13  ;;  %15019 = vmax.xlane.f32.xlu0 %v24138_v42 }
 0xc45   :  { %15021 = vmax.xlane.f32.xlu1 %v24140_v14 }
 0xc47   :  { %15023 = vmax.xlane.f32.xlu0 %v24143_v43 }
 0xc49   :  { %15025 = vmax.xlane.f32.xlu1 %v24146_v61 }
 0xc9f   :  { %v15000_v25 = vpop.xlane.xlu1 %14999 }
 0xca0   :  { %v15029_v1 = vsub.f32 %v14941_v38, %v15000_v25  ;;  %v14996_v41 = vpop.xlane.xlu0 %14995 }
 0xca1   :  { %v15027_v35 = vsub.f32 %v14933_v53, %v14996_v41 }
 0xca2   :  { %v15047_v9 = vmul.f32 1.442695, %v15029_v1 }
 0xca3   :  { %v15043_v48 = vmul.f32 1.442695, %v15027_v35  ;;  %v15002_v32 = vpop.xlane.xlu1 %15001 }
 0xca4   :  { %19874 = vpow2.f32 %v15047_v9  ;;  %v15030_v27 = vsub.f32 %v14944_v17, %v15002_v32  ;;  %v14998_v51 = vpop.xlane.xlu0 %14997 }
 0xca5   :  { %v15028_v12 = vsub.f32 %v14936_v16, %v14998_v51  ;;  %19876 = vpow2.f32 %v15043_v48 }
 0xca6   :  { %v15049_v36 = vmul.f32 1.442695, %v15030_v27 }
 0xca7   :  { %v15045_v52 = vmul.f32 1.442695, %v15028_v12 }
 0xca8   :  { %19878 = vpow2.f32 %v15049_v36 }
 0xca9   :  { %19880 = vpow2.f32 %v15045_v52 }
 0xcae   :  { %v24150_v0 = vpop.eup %19874 }
 0xcaf   :  { %v15008_v26 = vpop.xlane.xlu0 %15007  ;;  %15079 = vadd.xlane.f32.xlu0 %v24150_v0  ;;  %v24153_v4 = vpop.eup %19876 }
 0xcb0   :  { %v15033_v45 = vsub.f32 %v14957_v59, %v15008_v26 }
 0xcb1   :  { %v15010_v24 = vpop.xlane.xlu1 %15009 }
 0xcb2   :  { %v24155_v47 = vpop.eup %19878  ;;  %v15055_v37 = vmul.f32 1.442695, %v15033_v45  ;;  %v15034_v55 = vsub.f32 %v14960_v40, %v15010_v24 }
 0xcb3   :  { %v15004_v23 = vpop.xlane.xlu0 %15003  ;;  %15081 = vadd.xlane.f32.xlu1 %v24155_v47  ;;  %15075 = vadd.xlane.f32.xlu0 %v24153_v4  ;;  %v24160_v46 = vpop.eup %19880 }
 0xcb4   :  { %19882 = vpow2.f32 %v15055_v37  ;;  %v15057_v31 = vmul.f32 1.442695, %v15034_v55  ;;  %v15031_v30 = vsub.f32 %v24120_v34, %v15004_v23 }
 0xcb5   :  { %v15006_v44 = vpop.xlane.xlu1 %15005 }
 0xcb6   :  { %19884 = vpow2.f32 %v15057_v31  ;;  %v15051_v3 = vmul.f32 1.442695, %v15031_v30  ;;  %v15032_v63 = vsub.f32 %v24122_v58, %v15006_v44 }
 0xcb7   :  { %15077 = vadd.xlane.f32.xlu1 %v24160_v46 }
 0xcb8   :  { %19886 = vpow2.f32 %v15051_v3  ;;  %v15053_v20 = vmul.f32 1.442695, %v15032_v63 }
 0xcba   :  { %19888 = vpow2.f32 %v15053_v20 }
 0xcbe   :  { %v24164_v2 = vpop.eup %19882 }
 0xcbf   :  { %v15016_v60 = vpop.xlane.xlu0 %15015  ;;  %15087 = vadd.xlane.f32.xlu0 %v24164_v2 }
 0xcc0   :  { %v24167_v33 = vpop.eup %19884  ;;  %v15037_v22 = vsub.f32 %v24126_v39, %v15016_v60 }
 0xcc1   :  { %v15018_v10 = vpop.xlane.xlu1 %15017  ;;  %15089 = vadd.xlane.f32.xlu1 %v24167_v33 }
 0xcc2   :  { %v24171_v38 = vpop.eup %19886  ;;  %v15063_v6 = vmul.f32 1.442695, %v15037_v22  ;;  %v15038_v53 = vsub.f32 %v24128_v56, %v15018_v10 }
 0xcc3   :  { %v15012_v54 = vpop.xlane.xlu0 %15011  ;;  %15083 = vadd.xlane.f32.xlu0 %v24171_v38 }
 0xcc4   :  { %v24175_v29 = vpop.eup %19888  ;;  %19890 = vpow2.f32 %v15063_v6  ;;  %v15065_v17 = vmul.f32 1.442695, %v15038_v53  ;;  %v15035_v16 = vsub.f32 %v24131_v57, %v15012_v54 }
 0xcc5   :  { %v15014_v15 = vpop.xlane.xlu1 %15013  ;;  %15085 = vadd.xlane.f32.xlu1 %v24175_v29 }
 0xcc6   :  { %19892 = vpow2.f32 %v15065_v17  ;;  %v15059_v59 = vmul.f32 1.442695, %v15035_v16  ;;  %v15036_v7 = vsub.f32 %v24134_v11, %v15014_v15 }
 0xcc8   :  { %19894 = vpow2.f32 %v15059_v59  ;;  %v15061_v62 = vmul.f32 1.442695, %v15036_v7 }
 0xcca   :  { %19896 = vpow2.f32 %v15061_v62 }
 0xcce   :  { %v24180_v40 = vpop.eup %19890 }
 0xccf   :  { %15095 = vadd.xlane.f32.xlu0 %v24180_v40 }
 0xcd0   :  { %v24183_v8 = vpop.eup %19892  ;;  %v15020_v34 = vpop.xlane.xlu0 %15019 }
 0xcd1   :  { %v15039_v58 = vsub.f32 %v24138_v42, %v15020_v34  ;;  %15097 = vadd.xlane.f32.xlu1 %v24183_v8 }
 0xcd2   :  { %v24187_v19 = vpop.eup %19894  ;;  %v15022_v39 = vpop.xlane.xlu1 %15021 }
 0xcd3   :  { %v15067_v18 = vmul.f32 1.442695, %v15039_v58  ;;  %v15040_v21 = vsub.f32 %v24140_v14, %v15022_v39  ;;  %15091 = vadd.xlane.f32.xlu0 %v24187_v19 }
 0xcd4   :  { %v24191_v56 = vpop.eup %19896  ;;  %v15024_v5 = vpop.xlane.xlu0 %15023 }
 0xcd5   :  { %19898 = vpow2.f32 %v15067_v18  ;;  %v15069_v57 = vmul.f32 1.442695, %v15040_v21  ;;  %v15041_v11 = vsub.f32 %v24143_v43, %v15024_v5  ;;  %15093 = vadd.xlane.f32.xlu1 %v24191_v56 }
 0xcd6   :  { %v15026_v50 = vpop.xlane.xlu1 %15025 }
 0xcd7   :  { %19900 = vpow2.f32 %v15069_v57  ;;  %v15071_v49 = vmul.f32 1.442695, %v15041_v11  ;;  %v15042_v42 = vsub.f32 %v24146_v61, %v15026_v50 }
 0xcd9   :  { %19902 = vpow2.f32 %v15071_v49  ;;  %v15073_v28 = vmul.f32 1.442695, %v15042_v42 }
 0xcdb   :  { %19904 = vpow2.f32 %v15073_v28 }
 0xcdf   :  { %v24196_v13 = vpop.eup %19898 }
 0xce0   :  { %15099 = vadd.xlane.f32.xlu0 %v24196_v13 }
 0xce1   :  { %v24199_v14 = vpop.eup %19900 }
 0xce2   :  { %15101 = vadd.xlane.f32.xlu1 %v24199_v14 }
 0xce3   :  { %v24202_v43 = vpop.eup %19902 }
 0xce4   :  { %15103 = vadd.xlane.f32.xlu0 %v24202_v43 }
 0xce5   :  { %v24205_v25 = vpop.eup %19904 }
 0xce6   :  { %15105 = vadd.xlane.f32.xlu1 %v24205_v25 }
 0xd3c   :  { %v15080_v61 = vpop.xlane.xlu0 %15079 }
 0xd3d   :  { %19906 = vrcp.f32 %v15080_v61 }
 0xd40   :  { %v15082_v1 = vpop.xlane.xlu1 %15081  ;;  %v15076_v41 = vpop.xlane.xlu0 %15075 }
 0xd41   :  { %19908 = vrcp.f32 %v15082_v1 }
 0xd42   :  { %19910 = vrcp.f32 %v15076_v41 }
 0xd44   :  { %v15078_v35 = vpop.xlane.xlu1 %15077 }
 0xd45   :  { %19912 = vrcp.f32 %v15078_v35 }
 0xd47   :  { %v19907_v9 = vpop.eup %19906 }
 0xd48   :  { %v15125_v48 = vmul.f32 %v19907_v9, %v24150_v0 }
 0xd4a   :  { %15141 = vst [vmem:[%s20515_s9 + $0x10] sm:$0xff] %v15125_v48 }
 0xd4b   :  { %v19909_v32 = vpop.eup %19908 }
 0xd4c   :  { %v19911_v27 = vpop.eup %19910  ;;  %v15126_v51 = vmul.f32 %v19909_v32, %v24155_v47  ;;  %v15088_v12 = vpop.xlane.xlu0 %15087 }
 0xd4d   :  { %v15123_v36 = vmul.f32 %v19911_v27, %v24153_v4  ;;  %19914 = vrcp.f32 %v15088_v12 }
 0xd4e   :  { %15142 = vst [vmem:[%s20515_s9 + $0x18] sm:$0xff] %v15126_v51  ;;  %v15090_v52 = vpop.xlane.xlu1 %15089 }
 0xd4f   :  { %v19913_v26 = vpop.eup %19912  ;;  %15139 = vst [vmem:[%s20515_s9] sm:$0xff] %v15123_v36  ;;  %19916 = vrcp.f32 %v15090_v52 }
 0xd50   :  { %v15124_v45 = vmul.f32 %v19913_v26, %v24160_v46  ;;  %v15084_v0 = vpop.xlane.xlu0 %15083 }
 0xd51   :  { %19918 = vrcp.f32 %v15084_v0 }
 0xd52   :  { %15140 = vst [vmem:[%s20515_s9 + $0x8] sm:$0xff] %v15124_v45  ;;  %v15086_v24 = vpop.xlane.xlu1 %15085 }
 0xd53   :  { %19920 = vrcp.f32 %v15086_v24 }
 0xd57   :  { %v19915_v47 = vpop.eup %19914 }
 0xd58   :  { %v15129_v4 = vmul.f32 %v19915_v47, %v24164_v2 }
 0xd59   :  { %v19917_v37 = vpop.eup %19916 }
 0xd5a   :  { %15145 = vst [vmem:[%s20515_s9 + $0x30] sm:$0xff] %v15129_v4  ;;  %v15130_v55 = vmul.f32 %v19917_v37, %v24167_v33 }
 0xd5b   :  { %v19919_v23 = vpop.eup %19918 }
 0xd5c   :  { %15146 = vst [vmem:[%s20515_s9 + $0x38] sm:$0xff] %v15130_v55  ;;  %v15127_v31 = vmul.f32 %v19919_v23, %v24171_v38  ;;  %v15096_v30 = vpop.xlane.xlu0 %15095 }
 0xd5d   :  { %v19921_v44 = vpop.eup %19920  ;;  %19922 = vrcp.f32 %v15096_v30 }
 0xd5e   :  { %15143 = vst [vmem:[%s20515_s9 + $0x20] sm:$0xff] %v15127_v31  ;;  %v15128_v46 = vmul.f32 %v19921_v44, %v24175_v29  ;;  %v15098_v3 = vpop.xlane.xlu1 %15097 }
 0xd5f   :  { %19924 = vrcp.f32 %v15098_v3 }
 0xd60   :  { %15144 = vst [vmem:[%s20515_s9 + $0x28] sm:$0xff] %v15128_v46  ;;  %v15092_v63 = vpop.xlane.xlu0 %15091 }
 0xd61   :  { %19926 = vrcp.f32 %v15092_v63 }
 0xd62   :  { %v15094_v20 = vpop.xlane.xlu1 %15093 }
 0xd63   :  { %19928 = vrcp.f32 %v15094_v20 }
 0xd67   :  { %v19923_v2 = vpop.eup %19922 }
 0xd68   :  { %v15133_v60 = vmul.f32 %v19923_v2, %v24180_v40 }
 0xd69   :  { %v19925_v33 = vpop.eup %19924 }
 0xd6a   :  { %15149 = vst [vmem:[%s20515_s9 + $0x50] sm:$0xff] %v15133_v60  ;;  %v15134_v22 = vmul.f32 %v19925_v33, %v24183_v8 }
 0xd6b   :  { %v19927_v10 = vpop.eup %19926 }
 0xd6c   :  { %15150 = vst [vmem:[%s20515_s9 + $0x58] sm:$0xff] %v15134_v22  ;;  %v15131_v38 = vmul.f32 %v19927_v10, %v24187_v19 }
 0xd6d   :  { %v19929_v6 = vpop.eup %19928  ;;  %v15100_v53 = vpop.xlane.xlu0 %15099 }
 0xd6e   :  { %15147 = vst [vmem:[%s20515_s9 + $0x40] sm:$0xff] %v15131_v38  ;;  %v15132_v54 = vmul.f32 %v19929_v6, %v24191_v56  ;;  %19930 = vrcp.f32 %v15100_v53 }
 0xd6f   :  { %v15102_v29 = vpop.xlane.xlu1 %15101 }
 0xd70   :  { %15148 = vst [vmem:[%s20515_s9 + $0x48] sm:$0xff] %v15132_v54  ;;  %19932 = vrcp.f32 %v15102_v29 }
 0xd71   :  { %v15104_v17 = vpop.xlane.xlu0 %15103 }
 0xd72   :  { %19934 = vrcp.f32 %v15104_v17 }
 0xd73   :  { %v15106_v16 = vpop.xlane.xlu1 %15105 }
 0xd74   :  { %19936 = vrcp.f32 %v15106_v16 }
 0xd78   :  { %v19931_v15 = vpop.eup %19930 }
 0xd79   :  { %v15135_v59 = vmul.f32 %v19931_v15, %v24196_v13 }
 0xd7a   :  { %v19933_v7 = vpop.eup %19932 }
 0xd7b   :  { %15151 = vst [vmem:[%s20515_s9 + $0x60] sm:$0xff] %v15135_v59  ;;  %v15136_v62 = vmul.f32 %v19933_v7, %v24199_v14 }
 0xd7c   :  { %v19935_v40 = vpop.eup %19934 }
 0xd7d   :  { %15152 = vst [vmem:[%s20515_s9 + $0x68] sm:$0xff] %v15136_v62  ;;  %v15137_v8 = vmul.f32 %v19935_v40, %v24202_v43 }
 0xd7e   :  { %v19937_v34 = vpop.eup %19936 }
 0xd7f   :  { %15153 = vst [vmem:[%s20515_s9 + $0x70] sm:$0xff] %v15137_v8  ;;  %v15138_v58 = vmul.f32 %v19937_v34, %v24205_v25 }
 0xd81   :  { %15154 = vst [vmem:[%s20515_s9 + $0x78] sm:$0xff] %v15138_v58 }
 0xd82   :  { %15159 = vsyncpa [#allocation3], 1 }
 0xd83   :  { %15160 = vsyncpa [#allocation5], 1 }
 0xd84   :  { %15161 = vsyncpa [#allocation8], 1 }
 0xd85   :  { %15162 = vsyncpa [#allocation11], 1 }
 0xd86   :  { %15163 = vsyncpa [#allocation14], 1 }
 0xd87   :  { %15164 = vsyncpa [#allocation17], 1 }
 0xd88   :  { %15165 = vsyncpa [#allocation20], 1 }
 0xd89   :  { %15166 = vsyncpa [#allocation23], 1 }
 0xd8a   :  { %15167 = vsyncpa [#allocation26], 1 }

</bundles_post_ra>
